<compile_context>
chip_gen: v5e
topology: v5e:2x2
jax: 0.10.0
libtpu: 0.0.40
codegen_flags: <defaults>
</compile_context>

<pallas_src>
import functools

import jax
import jax.numpy as jnp
import numpy as np
from jax.experimental import pallas as pl
from jax.experimental.pallas import tpu as pltpu

RGB_PAD = 128      # lane-dense padded rgb channel dim (real channels = 3)
_EPS = 1e-8


# --------------------------------------------------------------------------
# Fused backbone kernel
# --------------------------------------------------------------------------

def _make_fused_kernel(depths, use_bf16):
    """Build the fused kernel body for a static block structure.

    Ref order (inputs):
      coords (1, tp, 2), cond_row (1, 1, Cd), cond_col (1, Cd, 1),
      proj_wT_x (Cd, C0), proj_b_x (1, C0), proj_wT_y (Cd, C0), proj_b_y (1, C0),
      bias_wT (Cd, C0), bias_b (1, C0),
      per block: [per layer: cond_w (cin, Cd), conv_wT (cin, cout), conv_b (1, cout)],
                 rgb_wT_pad (cout, RGB_PAD), rgb_b_pad (1, RGB_PAD)
    Output: rgb_pad (1, tp, RGB_PAD)
    """
    mm_dtype = jnp.bfloat16 if use_bf16 else jnp.float32

    def kernel(*refs):
        out_ref = refs[-1]
        it = iter(refs[:-1])

        coords_ref = next(it)
        cond_row_ref = next(it)
        cond_col_ref = next(it)
        proj_wT_x_ref = next(it)
        proj_b_x_ref = next(it)
        proj_wT_y_ref = next(it)
        proj_b_y_ref = next(it)
        bias_wT_ref = next(it)
        bias_b_ref = next(it)

        c = coords_ref[0]                # (tp, 2)
        cond_row = cond_row_ref[0]       # (1, Cd)
        cond_col = cond_col_ref[0]       # (Cd, 1)

        # ---- stem: projector / bias linears (sublane-reduce) + sin coord map ----
        px = jnp.sum(proj_wT_x_ref[...] * cond_col, axis=0, keepdims=True) + proj_b_x_ref[...]
        py = jnp.sum(proj_wT_y_ref[...] * cond_col, axis=0, keepdims=True) + proj_b_y_ref[...]
        b0 = jnp.sum(bias_wT_ref[...] * cond_col, axis=0, keepdims=True) + bias_b_ref[...]
        # K=2 contraction as two rank-1 VPU updates (avoids a degenerate K=2 matmul)
        h = jnp.sin(c[:, 0:1] * px + c[:, 1:2] * py + b0)         # (tp, C0) f32
        h = h.astype(mm_dtype)

        first_block = True
        for depth in depths:
            for _ in range(depth):
                cond_w_ref = next(it)    # (cin, Cd)
                conv_wT_ref = next(it)   # (cin, cout)
                conv_b_ref = next(it)    # (1, cout)
                # style as a column via lane-reduce: s[i] = sum_k W_cond[i,k]*cond[k]
                s_col = jnp.sum(cond_w_ref[...] * cond_row, axis=1, keepdims=True)
                wT = conv_wT_ref[...]                               # f32 (cin, cout)
                wm = wT * s_col                                     # modulate
                d = jax.lax.rsqrt(jnp.sum(wm * wm, axis=0, keepdims=True) + _EPS)
                wd = (wm * d).astype(mm_dtype)                      # demodulated weight
                y = jnp.dot(h, wd, preferred_element_type=jnp.float32)
                h = (y + conv_b_ref[...]).astype(mm_dtype)          # (tp, cout)
            rgb_wT_ref = next(it)        # (cout, RGB_PAD), zero beyond channel 3
            rgb_b_ref = next(it)         # (1, RGB_PAD), zero beyond channel 3
            r = jnp.dot(h, rgb_wT_ref[...].astype(mm_dtype),
                        preferred_element_type=jnp.float32) + rgb_b_ref[...]
            # accumulate rgb across blocks directly in the (VMEM-resident) output block
            if first_block:
                out_ref[0] = r.astype(out_ref.dtype)
                first_block = False
            else:
                out_ref[0] = out_ref[0] + r.astype(out_ref.dtype)

    return kernel


def _choose_tile_p(p, vmem_budget_bytes=8 * 1024 * 1024):
    """Largest pixel tile (multiple of 128, or full P) fitting a conservative
    VMEM budget (guards v7x's smaller 64 MiB VMEM at larger resolutions)."""
    per_pixel_bytes = 4 * (2 + 2 * RGB_PAD + 4 * RGB_PAD)   # coords + dbuf out + act slack
    cap = max(128, (vmem_budget_bytes // per_pixel_bytes) // 128 * 128)
    if p <= cap:
        return p
    for cand in range(cap, 0, -128):
        if p % cand == 0:
            return cand
    return p


def fused_backbone_pallas(coords, cond_row, cond_col, params, *, use_bf16=False,
                          tile_p=None):
    n, p, _ = coords.shape
    cond_size = cond_row.shape[-1]
    depths = tuple(len(blk['conv_wT']) for blk in params['blocks'])
    tp = tile_p if tile_p is not None else _choose_tile_p(p)
    assert p % tp == 0, "pixel count must be divisible by the pixel tile"

    inputs = [coords, cond_row, cond_col,
              params['proj_wT_x'], params['proj_b_x'],
              params['proj_wT_y'], params['proj_b_y'],
              params['bias_wT'], params['bias_b']]
    in_specs = [
        pl.BlockSpec((1, tp, 2), lambda b, t: (b, t, 0)),
        pl.BlockSpec((1, 1, cond_size), lambda b, t: (b, 0, 0)),
        pl.BlockSpec((1, cond_size, 1), lambda b, t: (b, 0, 0)),
    ]
    for arr in inputs[3:]:
        in_specs.append(pl.BlockSpec(arr.shape, lambda b, t: (0, 0)))

    for blk in params['blocks']:
        for cw, wT, cb in zip(blk['cond_w'], blk['conv_wT'], blk['conv_b']):
            for arr in (cw, wT, cb):
                inputs.append(arr)
                in_specs.append(pl.BlockSpec(arr.shape, lambda b, t: (0, 0)))
        for arr in (blk['rgb_wT_pad'], blk['rgb_b_pad']):
            inputs.append(arr)
            in_specs.append(pl.BlockSpec(arr.shape, lambda b, t: (0, 0)))

    kernel = _make_fused_kernel(depths, use_bf16)

    return pl.pallas_call(
        kernel,
        grid=(n, p // tp),
        in_specs=in_specs,
        out_specs=pl.BlockSpec((1, tp, RGB_PAD), lambda b, t: (b, t, 0)),
        out_shape=jax.ShapeDtypeStruct((n, p, RGB_PAD), jnp.float32),
        compiler_params=pltpu.CompilerParams(
            # batch axis parallel -> v7x's two TensorCores each take samples
            dimension_semantics=("parallel", "parallel"),
            vmem_limit_bytes=32 * 1024 * 1024),
    )(*inputs)


# --------------------------------------------------------------------------
# Parameter init (synthetic, deterministic) — weights stored pre-transposed
# --------------------------------------------------------------------------

def init_params(key, base_channels, cond_size, channel_factors, block_depth):
    ks = iter(jax.random.split(key, 128))

    def nrm(shape, scale):
        return scale * jax.random.normal(next(ks), shape, jnp.float32)

    c0 = base_channels * channel_factors[0]
    p = {
        'proj_wT_x': nrm((cond_size, c0), 1.0 / np.sqrt(cond_size)),
        'proj_b_x': nrm((1, c0), 0.1),
        'proj_wT_y': nrm((cond_size, c0), 1.0 / np.sqrt(cond_size)),
        'proj_b_y': nrm((1, c0), 0.1),
        'bias_wT': nrm((cond_size, c0), 1.0 / np.sqrt(cond_size)),
        'bias_b': nrm((1, c0), 0.1),
        'blocks': [],
    }
    for in_f, out_f in zip(channel_factors[:-1], channel_factors[1:]):
        cin = in_f * base_channels
        cout_final = out_f * base_channels
        blk = {'cond_w': [], 'conv_wT': [], 'conv_b': []}
        lr_cond = float(np.sqrt(2.0 / cond_size))   # lr_equal scaling, folded in
        for j in range(block_depth):
            co = cin if j < block_depth - 1 else cout_final
            blk['cond_w'].append(nrm((cin, cond_size), lr_cond))     # original (cin, Cd)
            blk['conv_wT'].append(nrm((cin, co), 1.0 / np.sqrt(cin)))  # pre-transposed
            blk['conv_b'].append(nrm((1, co), 0.1))
        lr_rgb = float(np.sqrt(2.0 / cout_final))   # lr_equal on the rgb conv
        rgb_wT = nrm((cout_final, 3), lr_rgb)
        rgb_b = nrm((1, 3), 0.1)
        blk['rgb_wT_pad'] = jnp.pad(rgb_wT, ((0, 0), (0, RGB_PAD - 3)))
        blk['rgb_b_pad'] = jnp.pad(rgb_b, ((0, 0), (0, RGB_PAD - 3)))
        # TODO(synk): noise_scale_{j} params are unused in the reference forward
        # (dead noise branch) -> not materialized.
        p['blocks'].append(blk)
    return p


# --------------------------------------------------------------------------
# Forward pass (glue in JAX, everything hot in one Pallas call)
# --------------------------------------------------------------------------

def forward(params, coordinates, condition, *, use_bf16=False, tile_p=None):
    n, _, hh, ww = coordinates.shape
    p = hh * ww
    coords = coordinates.transpose(0, 2, 3, 1).reshape(n, p, 2).astype(jnp.float32)
    cond = condition.astype(jnp.float32)
    cond_row = cond.reshape(n, 1, -1)
    cond_col = cond.reshape(n, -1, 1)
    rgb_pad = fused_backbone_pallas(coords, cond_row, cond_col, params,
                                    use_bf16=use_bf16, tile_p=tile_p)
    rgb = rgb_pad[..., :3]
    return rgb.reshape(n, hh, ww, 3).transpose(0, 3, 1, 2)     # NCHW out


# --------------------------------------------------------------------------
# Pure-JAX reference (correctness check only)
# --------------------------------------------------------------------------

def reference_forward(params, coordinates, condition):
    n, _, hh, ww = coordinates.shape
    coords = coordinates.transpose(0, 2, 3, 1).reshape(n, -1, 2)
    px = condition @ params['proj_wT_x'] + params['proj_b_x']
    py = condition @ params['proj_wT_y'] + params['proj_b_y']
    b0 = condition @ params['bias_wT'] + params['bias_b']
    out = jnp.sin(coords[..., 0:1] * px[:, None, :]
                  + coords[..., 1:2] * py[:, None, :] + b0[:, None, :])
    rgb = 0.0
    for blk in params['blocks']:
        hcur = out
        for cw, wT, cb in zip(blk['cond_w'], blk['conv_wT'], blk['conv_b']):
            s = condition @ cw.T                                   # (N, cin)
            wm = wT[None] * s[:, :, None]                          # (N, cin, cout)
            d = jax.lax.rsqrt(jnp.sum(wm * wm, axis=1, keepdims=True) + _EPS)
            wd = wm * d
            hcur = jnp.einsum('npi,nio->npo', hcur, wd) + cb[None]
        out = hcur
        rgb = rgb + (jnp.einsum('npi,io->npo', hcur, blk['rgb_wT_pad']) + blk['rgb_b_pad'])
    rgb = rgb[..., :3]
    return rgb.reshape(n, hh, ww, 3).transpose(0, 3, 1, 2)


# --------------------------------------------------------------------------

if __name__ == "__main__":
    base_channels = 32
    cond_size = 64
    channel_factors = [1, 2, 4]
    block_depth = 2
    N, H, W = 2, 16, 16

    key = jax.random.PRNGKey(0)
    kparams, kcond = jax.random.split(key)
    params = init_params(kparams, base_channels, cond_size, channel_factors, block_depth)

    ys, xs = jnp.meshgrid(jnp.linspace(-1.0, 1.0, H), jnp.linspace(-1.0, 1.0, W),
                          indexing='ij')
    grid2 = jnp.stack([xs, ys], axis=0)                                 # (2, H, W)
    coordinates = jnp.broadcast_to(grid2, (N, 2, H, W)).astype(jnp.float32)
    condition = jax.random.normal(kcond, (N, cond_size), jnp.float32)

    ref = reference_forward(params, coordinates, condition)

    # f32 path
    fwd_f32 = jax.jit(functools.partial(forward, use_bf16=False))
    rgb = fwd_f32(params, coordinates, condition)
    jax.block_until_ready(rgb)
    assert rgb.shape == (N, 3, H, W)
    np.testing.assert_allclose(np.asarray(rgb), np.asarray(ref), rtol=5e-2, atol=5e-3)

    # bf16 MXU path (v6e/v7x perf path) — sanity tolerance only
    fwd_bf16 = jax.jit(functools.partial(forward, use_bf16=True))
    rgb_bf16 = fwd_bf16(params, coordinates, condition)
    jax.block_until_ready(rgb_bf16)
    np.testing.assert_allclose(np.asarray(rgb_bf16), np.asarray(ref), rtol=2e-1, atol=1e-1)

    print("KERNEL_OK")
</pallas_src>

<mosaic_0001>
module attributes {stable_mosaic.version = 11 : i64} {
  func.func @kernel(%arg0: i32, %arg1: i32, %arg2: memref<1x256x2xf32, #tpu.memory_space<vmem>>, %arg3: memref<1x1x64xf32, #tpu.memory_space<vmem>>, %arg4: memref<1x64x1xf32, #tpu.memory_space<vmem>>, %arg5: memref<64x32xf32, #tpu.memory_space<vmem>>, %arg6: memref<1x32xf32, #tpu.memory_space<vmem>>, %arg7: memref<64x32xf32, #tpu.memory_space<vmem>>, %arg8: memref<1x32xf32, #tpu.memory_space<vmem>>, %arg9: memref<64x32xf32, #tpu.memory_space<vmem>>, %arg10: memref<1x32xf32, #tpu.memory_space<vmem>>, %arg11: memref<32x64xf32, #tpu.memory_space<vmem>>, %arg12: memref<32x32xf32, #tpu.memory_space<vmem>>, %arg13: memref<1x32xf32, #tpu.memory_space<vmem>>, %arg14: memref<32x64xf32, #tpu.memory_space<vmem>>, %arg15: memref<32x64xf32, #tpu.memory_space<vmem>>, %arg16: memref<1x64xf32, #tpu.memory_space<vmem>>, %arg17: memref<64x128xf32, #tpu.memory_space<vmem>>, %arg18: memref<1x128xf32, #tpu.memory_space<vmem>>, %arg19: memref<64x64xf32, #tpu.memory_space<vmem>>, %arg20: memref<64x64xf32, #tpu.memory_space<vmem>>, %arg21: memref<1x64xf32, #tpu.memory_space<vmem>>, %arg22: memref<64x64xf32, #tpu.memory_space<vmem>>, %arg23: memref<64x128xf32, #tpu.memory_space<vmem>>, %arg24: memref<1x128xf32, #tpu.memory_space<vmem>>, %arg25: memref<128x128xf32, #tpu.memory_space<vmem>>, %arg26: memref<1x128xf32, #tpu.memory_space<vmem>>, %arg27: memref<1x256x128xf32, #tpu.memory_space<vmem>>) attributes {dimension_semantics = [#tpu.dimension_semantics<parallel>, #tpu.dimension_semantics<parallel>], iteration_bounds = array<i64: 2, 1>, scalar_prefetch = 0 : i64, scratch_operands = 0 : i64, tpu.core_type = #tpu.core_type<tc>, window_params = [{transform_indices = @transform_0, window_bounds = array<i64: 1, 256, 2>}, {transform_indices = @transform_1, window_bounds = array<i64: 1, 1, 64>}, {transform_indices = @transform_2, window_bounds = array<i64: 1, 64, 1>}, {pipeline_mode = #tpu.pipeline_mode<synchronous>, transform_indices = @transform_3, window_bounds = array<i64: 64, 32>}, {pipeline_mode = #tpu.pipeline_mode<synchronous>, transform_indices = @transform_4, window_bounds = array<i64: 1, 32>}, {pipeline_mode = #tpu.pipeline_mode<synchronous>, transform_indices = @transform_5, window_bounds = array<i64: 64, 32>}, {pipeline_mode = #tpu.pipeline_mode<synchronous>, transform_indices = @transform_6, window_bounds = array<i64: 1, 32>}, {pipeline_mode = #tpu.pipeline_mode<synchronous>, transform_indices = @transform_7, window_bounds = array<i64: 64, 32>}, {pipeline_mode = #tpu.pipeline_mode<synchronous>, transform_indices = @transform_8, window_bounds = array<i64: 1, 32>}, {pipeline_mode = #tpu.pipeline_mode<synchronous>, transform_indices = @transform_9, window_bounds = array<i64: 32, 64>}, {pipeline_mode = #tpu.pipeline_mode<synchronous>, transform_indices = @transform_10, window_bounds = array<i64: 32, 32>}, {pipeline_mode = #tpu.pipeline_mode<synchronous>, transform_indices = @transform_11, window_bounds = array<i64: 1, 32>}, {pipeline_mode = #tpu.pipeline_mode<synchronous>, transform_indices = @transform_12, window_bounds = array<i64: 32, 64>}, {pipeline_mode = #tpu.pipeline_mode<synchronous>, transform_indices = @transform_13, window_bounds = array<i64: 32, 64>}, {pipeline_mode = #tpu.pipeline_mode<synchronous>, transform_indices = @transform_14, window_bounds = array<i64: 1, 64>}, {pipeline_mode = #tpu.pipeline_mode<synchronous>, transform_indices = @transform_15, window_bounds = array<i64: 64, 128>}, {pipeline_mode = #tpu.pipeline_mode<synchronous>, transform_indices = @transform_16, window_bounds = array<i64: 1, 128>}, {pipeline_mode = #tpu.pipeline_mode<synchronous>, transform_indices = @transform_17, window_bounds = array<i64: 64, 64>}, {pipeline_mode = #tpu.pipeline_mode<synchronous>, transform_indices = @transform_18, window_bounds = array<i64: 64, 64>}, {pipeline_mode = #tpu.pipeline_mode<synchronous>, transform_indices = @transform_19, window_bounds = array<i64: 1, 64>}, {pipeline_mode = #tpu.pipeline_mode<synchronous>, transform_indices = @transform_20, window_bounds = array<i64: 64, 64>}, {pipeline_mode = #tpu.pipeline_mode<synchronous>, transform_indices = @transform_21, window_bounds = array<i64: 64, 128>}, {pipeline_mode = #tpu.pipeline_mode<synchronous>, transform_indices = @transform_22, window_bounds = array<i64: 1, 128>}, {pipeline_mode = #tpu.pipeline_mode<synchronous>, transform_indices = @transform_23, window_bounds = array<i64: 128, 128>}, {pipeline_mode = #tpu.pipeline_mode<synchronous>, transform_indices = @transform_24, window_bounds = array<i64: 1, 128>}, {transform_indices = @transform_25, window_bounds = array<i64: 1, 256, 128>}]} {
    %c0 = arith.constant 0 : index
    %c0_0 = arith.constant 0 : index
    %c0_1 = arith.constant 0 : index
    %0 = vector.load %arg2[%c0, %c0_0, %c0_1] : memref<1x256x2xf32, #tpu.memory_space<vmem>>, vector<1x256x2xf32>
    %1 = vector.shape_cast %0 : vector<1x256x2xf32> to vector<256x2xf32>
    %c0_2 = arith.constant 0 : index
    %c0_3 = arith.constant 0 : index
    %c0_4 = arith.constant 0 : index
    %2 = vector.load %arg3[%c0_2, %c0_3, %c0_4] : memref<1x1x64xf32, #tpu.memory_space<vmem>>, vector<1x1x64xf32>
    %3 = vector.shape_cast %2 : vector<1x1x64xf32> to vector<1x64xf32>
    %c0_5 = arith.constant 0 : index
    %c0_6 = arith.constant 0 : index
    %c0_7 = arith.constant 0 : index
    %4 = vector.load %arg4[%c0_5, %c0_6, %c0_7] : memref<1x64x1xf32, #tpu.memory_space<vmem>>, vector<1x64x1xf32>
    %5 = vector.shape_cast %4 : vector<1x64x1xf32> to vector<64x1xf32>
    %c0_8 = arith.constant 0 : index
    %c0_9 = arith.constant 0 : index
    %6 = vector.load %arg5[%c0_8, %c0_9] : memref<64x32xf32, #tpu.memory_space<vmem>>, vector<64x32xf32>
    %7 = vector.broadcast %5 : vector<64x1xf32> to vector<64x32xf32>
    %8 = arith.mulf %6, %7 : vector<64x32xf32>
    %cst = arith.constant dense<0.000000e+00> : vector<32xf32>
    %9 = vector.multi_reduction <add>, %8, %cst [0] : vector<64x32xf32> to vector<32xf32>
    %10 = vector.shape_cast %9 : vector<32xf32> to vector<1x32xf32>
    %c0_10 = arith.constant 0 : index
    %c0_11 = arith.constant 0 : index
    %11 = vector.load %arg6[%c0_10, %c0_11] : memref<1x32xf32, #tpu.memory_space<vmem>>, vector<1x32xf32>
    %12 = arith.addf %10, %11 : vector<1x32xf32>
    %c0_12 = arith.constant 0 : index
    %c0_13 = arith.constant 0 : index
    %13 = vector.load %arg7[%c0_12, %c0_13] : memref<64x32xf32, #tpu.memory_space<vmem>>, vector<64x32xf32>
    %14 = vector.broadcast %5 : vector<64x1xf32> to vector<64x32xf32>
    %15 = arith.mulf %13, %14 : vector<64x32xf32>
    %cst_14 = arith.constant dense<0.000000e+00> : vector<32xf32>
    %16 = vector.multi_reduction <add>, %15, %cst_14 [0] : vector<64x32xf32> to vector<32xf32>
    %17 = vector.shape_cast %16 : vector<32xf32> to vector<1x32xf32>
    %c0_15 = arith.constant 0 : index
    %c0_16 = arith.constant 0 : index
    %18 = vector.load %arg8[%c0_15, %c0_16] : memref<1x32xf32, #tpu.memory_space<vmem>>, vector<1x32xf32>
    %19 = arith.addf %17, %18 : vector<1x32xf32>
    %c0_17 = arith.constant 0 : index
    %c0_18 = arith.constant 0 : index
    %20 = vector.load %arg9[%c0_17, %c0_18] : memref<64x32xf32, #tpu.memory_space<vmem>>, vector<64x32xf32>
    %21 = vector.broadcast %5 : vector<64x1xf32> to vector<64x32xf32>
    %22 = arith.mulf %20, %21 : vector<64x32xf32>
    %cst_19 = arith.constant dense<0.000000e+00> : vector<32xf32>
    %23 = vector.multi_reduction <add>, %22, %cst_19 [0] : vector<64x32xf32> to vector<32xf32>
    %24 = vector.shape_cast %23 : vector<32xf32> to vector<1x32xf32>
    %c0_20 = arith.constant 0 : index
    %c0_21 = arith.constant 0 : index
    %25 = vector.load %arg10[%c0_20, %c0_21] : memref<1x32xf32, #tpu.memory_space<vmem>>, vector<1x32xf32>
    %26 = arith.addf %24, %25 : vector<1x32xf32>
    %27 = vector.extract_strided_slice %1 {offsets = [0, 0], sizes = [256, 1], strides = [1, 1]} : vector<256x2xf32> to vector<256x1xf32>
    %28 = vector.broadcast %27 : vector<256x1xf32> to vector<256x32xf32>
    %29 = vector.broadcast %12 : vector<1x32xf32> to vector<256x32xf32>
    %30 = arith.mulf %28, %29 : vector<256x32xf32>
    %31 = vector.extract_strided_slice %1 {offsets = [0, 1], sizes = [256, 1], strides = [1, 1]} : vector<256x2xf32> to vector<256x1xf32>
    %32 = vector.broadcast %31 : vector<256x1xf32> to vector<256x32xf32>
    %33 = vector.broadcast %19 : vector<1x32xf32> to vector<256x32xf32>
    %34 = arith.mulf %32, %33 : vector<256x32xf32>
    %35 = arith.addf %30, %34 : vector<256x32xf32>
    %36 = vector.broadcast %26 : vector<1x32xf32> to vector<256x32xf32>
    %37 = arith.addf %35, %36 : vector<256x32xf32>
    %38 = math.sin %37 : vector<256x32xf32>
    %c0_22 = arith.constant 0 : index
    %c0_23 = arith.constant 0 : index
    %39 = vector.load %arg11[%c0_22, %c0_23] : memref<32x64xf32, #tpu.memory_space<vmem>>, vector<32x64xf32>
    %40 = vector.broadcast %3 : vector<1x64xf32> to vector<32x64xf32>
    %41 = arith.mulf %39, %40 : vector<32x64xf32>
    %cst_24 = arith.constant dense<0.000000e+00> : vector<32xf32>
    %42 = vector.multi_reduction <add>, %41, %cst_24 [1] : vector<32x64xf32> to vector<32xf32>
    %43 = vector.shape_cast %42 : vector<32xf32> to vector<32x1xf32>
    %c0_25 = arith.constant 0 : index
    %c0_26 = arith.constant 0 : index
    %44 = vector.load %arg12[%c0_25, %c0_26] : memref<32x32xf32, #tpu.memory_space<vmem>>, vector<32x32xf32>
    %45 = vector.broadcast %43 : vector<32x1xf32> to vector<32x32xf32>
    %46 = arith.mulf %44, %45 : vector<32x32xf32>
    %47 = arith.mulf %46, %46 : vector<32x32xf32>
    %cst_27 = arith.constant dense<0.000000e+00> : vector<32xf32>
    %48 = vector.multi_reduction <add>, %47, %cst_27 [0] : vector<32x32xf32> to vector<32xf32>
    %49 = vector.shape_cast %48 : vector<32xf32> to vector<1x32xf32>
    %cst_28 = arith.constant 9.99999993E-9 : f32
    %50 = vector.broadcast %cst_28 : f32 to vector<1x32xf32>
    %51 = arith.addf %49, %50 : vector<1x32xf32>
    %52 = math.rsqrt %51 : vector<1x32xf32>
    %53 = vector.broadcast %52 : vector<1x32xf32> to vector<32x32xf32>
    %54 = arith.mulf %46, %53 : vector<32x32xf32>
    %cst_29 = arith.constant dense<0.000000e+00> : vector<256x32xf32>
    %55 = tpu.matmul %38, %54, %cst_29 {dimension_numbers = #tpu.dot_dimension_numbers<[1], [0], [0], [1], [0, 0, 1, 1], [], []>} : vector<256x32xf32>, vector<32x32xf32>, vector<256x32xf32> -> vector<256x32xf32>
    %c0_30 = arith.constant 0 : index
    %c0_31 = arith.constant 0 : index
    %56 = vector.load %arg13[%c0_30, %c0_31] : memref<1x32xf32, #tpu.memory_space<vmem>>, vector<1x32xf32>
    %57 = vector.broadcast %56 : vector<1x32xf32> to vector<256x32xf32>
    %58 = arith.addf %55, %57 : vector<256x32xf32>
    %c0_32 = arith.constant 0 : index
    %c0_33 = arith.constant 0 : index
    %59 = vector.load %arg14[%c0_32, %c0_33] : memref<32x64xf32, #tpu.memory_space<vmem>>, vector<32x64xf32>
    %60 = vector.broadcast %3 : vector<1x64xf32> to vector<32x64xf32>
    %61 = arith.mulf %59, %60 : vector<32x64xf32>
    %cst_34 = arith.constant dense<0.000000e+00> : vector<32xf32>
    %62 = vector.multi_reduction <add>, %61, %cst_34 [1] : vector<32x64xf32> to vector<32xf32>
    %63 = vector.shape_cast %62 : vector<32xf32> to vector<32x1xf32>
    %c0_35 = arith.constant 0 : index
    %c0_36 = arith.constant 0 : index
    %64 = vector.load %arg15[%c0_35, %c0_36] : memref<32x64xf32, #tpu.memory_space<vmem>>, vector<32x64xf32>
    %65 = vector.broadcast %63 : vector<32x1xf32> to vector<32x64xf32>
    %66 = arith.mulf %64, %65 : vector<32x64xf32>
    %67 = arith.mulf %66, %66 : vector<32x64xf32>
    %cst_37 = arith.constant dense<0.000000e+00> : vector<64xf32>
    %68 = vector.multi_reduction <add>, %67, %cst_37 [0] : vector<32x64xf32> to vector<64xf32>
    %69 = vector.shape_cast %68 : vector<64xf32> to vector<1x64xf32>
    %cst_38 = arith.constant 9.99999993E-9 : f32
    %70 = vector.broadcast %cst_38 : f32 to vector<1x64xf32>
    %71 = arith.addf %69, %70 : vector<1x64xf32>
    %72 = math.rsqrt %71 : vector<1x64xf32>
    %73 = vector.broadcast %72 : vector<1x64xf32> to vector<32x64xf32>
    %74 = arith.mulf %66, %73 : vector<32x64xf32>
    %cst_39 = arith.constant dense<0.000000e+00> : vector<256x64xf32>
    %75 = tpu.matmul %58, %74, %cst_39 {dimension_numbers = #tpu.dot_dimension_numbers<[1], [0], [0], [1], [0, 0, 1, 1], [], []>} : vector<256x32xf32>, vector<32x64xf32>, vector<256x64xf32> -> vector<256x64xf32>
    %c0_40 = arith.constant 0 : index
    %c0_41 = arith.constant 0 : index
    %76 = vector.load %arg16[%c0_40, %c0_41] : memref<1x64xf32, #tpu.memory_space<vmem>>, vector<1x64xf32>
    %77 = vector.broadcast %76 : vector<1x64xf32> to vector<256x64xf32>
    %78 = arith.addf %75, %77 : vector<256x64xf32>
    %c0_42 = arith.constant 0 : index
    %c0_43 = arith.constant 0 : index
    %79 = vector.load %arg17[%c0_42, %c0_43] : memref<64x128xf32, #tpu.memory_space<vmem>>, vector<64x128xf32>
    %cst_44 = arith.constant dense<0.000000e+00> : vector<256x128xf32>
    %80 = tpu.matmul %78, %79, %cst_44 {dimension_numbers = #tpu.dot_dimension_numbers<[1], [0], [0], [1], [0, 0, 1, 1], [], []>} : vector<256x64xf32>, vector<64x128xf32>, vector<256x128xf32> -> vector<256x128xf32>
    %c0_45 = arith.constant 0 : index
    %c0_46 = arith.constant 0 : index
    %81 = vector.load %arg18[%c0_45, %c0_46] : memref<1x128xf32, #tpu.memory_space<vmem>>, vector<1x128xf32>
    %82 = vector.broadcast %81 : vector<1x128xf32> to vector<256x128xf32>
    %83 = arith.addf %80, %82 : vector<256x128xf32>
    %c0_47 = arith.constant 0 : index
    %c0_48 = arith.constant 0 : index
    %c0_49 = arith.constant 0 : index
    %84 = vector.load %arg27[%c0_47, %c0_48, %c0_49] : memref<1x256x128xf32, #tpu.memory_space<vmem>>, vector<1x256x128xf32>
    %85 = vector.shape_cast %84 : vector<1x256x128xf32> to vector<256x128xf32>
    %86 = vector.shape_cast %83 : vector<256x128xf32> to vector<1x256x128xf32>
    tpu.vector_store %arg27[%c0_47, %c0_48, %c0_49], %86 {strides = array<i32>} : memref<1x256x128xf32, #tpu.memory_space<vmem>>, vector<1x256x128xf32>,
    %c0_50 = arith.constant 0 : index
    %c0_51 = arith.constant 0 : index
    %87 = vector.load %arg19[%c0_50, %c0_51] : memref<64x64xf32, #tpu.memory_space<vmem>>, vector<64x64xf32>
    %88 = vector.broadcast %3 : vector<1x64xf32> to vector<64x64xf32>
    %89 = arith.mulf %87, %88 : vector<64x64xf32>
    %cst_52 = arith.constant dense<0.000000e+00> : vector<64xf32>
    %90 = vector.multi_reduction <add>, %89, %cst_52 [1] : vector<64x64xf32> to vector<64xf32>
    %91 = vector.shape_cast %90 : vector<64xf32> to vector<64x1xf32>
    %c0_53 = arith.constant 0 : index
    %c0_54 = arith.constant 0 : index
    %92 = vector.load %arg20[%c0_53, %c0_54] : memref<64x64xf32, #tpu.memory_space<vmem>>, vector<64x64xf32>
    %93 = vector.broadcast %91 : vector<64x1xf32> to vector<64x64xf32>
    %94 = arith.mulf %92, %93 : vector<64x64xf32>
    %95 = arith.mulf %94, %94 : vector<64x64xf32>
    %cst_55 = arith.constant dense<0.000000e+00> : vector<64xf32>
    %96 = vector.multi_reduction <add>, %95, %cst_55 [0] : vector<64x64xf32> to vector<64xf32>
    %97 = vector.shape_cast %96 : vector<64xf32> to vector<1x64xf32>
    %cst_56 = arith.constant 9.99999993E-9 : f32
    %98 = vector.broadcast %cst_56 : f32 to vector<1x64xf32>
    %99 = arith.addf %97, %98 : vector<1x64xf32>
    %100 = math.rsqrt %99 : vector<1x64xf32>
    %101 = vector.broadcast %100 : vector<1x64xf32> to vector<64x64xf32>
    %102 = arith.mulf %94, %101 : vector<64x64xf32>
    %cst_57 = arith.constant dense<0.000000e+00> : vector<256x64xf32>
    %103 = tpu.matmul %78, %102, %cst_57 {dimension_numbers = #tpu.dot_dimension_numbers<[1], [0], [0], [1], [0, 0, 1, 1], [], []>} : vector<256x64xf32>, vector<64x64xf32>, vector<256x64xf32> -> vector<256x64xf32>
    %c0_58 = arith.constant 0 : index
    %c0_59 = arith.constant 0 : index
    %104 = vector.load %arg21[%c0_58, %c0_59] : memref<1x64xf32, #tpu.memory_space<vmem>>, vector<1x64xf32>
    %105 = vector.broadcast %104 : vector<1x64xf32> to vector<256x64xf32>
    %106 = arith.addf %103, %105 : vector<256x64xf32>
    %c0_60 = arith.constant 0 : index
    %c0_61 = arith.constant 0 : index
    %107 = vector.load %arg22[%c0_60, %c0_61] : memref<64x64xf32, #tpu.memory_space<vmem>>, vector<64x64xf32>
    %108 = vector.broadcast %3 : vector<1x64xf32> to vector<64x64xf32>
    %109 = arith.mulf %107, %108 : vector<64x64xf32>
    %cst_62 = arith.constant dense<0.000000e+00> : vector<64xf32>
    %110 = vector.multi_reduction <add>, %109, %cst_62 [1] : vector<64x64xf32> to vector<64xf32>
    %111 = vector.shape_cast %110 : vector<64xf32> to vector<64x1xf32>
    %c0_63 = arith.constant 0 : index
    %c0_64 = arith.constant 0 : index
    %112 = vector.load %arg23[%c0_63, %c0_64] : memref<64x128xf32, #tpu.memory_space<vmem>>, vector<64x128xf32>
    %113 = vector.broadcast %111 : vector<64x1xf32> to vector<64x128xf32>
    %114 = arith.mulf %112, %113 : vector<64x128xf32>
    %115 = arith.mulf %114, %114 : vector<64x128xf32>
    %cst_65 = arith.constant dense<0.000000e+00> : vector<128xf32>
    %116 = vector.multi_reduction <add>, %115, %cst_65 [0] : vector<64x128xf32> to vector<128xf32>
    %117 = vector.shape_cast %116 : vector<128xf32> to vector<1x128xf32>
    %cst_66 = arith.constant 9.99999993E-9 : f32
    %118 = vector.broadcast %cst_66 : f32 to vector<1x128xf32>
    %119 = arith.addf %117, %118 : vector<1x128xf32>
    %120 = math.rsqrt %119 : vector<1x128xf32>
    %121 = vector.broadcast %120 : vector<1x128xf32> to vector<64x128xf32>
    %122 = arith.mulf %114, %121 : vector<64x128xf32>
    %cst_67 = arith.constant dense<0.000000e+00> : vector<256x128xf32>
    %123 = tpu.matmul %106, %122, %cst_67 {dimension_numbers = #tpu.dot_dimension_numbers<[1], [0], [0], [1], [0, 0, 1, 1], [], []>} : vector<256x64xf32>, vector<64x128xf32>, vector<256x128xf32> -> vector<256x128xf32>
    %c0_68 = arith.constant 0 : index
    %c0_69 = arith.constant 0 : index
    %124 = vector.load %arg24[%c0_68, %c0_69] : memref<1x128xf32, #tpu.memory_space<vmem>>, vector<1x128xf32>
    %125 = vector.broadcast %124 : vector<1x128xf32> to vector<256x128xf32>
    %126 = arith.addf %123, %125 : vector<256x128xf32>
    %c0_70 = arith.constant 0 : index
    %c0_71 = arith.constant 0 : index
    %127 = vector.load %arg25[%c0_70, %c0_71] : memref<128x128xf32, #tpu.memory_space<vmem>>, vector<128x128xf32>
    %cst_72 = arith.constant dense<0.000000e+00> : vector<256x128xf32>
    %128 = tpu.matmul %126, %127, %cst_72 {dimension_numbers = #tpu.dot_dimension_numbers<[1], [0], [0], [1], [0, 0, 1, 1], [], []>} : vector<256x128xf32>, vector<128x128xf32>, vector<256x128xf32> -> vector<256x128xf32>
    %c0_73 = arith.constant 0 : index
    %c0_74 = arith.constant 0 : index
    %129 = vector.load %arg26[%c0_73, %c0_74] : memref<1x128xf32, #tpu.memory_space<vmem>>, vector<1x128xf32>
    %130 = vector.broadcast %129 : vector<1x128xf32> to vector<256x128xf32>
    %131 = arith.addf %128, %130 : vector<256x128xf32>
    %c0_75 = arith.constant 0 : index
    %c0_76 = arith.constant 0 : index
    %c0_77 = arith.constant 0 : index
    %132 = vector.load %arg27[%c0_75, %c0_76, %c0_77] : memref<1x256x128xf32, #tpu.memory_space<vmem>>, vector<1x256x128xf32>
    %133 = vector.shape_cast %132 : vector<1x256x128xf32> to vector<256x128xf32>
    %134 = arith.addf %133, %131 : vector<256x128xf32>
    %c0_78 = arith.constant 0 : index
    %c0_79 = arith.constant 0 : index
    %c0_80 = arith.constant 0 : index
    %135 = vector.load %arg27[%c0_78, %c0_79, %c0_80] : memref<1x256x128xf32, #tpu.memory_space<vmem>>, vector<1x256x128xf32>
    %136 = vector.shape_cast %135 : vector<1x256x128xf32> to vector<256x128xf32>
    %137 = vector.shape_cast %134 : vector<256x128xf32> to vector<1x256x128xf32>
    tpu.vector_store %arg27[%c0_78, %c0_79, %c0_80], %137 {strides = array<i32>} : memref<1x256x128xf32, #tpu.memory_space<vmem>>, vector<1x256x128xf32>,
    return
  }
  func.func @transform_0(%arg0: i32, %arg1: i32) -> (i32, i32, i32) {
    %c0_i32 = arith.constant 0 : i32
    %c0_i32_0 = arith.constant 0 : i32
    return %arg0, %arg1, %c0_i32 : i32, i32, i32
  }
  func.func @transform_1(%arg0: i32, %arg1: i32) -> (i32, i32, i32) {
    %c0_i32 = arith.constant 0 : i32
    %c0_i32_0 = arith.constant 0 : i32
    %c0_i32_1 = arith.constant 0 : i32
    return %arg0, %c0_i32, %c0_i32_0 : i32, i32, i32
  }
  func.func @transform_2(%arg0: i32, %arg1: i32) -> (i32, i32, i32) {
    %c0_i32 = arith.constant 0 : i32
    %c0_i32_0 = arith.constant 0 : i32
    %c0_i32_1 = arith.constant 0 : i32
    return %arg0, %c0_i32, %c0_i32_0 : i32, i32, i32
  }
  func.func @transform_3(%arg0: i32, %arg1: i32) -> (i32, i32) {
    %c0_i32 = arith.constant 0 : i32
    %c0_i32_0 = arith.constant 0 : i32
    %c0_i32_1 = arith.constant 0 : i32
    return %c0_i32, %c0_i32_0 : i32, i32
  }
  func.func @transform_4(%arg0: i32, %arg1: i32) -> (i32, i32) {
    %c0_i32 = arith.constant 0 : i32
    %c0_i32_0 = arith.constant 0 : i32
    %c0_i32_1 = arith.constant 0 : i32
    return %c0_i32, %c0_i32_0 : i32, i32
  }
  func.func @transform_5(%arg0: i32, %arg1: i32) -> (i32, i32) {
    %c0_i32 = arith.constant 0 : i32
    %c0_i32_0 = arith.constant 0 : i32
    %c0_i32_1 = arith.constant 0 : i32
    return %c0_i32, %c0_i32_0 : i32, i32
  }
  func.func @transform_6(%arg0: i32, %arg1: i32) -> (i32, i32) {
    %c0_i32 = arith.constant 0 : i32
    %c0_i32_0 = arith.constant 0 : i32
    %c0_i32_1 = arith.constant 0 : i32
    return %c0_i32, %c0_i32_0 : i32, i32
  }
  func.func @transform_7(%arg0: i32, %arg1: i32) -> (i32, i32) {
    %c0_i32 = arith.constant 0 : i32
    %c0_i32_0 = arith.constant 0 : i32
    %c0_i32_1 = arith.constant 0 : i32
    return %c0_i32, %c0_i32_0 : i32, i32
  }
  func.func @transform_8(%arg0: i32, %arg1: i32) -> (i32, i32) {
    %c0_i32 = arith.constant 0 : i32
    %c0_i32_0 = arith.constant 0 : i32
    %c0_i32_1 = arith.constant 0 : i32
    return %c0_i32, %c0_i32_0 : i32, i32
  }
  func.func @transform_9(%arg0: i32, %arg1: i32) -> (i32, i32) {
    %c0_i32 = arith.constant 0 : i32
    %c0_i32_0 = arith.constant 0 : i32
    %c0_i32_1 = arith.constant 0 : i32
    return %c0_i32, %c0_i32_0 : i32, i32
  }
  func.func @transform_10(%arg0: i32, %arg1: i32) -> (i32, i32) {
    %c0_i32 = arith.constant 0 : i32
    %c0_i32_0 = arith.constant 0 : i32
    %c0_i32_1 = arith.constant 0 : i32
    return %c0_i32, %c0_i32_0 : i32, i32
  }
  func.func @transform_11(%arg0: i32, %arg1: i32) -> (i32, i32) {
    %c0_i32 = arith.constant 0 : i32
    %c0_i32_0 = arith.constant 0 : i32
    %c0_i32_1 = arith.constant 0 : i32
    return %c0_i32, %c0_i32_0 : i32, i32
  }
  func.func @transform_12(%arg0: i32, %arg1: i32) -> (i32, i32) {
    %c0_i32 = arith.constant 0 : i32
    %c0_i32_0 = arith.constant 0 : i32
    %c0_i32_1 = arith.constant 0 : i32
    return %c0_i32, %c0_i32_0 : i32, i32
  }
  func.func @transform_13(%arg0: i32, %arg1: i32) -> (i32, i32) {
    %c0_i32 = arith.constant 0 : i32
    %c0_i32_0 = arith.constant 0 : i32
    %c0_i32_1 = arith.constant 0 : i32
    return %c0_i32, %c0_i32_0 : i32, i32
  }
  func.func @transform_14(%arg0: i32, %arg1: i32) -> (i32, i32) {
    %c0_i32 = arith.constant 0 : i32
    %c0_i32_0 = arith.constant 0 : i32
    %c0_i32_1 = arith.constant 0 : i32
    return %c0_i32, %c0_i32_0 : i32, i32
  }
  func.func @transform_15(%arg0: i32, %arg1: i32) -> (i32, i32) {
    %c0_i32 = arith.constant 0 : i32
    %c0_i32_0 = arith.constant 0 : i32
    %c0_i32_1 = arith.constant 0 : i32
    return %c0_i32, %c0_i32_0 : i32, i32
  }
  func.func @transform_16(%arg0: i32, %arg1: i32) -> (i32, i32) {
    %c0_i32 = arith.constant 0 : i32
    %c0_i32_0 = arith.constant 0 : i32
    %c0_i32_1 = arith.constant 0 : i32
    return %c0_i32, %c0_i32_0 : i32, i32
  }
  func.func @transform_17(%arg0: i32, %arg1: i32) -> (i32, i32) {
    %c0_i32 = arith.constant 0 : i32
    %c0_i32_0 = arith.constant 0 : i32
    %c0_i32_1 = arith.constant 0 : i32
    return %c0_i32, %c0_i32_0 : i32, i32
  }
  func.func @transform_18(%arg0: i32, %arg1: i32) -> (i32, i32) {
    %c0_i32 = arith.constant 0 : i32
    %c0_i32_0 = arith.constant 0 : i32
    %c0_i32_1 = arith.constant 0 : i32
    return %c0_i32, %c0_i32_0 : i32, i32
  }
  func.func @transform_19(%arg0: i32, %arg1: i32) -> (i32, i32) {
    %c0_i32 = arith.constant 0 : i32
    %c0_i32_0 = arith.constant 0 : i32
    %c0_i32_1 = arith.constant 0 : i32
    return %c0_i32, %c0_i32_0 : i32, i32
  }
  func.func @transform_20(%arg0: i32, %arg1: i32) -> (i32, i32) {
    %c0_i32 = arith.constant 0 : i32
    %c0_i32_0 = arith.constant 0 : i32
    %c0_i32_1 = arith.constant 0 : i32
    return %c0_i32, %c0_i32_0 : i32, i32
  }
  func.func @transform_21(%arg0: i32, %arg1: i32) -> (i32, i32) {
    %c0_i32 = arith.constant 0 : i32
    %c0_i32_0 = arith.constant 0 : i32
    %c0_i32_1 = arith.constant 0 : i32
    return %c0_i32, %c0_i32_0 : i32, i32
  }
  func.func @transform_22(%arg0: i32, %arg1: i32) -> (i32, i32) {
    %c0_i32 = arith.constant 0 : i32
    %c0_i32_0 = arith.constant 0 : i32
    %c0_i32_1 = arith.constant 0 : i32
    return %c0_i32, %c0_i32_0 : i32, i32
  }
  func.func @transform_23(%arg0: i32, %arg1: i32) -> (i32, i32) {
    %c0_i32 = arith.constant 0 : i32
    %c0_i32_0 = arith.constant 0 : i32
    %c0_i32_1 = arith.constant 0 : i32
    return %c0_i32, %c0_i32_0 : i32, i32
  }
  func.func @transform_24(%arg0: i32, %arg1: i32) -> (i32, i32) {
    %c0_i32 = arith.constant 0 : i32
    %c0_i32_0 = arith.constant 0 : i32
    %c0_i32_1 = arith.constant 0 : i32
    return %c0_i32, %c0_i32_0 : i32, i32
  }
  func.func @transform_25(%arg0: i32, %arg1: i32) -> (i32, i32, i32) {
    %c0_i32 = arith.constant 0 : i32
    %c0_i32_0 = arith.constant 0 : i32
    return %arg0, %arg1, %c0_i32 : i32, i32, i32
  }
}

</mosaic_0001>

<bundles_post_ra>
// kernel: forward.1
= control target key start
LH: loop header
LB: loop body
LE: loop exit
PB: predicated region body
PF: predicated region fallthrough
CT: control target
= control target key end

     0   :  { %s8627_s29 = smov 0   ;;  %s14394_s0 = inlined_call_operand.vmem [shape: f32[2,256,2], index: 0, kind: input, shape index: {}]   ;;  %s14395_s1 = inlined_call_operand.vmem [shape: f32[2,1,64], index: 1, kind: input, shape index: {}]   ;;  %s14396_s2 = inlined_call_operand.vmem [shape: f32[2,64,1], index: 2, kind: input, shape index: {}]   ;;  %s14397_s3 = inlined_call_operand.vmem [shape: f32[64,32], index: 3, kind: input, shape index: {}]   ;;  %s14398_s4 = inlined_call_operand.vmem [shape: f32[1,32], index: 4, kind: input, shape index: {}]   ;;  %s14399_s5 = inlined_call_operand.vmem [shape: f32[64,32], index: 5, kind: input, shape index: {}]   ;;  %s14400_s6 = inlined_call_operand.vmem [shape: f32[1,32], index: 6, kind: input, shape index: {}]   ;;  %s14401_s7 = inlined_call_operand.vmem [shape: f32[64,32], index: 7, kind: input, shape index: {}]   ;;  %s14402_s8 = inlined_call_operand.vmem [shape: f32[1,32], index: 8, kind: input, shape index: {}]   ;;  %s14403_s9 = inlined_call_operand.vmem [shape: f32[32,64], index: 9, kind: input, shape index: {}]   ;;  %s14404_s10 = inlined_call_operand.vmem [shape: f32[32,32], index: 10, kind: input, shape index: {}]   ;;  %s14405_s11 = inlined_call_operand.vmem [shape: f32[1,32], index: 11, kind: input, shape index: {}]   ;;  %s14406_s12 = inlined_call_operand.vmem [shape: f32[32,64], index: 12, kind: input, shape index: {}]   ;;  %s14407_s13 = inlined_call_operand.vmem [shape: f32[32,64], index: 13, kind: input, shape index: {}]   ;;  %s14408_s14 = inlined_call_operand.vmem [shape: f32[1,64], index: 14, kind: input, shape index: {}]   ;;  %s14409_s15 = inlined_call_operand.vmem [shape: f32[64,128], index: 15, kind: input, shape index: {}]   ;;  %s14410_s16 = inlined_call_operand.vmem [shape: f32[1,128], index: 16, kind: input, shape index: {}]   ;;  %s14411_s17 = inlined_call_operand.vmem [shape: f32[64,64], index: 17, kind: input, shape index: {}]   ;;  %s14412_s18 = inlined_call_operand.vmem [shape: f32[64,64], index: 18, kind: input, shape index: {}]   ;;  %s14413_s19 = inlined_call_operand.vmem [shape: f32[1,64], index: 19, kind: input, shape index: {}]   ;;  %s14414_s20 = inlined_call_operand.vmem [shape: f32[64,64], index: 20, kind: input, shape index: {}]   ;;  %s14415_s21 = inlined_call_operand.vmem [shape: f32[64,128], index: 21, kind: input, shape index: {}]   ;;  %s14416_s22 = inlined_call_operand.vmem [shape: f32[1,128], index: 22, kind: input, shape index: {}]   ;;  %s14417_s23 = inlined_call_operand.vmem [shape: f32[128,128], index: 23, kind: input, shape index: {}]   ;;  %s14418_s24 = inlined_call_operand.vmem [shape: f32[1,128], index: 24, kind: input, shape index: {}]   ;;  %s14419_s25 = inlined_call_operand.vmem [shape: f32[2,256,128], index: 25, kind: output, shape index: {}]  }
   0x1   :  { %14564 = sst [smem:[#allocation40_spill]] %s14394_s0 }
   0x2   :  { %14565 = sst [smem:[#allocation41_spill]] %s14395_s1 }
   0x3   :  { %14566 = sst [smem:[#allocation42_spill]] %s14396_s2  ;;  %s8629_s2 = smov 0  }
   0x4   :  { %14567 = sst [smem:[#allocation43_spill]] %s14397_s3 }
   0x5   :  { %14568 = sst [smem:[#allocation44_spill]] %s14398_s4 }
   0x6   :  { %14569 = sst [smem:[#allocation45_spill]] %s14399_s5 }
   0x7   :  { %14570 = sst [smem:[#allocation46_spill]] %s14400_s6  ;;  %s8631_s6 = smov 0  }
   0x8   :  { %14571 = sst [smem:[#allocation47_spill]] %s14401_s7 }
   0x9   :  { %14572 = sst [smem:[#allocation48_spill]] %s14402_s8 }
   0xa   :  { %14573 = sst [smem:[#allocation49_spill]] %s14403_s9 }
   0xb   :  { %14574 = sst [smem:[#allocation50_spill]] %s14419_s25 }
   0xc LB: > { %14575 = sst [smem:[#allocation2_spill]] %s8483_s2  ;;  %s47_s30 = sadd.s32 1, %s8483_s2  ;;  %s8487_s6 = sphi %s8631_s6, %s35_s6   ;;  %s8483_s2 = sphi %s8629_s2, %s14837_s2   ;;  %s8479_s29 = sphi %s8627_s29, %s14836_s29  }
   0xd   : > { %14576 = sst [smem:[#allocation3_spill]] %s8487_s6  ;;  %p8090_p0 = scmp.ge.s32.totalorder %s8487_s6, 1 }
   0xe   : > { %p49_p1 = scmp.ge.s32.totalorder %s47_s30, 2  ;;  %p726_p2 = scmp.lt.s32.totalorder %s8487_s6, 3 }
  0x10   : > { %s14839_s30 = smov (%p49_p1, %s47_s30), 0  ;;  %p727_p3 = pnand %p8090_p0, %p726_p2 }
  0x11   : > { %14577 = sst [smem:[#allocation4_spill]] %s14839_s30 }
  0x12   : > { %730 = sbr.rel (%p727_p3) target bundleno = 2301 (0x8fd), region = 120 }
  0x17   : > { %p811_p4 = scmp.lt.s32.totalorder %s8479_s29, 1  ;;  %v14429_v0 = vmov 0   ;;  %s14578_s1 = sld [smem:[#allocation42_spill]]  ;;  %v8490_v11 = vmov 1   ;;  %vm6427_vm0 = vcmask 523264   ;;  %vm935_vm1 = vcmask 261120  }
  0x18   : > { %8408 = vset.pattern.permute.xlu2 %v14429_v0  ;;  %8407 = vset.pattern.permute.xlu1 %v14429_v0  ;;  %s14579_s28 = sld [smem:[#allocation41_spill]] }
  0x19   : > { %8406 = vset.pattern.permute.xlu0 %v14429_v0  ;;  %s14841_s29 = smov (!%p811_p4, %s8479_s29), 1  ;;  %s14580_s3 = sld [smem:[#allocation40_spill]] }
  0x1a   : > { %s8356_s7 = sshll.u32 %s14841_s29, 6  ;;  %s14424_s5 = sshll.u32 %s14841_s29, 8 }
  0x1b   : > { %s14581_s27 = sld [smem:[#allocation49_spill]]  ;;  %s14833_s25 = sshll.u32 %s14841_s29, 8 }
  0x1c   : > { %s14587_s2 = sld [smem:[#allocation48_spill]] }
  0x1d   : > { %s827_s8 = scalar_lea.vmem %s14578_s1, %s8356_s7  ;;  %s14586_s7 = sld [smem:[#allocation46_spill]] }
  0x1e   : > { %v875_v1 = vld [vmem:[%s827_s8 + $0x20] sm:$0xff]  ;;  %s8658_s9 = scalar_lea.vmem %s14579_s28, %s14841_s29  ;;  %v873_v2 = vld [vmem:[%s827_s8 + $0x10] sm:$0xff]  ;;  %v876_v4 = vld [vmem:[%s827_s8 + $0x28] sm:$0xff]  ;;  %s14582_s28 = sld [smem:[#allocation43_spill]] }
  0x1f   : > { %v871_v3 = vld [vmem:[%s827_s8] sm:$0xff]  ;;  %909 = vperm.xlu2 %8408, %v875_v1   ;;  %899 = vperm.xlu1 %8407, %v873_v2   ;;  %v874_v5 = vld [vmem:[%s827_s8 + $0x18] sm:$0xff]  ;;  %v872_v6 = vld [vmem:[%s827_s8 + $0x8] sm:$0xff]  ;;  %s8666_s26 = scalar_lea.vmem %s14580_s3, %s14424_s5  ;;  %s14583_s3 = sld [smem:[#allocation45_spill]] }
  0x20   : > { %889 = vperm.xlu0 %8406, %v871_v3   ;;  %v878_v7 = vld [vmem:[%s827_s8 + $0x38] sm:$0xff]  ;;  %v838_v8 = vld [vmem:[%s8666_s26] sm:$0xff]  ;;  %v877_v9 = vld [vmem:[%s827_s8 + $0x30] sm:$0xff]  ;;  %s14585_s8 = sld [smem:[#allocation44_spill]] }
  0x21   : > { %v839_v10 = vld [vmem:[%s8666_s26 + $0x8] sm:$0xff]  ;;  %v840_v12 = vld [vmem:[%s8666_s26 + $0x10] sm:$0xff]  ;;  %v841_v14 = vld [vmem:[%s8666_s26 + $0x18] sm:$0xff] }
  0x22   : > { %v843_v13 = vld [vmem:[%s8666_s26 + $0x28] sm:$0xff]  ;;  %v842_v15 = vld [vmem:[%s8666_s26 + $0x20] sm:$0xff]  ;;  %v6418_v17 = vld [vmem:[%s14581_s27 + $0x10] sm:$0xff] }
  0x23   : > { %v8443_v16 = vld [vmem:[%s8658_s9] ss:$0 sm:$0xff]  ;;  %v6417_v20 = vld [vmem:[%s14581_s27 + $0x8] sm:$0xff]  ;;  %v6419_v26 = vld [vmem:[%s14581_s27 + $0x18] sm:$0xff] }
  0x24   : > { %v6425_v18 = vmul.f32 %v8443_v16, %v6418_v17  ;;  %v6416_v19 = vld [vmem:[%s14581_s27] sm:$0xff]  ;;  %v6424_v23 = vmul.f32 %v8443_v16, %v6417_v20  ;;  %v6426_v27 = vmul.f32 %v8443_v16, %v6419_v26  ;;  %v8705_v32 = vld [vmem:[%s8666_s26 + $0x58] sm:$0xff]  ;;  %v844_v33 = vld [vmem:[%s8666_s26 + $0x30] sm:$0xff]  ;;  %s14584_s27 = sld [smem:[#allocation47_spill]] }
  0x25   : > { %v6423_v22 = vmul.f32 %v8443_v16, %v6416_v19  ;;  %v8699_v30 = vld [vmem:[%s8666_s26 + $0x40] sm:$0xff]  ;;  %v881_v42 = vld [vmem:[%s14582_s28 + $0x10] sm:$0xff]  ;;  %v880_v49 = vld [vmem:[%s14582_s28 + $0x8] sm:$0xff] }
  0x26   : > { %v6434_v21 = vsel %vm6427_vm0, %v6425_v18, 0.0  ;;  %v6431_v25 = vsel %vm6427_vm0, %v6424_v23, 0.0  ;;  %v6437_v28 = vsel %vm6427_vm0, %v6426_v27, 0.0  ;;  %v879_v36 = vld [vmem:[%s14582_s28] sm:$0xff]  ;;  %v961_v43 = vld [vmem:[%s14583_s3 + $0x10] sm:$0xff]  ;;  %v960_v51 = vld [vmem:[%s14583_s3 + $0x8] sm:$0xff] }
  0x27   : > { %914 = vperm.xlu2 %8408, %v876_v4   ;;  %904 = vperm.xlu1 %8407, %v874_v5   ;;  %v6428_v24 = vsel %vm6427_vm0, %v6423_v22, 0.0  ;;  %v959_v37 = vld [vmem:[%s14583_s3] sm:$0xff]  ;;  %v8743_v50 = vld [vmem:[%s8666_s26 + $0x70] sm:$0xff]  ;;  %v8752_v53 = vld [vmem:[%s8666_s26 + $0x38] sm:$0xff] }
  0x28   : > { %894 = vperm.xlu0 %8406, %v872_v6   ;;  %v883_v39 = vld [vmem:[%s14582_s28 + $0x20] sm:$0xff]  ;;  %v884_v56 = vld [vmem:[%s14582_s28 + $0x28] sm:$0xff]  ;;  %v882_v58 = vld [vmem:[%s14582_s28 + $0x18] sm:$0xff] }
  0x29   : > { %v963_v40 = vld [vmem:[%s14583_s3 + $0x20] sm:$0xff]  ;;  %v962_v59 = vld [vmem:[%s14583_s3 + $0x18] sm:$0xff]  ;;  %v964_v4 = vld [vmem:[%s14583_s3 + $0x28] sm:$0xff] }
  0x2a   : > { %v998_v38 = vld [vmem:[%s14584_s27] sm:$0xff]  ;;  %v1000_v47 = vld [vmem:[%s14584_s27 + $0x10] sm:$0xff]  ;;  %v999_v52 = vld [vmem:[%s14584_s27 + $0x8] sm:$0xff] }
  0x2b   : > { %v1002_v46 = vld [vmem:[%s14584_s27 + $0x20] sm:$0xff]  ;;  %v1001_v2 = vld [vmem:[%s14584_s27 + $0x18] sm:$0xff] }
  0x2f   : > { %924 = vperm.xlu1 %8407, %v878_v7   ;;  %1039 = vperm.xlu2 %8408, %v838_v8  }
  0x30   : > { %919 = vperm.xlu0 %8406, %v877_v9  }
  0x37   : > { %1044 = vperm.xlu1 %8407, %v839_v10   ;;  %8410 = vset.pattern.permute.xlu2 %v8490_v11 }
  0x38   : > { %8409 = vset.pattern.permute.xlu0 %v8490_v11  ;;  %1235 = vperm.xlu2 %8410, %v839_v10   ;;  %v1003_v10 = vld [vmem:[%s14584_s27 + $0x28] sm:$0xff] }
  0x39   : > { %1231 = vperm.xlu0 %8409, %v838_v8  }
  0x3f   : > { %1049 = vperm.xlu1 %8407, %v840_v12  }
  0x40   : > { %1239 = vperm.xlu2 %8410, %v840_v12  }
  0x41   : > { %1251 = vperm.xlu0 %8409, %v843_v13  }
  0x47   : > { %8411 = vset.pattern.permute.xlu1 %v8490_v11 }
  0x48   : > { %1243 = vperm.xlu1 %8411, %v841_v14   ;;  %8412 = vset.pattern.permute.xlu2 %v14429_v0 }
  0x49   : > { %8413 = vset.pattern.permute.xlu0 %v14429_v0  ;;  %1059 = vperm.xlu2 %8412, %v842_v15  }
  0x4a   : > { %1054 = vperm.xlu0 %8413, %v841_v14  }
  0x50   : > { %1247 = vperm.xlu1 %8411, %v842_v15  }
  0x51   : > { %1064 = vperm.xlu2 %8412, %v843_v13  }
  0x58   : > { %8414 = vset.pattern.permute.xlu1 %v14429_v0 }
  0x59   : > { %8415 = vset.pattern.permute.xlu2 %v8490_v11 }
  0x74   : > { %6435 = vadd.xlane.f32.xlu0 %v6434_v21 }
  0x79   : > { %v910_v29 = vpop.permute.xlu2 %909 }
  0x7a   : > { %6429 = vadd.xlane.f32.xlu1 %v6428_v24  ;;  %6432 = vadd.xlane.f32.xlu2 %v6431_v25  ;;  %v931_v54 = vmul.f32 %v910_v29, %v883_v39  ;;  %v971_v55 = vmul.f32 %v963_v40, %v910_v29  ;;  %v1010_v9 = vmul.f32 %v1002_v46, %v910_v29  ;;  %v886_v40 = vld [vmem:[%s14582_s28 + $0x38] sm:$0xff] }
  0x81   : > { %v8702_v31 = vpop.permute.xlu2 %914 }
  0x82   : > { %6438 = vadd.xlane.f32.xlu2 %v6437_v28  ;;  %v932_v12 = vmul.f32 %v8702_v31, %v884_v56  ;;  %v972_v19 = vmul.f32 %v964_v4, %v8702_v31  ;;  %v1011_v24 = vmul.f32 %v1003_v10, %v8702_v31  ;;  %v943_v28 = vsel %vm935_vm1, %v931_v54, 0.0  ;;  %v1004_v56 = vld [vmem:[%s14584_s27 + $0x30] sm:$0xff] }
  0x84   : > { %v984_v54 = vsel %vm935_vm1, %v972_v19, 0.0 }
  0x88   : > { %1079 = vperm.xlu0 %8413, %v8699_v30  }
  0x89   : > { %v8725_v41 = vpop.permute.xlu2 %1039 }
  0x90   : > { %8418 = vset.pattern.permute.xlu0 %v8490_v11 }
  0x91   : > { %1275 = vperm.xlu0 %8418, %v8705_v32   ;;  %v900_v34 = vpop.permute.xlu1 %899 }
  0x92   : > { %v890_v35 = vpop.permute.xlu0 %889  ;;  %v929_v57 = vmul.f32 %v900_v34, %v881_v42  ;;  %v969_v61 = vmul.f32 %v961_v43, %v900_v34  ;;  %v1008_v62 = vmul.f32 %v1000_v47, %v900_v34  ;;  %v8783_v20 = vpop.permute.xlu2 %1235  ;;  %v1021_v43 = vsel %vm935_vm1, %v1010_v9, 0.0  ;;  %v966_v47 = vld [vmem:[%s14583_s3 + $0x38] sm:$0xff] }
  0x93   : > { %1069 = vperm.xlu1 %8414, %v844_v33   ;;  %v927_v44 = vmul.f32 %v890_v35, %v879_v36  ;;  %v967_v45 = vmul.f32 %v959_v37, %v890_v35  ;;  %v1006_v48 = vmul.f32 %v998_v38, %v890_v35  ;;  %v8791_v35 = vld [vmem:[%s8666_s26 + $0x80] sm:$0xff]  ;;  %v885_v36 = vld [vmem:[%s14582_s28 + $0x30] sm:$0xff]  ;;  %v982_v37 = vsel %vm935_vm1, %v971_v55, 0.0 }
  0x94   : > { %v939_v25 = vsel %vm935_vm1, %v929_v57, 0.0  ;;  %v978_v26 = vsel %vm935_vm1, %v969_v61, 0.0  ;;  %v1017_v27 = vsel %vm935_vm1, %v1008_v62, 0.0  ;;  %v1023_v55 = vsel %vm935_vm1, %v1011_v24, 0.0 }
  0x95   : > { %v936_v63 = vsel %vm935_vm1, %v927_v44, 0.0  ;;  %v975_v1 = vsel %vm935_vm1, %v967_v45, 0.0  ;;  %v1014_v5 = vsel %vm935_vm1, %v1006_v48, 0.0  ;;  %v1005_v48 = vld [vmem:[%s14584_s27 + $0x38] sm:$0xff] }
  0x99   : > { %8421 = vset.pattern.permute.xlu0 %v14429_v0  ;;  %v905_v60 = vpop.permute.xlu1 %904 }
  0x9a   : > { %v895_v3 = vpop.permute.xlu0 %894  ;;  %1109 = vperm.xlu0 %8421, %v8743_v50   ;;  %1255 = vperm.xlu2 %8415, %v844_v33   ;;  %v930_v13 = vmul.f32 %v905_v60, %v882_v58  ;;  %v970_v14 = vmul.f32 %v962_v59, %v905_v60  ;;  %v1009_v15 = vmul.f32 %v1001_v2, %v905_v60 }
  0x9b   : > { %v928_v6 = vmul.f32 %v895_v3, %v880_v49  ;;  %v968_v7 = vmul.f32 %v960_v51, %v895_v3  ;;  %v1007_v8 = vmul.f32 %v999_v52, %v895_v3  ;;  %1074 = vperm.xlu1 %8414, %v8752_v53   ;;  %v965_v49 = vld [vmem:[%s14583_s3 + $0x30] sm:$0xff]  ;;  %v945_v52 = vsel %vm935_vm1, %v932_v12, 0.0 }
  0x9c   : > { %v941_v31 = vsel %vm935_vm1, %v930_v13, 0.0  ;;  %v980_v38 = vsel %vm935_vm1, %v970_v14, 0.0  ;;  %v1019_v39 = vsel %vm935_vm1, %v1009_v15, 0.0 }
  0x9d   : > { %v937_v16 = vsel %vm935_vm1, %v928_v6, 0.0  ;;  %v976_v17 = vsel %vm935_vm1, %v968_v7, 0.0  ;;  %v1015_v18 = vsel %vm935_vm1, %v1007_v8, 0.0  ;;  %v1240_v7 = vpop.permute.xlu2 %1239 }
  0x9e   : > { %v938_v21 = vadd.f32 %v937_v16, %v936_v63  ;;  %v977_v22 = vadd.f32 %v976_v17, %v975_v1  ;;  %v1016_v23 = vadd.f32 %v1015_v18, %v1014_v5  ;;  %v8830_v16 = vld [vmem:[%s8666_s26 + $0x98] sm:$0xff] }
  0xa0   : > { %v940_v29 = vadd.f32 %v939_v25, %v938_v21  ;;  %v979_v33 = vadd.f32 %v978_v26, %v977_v22  ;;  %v1018_v34 = vadd.f32 %v1017_v27, %v1016_v23 }
  0xa1   : > { %v925_v42 = vpop.permute.xlu1 %924 }
  0xa2   : > { %v942_v44 = vadd.f32 %v941_v31, %v940_v29  ;;  %v981_v45 = vadd.f32 %v980_v38, %v979_v33  ;;  %v1020_v46 = vadd.f32 %v1019_v39, %v1018_v34  ;;  %8424 = vset.pattern.permute.xlu0 %v8490_v11  ;;  %v920_v51 = vpop.permute.xlu0 %919  ;;  %1259 = vperm.xlu2 %8415, %v8752_v53  }
  0xa3   : > { %1295 = vperm.xlu0 %8424, %v8791_v35   ;;  %v933_v57 = vmul.f32 %v920_v51, %v885_v36  ;;  %v934_v58 = vmul.f32 %v925_v42, %v886_v40  ;;  %8416 = vset.pattern.permute.xlu1 %v8490_v11  ;;  %v974_v62 = vmul.f32 %v966_v47, %v925_v42  ;;  %v8839_v40 = vld [vmem:[%s8666_s26 + $0xa8] sm:$0xff]  ;;  %v996_v47 = vld [vmem:[%s14586_s7] sm:$0x1] }
  0xa4   : > { %v944_v59 = vadd.f32 %v943_v28, %v942_v44  ;;  %v983_v60 = vadd.f32 %v982_v37, %v981_v45  ;;  %v1022_v61 = vadd.f32 %v1021_v43, %v1020_v46  ;;  %v1013_v63 = vmul.f32 %v1005_v48, %v925_v42  ;;  %1263 = vperm.xlu1 %8416, %v8699_v30   ;;  %v847_v30 = vld [vmem:[%s8666_s26 + $0x48] sm:$0xff]  ;;  %v848_v37 = vld [vmem:[%s8666_s26 + $0x50] sm:$0xff]  ;;  %v957_v46 = vld [vmem:[%s14585_s8] sm:$0x1]  ;;  %s14834_s8 = sld [smem:[#allocation50_spill]] }
  0xa5   : > { %v947_v1 = vsel %vm935_vm1, %v933_v57, 0.0  ;;  %v973_v2 = vmul.f32 %v965_v49, %v920_v51  ;;  %v1012_v5 = vmul.f32 %v1004_v56, %v920_v51  ;;  %v949_v12 = vsel %vm935_vm1, %v934_v58, 0.0  ;;  %v1060_v39 = vpop.permute.xlu2 %1059 }
  0xa6   : > { %v946_v53 = vadd.f32 %v945_v52, %v944_v59  ;;  %v985_v3 = vadd.f32 %v984_v54, %v983_v60  ;;  %v1024_v4 = vadd.f32 %v1023_v55, %v1022_v61  ;;  %v988_v13 = vsel %vm935_vm1, %v974_v62, 0.0  ;;  %v1035_v54 = vld [vmem:[%s14587_s2] sm:$0x1] }
  0xa7   : > { %v986_v6 = vsel %vm935_vm1, %v973_v2, 0.0  ;;  %v1025_v10 = vsel %vm935_vm1, %v1012_v5, 0.0  ;;  %v1027_v17 = vsel %vm935_vm1, %v1013_v63, 0.0  ;;  %v850_v61 = vld [vmem:[%s8666_s26 + $0x60] sm:$0xff] }
  0xa8   : > { %v948_v8 = vadd.f32 %v947_v1, %v946_v53  ;;  %v987_v9 = vadd.f32 %v986_v6, %v985_v3  ;;  %v1026_v14 = vadd.f32 %v1025_v10, %v1024_v4  ;;  %v8864_v3 = vld [vmem:[%s8666_s26 + $0xc0] sm:$0xff] }
  0xa9   : > { %v1045_v15 = vpop.permute.xlu1 %1044 }
  0xaa   : > { %v950_v18 = vadd.f32 %v949_v12, %v948_v8  ;;  %v989_v19 = vadd.f32 %v988_v13, %v987_v9  ;;  %v1028_v21 = vadd.f32 %v1027_v17, %v1026_v14  ;;  %8417 = vset.pattern.permute.xlu2 %v14429_v0  ;;  %s14219_s4 = scalar_lea.vmem %s14834_s8, %s14833_s25 }
  0xab   : > { %8427 = vset.pattern.permute.xlu0 %v14429_v0  ;;  %v1232_v22 = vpop.permute.xlu0 %1231  ;;  %1084 = vperm.xlu2 %8417, %v847_v30  }
  0xac   : > { %v951_v23 = vrot.slane %v950_v18, 4  ;;  %v990_v24 = vrot.slane %v989_v19, 4  ;;  %1134 = vperm.xlu0 %8427, %v8830_v16   ;;  %v1029_v25 = vrot.slane %v1028_v21, 4  ;;  %1267 = vperm.xlu1 %8416, %v847_v30  }
  0xad   : > { %v1065_v2 = vpop.permute.xlu2 %1064 }
  0xae   : > { %v952_v26 = vadd.f32 %v951_v23, %v950_v18  ;;  %v991_v27 = vadd.f32 %v990_v24, %v989_v19  ;;  %v1030_v28 = vadd.f32 %v1029_v25, %v1028_v21  ;;  %v851_v23 = vld [vmem:[%s8666_s26 + $0x68] sm:$0xff] }
  0xb0   : > { %v953_v29 = vrot.slane %v952_v26, 2  ;;  %v992_v33 = vrot.slane %v991_v27, 2  ;;  %v1031_v34 = vrot.slane %v1030_v28, 2 }
  0xb1   : > { %v1050_v36 = vpop.permute.xlu1 %1049 }
  0xb2   : > { %v954_v31 = vadd.f32 %v953_v29, %v952_v26  ;;  %v993_v38 = vadd.f32 %v992_v33, %v991_v27  ;;  %v1032_v42 = vadd.f32 %v1031_v34, %v1030_v28  ;;  %v8899_v27 = vld [vmem:[%s8666_s26 + $0xd0] sm:$0xff] }
  0xb3   : > { %v1252_v43 = vpop.permute.xlu0 %1251  ;;  %1089 = vperm.xlu2 %8417, %v848_v37  }
  0xb4   : > { %v955_v44 = vrot.slane %v954_v31, 1  ;;  %v994_v45 = vrot.slane %v993_v38, 1  ;;  %8430 = vset.pattern.permute.xlu0 %v8490_v11  ;;  %v1033_v48 = vrot.slane %v1032_v42, 1  ;;  %1271 = vperm.xlu1 %8416, %v848_v37  }
  0xb5   : > { %1315 = vperm.xlu0 %8430, %v8839_v40  }
  0xb6   : > { %v956_v49 = vadd.f32 %v955_v44, %v954_v31  ;;  %v995_v51 = vadd.f32 %v994_v45, %v993_v38  ;;  %v1034_v52 = vadd.f32 %v1033_v48, %v1032_v42  ;;  %v8906_v38 = vld [vmem:[%s8666_s26 + $0xe8] sm:$0xff]  ;;  %v14437_v45 = vmov 2475754826  }
  0xb7   : > { %v14439_v48 = vmov 2131351028  }
  0xb8   : > { %v958_v55 = vadd.f32 %v957_v46, %v956_v49  ;;  %v997_v56 = vadd.f32 %v996_v47, %v995_v51  ;;  %v1036_v60 = vadd.f32 %v1035_v54, %v1034_v52  ;;  %v853_v51 = vld [vmem:[%s8666_s26 + $0x78] sm:$0xff] }
  0xba   : > { %v8852_v57 = vperm.slane %v958_v55, 0  ;;  %v8854_v58 = vperm.slane %v997_v56, 0  ;;  %v1244_v59 = vpop.permute.xlu1 %1243  ;;  %v14441_v55 = vmov 2102212464  }
  0xbb   : > { %1094 = vperm.xlu2 %8417, %v8705_v32   ;;  %v8875_v32 = vperm.slane %v1036_v60, 0 }
  0xbc   : > { %v1198_v62 = vmul.f32 %v8852_v57, %v8725_v41  ;;  %v1360_v63 = vmul.f32 %v8854_v58, %v8783_v20  ;;  %v1361_v1 = vmul.f32 %v8854_v58, %v1240_v7  ;;  %v1055_v53 = vpop.permute.xlu0 %1054  ;;  %v1199_v4 = vmul.f32 %v8852_v57, %v1045_v15  ;;  %8419 = vset.pattern.permute.xlu1 %v14429_v0 }
  0xbd   : > { %v1359_v5 = vmul.f32 %v8854_v58, %v1232_v22  ;;  %v1203_v6 = vmul.f32 %v8852_v57, %v1065_v2  ;;  %v1200_v8 = vmul.f32 %v8852_v57, %v1050_v36  ;;  %v1364_v41 = vmul.f32 %v8854_v58, %v1252_v43  ;;  %8433 = vset.pattern.permute.xlu0 %v14429_v0 }
  0xbe   : > { %v1362_v20 = vmul.f32 %v8854_v58, %v1244_v59  ;;  %v1201_v7 = vmul.f32 %v8852_v57, %v1055_v53  ;;  %1099 = vperm.xlu1 %8419, %v850_v61   ;;  %v1392_v9 = vadd.f32 %v1360_v63, %v1199_v4  ;;  %1159 = vperm.xlu0 %8433, %v8864_v3   ;;  %v14431_v43 = vmov 683565275  }
  0xbf   : > { %v1391_v10 = vadd.f32 %v1359_v5, %v1198_v62  ;;  %v8877_v12 = vadd.f32 %v1361_v1, %v1200_v8  ;;  %v8880_v13 = vadd.f32 %v1364_v41, %v1203_v6  ;;  %v1202_v18 = vmul.f32 %v8852_v57, %v1060_v39  ;;  %v869_v8 = vld [vmem:[%s8666_s26 + $0xf8] sm:$0xff] }
  0xc0   : > { %v8882_v14 = vadd.f32 %v1362_v20, %v1201_v7  ;;  %v8885_v15 = vadd.f32 %v8875_v32, %v1392_v9  ;;  %v14445_v62 = vmov 920167782   ;;  %v14443_v4 = vmov 1326507024  }
  0xc1   : > { %v8888_v30 = vadd.f32 %v8875_v32, %v1391_v10 }
  0xc2   : > { %v1248_v17 = vpop.permute.xlu1 %1247  ;;  %v1614_v19 = vand.u32 2139095040, %v8885_v15  ;;  %v1611_v7 = vand.u32 2147483647, %v8885_v15 }
  0xc3   : > { %v1459_v21 = vand.u32 2139095040, %v8888_v30  ;;  %v1363_v22 = vmul.f32 %v8854_v58, %v1248_v17  ;;  %8420 = vset.pattern.permute.xlu2 %v8490_v11  ;;  %v1456_v34 = vand.u32 2147483647, %v8888_v30 }
  0xc4   : > { %v1615_v24 = vshrl.u32 %v1614_v19, 23  ;;  %1279 = vperm.xlu2 %8420, %v850_v61  }
  0xc5   : > { %v1460_v25 = vshrl.u32 %v1459_v21, 23  ;;  %v8896_v26 = vadd.f32 %v1363_v22, %v1202_v18  ;;  %v1463_v42 = vand.u32 8388607, %v1456_v34 }
  0xc6   : > { %1104 = vperm.xlu1 %8419, %v851_v23   ;;  %8436 = vset.pattern.permute.xlu0 %v8490_v11  ;;  %v8100_v29 = vadd.s32 4294967169, %v1615_v24 }
  0xc7   : > { %v8097_v28 = vadd.s32 4294967169, %v1460_v25  ;;  %1335 = vperm.xlu0 %8436, %v8899_v27   ;;  %v1464_v52 = vor.u32 8388608, %v1463_v42  ;;  %v855_v42 = vld [vmem:[%s8666_s26 + $0x88] sm:$0xff] }
  0xc8   : > { %v1621_v37 = vadd.s32 1, %v8100_v29 }
  0xc9   : > { %v1466_v33 = vadd.s32 1, %v8097_v28  ;;  %v8927_v20 = vshll.u32 %v1464_v52, 8 }
  0xca   : > { %vm1622_vm3 = vcmp.gt.s32.totalorder %v1621_v37, 0 }
  0xcb   : > { %vm1467_vm2 = vcmp.gt.s32.totalorder %v1466_v33, 0  ;;  %v1623_v1 = vsel %vm1622_vm3, %v1621_v37, 0  ;;  %v1505_v29 = vand.u32 65535, %v8927_v20 }
  0xcc   : > { %v1468_v36 = vsel %vm1467_vm2, %v1466_v33, 0  ;;  %1283 = vperm.xlu2 %8420, %v851_v23   ;;  %v8930_v9 = vand.u32 31, %v1623_v1  ;;  %v1506_v33 = vshrl.u32 %v8927_v20, 16 }
  0xcd   : > { %v1470_v31 = vand.u32 31, %v1468_v36 }
  0xce   : > { %8422 = vset.pattern.permute.xlu1 %v8490_v11  ;;  %v8949_v52 = vsub.s32 32, %v8930_v9 }
  0xcf   : > { %v1471_v39 = vsub.s32 32, %v1470_v31  ;;  %1287 = vperm.xlu1 %8422, %v8743_v50   ;;  %8439 = vset.pattern.permute.xlu0 %v14429_v0  ;;  %v1473_v44 = vshll.u32 %v14431_v43, %v1470_v31  ;;  %v1476_v47 = vshll.u32 %v14437_v45, %v1470_v31  ;;  %v1469_v50 = vshrl.u32 %v1468_v36, 5 }
  0xd0   : > { %1184 = vperm.xlu0 %8439, %v8906_v38   ;;  %v1479_v54 = vshll.u32 %v14439_v48, %v1470_v31  ;;  %v1482_v61 = vshll.u32 %v14441_v55, %v1470_v31  ;;  %v1485_v53 = vshll.u32 %v14445_v62, %v1470_v31 }
  0xd1   : > { %v1474_v46 = vshrl.u32 %v14437_v45, %v1471_v39  ;;  %v1477_v49 = vshrl.u32 %v14439_v48, %v1471_v39  ;;  %v1480_v56 = vshrl.u32 %v14441_v55, %v1471_v39  ;;  %v1483_v63 = vshrl.u32 %v14445_v62, %v1471_v39 }
  0xd2   : > { %v1486_v5 = vshrl.u32 %v14443_v4, %v1471_v39  ;;  %vm1488_vm4 = vcmp.lt.s32.totalorder %v1469_v50, 1  ;;  %v1472_v10 = vshrl.u32 %v14431_v43, %v1471_v39  ;;  %vm1491_vm5 = vcmp.lt.s32.totalorder %v1469_v50, 4 }
  0xd3   : > { %v1475_v59 = vor.u32 %v1474_v46, %v1473_v44  ;;  %v1478_v60 = vor.u32 %v1477_v49, %v1476_v47  ;;  %v1481_v2 = vor.u32 %v1480_v56, %v1479_v54  ;;  %v1484_v6 = vor.u32 %v1483_v63, %v1482_v61 }
  0xd4   : > { %8423 = vset.pattern.permute.xlu2 %v14429_v0  ;;  %v1487_v41 = vor.u32 %v1486_v5, %v1485_v53  ;;  %vm1490_vm6 = vcmp.lt.s32.totalorder %v1469_v50, 3  ;;  %vm1489_vm7 = vcmp.lt.s32.totalorder %v1469_v50, 2 }
  0xd5   : > { %1114 = vperm.xlu2 %8423, %v853_v51   ;;  %v1496_v17 = vsel %vm1488_vm4, %v1475_v59, %v1478_v60  ;;  %v1497_v18 = vsel %vm1491_vm5, %v1484_v6, 920167782  ;;  %v1500_v19 = vsel %vm1488_vm4, %v1478_v60, %v1481_v2  ;;  %v1493_v22 = vsel %vm1491_vm5, %v1481_v2, 2102212464 }
  0xd6   : > { %v1501_v21 = vsel %vm1491_vm5, %v1487_v41, 1326507024  ;;  %v1498_v23 = vsel %vm1490_vm6, %v1481_v2, %v1497_v18  ;;  %v1492_v44 = vsel %vm1488_vm4, %v1472_v10, %v1475_v59  ;;  %v1494_v46 = vsel %vm1490_vm6, %v1478_v60, %v1493_v22 }
  0xd7   : > { %1291 = vperm.xlu1 %8422, %v853_v51   ;;  %v1502_v24 = vsel %vm1490_vm6, %v1484_v6, %v1501_v21  ;;  %v1499_v25 = vsel %vm1489_vm7, %v1496_v17, %v1498_v23  ;;  %v8946_v51 = vshrl.u32 %v1623_v1, 5  ;;  %v8953_v61 = vsel %vm1489_vm7, %v1492_v44, %v1494_v46  ;;  %v856_v21 = vld [vmem:[%s8666_s26 + $0x90] sm:$0xff] }
  0xd8   : > { %8442 = vset.pattern.permute.xlu0 %v8490_v11  ;;  %v1503_v28 = vsel %vm1489_vm7, %v1500_v19, %v1502_v24  ;;  %v1529_v31 = vand.u32 65535, %v1499_v25  ;;  %v1530_v39 = vshrl.u32 %v1499_v25, 16  ;;  %v1631_v46 = vshll.u32 %v14437_v45, %v8930_v9 }
  0xd9   : > { %1355 = vperm.xlu0 %8442, %v869_v8   ;;  %v1507_v36 = vand.u32 65535, %v1503_v28  ;;  %v1508_v37 = vshrl.u32 %v1503_v28, 16  ;;  %vm1643_vm13 = vcmp.lt.s32.totalorder %v8946_v51, 1  ;;  %vm1645_vm14 = vcmp.lt.s32.totalorder %v8946_v51, 3 }
  0xda   : > { %v1532_v54 = vmul.u32 %v1530_v39, %v1505_v29  ;;  %v1533_v56 = vmul.u32 %v1529_v31, %v1506_v33  ;;  %v1531_v1 = vmul.u32 %v1529_v31, %v1505_v29  ;;  %v1534_v2 = vmul.u32 %v1530_v39, %v1506_v33 }
  0xdb   : > { %v1510_v47 = vmul.u32 %v1508_v37, %v1505_v29  ;;  %v1511_v49 = vmul.u32 %v1507_v36, %v1506_v33  ;;  %v1509_v59 = vmul.u32 %v1507_v36, %v1505_v29  ;;  %v1512_v60 = vmul.u32 %v1508_v37, %v1506_v33 }
  0xdc   : > { %v1535_v53 = vshll.u32 %v1532_v54, 16  ;;  %v1537_v50 = vshll.u32 %v1533_v56, 16  ;;  %v1536_v23 = vshrl.u32 %v1532_v54, 16  ;;  %v1629_v29 = vshrl.u32 %v14437_v45, %v8949_v52 }
  0xdd   : > { %1119 = vperm.xlu2 %8423, %v8791_v35   ;;  %v1513_v63 = vshll.u32 %v1510_v47, 16  ;;  %v8957_v35 = vand.u32 8388607, %v1611_v7  ;;  %v1514_v5 = vshrl.u32 %v1510_v47, 16  ;;  %v1515_v6 = vshll.u32 %v1511_v49, 16 }
  0xde   : > { %vm1539_vm9 = vc.u32 %v1531_v1, %v1535_v53  ;;  %v1541_v10 = vadd.s32 %v1535_v53, %v1531_v1  ;;  %v1516_v17 = vshrl.u32 %v1511_v49, 16  ;;  %v1632_v33 = vshrl.u32 %v14439_v48, %v8949_v52 }
  0xdf   : > { %8425 = vset.pattern.permute.xlu1 %v14429_v0  ;;  %vm1517_vm8 = vc.u32 %v1509_v59, %v1513_v63  ;;  %v1519_v8 = vadd.s32 %v1513_v63, %v1509_v59  ;;  %v1540_v19 = vsel %vm1539_vm9, 1, %v14429_v0  ;;  %v1538_v36 = vshrl.u32 %v1533_v56, 16 }
  0xe0   : > { %1124 = vperm.xlu1 %8425, %v855_v42   ;;  %v1518_v41 = vsel %vm1517_vm8, 1, %v14429_v0  ;;  %v1542_v24 = vadd.s32 %v1540_v19, %v1534_v2  ;;  %vm1543_vm11 = vc.u32 %v1541_v10, %v1537_v50  ;;  %v1628_v31 = vshll.u32 %v14431_v43, %v8930_v9 }
  0xe1   : > { %v1520_v18 = vadd.s32 %v1518_v41, %v1512_v60  ;;  %vm1521_vm10 = vc.u32 %v1519_v8, %v1515_v6  ;;  %v1544_v28 = vsel %vm1543_vm11, 1, %v14429_v0  ;;  %v1635_v39 = vshrl.u32 %v14441_v55, %v8949_v52  ;;  %v6440_v6 = vld [vmem:[%s14404_s10] sm:$0xff]  ;;  %v6441_v8 = vld [vmem:[%s14404_s10 + $0x8] sm:$0xff] }
  0xe2   : > { %v1522_v22 = vsel %vm1521_vm10, 1, %v14429_v0  ;;  %v1546_v37 = vadd.s32 %v1544_v28, %v1542_v24  ;;  %v1637_v47 = vshll.u32 %v14441_v55, %v8930_v9  ;;  %v1638_v49 = vshrl.u32 %v14445_v62, %v8949_v52 }
  0xe3   : > { %v1524_v25 = vadd.s32 %v1522_v22, %v1520_v18  ;;  %v8982_v56 = vadd.s32 %v1541_v10, %v1537_v50  ;;  %v1634_v63 = vshll.u32 %v14439_v48, %v8930_v9  ;;  %v1641_v60 = vshrl.u32 %v14443_v4, %v8949_v52 }
  0xe4   : > { %v1547_v59 = vadd.s32 %v1546_v37, %v1536_v23  ;;  %v8990_v2 = vor.u32 %v1629_v29, %v1628_v31  ;;  %v8992_v53 = vor.u32 %v1632_v33, %v1631_v46  ;;  %v1549_v50 = vmul.u32 %v8927_v20, %v8953_v61 }
  0xe5   : > { %8426 = vset.pattern.permute.xlu2 %v8490_v11  ;;  %v1525_v44 = vadd.s32 %v1524_v25, %v1514_v5  ;;  %v1639_v5 = vor.u32 %v1638_v49, %v1637_v47  ;;  %v9002_v10 = vor.u32 %v1635_v39, %v1634_v63  ;;  %v1619_v19 = vor.u32 8388608, %v8957_v35 }
  0xe6   : > { %1299 = vperm.xlu2 %8426, %v855_v42   ;;  %v6442_v42 = vld [vmem:[%s14404_s10 + $0x10] sm:$0xff]  ;;  %v1548_v41 = vadd.s32 %v1547_v59, %v1538_v36  ;;  %vm1646_vm15 = vcmp.lt.s32.totalorder %v8946_v51, 4  ;;  %v1651_v61 = vsel %vm1643_vm13, %v8990_v2, %v8992_v53  ;;  %vm1644_vm2 = vcmp.lt.s32.totalorder %v8946_v51, 2 }
  0xe7   : > { %v6436_v54 = vpop.xlane.xlu0 %6435  ;;  %v8988_v1 = vadd.s32 %v1525_v44, %v1516_v17  ;;  %v1640_v17 = vshll.u32 %v14445_v62, %v8930_v9  ;;  %v1652_v35 = vsel %vm1646_vm15, %v1639_v5, 920167782  ;;  %v9044_v46 = vshll.u32 %v1619_v19, 8 }
  0xe8   : > { %1129 = vperm.xlu1 %8425, %v856_v21   ;;  %v9006_v18 = vmul.f32 %v6442_v42, %v6436_v54  ;;  %v1552_v24 = vadd.s32 1, %v1548_v41  ;;  %v1653_v29 = vsel %vm1645_vm14, %v9002_v10, %v1652_v35  ;;  %vm1458_vm10 = vcmp.lt.s32.totalorder %v8888_v30, 0 }
  0xe9   : > { %vm1551_vm12 = vc.u32 %v8988_v1, %v8982_v56  ;;  %v1642_v25 = vor.u32 %v1641_v60, %v1640_v17  ;;  %v1654_v39 = vsel %vm1644_vm2, %v1651_v61, %v1653_v29  ;;  %v1660_v17 = vand.u32 65535, %v9044_v46 }
  0xea   : > { %v1553_v28 = vsel %vm1551_vm12, %v1552_v24, %v1548_v41  ;;  %v6450_v31 = vmul.f32 %v9006_v18, %v9006_v18  ;;  %v1661_v24 = vshrl.u32 %v9044_v46, 16  ;;  %v1684_v61 = vand.u32 65535, %v1654_v39 }
  0xeb   : > { %v1554_v37 = vadd.s32 %v1553_v28, %v1549_v50  ;;  %v1656_v44 = vsel %vm1646_vm15, %v1642_v25, 1326507024  ;;  %v858_v50 = vld [vmem:[%s8666_s26 + $0xa0] sm:$0xff]  ;;  %vm9120_vm11 = vcmp.le.f32.partialorder %v1456_v34, 0.7853982 }
  0xec   : > { %v1657_v54 = vsel %vm1645_vm14, %v1639_v5, %v1656_v44 }
  0xed   : > { %v6430_v22 = vpop.xlane.xlu1 %6429  ;;  %v6433_v23 = vpop.xlane.xlu2 %6432  ;;  %v1555_v42 = vadd.s32 536870912, %v1554_v37 }
  0xee   : > { %v9014_v20 = vmul.f32 %v6440_v6, %v6430_v22  ;;  %v9016_v9 = vmul.f32 %v6441_v8, %v6433_v23  ;;  %1303 = vperm.xlu2 %8426, %v856_v21   ;;  %v1655_v21 = vsel %vm1643_vm13, %v8992_v53, %v9002_v10  ;;  %v1685_v6 = vshrl.u32 %v1654_v39, 16 }
  0xef   : > { %v1658_v59 = vsel %vm1644_vm2, %v1655_v21, %v1657_v54  ;;  %v9055_v63 = vshrl.u32 %v1555_v42, 30  ;;  %v6455_v22 = vsel %vm935_vm1, %v6450_v31, 0.0  ;;  %v1688_v42 = vmul.u32 %v1684_v61, %v1661_v24 }
  0xf0   : > { %v6448_v33 = vmul.f32 %v9014_v20, %v9014_v20  ;;  %v6449_v36 = vmul.f32 %v9016_v9, %v9016_v9  ;;  %8428 = vset.pattern.permute.xlu1 %v8490_v11  ;;  %v1663_v60 = vshrl.u32 %v1658_v59, 16  ;;  %v1662_v19 = vand.u32 65535, %v1658_v59 }
  0xf1   : > { %1307 = vperm.xlu1 %8428, %v8830_v16   ;;  %v6443_v16 = vld [vmem:[%s14404_s10 + $0x18] sm:$0xff]  ;;  %v1557_v23 = vshll.u32 %v9055_v63, 30  ;;  %v9069_v29 = vmul.u32 %v1685_v6, %v1660_v17 }
  0xf2   : > { %v6452_v47 = vsel %vm935_vm1, %v6448_v33, 0.0  ;;  %v6453_v49 = vsel %vm935_vm1, %v6449_v36, 0.0  ;;  %v1665_v25 = vmul.u32 %v1663_v60, %v1660_v17  ;;  %v1664_v36 = vmul.u32 %v1662_v19, %v1660_v17 }
  0xf3   : > { %v6454_v8 = vadd.f32 %v6453_v49, %v6452_v47  ;;  %v9067_v28 = vsub.s32 %v1554_v37, %v1557_v23  ;;  %v1666_v21 = vmul.u32 %v1662_v19, %v1661_v24  ;;  %v1667_v49 = vmul.u32 %v1663_v60, %v1661_v24 }
  0xf4   : > { %v1668_v31 = vshll.u32 %v1665_v25, 16  ;;  %v1690_v59 = vshll.u32 %v9069_v29, 16  ;;  %v1627_v60 = vshrl.u32 %v14431_v43, %v8949_v52  ;;  %v1648_v23 = vsel %vm1646_vm15, %v9002_v10, 2102212464 }
  0xf5   : > { %v6439_v41 = vpop.xlane.xlu2 %6438  ;;  %v6456_v33 = vadd.f32 %v6455_v22, %v6454_v8  ;;  %vm1559_vm3 = vcmp.lt.s32.totalorder %v9067_v28, 0  ;;  %v1560_v47 = vsub.s32 0, %v9067_v28  ;;  %v1550_v22 = vadd.s32 %v8982_v56, %v8988_v1 }
  0xf6   : > { %v9060_v5 = vmul.f32 %v6443_v16, %v6439_v41  ;;  %8429 = vset.pattern.permute.xlu2 %v14429_v0  ;;  %vm1672_vm4 = vc.u32 %v1664_v36, %v1668_v31  ;;  %v1674_v16 = vadd.s32 %v1668_v31, %v1664_v36  ;;  %v1689_v31 = vmul.u32 %v1685_v6, %v1661_v24 }
  0xf7   : > { %1139 = vperm.xlu2 %8429, %v858_v50   ;;  %v1561_v37 = vsel %vm1559_vm3, %v1560_v47, %v9067_v28  ;;  %v1673_v54 = vsel %vm1672_vm4, 1, %v14429_v0 }
  0xf8   : > { %v6451_v35 = vmul.f32 %v9060_v5, %v9060_v5  ;;  %v1562_v41 = vclz %v1561_v37  ;;  %v1675_v19 = vadd.s32 %v1673_v54, %v1667_v49  ;;  %v1692_v49 = vshll.u32 %v1688_v42, 16 }
  0xf9   : > { %1311 = vperm.xlu1 %8428, %v858_v50   ;;  %v1670_v50 = vshll.u32 %v1666_v21, 16  ;;  %v1671_v37 = vshrl.u32 %v1666_v21, 16 }
  0xfa   : > { %v6457_v44 = vsel %vm935_vm1, %v6451_v35, 0.0  ;;  %v1686_v35 = vmul.u32 %v1684_v61, %v1660_v17  ;;  %v8098_v36 = vadd.s32 4294967294, %v1562_v41  ;;  %v1669_v61 = vshrl.u32 %v1665_v25, 16 }
  0xfb   : > { %v6458_v39 = vadd.f32 %v6457_v44, %v6456_v33  ;;  %v860_v44 = vld [vmem:[%s8666_s26 + $0xb0] sm:$0xff]  ;;  %vm1676_vm5 = vc.u32 %v1674_v16, %v1670_v50  ;;  %v1647_v25 = vsel %vm1643_vm13, %v1627_v60, %v8990_v2 }
  0xfc   : > { %v1677_v47 = vsel %vm1676_vm5, 1, %v14429_v0  ;;  %vm1694_vm6 = vc.u32 %v1686_v35, %v1690_v59  ;;  %v1696_v56 = vadd.s32 %v1690_v59, %v1686_v35  ;;  %vm8099_vm7 = vcmp.lt.s32.totalorder %v8098_v36, 0 }
  0xfd   : > { %v6459_v8 = vrot.slane %v6458_v39, 4  ;;  %v1679_v52 = vadd.s32 %v1677_v47, %v1675_v19  ;;  %v1695_v10 = vsel %vm1694_vm6, 1, %v14429_v0  ;;  %v1565_v17 = vsel %vm8099_vm7, 0, %v8098_v36 }
  0xfe   : > { %vm1698_vm8 = vc.u32 %v1696_v56, %v1692_v49  ;;  %v1566_v24 = vsub.s32 32, %v1565_v17  ;;  %v1567_v54 = vshll.u32 %v9067_v28, %v1565_v17  ;;  %v1691_v59 = vshrl.u32 %v9069_v29, 16 }
  0xff   : > { %v6460_v33 = vadd.f32 %v6459_v8, %v6458_v39  ;;  %1144 = vperm.xlu2 %8429, %v8839_v40   ;;  %v1697_v39 = vadd.s32 %v1695_v10, %v1689_v31  ;;  %v1570_v40 = vsub.s32 4294967266, %v1565_v17  ;;  %v1680_v16 = vadd.s32 %v1679_v52, %v1669_v61  ;;  %v861_v31 = vld [vmem:[%s8666_s26 + $0xb8] sm:$0xff] }
 0x100   : > { %v1699_v8 = vsel %vm1698_vm8, 1, %v14429_v0  ;;  %v1568_v50 = vshrl.u32 %v1550_v22, %v1566_v24  ;;  %v1693_v28 = vshrl.u32 %v1688_v42, 16  ;;  %v9103_v22 = vadd.f32 %v8875_v32, %v8877_v12 }
 0x101   : > { %v6461_v1 = vrot.slane %v6460_v33, 2  ;;  %8431 = vset.pattern.permute.xlu1 %v14429_v0  ;;  %v1571_v19 = vadd.s32 127, %v1570_v40  ;;  %v1701_v35 = vadd.s32 %v1699_v8, %v1697_v39  ;;  %v9098_v21 = vadd.s32 %v1680_v16, %v1671_v37 }
 0x102   : > { %1149 = vperm.xlu1 %8431, %v860_v44   ;;  %v1569_v29 = vor.u32 %v1568_v50, %v1567_v54  ;;  %v9106_v52 = vadd.s32 %v1696_v56, %v1692_v49  ;;  %v1769_v17 = vand.u32 2139095040, %v9103_v22  ;;  %vm1599_vm7 = vweird.f32 %v8888_v30 }
 0x103   : > { %v6462_v6 = vadd.f32 %v6461_v1, %v6460_v33  ;;  %v1649_v33 = vsel %vm1645_vm14, %v8992_v53, %v1648_v23  ;;  %v1572_v47 = vshll.u32 %v1571_v19, 23  ;;  %v1702_v1 = vadd.s32 %v1701_v35, %v1691_v59  ;;  %v863_v35 = vld [vmem:[%s8666_s26 + $0xc8] sm:$0xff] }
 0x104   : > { %v1650_v53 = vsel %vm1644_vm2, %v1647_v25, %v1649_v33  ;;  %vm1706_vm9 = vc.u32 %v9098_v21, %v9106_v52  ;;  %v1576_v10 = vcvt.s32.f32 %v1569_v29  ;;  %v1580_v19 = vsub.s32 4, %v9055_v63 }
 0x105   : > { %v6463_v41 = vrot.slane %v6462_v6, 1  ;;  %v1573_v60 = vor.u32 4788187, %v1572_v47  ;;  %v1703_v42 = vadd.s32 %v1702_v1, %v1693_v28  ;;  %v1704_v49 = vmul.u32 %v9044_v46, %v1650_v53 }
 0x106   : > { %v1581_v47 = vsel %vm1458_vm10, %v1580_v19, %v9055_v63  ;;  %v9145_v63 = vadd.f32 %v8875_v32, %v8882_v14  ;;  %vm1613_vm8 = vcmp.lt.s32.totalorder %v8885_v15, 0 }
 0x107   : > { %v6464_v36 = vadd.f32 %v6463_v41, %v6462_v6  ;;  %8432 = vset.pattern.permute.xlu2 %v8490_v11  ;;  %v1574_v23 = vand.u32 2147483647, %v1573_v60  ;;  %v1707_v12 = vadd.s32 1, %v1703_v42  ;;  %v1770_v6 = vshrl.u32 %v1769_v17, 23 }
 0x108   : > { %1319 = vperm.xlu2 %8432, %v860_v44  }
 0x109   : > { %v6465_v2 = vadd.f32 1e-08, %v6464_v36  ;;  %v1577_v56 = vmul.f32 %v1576_v10, %v1574_v23  ;;  %v1708_v61 = vsel %vm1706_vm9, %v1707_v12, %v1703_v42  ;;  %v8103_v59 = vadd.s32 4294967169, %v1770_v6 }
 0x10a   : > { %1154 = vperm.xlu1 %8431, %v861_v31   ;;  %v1709_v44 = vadd.s32 %v1708_v61, %v1704_v49  ;;  %v1583_v10 = vsel %vm9120_vm11, 0, %v1581_v47 }
 0x10b   : > { %8450 = vrsqrt.f32 %v6465_v2  ;;  %v1578_v39 = vxor.u32 2147483648, %v1577_v56  ;;  %v1776_v28 = vadd.s32 1, %v8103_v59  ;;  %vm6472_vm13 = vweird.f32 %v6465_v2 }
 0x10c   : > { %v1710_v51 = vadd.s32 536870912, %v1709_v44  ;;  %v1600_v61 = vadd.s32 3, %v1583_v10 }
 0x10d   : > { %v1579_v40 = vsel %vm1458_vm10, %v1578_v39, %v1577_v56  ;;  %vm1777_vm15 = vcmp.gt.s32.totalorder %v1776_v28, 0 }
 0x10e   : > { %v1582_v54 = vsel %vm9120_vm11, %v8888_v30, %v1579_v40  ;;  %v9128_v16 = vshrl.u32 %v1710_v51, 30  ;;  %v1778_v56 = vsel %vm1777_vm15, %v1776_v28, 0  ;;  %v865_v40 = vld [vmem:[%s8666_s26 + $0xd8] sm:$0xff]  ;;  %v1705_v28 = vadd.s32 %v9106_v52, %v9098_v21 }
 0x10f   : > { %v1584_v41 = vmul.f32 %v1582_v54, %v1582_v54  ;;  %v1780_v59 = vand.u32 31, %v1778_v56 }
 0x110   : > { %1323 = vperm.xlu2 %8432, %v861_v31   ;;  %v1712_v50 = vshll.u32 %v9128_v16, 30 }
 0x111   : > { %v8451_v24 = vpop.eup %8450  ;;  %v1585_v25 = vmul.f32 -0.001358992, %v1584_v41  ;;  %v1592_v33 = vmul.f32 -0.00019511016, %v1584_v41 }
 0x112   : > { %8434 = vset.pattern.permute.xlu1 %v8490_v11  ;;  %v6467_v37 = vmul.f32 %v8451_v24, %v6465_v2  ;;  %v9133_v36 = vsub.s32 %v1709_v44, %v1712_v50  ;;  %vm6473_vm12 = vweird.f32 %v8451_v24 }
 0x113   : > { %1327 = vperm.xlu1 %8434, %v8864_v3   ;;  %v1586_v31 = vadd.f32 0.041655596, %v1585_v25  ;;  %v1593_v29 = vadd.f32 0.008332121, %v1592_v33  ;;  %vm6474_vm2 = vmor %vm6472_vm13, %vm6473_vm12 }
 0x114   : > { %v6468_v8 = vmul.f32 %v8451_v24, %v6467_v37  ;;  %v1715_v1 = vsub.s32 0, %v9133_v36  ;;  %vm1714_vm14 = vcmp.lt.s32.totalorder %v9133_v36, 0 }
 0x115   : > { %v1587_v53 = vmul.f32 %v1586_v31, %v1584_v41  ;;  %v1594_v42 = vmul.f32 %v1593_v29, %v1584_v41 }
 0x116   : > { %v6469_v34 = vmul.f32 0.5, %v6468_v8  ;;  %v1716_v17 = vsel %vm1714_vm14, %v1715_v1, %v9133_v36  ;;  %v1601_v8 = vand.u32 3, %v1600_v61  ;;  %v1789_v61 = vshll.u32 %v14439_v48, %v1780_v59 }
 0x117   : > { %v1588_v2 = vadd.f32 -0.4999988, %v1587_v53  ;;  %v1595_v12 = vadd.f32 -0.16666654, %v1594_v42  ;;  %v1717_v51 = vclz %v1716_v17  ;;  %v9169_v53 = vshrl.u32 %v1778_v56, 5 }
 0x118   : > { %8435 = vset.pattern.permute.xlu2 %v14429_v0  ;;  %v6470_v3 = vsub.f32 1.5, %v6469_v34  ;;  %vm1603_vm4 = vcmp.eq.s32.totalorder %v1601_v8, 0  ;;  %vm1606_vm5 = vcmp.eq.s32.totalorder %v1601_v8, 2  ;;  %vm1602_vm6 = vcmp.lt.s32.totalorder %v1601_v8, 2 }
 0x119   : > { %1164 = vperm.xlu2 %8435, %v863_v35   ;;  %v1589_v39 = vmul.f32 %v1588_v2, %v1584_v41  ;;  %v1596_v6 = vmul.f32 %v1595_v12, %v1584_v41  ;;  %v8101_v46 = vadd.s32 4294967294, %v1717_v51  ;;  %v1792_v2 = vshll.u32 %v14441_v55, %v1780_v59 }
 0x11a   : > { %v6471_v60 = vmul.f32 %v8451_v24, %v6470_v3  ;;  %v1766_v3 = vand.u32 2147483647, %v9103_v22  ;;  %v1795_v12 = vshll.u32 %v14445_v62, %v1780_v59  ;;  %v1786_v56 = vshll.u32 %v14437_v45, %v1780_v59 }
 0x11b   : > { %1331 = vperm.xlu1 %8434, %v863_v35   ;;  %v1590_v37 = vadd.f32 1.0, %v1589_v39  ;;  %vm8102_vm3 = vcmp.lt.s32.totalorder %v8101_v46, 0  ;;  %v9156_v35 = vsub.s32 32, %v1780_v59  ;;  %vm1801_vm9 = vcmp.lt.s32.totalorder %v9169_v53, 4 }
 0x11c   : > { %v6475_v23 = vsel %vm6474_vm2, %v8451_v24, %v6471_v60  ;;  %v1924_v24 = vand.u32 2139095040, %v9145_v63  ;;  %v1773_v10 = vand.u32 8388607, %v1766_v3  ;;  %vm1798_vm10 = vcmp.lt.s32.totalorder %v9169_v53, 1 }
 0x11d   : > { %v6479_v49 = vmul.f32 %v6475_v23, %v9060_v5  ;;  %v6478_v44 = vmul.f32 %v6475_v23, %v9006_v18  ;;  %v6477_v14 = vmul.f32 %v6475_v23, %v9016_v9  ;;  %v1597_v5 = vadd.f32 1.0, %v1596_v6 }
 0x11e   : > { %v6476_v18 = vmul.f32 %v6475_v23, %v9014_v20  ;;  %v1607_v50 = vxor.u32 2147483648, %v1590_v37  ;;  %v1720_v9 = vsel %vm8102_vm3, 0, %v8101_v46  ;;  %v1793_v60 = vshrl.u32 %v14445_v62, %v9156_v35 }
 0x11f   : > { %6592 = vmatpush.msra.mxu0 %v6479_v49  ;;  %8358 = vmatpush.msra.mxu2 %v6479_v49  ;;  %v1598_v41 = vmul.f32 %v1597_v5, %v1582_v54  ;;  %v1721_v33 = vsub.s32 32, %v1720_v9  ;;  %v866_v54 = vld [vmem:[%s8666_s26 + $0xe0] sm:$0xff]  ;;  %v1725_v1 = vsub.s32 4294967266, %v1720_v9  ;;  %v1796_v30 = vshrl.u32 %v14443_v4, %v9156_v35 }
 0x120   : > { %v1784_v21 = vshrl.u32 %v14437_v45, %v9156_v35  ;;  %v1787_v52 = vshrl.u32 %v14439_v48, %v9156_v35  ;;  %v1790_v42 = vshrl.u32 %v14441_v55, %v9156_v35  ;;  %v1722_v23 = vshll.u32 %v9133_v36, %v1720_v9 }
 0x121   : > { %1169 = vperm.xlu2 %8435, %v8899_v27   ;;  %6593 = vmatpush.msra.mxu0 %v6478_v44  ;;  %v1925_v27 = vshrl.u32 %v1924_v24, 23  ;;  %v1604_v19 = vxor.u32 2147483648, %v1598_v41  ;;  %v1608_v25 = vsel %vm1606_vm5, %v1607_v50, %v1598_v41  ;;  %v1723_v47 = vshrl.u32 %v1705_v28, %v1721_v33 }
 0x122   : > { %8359 = vmatpush.msra.mxu2 %v6478_v44  ;;  %v1726_v17 = vadd.s32 127, %v1725_v1  ;;  %v1783_v49 = vshll.u32 %v14431_v43, %v1780_v59  ;;  %v1794_v39 = vor.u32 %v1793_v60, %v1792_v2  ;;  %v1797_v6 = vor.u32 %v1796_v30, %v1795_v12 }
 0x123   : > { %8437 = vset.pattern.permute.xlu1 %v14429_v0  ;;  %6594 = vmatpush.msra.mxu0 %v6477_v14  ;;  %v1605_v34 = vsel %vm1603_vm4, %v1590_v37, %v1604_v19  ;;  %v8106_v31 = vadd.s32 4294967169, %v1925_v27  ;;  %v1724_v44 = vor.u32 %v1723_v47, %v1722_v23  ;;  %v9187_v36 = vor.u32 %v1787_v52, %v1786_v56 }
 0x124   : > { %1174 = vperm.xlu1 %8437, %v865_v40   ;;  %8360 = vmatpush.msra.mxu2 %v6477_v14  ;;  %v1609_v20 = vsel %vm1602_vm6, %v1605_v34, %v1608_v25  ;;  %v1727_v51 = vshll.u32 %v1726_v17, 23  ;;  %v9185_v24 = vor.u32 %v1784_v21, %v1783_v49  ;;  %v9191_v37 = vadd.f32 %v8875_v32, %v8896_v26 }
 0x125   : > { %6595 = vmatpush.msra.mxu0 %v6476_v18  ;;  %v1610_v29 = vsel %vm1599_vm7, nan, %v1609_v20  ;;  %v1931_v14 = vadd.s32 1, %v8106_v31  ;;  %v1735_v5 = vsub.s32 4, %v9128_v16  ;;  %v1774_v59 = vor.u32 8388608, %v1773_v10 }
 0x126   : > { %8361 = vmatpush.msra.mxu2 %v6476_v18  ;;  %8193 = vmatmul.msk.f32.vlgmr.msra.gmra.mxu0 %vm935_vm1, %v1610_v29  ;;  %v1728_v46 = vor.u32 4788187, %v1727_v51  ;;  %v1731_v8 = vcvt.s32.f32 %v1724_v44  ;;  %v1807_v18 = vsel %vm1801_vm9, %v1794_v39, 920167782  ;;  %v1811_v41 = vsel %vm1801_vm9, %v1797_v6, 1326507024 }
 0x127   : > { %vm1800_vm11 = vcmp.lt.s32.totalorder %v9169_v53, 3  ;;  %v1806_v50 = vsel %vm1798_vm10, %v9185_v24, %v9187_v36  ;;  %vm1932_vm12 = vcmp.gt.s32.totalorder %v1931_v14, 0  ;;  %v1736_v19 = vsel %vm1613_vm8, %v1735_v5, %v9128_v16 }
 0x128   : > { %v1729_v26 = vand.u32 2147483647, %v1728_v46  ;;  %v1812_v9 = vsel %vm1800_vm11, %v1794_v39, %v1811_v41  ;;  %v2079_v34 = vand.u32 2139095040, %v9191_v37  ;;  %vm1799_vm13 = vcmp.lt.s32.totalorder %v9169_v53, 2 }
 0x129   : > { %8438 = vset.pattern.permute.xlu2 %v8490_v11  ;;  %vm9222_vm14 = vcmp.le.f32.partialorder %v1611_v7, 0.7853982  ;;  %v9230_v20 = vshll.u32 %v1774_v59, 8  ;;  %v1782_v49 = vshrl.u32 %v14431_v43, %v9156_v35  ;;  %vm1754_vm6 = vweird.f32 %v8885_v15 }
 0x12a   : > { %1339 = vperm.xlu2 %8438, %v865_v40   ;;  %v1791_v40 = vor.u32 %v1790_v42, %v1789_v61  ;;  %v1732_v25 = vmul.f32 %v1731_v8, %v1729_v26  ;;  %v1738_v31 = vsel %vm9222_vm14, 0, %v1736_v19  ;;  %v9239_v21 = vshrl.u32 %v2079_v34, 23 }
 0x12b   : > { %v1815_v29 = vand.u32 65535, %v9230_v20  ;;  %v1816_v7 = vshrl.u32 %v9230_v20, 16  ;;  %v1755_v17 = vadd.s32 3, %v1738_v31 }
 0x12c   : > { %1179 = vperm.xlu1 %8437, %v866_v54   ;;  %v1810_v27 = vsel %vm1798_vm10, %v9187_v36, %v1791_v40  ;;  %v1733_v28 = vxor.u32 2147483648, %v1732_v25  ;;  %v1803_v51 = vsel %vm1801_vm9, %v1791_v40, 2102212464 }
 0x12d   : > { %v1813_v16 = vsel %vm1799_vm13, %v1810_v27, %v1812_v9  ;;  %v9252_v41 = vand.u32 3, %v1755_v17  ;;  %v1802_v9 = vsel %vm1798_vm10, %v1782_v49, %v9185_v24  ;;  %v1804_v34 = vsel %vm1800_vm11, %v9187_v36, %v1803_v51 }
 0x12e   : > { %v1817_v47 = vand.u32 65535, %v1813_v16  ;;  %v1818_v1 = vshrl.u32 %v1813_v16, 16  ;;  %v1734_v60 = vsel %vm1613_vm8, %v1733_v28, %v1732_v25 }
 0x12f   : > { %v1737_v52 = vsel %vm9222_vm14, %v8885_v15, %v1734_v60  ;;  %vm1758_vm3 = vcmp.eq.s32.totalorder %v9252_v41, 0  ;;  %vm1757_vm5 = vcmp.lt.s32.totalorder %v9252_v41, 2  ;;  %vm1761_vm8 = vcmp.eq.s32.totalorder %v9252_v41, 2 }
 0x130   : > { %v1820_v42 = vmul.u32 %v1818_v1, %v1815_v29  ;;  %v1821_v23 = vmul.u32 %v1817_v47, %v1816_v7  ;;  %v1739_v12 = vmul.f32 %v1737_v52, %v1737_v52  ;;  %v1819_v56 = vmul.u32 %v1817_v47, %v1815_v29 }
 0x131   : > { %v1822_v5 = vmul.u32 %v1818_v1, %v1816_v7 }
 0x132   : > { %1343 = vperm.xlu2 %8438, %v866_v54   ;;  %v1933_v54 = vsel %vm1932_vm12, %v1931_v14, 0  ;;  %v1823_v61 = vshll.u32 %v1820_v42, 16  ;;  %v1740_v39 = vmul.f32 -0.001358992, %v1739_v12  ;;  %v1747_v6 = vmul.f32 -0.00019511016, %v1739_v12 }
 0x133   : > { %v9244_v10 = vshrl.u32 %v1933_v54, 5  ;;  %v9246_v2 = vand.u32 31, %v1933_v54  ;;  %v1825_v46 = vshll.u32 %v1821_v23, 16  ;;  %v1824_v25 = vshrl.u32 %v1820_v42, 16 }
 0x134   : > { %8440 = vset.pattern.permute.xlu1 %v8490_v11  ;;  %v1808_v11 = vsel %vm1800_vm11, %v1791_v40, %v1807_v18  ;;  %vm1827_vm15 = vc.u32 %v1819_v56, %v1823_v61  ;;  %v1829_v59 = vadd.s32 %v1823_v61, %v1819_v56  ;;  %v1741_v8 = vadd.f32 0.041655596, %v1740_v39 }
 0x135   : > { %1347 = vperm.xlu1 %8440, %v8906_v38   ;;  %v1809_v38 = vsel %vm1799_vm13, %v1806_v50, %v1808_v11  ;;  %v1748_v18 = vadd.f32 0.008332121, %v1747_v6  ;;  %v1828_v26 = vsel %vm1827_vm15, 1, %v14429_v0  ;;  %v9256_v19 = vsub.s32 32, %v9246_v2 }
 0x136   : > { %v1840_v30 = vshrl.u32 %v1809_v38, 16  ;;  %v1839_v44 = vand.u32 65535, %v1809_v38  ;;  %v1830_v35 = vadd.s32 %v1828_v26, %v1822_v5  ;;  %vm1831_vm2 = vc.u32 %v1829_v59, %v1825_v46 }
 0x137   : > { %v1742_v11 = vmul.f32 %v1741_v8, %v1739_v12  ;;  %v1749_v40 = vmul.f32 %v1748_v18, %v1739_v12  ;;  %v1832_v33 = vsel %vm1831_vm2, 1, %v14429_v0  ;;  %v1826_v28 = vshrl.u32 %v1821_v23, 16 }
 0x138   : > { %v1842_v14 = vmul.u32 %v1840_v30, %v1815_v29  ;;  %v1843_v50 = vmul.u32 %v1839_v44, %v1816_v7  ;;  %v1841_v38 = vmul.u32 %v1839_v44, %v1815_v29  ;;  %v1834_v31 = vadd.s32 %v1832_v33, %v1830_v35 }
 0x139   : > { %v1743_v16 = vadd.f32 -0.4999988, %v1742_v11  ;;  %v1750_v54 = vadd.f32 -0.16666654, %v1749_v40  ;;  %v1844_v47 = vmul.u32 %v1840_v30, %v1816_v7  ;;  %v1805_v29 = vsel %vm1799_vm13, %v1802_v9, %v1804_v34 }
 0x13a   : > { %8441 = vset.pattern.permute.xlu2 %v14429_v0  ;;  %v1845_v27 = vshll.u32 %v1842_v14, 16  ;;  %v1847_v1 = vshll.u32 %v1843_v50, 16  ;;  %v1835_v49 = vadd.s32 %v1834_v31, %v1824_v25  ;;  %v1921_v23 = vand.u32 2147483647, %v9145_v63 }
 0x13b   : > { %v1744_v17 = vmul.f32 %v1743_v16, %v1739_v12  ;;  %v1751_v24 = vmul.f32 %v1750_v54, %v1739_v12  ;;  %v1846_v61 = vshrl.u32 %v1842_v14, 16  ;;  %v1848_v53 = vshrl.u32 %v1843_v50, 16 }
 0x13c   : > { %vm1849_vm4 = vc.u32 %v1841_v38, %v1845_v27  ;;  %v1851_v60 = vadd.s32 %v1845_v27, %v1841_v38  ;;  %v9272_v56 = vadd.s32 %v1835_v49, %v1826_v28  ;;  %v1859_v5 = vmul.u32 %v9230_v20, %v1805_v29 }
 0x13d   : > { %v1850_v36 = vsel %vm1849_vm4, 1, %v14429_v0  ;;  %v1745_v7 = vadd.f32 1.0, %v1744_v17  ;;  %v1752_v30 = vadd.f32 1.0, %v1751_v24  ;;  %v1928_v59 = vand.u32 8388607, %v1921_v23 }
 0x13e   : > { %v1852_v42 = vadd.s32 %v1850_v36, %v1844_v47  ;;  %vm1853_vm7 = vc.u32 %v1851_v60, %v1847_v1  ;;  %v9276_v44 = vadd.s32 %v1851_v60, %v1847_v1  ;;  %v1938_v8 = vshll.u32 %v14431_v43, %v9246_v2 }
 0x13f   : > { %v1854_v12 = vsel %vm1853_vm7, 1, %v14429_v0  ;;  %v1753_v6 = vmul.f32 %v1752_v30, %v1737_v52  ;;  %v1762_v51 = vxor.u32 2147483648, %v1745_v7  ;;  %v1939_v26 = vshrl.u32 %v14437_v45, %v9256_v19 }
 0x140   : > { %v1856_v39 = vadd.s32 %v1854_v12, %v1852_v42  ;;  %vm1861_vm9 = vc.u32 %v9272_v56, %v9276_v44  ;;  %v1941_v52 = vshll.u32 %v14437_v45, %v9246_v2  ;;  %v1942_v20 = vshrl.u32 %v14439_v48, %v9256_v19 }
 0x141   : > { %v1759_v18 = vxor.u32 2147483648, %v1753_v6  ;;  %v1763_v14 = vsel %vm1761_vm8, %v1762_v51, %v1753_v6  ;;  %v1944_v50 = vshll.u32 %v14439_v48, %v9246_v2  ;;  %v1945_v27 = vshrl.u32 %v14441_v55, %v9256_v19 }
 0x142   : > { %v1857_v46 = vadd.s32 %v1856_v39, %v1846_v61  ;;  %v9297_v40 = vor.u32 %v1939_v26, %v1938_v8  ;;  %v1947_v9 = vshll.u32 %v14441_v55, %v9246_v2  ;;  %v1948_v34 = vshrl.u32 %v14445_v62, %v9256_v19 }
 0x143   : > { %v1760_v11 = vsel %vm1758_vm3, %v1745_v7, %v1759_v18  ;;  %v9305_v38 = vor.u32 %v1942_v20, %v1941_v52  ;;  %v9307_v16 = vor.u32 %v1945_v27, %v1944_v50  ;;  %v1950_v31 = vshll.u32 %v14445_v62, %v9246_v2 }
 0x144   : > { %v1858_v35 = vadd.s32 %v1857_v46, %v1848_v53  ;;  %v1764_v25 = vsel %vm1757_vm5, %v1760_v11, %v1763_v14  ;;  %v1949_v28 = vor.u32 %v1948_v34, %v1947_v9  ;;  %v1951_v47 = vshrl.u32 %v14443_v4, %v9256_v19 }
 0x145   : > { %v1765_v54 = vsel %vm1754_vm6, nan, %v1764_v25  ;;  %v8109_v1 = vadd.s32 4294967169, %v9239_v21  ;;  %v1929_v60 = vor.u32 8388608, %v1928_v59  ;;  %vm1953_vm10 = vcmp.lt.s32.totalorder %v9244_v10, 1 }
 0x146   : > { %v1862_v33 = vadd.s32 1, %v1858_v35  ;;  %8194 = vmatmul.msk.f32.gmra.mxu0 %vm935_vm1, %v1765_v54  ;;  %v1952_v24 = vor.u32 %v1951_v47, %v1950_v31  ;;  %vm1956_vm11 = vcmp.lt.s32.totalorder %v9244_v10, 4  ;;  %vm1955_vm12 = vcmp.lt.s32.totalorder %v9244_v10, 3 }
 0x147   : > { %v1961_v15 = vsel %vm1953_vm10, %v9297_v40, %v9305_v38  ;;  %v1962_v21 = vsel %vm1956_vm11, %v1949_v28, 920167782  ;;  %v1965_v2 = vsel %vm1953_vm10, %v9305_v38, %v9307_v16  ;;  %vm1954_vm13 = vcmp.lt.s32.totalorder %v9244_v10, 2 }
 0x148   : > { %v1863_v41 = vsel %vm1861_vm9, %v1862_v33, %v1858_v35  ;;  %v1963_v36 = vsel %vm1955_vm12, %v9307_v16, %v1962_v21  ;;  %v1966_v29 = vsel %vm1956_vm11, %v1952_v24, 1326507024  ;;  %v9343_v30 = vshll.u32 %v1929_v60, 8 }
 0x149   : > { %v1864_v17 = vadd.s32 %v1863_v41, %v1859_v5  ;;  %v1964_v42 = vsel %vm1954_vm13, %v1961_v15, %v1963_v36  ;;  %v1967_v7 = vsel %vm1955_vm12, %v1949_v28, %v1966_v29  ;;  %v2086_v46 = vadd.s32 1, %v8109_v1 }
 0x14a   : > { %v1968_v61 = vsel %vm1954_vm13, %v1965_v2, %v1967_v7  ;;  %v1995_v39 = vshrl.u32 %v1964_v42, 16  ;;  %v1970_v6 = vand.u32 65535, %v9343_v30  ;;  %v1971_v51 = vshrl.u32 %v9343_v30, 16 }
 0x14b   : > { %v1865_v49 = vadd.s32 536870912, %v1864_v17  ;;  %v1972_v53 = vand.u32 65535, %v1968_v61  ;;  %v1973_v5 = vshrl.u32 %v1968_v61, 16  ;;  %v1994_v26 = vand.u32 65535, %v1964_v42 }
 0x14c   : > { %v1997_v52 = vmul.u32 %v1995_v39, %v1970_v6  ;;  %vm2087_vm14 = vcmp.gt.s32.totalorder %v2086_v46, 0  ;;  %v9356_v60 = vadd.f32 %v8875_v32, %v8880_v13  ;;  %v1999_v15 = vmul.u32 %v1995_v39, %v1971_v51 }
 0x14d   : > { %v9345_v12 = vshrl.u32 %v1865_v49, 30  ;;  %v1975_v8 = vmul.u32 %v1973_v5, %v1970_v6  ;;  %v1976_v18 = vmul.u32 %v1972_v53, %v1971_v51  ;;  %v1974_v35 = vmul.u32 %v1972_v53, %v1970_v6 }
 0x14e   : > { %v1977_v27 = vmul.u32 %v1973_v5, %v1971_v51  ;;  %v1998_v33 = vmul.u32 %v1994_v26, %v1971_v51  ;;  %v2000_v54 = vshll.u32 %v1997_v52, 16  ;;  %v2088_v47 = vsel %vm2087_vm14, %v2086_v46, 0 }
 0x14f   : > { %v1867_v59 = vshll.u32 %v9345_v12, 30  ;;  %v1978_v20 = vshll.u32 %v1975_v8, 16  ;;  %v1980_v11 = vshll.u32 %v1976_v18, 16  ;;  %v1996_v41 = vmul.u32 %v1994_v26, %v1970_v6 }
 0x150   : > { %v2002_v21 = vshll.u32 %v1998_v33, 16  ;;  %v9358_v49 = vand.u32 31, %v2088_v47  ;;  %v1979_v36 = vshrl.u32 %v1975_v8, 16  ;;  %v1860_v42 = vadd.s32 %v9276_v44, %v9272_v56 }
 0x151   : > { %v1868_v14 = vsub.s32 %v1864_v17, %v1867_v59  ;;  %vm1982_vm2 = vc.u32 %v1974_v35, %v1978_v20  ;;  %v1984_v9 = vadd.s32 %v1978_v20, %v1974_v35  ;;  %vm2004_vm4 = vc.u32 %v1996_v41, %v2000_v54 }
 0x152   : > { %v1983_v25 = vsel %vm1982_vm2, 1, %v14429_v0  ;;  %v2006_v2 = vadd.s32 %v2000_v54, %v1996_v41  ;;  %v2005_v29 = vsel %vm2004_vm4, 1, %v14429_v0  ;;  %v1958_v39 = vsel %vm1956_vm11, %v9307_v16, 2102212464 }
 0x153   : > { %vm1869_vm15 = vcmp.lt.s32.totalorder %v1868_v14, 0  ;;  %v1870_v50 = vsub.s32 0, %v1868_v14  ;;  %v1985_v31 = vadd.s32 %v1983_v25, %v1977_v27  ;;  %vm1986_vm3 = vc.u32 %v1984_v9, %v1980_v11 }
 0x154   : > { %v1987_v1 = vsel %vm1986_vm3, 1, %v14429_v0  ;;  %v2007_v61 = vadd.s32 %v2005_v29, %v1999_v15  ;;  %vm2008_vm6 = vc.u32 %v2006_v2, %v2002_v21  ;;  %v1937_v53 = vshrl.u32 %v14431_v43, %v9256_v19 }
 0x155   : > { %v1871_v34 = vsel %vm1869_vm15, %v1870_v50, %v1868_v14  ;;  %v1989_v24 = vadd.s32 %v1987_v1, %v1985_v31  ;;  %v1981_v5 = vshrl.u32 %v1976_v18, 16  ;;  %v2001_v46 = vshrl.u32 %v1997_v52, 16 }
 0x156   : > { %v1872_v28 = vclz %v1871_v34  ;;  %v2009_v59 = vsel %vm2008_vm6, 1, %v14429_v0  ;;  %v1957_v35 = vsel %vm1953_vm10, %v1937_v53, %v9297_v40  ;;  %v1959_v16 = vsel %vm1955_vm12, %v9305_v38, %v1958_v39 }
 0x157   : > { %v1990_v51 = vadd.s32 %v1989_v24, %v1979_v36  ;;  %v2011_v26 = vadd.s32 %v2009_v59, %v2007_v61  ;;  %v9378_v18 = vsub.s32 32, %v9358_v49  ;;  %v2003_v52 = vshrl.u32 %v1998_v33, 16 }
 0x158   : > { %v8104_v17 = vadd.s32 4294967294, %v1872_v28  ;;  %v2234_v11 = vand.u32 2139095040, %v9356_v60  ;;  %v9382_v40 = vadd.s32 %v2006_v2, %v2002_v21  ;;  %v1960_v38 = vsel %vm1954_vm13, %v1957_v35, %v1959_v16 }
 0x159   : > { %v9375_v27 = vadd.s32 %v1990_v51, %v1981_v5  ;;  %v2012_v19 = vadd.s32 %v2011_v26, %v2001_v46  ;;  %v1890_v28 = vsub.s32 4, %v9345_v12  ;;  %v2106_v33 = vshrl.u32 %v14443_v4, %v9378_v18 }
 0x15a   : > { %vm8105_vm5 = vcmp.lt.s32.totalorder %v8104_v17, 0  ;;  %v2235_v1 = vshrl.u32 %v2234_v11, 23  ;;  %v2076_v10 = vand.u32 2147483647, %v9191_v37  ;;  %v9393_v24 = vshrl.u32 %v2088_v47, 5 }
 0x15b   : > { %v1875_v7 = vsel %vm8105_vm5, 0, %v8104_v17  ;;  %v2013_v34 = vadd.s32 %v2012_v19, %v2003_v52  ;;  %vm2016_vm7 = vc.u32 %v9375_v27, %v9382_v40  ;;  %v2014_v17 = vmul.u32 %v9343_v30, %v1960_v38 }
 0x15c   : > { %v1876_v13 = vsub.s32 32, %v1875_v7  ;;  %v1880_v6 = vsub.s32 4294967266, %v1875_v7  ;;  %v1877_v8 = vshll.u32 %v1868_v14, %v1875_v7  ;;  %v868_v14 = vld [vmem:[%s8666_s26 + $0xf0] sm:$0xff]  ;;  %vm9397_vm8 = vcmp.le.f32.partialorder %v1766_v3, 0.7853982 }
 0x15d   : > { %1189 = vperm.xlu2 %8441, %v868_v14   ;;  %1351 = vperm.xlu1 %8440, %v868_v14   ;;  %v2017_v31 = vadd.s32 1, %v2013_v34  ;;  %v2105_v2 = vshll.u32 %v14445_v62, %v9358_v49  ;;  %vm1768_vm9 = vcmp.lt.s32.totalorder %v9103_v22, 0  ;;  %v2103_v30 = vshrl.u32 %v14445_v62, %v9378_v18 }
 0x15e   : > { %v1878_v56 = vshrl.u32 %v1860_v42, %v1876_v13  ;;  %v1881_v44 = vadd.s32 127, %v1880_v6  ;;  %v1891_v47 = vsel %vm1768_vm9, %v1890_v28, %v9345_v12  ;;  %v2097_v42 = vshrl.u32 %v14439_v48, %v9378_v18  ;;  %v8458_v6 = vld [vmem:[%s8666_s26 + $0xf8] sm:$0xff] }
 0x15f   : > { %v2018_v21 = vsel %vm2016_vm7, %v2017_v31, %v2013_v34  ;;  %v2100_v3 = vshrl.u32 %v14441_v55, %v9378_v18  ;;  %v2107_v7 = vor.u32 %v2106_v33, %v2105_v2  ;;  %v2083_v39 = vand.u32 8388607, %v2076_v10 }
 0x160   : > { %v1879_v20 = vor.u32 %v1878_v56, %v1877_v8  ;;  %v1882_v50 = vshll.u32 %v1881_v44, 23  ;;  %v2019_v29 = vadd.s32 %v2018_v21, %v2014_v17  ;;  %v2102_v51 = vshll.u32 %v14441_v55, %v9358_v49 }
 0x161   : > { %v2094_v53 = vshrl.u32 %v14437_v45, %v9378_v18  ;;  %v2096_v5 = vshll.u32 %v14437_v45, %v9358_v49  ;;  %v2099_v46 = vshll.u32 %v14439_v48, %v9358_v49  ;;  %vm2111_vm10 = vcmp.lt.s32.totalorder %v9393_v24, 4 }
 0x162   : > { %v1883_v9 = vor.u32 4788187, %v1882_v50  ;;  %v1886_v54 = vcvt.s32.f32 %v1879_v20  ;;  %v2020_v13 = vadd.s32 536870912, %v2019_v29  ;;  %v2104_v56 = vor.u32 %v2103_v30, %v2102_v51 }
 0x163   : > { %v2093_v44 = vshll.u32 %v14431_v43, %v9358_v49  ;;  %v9430_v26 = vor.u32 %v2097_v42, %v2096_v5  ;;  %v9432_v35 = vor.u32 %v2100_v3, %v2099_v46  ;;  %v2121_v16 = vsel %vm2111_vm10, %v2107_v7, 1326507024 }
 0x164   : > { %v1884_v25 = vand.u32 2147483647, %v1883_v9  ;;  %v9425_v8 = vshrl.u32 %v2020_v13, 30  ;;  %v1893_v20 = vsel %vm9397_vm8, 0, %v1891_v47  ;;  %v2084_v52 = vor.u32 8388608, %v2083_v39 }
 0x165   : > { %1194 = vperm.xlu2 %8441, %v8458_v6   ;;  %v9439_v11 = vor.u32 %v2094_v53, %v2093_v44  ;;  %vm2108_vm11 = vcmp.lt.s32.totalorder %v9393_v24, 1  ;;  %vm2110_vm12 = vcmp.lt.s32.totalorder %v9393_v24, 3  ;;  %v2117_v34 = vsel %vm2111_vm10, %v2104_v56, 920167782 }
 0x166   : > { %v1887_v41 = vmul.f32 %v1886_v54, %v1884_v25  ;;  %v2022_v14 = vshll.u32 %v9425_v8, 30  ;;  %v1910_v25 = vadd.s32 3, %v1893_v20  ;;  %v2120_v54 = vsel %vm2108_vm11, %v9430_v26, %v9432_v35 }
 0x167   : > { %v2122_v28 = vsel %vm2110_vm12, %v2104_v56, %v2121_v16  ;;  %v8112_v31 = vadd.s32 4294967169, %v2235_v1  ;;  %vm2109_vm13 = vcmp.lt.s32.totalorder %v9393_v24, 2  ;;  %v2116_v15 = vsel %vm2108_vm11, %v9439_v11, %v9430_v26 }
 0x168   : > { %v1888_v36 = vxor.u32 2147483648, %v1887_v41  ;;  %v9443_v38 = vsub.s32 %v2019_v29, %v2022_v14  ;;  %v2118_v21 = vsel %vm2110_vm12, %v9432_v35, %v2117_v34  ;;  %v2123_v1 = vsel %vm2109_vm13, %v2120_v54, %v2122_v28 }
 0x169   : > { %v9465_v29 = vshll.u32 %v2084_v52, 8  ;;  %v1911_v30 = vand.u32 3, %v1910_v25  ;;  %v2241_v42 = vadd.s32 1, %v8112_v31  ;;  %vm1909_vm15 = vweird.f32 %v9103_v22 }
 0x16a   : > { %v1889_v61 = vsel %vm1768_vm9, %v1888_v36, %v1887_v41  ;;  %vm2024_vm14 = vcmp.lt.s32.totalorder %v9443_v38, 0  ;;  %v2025_v17 = vsub.s32 0, %v9443_v38  ;;  %v2119_v13 = vsel %vm2109_vm13, %v2116_v15, %v2118_v21  ;;  %v9481_v21 = vpop.permute.xlu2 %1255 }
 0x16b   : > { %v1892_v12 = vsel %vm9397_vm8, %v9103_v22, %v1889_v61  ;;  %v2127_v6 = vand.u32 65535, %v2123_v1  ;;  %v2128_v39 = vshrl.u32 %v2123_v1, 16  ;;  %v2125_v46 = vand.u32 65535, %v9465_v29 }
 0x16c   : > { %v1894_v59 = vmul.f32 %v1892_v12, %v1892_v12  ;;  %v2026_v47 = vsel %vm2024_vm14, %v2025_v17, %v9443_v38  ;;  %vm1912_vm2 = vcmp.lt.s32.totalorder %v1911_v30, 2  ;;  %vm1913_vm3 = vcmp.eq.s32.totalorder %v1911_v30, 0 }
 0x16d   : > { %v2027_v61 = vclz %v2026_v47  ;;  %vm1916_vm4 = vcmp.eq.s32.totalorder %v1911_v30, 2  ;;  %v2126_v56 = vshrl.u32 %v9465_v29, 16  ;;  %v2130_v16 = vmul.u32 %v2128_v39, %v2125_v46 }
 0x16e   : > { %v1895_v50 = vmul.f32 -0.001358992, %v1894_v59  ;;  %v1902_v19 = vmul.f32 -0.00019511016, %v1894_v59  ;;  %v2015_v20 = vadd.s32 %v9382_v40, %v9375_v27  ;;  %v2149_v14 = vand.u32 65535, %v2119_v13 }
 0x16f   : > { %v8107_v5 = vadd.s32 4294967294, %v2027_v61  ;;  %v2150_v34 = vshrl.u32 %v2119_v13, 16  ;;  %v2132_v28 = vmul.u32 %v2128_v39, %v2126_v56  ;;  %v2133_v31 = vshll.u32 %v2130_v16, 16 }
 0x170   : > { %v1896_v49 = vadd.f32 0.041655596, %v1895_v50  ;;  %v1903_v9 = vadd.f32 0.008332121, %v1902_v19  ;;  %v9475_v19 = vmul.u32 %v2127_v6, %v2126_v56  ;;  %vm2242_vm7 = vcmp.gt.s32.totalorder %v2241_v42, 0 }
 0x171   : > { %vm8108_vm5 = vcmp.lt.s32.totalorder %v8107_v5, 0  ;;  %v2152_v1 = vmul.u32 %v2150_v34, %v2125_v46  ;;  %v2092_v30 = vshrl.u32 %v14431_v43, %v9378_v18  ;;  %v2153_v61 = vmul.u32 %v2149_v14, %v2126_v56 }
 0x172   : > { %v1897_v33 = vmul.f32 %v1896_v49, %v1894_v59  ;;  %v1904_v41 = vmul.f32 %v1903_v9, %v1894_v59  ;;  %v2030_v50 = vsel %vm8108_vm5, 0, %v8107_v5  ;;  %v2129_v9 = vmul.u32 %v2127_v6, %v2125_v46 }
 0x173   : > { %v2031_v49 = vsub.s32 32, %v2030_v50  ;;  %v2035_v54 = vsub.s32 4294967266, %v2030_v50  ;;  %v2135_v17 = vshll.u32 %v9475_v19, 16  ;;  %v2155_v13 = vshll.u32 %v2152_v1, 16 }
 0x174   : > { %v1898_v2 = vadd.f32 -0.4999988, %v1897_v33  ;;  %v1905_v36 = vadd.f32 -0.16666654, %v1904_v41  ;;  %v2032_v33 = vshll.u32 %v9443_v38, %v2030_v50  ;;  %vm2137_vm6 = vc.u32 %v2129_v9, %v2133_v31 }
 0x175   : > { %v2033_v41 = vshrl.u32 %v2015_v20, %v2031_v49  ;;  %v2036_v40 = vadd.s32 127, %v2035_v54  ;;  %v2139_v15 = vadd.s32 %v2133_v31, %v2129_v9  ;;  %v2113_v22 = vsel %vm2111_vm10, %v9432_v35, 2102212464 }
 0x176   : > { %v1899_v3 = vmul.f32 %v1898_v2, %v1894_v59  ;;  %v1906_v7 = vmul.f32 %v1905_v36, %v1894_v59  ;;  %v2138_v36 = vsel %vm2137_vm6, 1, %v14429_v0  ;;  %v2112_v5 = vsel %vm2108_vm11, %v2092_v30, %v9439_v11 }
 0x177   : > { %v2034_v38 = vor.u32 %v2033_v41, %v2032_v33  ;;  %v2037_v47 = vshll.u32 %v2036_v40, 23  ;;  %vm2141_vm8 = vc.u32 %v2139_v15, %v2135_v17  ;;  %v2154_v20 = vmul.u32 %v2150_v34, %v2126_v56  ;;  %v9510_v34 = vpop.permute.xlu2 %1259 }
 0x178   : > { %v1900_v51 = vadd.f32 1.0, %v1899_v3  ;;  %v1907_v53 = vadd.f32 1.0, %v1906_v7  ;;  %v2140_v3 = vadd.s32 %v2138_v36, %v2132_v28  ;;  %v2142_v7 = vsel %vm2141_vm8, 1, %v14429_v0 }
 0x179   : > { %v2038_v6 = vor.u32 4788187, %v2037_v47  ;;  %v2041_v18 = vcvt.s32.f32 %v2034_v38  ;;  %v2114_v50 = vsel %vm2110_vm12, %v9430_v26, %v2113_v22  ;;  %vm9504_vm11 = vcmp.le.f32.partialorder %v1921_v23, 0.7853982  ;;  %v9531_v38 = vpop.permute.xlu1 %1069 }
 0x17a   : > { %v1908_v44 = vmul.f32 %v1907_v53, %v1892_v12  ;;  %v1917_v59 = vxor.u32 2147483648, %v1900_v51  ;;  %v2144_v39 = vadd.s32 %v2142_v7, %v2140_v3  ;;  %v2243_v53 = vsel %vm2242_vm7, %v2241_v42, 0 }
 0x17b   : > { %v2045_v42 = vsub.s32 4, %v9425_v8  ;;  %v2136_v26 = vshrl.u32 %v9475_v19, 16  ;;  %vm1923_vm12 = vcmp.lt.s32.totalorder %v9145_v63, 0  ;;  %v2115_v54 = vsel %vm2109_vm13, %v2112_v5, %v2114_v50 }
 0x17c   : > { %v1914_v52 = vxor.u32 2147483648, %v1908_v44  ;;  %v1918_v25 = vsel %vm1916_vm4, %v1917_v59, %v1908_v44  ;;  %v2134_v44 = vshrl.u32 %v2130_v16, 16  ;;  %v2039_v59 = vand.u32 2147483647, %v2038_v6 }
 0x17d   : > { %v2156_v28 = vshrl.u32 %v2152_v1, 16  ;;  %v2046_v23 = vsel %vm1923_vm12, %v2045_v42, %v9425_v8  ;;  %v2231_v41 = vand.u32 2147483647, %v9356_v60  ;;  %v2169_v1 = vmul.u32 %v9465_v29, %v2115_v54 }
 0x17e   : > { %v1915_v12 = vsel %vm1913_vm3, %v1900_v51, %v1914_v52  ;;  %v2151_v51 = vmul.u32 %v2149_v14, %v2125_v46  ;;  %v2157_v52 = vshll.u32 %v2153_v61, 16  ;;  %v2042_v46 = vmul.f32 %v2041_v18, %v2039_v59 }
 0x17f   : > { %v1919_v27 = vsel %vm1912_vm2, %v1915_v12, %v1918_v25  ;;  %v2145_v14 = vadd.s32 %v2144_v39, %v2134_v44  ;;  %v2245_v25 = vand.u32 31, %v2243_v53  ;;  %v2048_v8 = vsel %vm9504_vm11, 0, %v2046_v23 }
 0x180   : > { %v1920_v2 = vsel %vm1909_vm15, nan, %v1919_v27  ;;  %vm2159_vm9 = vc.u32 %v2151_v51, %v2155_v13  ;;  %v2161_v49 = vadd.s32 %v2155_v13, %v2151_v51  ;;  %v2043_v56 = vxor.u32 2147483648, %v2042_v46 }
 0x181   : > { %8195 = vmatmul.msk.f32.gmra.mxu0 %vm935_vm1, %v1920_v2  ;;  %v2160_v35 = vsel %vm2159_vm9, 1, %v14429_v0  ;;  %v9516_v33 = vadd.s32 %v2145_v14, %v2136_v26  ;;  %v9519_v17 = vsub.s32 32, %v2245_v25  ;;  %v2158_v27 = vshrl.u32 %v2153_v61, 16 }
 0x182   : > { %v2162_v9 = vadd.s32 %v2160_v35, %v2154_v20  ;;  %vm2163_vm10 = vc.u32 %v2161_v49, %v2157_v52  ;;  %v2044_v12 = vsel %vm1923_vm12, %v2043_v56, %v2042_v46  ;;  %v9524_v24 = vadd.s32 %v2161_v49, %v2157_v52  ;;  %v9551_v35 = vpop.permute.xlu2 %1084 }
 0x183   : > { %v2164_v16 = vsel %vm2163_vm10, 1, %v14429_v0  ;;  %v2047_v19 = vsel %vm9504_vm11, %v9145_v63, %v2044_v12  ;;  %v9526_v2 = vshrl.u32 %v2243_v53, 5  ;;  %v2238_v30 = vand.u32 8388607, %v2231_v41 }
 0x184   : > { %v2166_v31 = vadd.s32 %v2164_v16, %v2162_v9  ;;  %v2049_v15 = vmul.f32 %v2047_v19, %v2047_v19  ;;  %vm2171_vm13 = vc.u32 %v9516_v33, %v9524_v24  ;;  %v2249_v61 = vshrl.u32 %v14437_v45, %v9519_v17 }
 0x185   : > { %v2252_v13 = vshrl.u32 %v14439_v48, %v9519_v17  ;;  %v2258_v29 = vshrl.u32 %v14445_v62, %v9519_v17  ;;  %v2255_v39 = vshrl.u32 %v14441_v55, %v9519_v17  ;;  %v2257_v51 = vshll.u32 %v14441_v55, %v2245_v25 }
 0x186   : > { %v2167_v40 = vadd.s32 %v2166_v31, %v2156_v28  ;;  %v2050_v47 = vmul.f32 -0.001358992, %v2049_v15  ;;  %v2057_v3 = vmul.f32 -0.00019511016, %v2049_v15  ;;  %v2248_v5 = vshll.u32 %v14431_v43, %v2245_v25 }
 0x187   : > { %v2251_v44 = vshll.u32 %v14437_v45, %v2245_v25  ;;  %v2261_v59 = vshrl.u32 %v14443_v4, %v9519_v17  ;;  %v2254_v50 = vshll.u32 %v14439_v48, %v2245_v25  ;;  %v2259_v52 = vor.u32 %v2258_v29, %v2257_v51 }
 0x188   : > { %v2168_v36 = vadd.s32 %v2167_v40, %v2158_v27  ;;  %v2051_v6 = vadd.f32 0.041655596, %v2050_v47  ;;  %v2058_v22 = vadd.f32 0.008332121, %v2057_v3  ;;  %v2065_v49 = vadd.s32 3, %v2048_v8 }
 0x189   : > { %v9553_v42 = vor.u32 %v2249_v61, %v2248_v5  ;;  %v2260_v14 = vshll.u32 %v14445_v62, %v2245_v25  ;;  %v9556_v56 = vor.u32 %v2252_v13, %v2251_v44  ;;  %v9558_v26 = vor.u32 %v2255_v39, %v2254_v50  ;;  %v9567_v25 = vpop.permute.xlu1 %1074 }
 0x18a   : > { %v2172_v7 = vadd.s32 1, %v2168_v36  ;;  %v2052_v18 = vmul.f32 %v2051_v6, %v2049_v15  ;;  %v2059_v20 = vmul.f32 %v2058_v22, %v2049_v15  ;;  %v2239_v54 = vor.u32 8388608, %v2238_v30 }
 0x18b   : > { %v2262_v28 = vor.u32 %v2261_v59, %v2260_v14  ;;  %vm2266_vm14 = vcmp.lt.s32.totalorder %v9526_v2, 4  ;;  %v2066_v27 = vand.u32 3, %v2065_v49  ;;  %vm2263_vm15 = vcmp.lt.s32.totalorder %v9526_v2, 1 }
 0x18c   : > { %v2173_v53 = vsel %vm2171_vm13, %v2172_v7, %v2168_v36  ;;  %v2053_v9 = vadd.f32 -0.4999988, %v2052_v18  ;;  %v2060_v11 = vadd.f32 -0.16666654, %v2059_v20  ;;  %v2272_v23 = vsel %vm2266_vm14, %v2259_v52, 920167782 }
 0x18d   : > { %v2174_v46 = vadd.s32 %v2173_v53, %v2169_v1  ;;  %vm2265_vm2 = vcmp.lt.s32.totalorder %v9526_v2, 3  ;;  %v2271_v1 = vsel %vm2263_vm15, %v9553_v42, %v9556_v56  ;;  %v2276_v30 = vsel %vm2266_vm14, %v2262_v28, 1326507024 }
 0x18e   : > { %v2054_v31 = vmul.f32 %v2053_v9, %v2049_v15  ;;  %v2061_v12 = vmul.f32 %v2060_v11, %v2049_v15  ;;  %v2275_v15 = vsel %vm2263_vm15, %v9556_v56, %v9558_v26  ;;  %v2273_v3 = vsel %vm2265_vm2, %v9558_v26, %v2272_v23 }
 0x18f   : > { %v2175_v16 = vadd.s32 536870912, %v2174_v46  ;;  %v9583_v7 = vshll.u32 %v2239_v54, 8  ;;  %vm2264_vm3 = vcmp.lt.s32.totalorder %v9526_v2, 2  ;;  %v2277_v29 = vsel %vm2265_vm2, %v2259_v52, %v2276_v30 }
 0x190   : > { %v2055_v8 = vadd.f32 1.0, %v2054_v31  ;;  %v2062_v36 = vadd.f32 1.0, %v2061_v12  ;;  %vm2064_vm4 = vweird.f32 %v9145_v63  ;;  %vm2067_vm5 = vcmp.lt.s32.totalorder %v2066_v27, 2 }
 0x191   : > { %v9563_v40 = vshrl.u32 %v2175_v16, 30  ;;  %v2278_v22 = vsel %vm2264_vm3, %v2275_v15, %v2277_v29  ;;  %vm2068_vm6 = vcmp.eq.s32.totalorder %v2066_v27, 0  ;;  %vm2071_vm7 = vcmp.eq.s32.totalorder %v2066_v27, 2  ;;  %v9601_v28 = vpop.permute.xlu1 %1263 }
 0x192   : > { %v2063_v61 = vmul.f32 %v2062_v36, %v2047_v19  ;;  %v2072_v13 = vxor.u32 2147483648, %v2055_v8  ;;  %v2274_v51 = vsel %vm2264_vm3, %v2271_v1, %v2273_v3  ;;  %v9593_v19 = vpop.permute.xlu2 %1089  ;;  %v2280_v5 = vand.u32 65535, %v9583_v7 }
 0x193   : > { %v2177_v47 = vshll.u32 %v9563_v40, 30  ;;  %v2282_v44 = vand.u32 65535, %v2278_v22  ;;  %v2281_v20 = vshrl.u32 %v9583_v7, 16  ;;  %v2283_v50 = vshrl.u32 %v2278_v22, 16 }
 0x194   : > { %v2069_v39 = vxor.u32 2147483648, %v2063_v61  ;;  %v2073_v18 = vsel %vm2071_vm7, %v2072_v13, %v2063_v61  ;;  %v2305_v14 = vshrl.u32 %v2274_v51, 16  ;;  %v1204_v27 = vmul.f32 %v8852_v57, %v9531_v38 }
 0x195   : > { %v2178_v6 = vsub.s32 %v2174_v46, %v2177_v47  ;;  %v2304_v46 = vand.u32 65535, %v2274_v51  ;;  %v2285_v16 = vmul.u32 %v2283_v50, %v2280_v5  ;;  %v2286_v54 = vmul.u32 %v2282_v44, %v2281_v20  ;;  %v1080_v47 = vpop.permute.xlu0 %1079 }
 0x196   : > { %v2070_v59 = vsel %vm2068_vm6, %v2055_v8, %v2069_v39  ;;  %v2284_v12 = vmul.u32 %v2282_v44, %v2280_v5  ;;  %v2287_v8 = vmul.u32 %v2283_v50, %v2281_v20  ;;  %v2307_v1 = vmul.u32 %v2305_v14, %v2280_v5 }
 0x197   : > { %vm2179_vm8 = vcmp.lt.s32.totalorder %v2178_v6, 0  ;;  %v2180_v53 = vsub.s32 0, %v2178_v6  ;;  %v2074_v52 = vsel %vm2067_vm5, %v2070_v59, %v2073_v18  ;;  %v2288_v23 = vshll.u32 %v2285_v16, 16 }
 0x198   : > { %v2075_v9 = vsel %vm2064_vm4, nan, %v2074_v52  ;;  %v2306_v36 = vmul.u32 %v2304_v46, %v2280_v5  ;;  %v2290_v15 = vshll.u32 %v2286_v54, 16  ;;  %v2308_v61 = vmul.u32 %v2304_v46, %v2281_v20 }
 0x199   : > { %v2181_v49 = vsel %vm2179_vm8, %v2180_v53, %v2178_v6  ;;  %8196 = vmatmul.msk.f32.gmra.mxu0 %vm935_vm1, %v2075_v9  ;;  %vm2292_vm10 = vc.u32 %v2284_v12, %v2288_v23  ;;  %v2294_v63 = vadd.s32 %v2288_v23, %v2284_v12  ;;  %v2310_v13 = vshll.u32 %v2307_v1, 16 }
 0x19a   : > { %v2182_v11 = vclz %v2181_v49  ;;  %v2293_v30 = vsel %vm2292_vm10, 1, %v14429_v0  ;;  %v2170_v29 = vadd.s32 %v9524_v24, %v9516_v33  ;;  %v1095_v38 = vpop.permute.xlu2 %1094  ;;  %v2309_v5 = vmul.u32 %v2305_v14, %v2281_v20  ;;  %v1268_v14 = vpop.permute.xlu1 %1267 }
 0x19b   : > { %v2295_v51 = vadd.s32 %v2293_v30, %v2287_v8  ;;  %vm2296_vm11 = vc.u32 %v2294_v63, %v2290_v15  ;;  %vm2314_vm12 = vc.u32 %v2306_v36, %v2310_v13  ;;  %v2289_v52 = vshrl.u32 %v2285_v16, 16 }
 0x19c   : > { %v8110_v31 = vadd.s32 4294967294, %v2182_v11  ;;  %v2297_v18 = vsel %vm2296_vm11, 1, %v14429_v0  ;;  %v2315_v50 = vsel %vm2314_vm12, 1, %v14429_v0  ;;  %v2312_v46 = vshll.u32 %v2308_v61, 16 }
 0x19d   : > { %v2299_v49 = vadd.s32 %v2297_v18, %v2295_v51  ;;  %v2316_v9 = vadd.s32 %v2310_v13, %v2306_v36  ;;  %v1365_v33 = vmul.f32 %v8854_v58, %v9481_v21  ;;  %v2268_v23 = vsel %vm2266_vm14, %v9558_v26, 2102212464 }
 0x19e   : > { %vm8111_vm9 = vcmp.lt.s32.totalorder %v8110_v31, 0  ;;  %v1205_v16 = vmul.f32 %v8852_v57, %v9567_v25  ;;  %v2247_v8 = vshrl.u32 %v14431_v43, %v9519_v17  ;;  %v2291_v36 = vshrl.u32 %v2286_v54, 16 }
 0x19f   : > { %v2185_v3 = vsel %vm8111_vm9, 0, %v8110_v31  ;;  %v2317_v31 = vadd.s32 %v2315_v50, %v2309_v5  ;;  %vm2318_vm13 = vc.u32 %v2316_v9, %v2312_v46  ;;  %v1397_v20 = vadd.f32 %v1365_v33, %v1204_v27  ;;  %v1276_v27 = vpop.permute.xlu0 %1275 }
 0x1a0   : > { %v2186_v22 = vsub.s32 32, %v2185_v3  ;;  %v2190_v39 = vsub.s32 4294967266, %v2185_v3  ;;  %v2187_v53 = vshll.u32 %v2178_v6, %v2185_v3  ;;  %v2300_v6 = vadd.s32 %v2299_v49, %v2289_v52 }
 0x1a1   : > { %v2319_v21 = vsel %vm2318_vm13, 1, %v14429_v0  ;;  %v2311_v3 = vshrl.u32 %v2307_v1, 16  ;;  %v1366_v13 = vmul.f32 %v8854_v58, %v9510_v34  ;;  %v2267_v26 = vsel %vm2263_vm15, %v2247_v8, %v9553_v42 }
 0x1a2   : > { %v2188_v44 = vshrl.u32 %v2170_v29, %v2186_v22  ;;  %v2191_v59 = vadd.s32 127, %v2190_v39  ;;  %v2321_v30 = vadd.s32 %v2319_v21, %v2317_v31  ;;  %v2269_v25 = vsel %vm2265_vm2, %v9556_v56, %v2268_v23  ;;  %v9633_v51 = vpop.permute.xlu2 %1279 }
 0x1a3   : > { %v9628_v17 = vadd.s32 %v2300_v6, %v2291_v36  ;;  %v9631_v54 = vadd.f32 %v8875_v32, %v1397_v20  ;;  %v2313_v1 = vshrl.u32 %v2308_v61, 16  ;;  %v1398_v39 = vadd.f32 %v1366_v13, %v1205_v16 }
 0x1a4   : > { %v2189_v24 = vor.u32 %v2188_v44, %v2187_v53  ;;  %v2192_v11 = vshll.u32 %v2191_v59, 23  ;;  %v2322_v22 = vadd.s32 %v2321_v30, %v2311_v3  ;;  %v9635_v34 = vadd.s32 %v2316_v9, %v2312_v46  ;;  %v1272_v46 = vpop.permute.xlu1 %1271 }
 0x1a5   : > { %v1367_v42 = vmul.f32 %v8854_v58, %v9601_v28  ;;  %v2270_v56 = vsel %vm2264_vm3, %v2267_v26, %v2269_v25  ;;  %v1206_v44 = vmul.f32 %v8852_v57, %v1080_v47  ;;  %vm2078_vm14 = vcmp.lt.s32.totalorder %v9191_v37, 0 }
 0x1a6   : > { %v2193_v12 = vor.u32 4788187, %v2192_v11  ;;  %v2196_v63 = vcvt.s32.f32 %v2189_v24  ;;  %v2323_v5 = vadd.s32 %v2322_v22, %v2313_v1  ;;  %vm2326_vm15 = vc.u32 %v9628_v17, %v9635_v34 }
 0x1a7   : > { %v2389_v61 = vand.u32 2139095040, %v9631_v54  ;;  %vm9648_vm2 = vcmp.le.f32.partialorder %v2076_v10, 0.7853982  ;;  %v9655_v18 = vadd.f32 %v8875_v32, %v1398_v39  ;;  %v2200_v47 = vsub.s32 4, %v9563_v40 }
 0x1a8   : > { %v2194_v15 = vand.u32 2147483647, %v2193_v12  ;;  %v2327_v28 = vadd.s32 1, %v2323_v5  ;;  %v2324_v52 = vmul.u32 %v9583_v7, %v2270_v56  ;;  %v1399_v49 = vadd.f32 %v1367_v42, %v1206_v44  ;;  %v9664_v12 = vpop.permute.xlu0 %1109 }
 0x1a9   : > { %v1209_v10 = vmul.f32 %v8852_v57, %v1095_v38  ;;  %v1370_v11 = vmul.f32 %v8854_v58, %v1276_v27  ;;  %v2390_v31 = vshrl.u32 %v2389_v61, 23  ;;  %v2544_v23 = vand.u32 2139095040, %v9655_v18 }
 0x1aa   : > { %v2197_v29 = vmul.f32 %v2196_v63, %v2194_v15  ;;  %v2328_v33 = vsel %vm2326_vm15, %v2327_v28, %v2323_v5  ;;  %v2201_v7 = vsel %vm2078_vm14, %v2200_v47, %v9563_v40  ;;  %v9671_v38 = vadd.f32 %v8875_v32, %v1399_v49  ;;  %v9674_v63 = vpop.permute.xlu2 %1283 }
 0x1ab   : > { %v2329_v24 = vadd.s32 %v2328_v33, %v2324_v52  ;;  %v1402_v8 = vadd.f32 %v1370_v11, %v1209_v10  ;;  %v1368_v15 = vmul.f32 %v8854_v58, %v1268_v14  ;;  %v8115_v30 = vadd.s32 4294967169, %v2390_v31 }
 0x1ac   : > { %v2198_v53 = vxor.u32 2147483648, %v2197_v29  ;;  %v2203_v27 = vsel %vm9648_vm2, 0, %v2201_v7  ;;  %v2545_v40 = vshrl.u32 %v2544_v23, 23  ;;  %v1207_v25 = vmul.f32 %v8852_v57, %v9551_v35  ;;  %v1100_v61 = vpop.permute.xlu1 %1099 }
 0x1ad   : > { %v2330_v16 = vadd.s32 536870912, %v2329_v24  ;;  %v2699_v1 = vand.u32 2139095040, %v9671_v38  ;;  %v9685_v14 = vadd.f32 %v8875_v32, %v1402_v8  ;;  %v2220_v56 = vadd.s32 3, %v2203_v27 }
 0x1ae   : > { %v2199_v2 = vsel %vm2078_vm14, %v2198_v53, %v2197_v29  ;;  %v1400_v42 = vadd.f32 %v1368_v15, %v1207_v25  ;;  %v1369_v53 = vmul.f32 %v8854_v58, %v1272_v46  ;;  %v2396_v44 = vadd.s32 1, %v8115_v30 }
 0x1af   : > { %v2202_v50 = vsel %vm9648_vm2, %v9191_v37, %v2199_v2  ;;  %v9676_v3 = vshrl.u32 %v2330_v16, 30  ;;  %14598 = vst [vmem:[#allocation5_spill] sm:$0xff] %v9685_v14  ;;  %v8118_v28 = vadd.s32 4294967169, %v2545_v40  ;;  %v1208_v35 = vmul.f32 %v8852_v57, %v9593_v19 }
 0x1b0   : > { %v2204_v9 = vmul.f32 %v2202_v50, %v2202_v50  ;;  %v2700_v52 = vshrl.u32 %v2699_v1, 23  ;;  %v3164_v49 = vand.u32 2139095040, %v9685_v14  ;;  %v9691_v11 = vpop.permute.xlu0 %1295  ;;  %v9694_v46 = vadd.f32 %v8875_v32, %v1400_v42 }
 0x1b1   : > { %v2332_v29 = vshll.u32 %v9676_v3, 30  ;;  %v2221_v31 = vand.u32 3, %v2220_v56  ;;  %vm2397_vm4 = vcmp.gt.s32.totalorder %v2396_v44, 0  ;;  %v2551_v19 = vadd.s32 1, %v8118_v28 }
 0x1b2   : > { %v2205_v6 = vmul.f32 -0.001358992, %v2204_v9  ;;  %v2212_v20 = vmul.f32 -0.00019511016, %v2204_v9  ;;  %v9696_v7 = vpop.permute.xlu2 %1114  ;;  %v8121_v16 = vadd.s32 4294967169, %v2700_v52  ;;  %v3165_v8 = vshrl.u32 %v3164_v49, 23 }
 0x1b3   : > { %v2333_v5 = vsub.s32 %v2329_v24, %v2332_v29  ;;  %v1401_v24 = vadd.f32 %v1369_v53, %v1208_v35  ;;  %v2854_v15 = vand.u32 2139095040, %v9694_v46  ;;  %vm2223_vm5 = vcmp.eq.s32.totalorder %v2221_v31, 0 }
 0x1b4   : > { %v2206_v36 = vadd.f32 0.041655596, %v2205_v6  ;;  %v2213_v21 = vadd.f32 0.008332121, %v2212_v20  ;;  %vm2226_vm6 = vcmp.eq.s32.totalorder %v2221_v31, 2  ;;  %vm2222_vm7 = vcmp.lt.s32.totalorder %v2221_v31, 2  ;;  %v1105_v25 = vpop.permute.xlu1 %1104 }
 0x1b5   : > { %vm2334_vm3 = vcmp.lt.s32.totalorder %v2333_v5, 0  ;;  %v2335_v47 = vsub.s32 0, %v2333_v5  ;;  %v9700_v30 = vadd.f32 %v8875_v32, %v1401_v24  ;;  %vm2219_vm9 = vweird.f32 %v9191_v37 }
 0x1b6   : > { %v2207_v13 = vmul.f32 %v2206_v36, %v2204_v9  ;;  %v2214_v26 = vmul.f32 %v2213_v21, %v2204_v9  ;;  %v2325_v1 = vadd.s32 %v9635_v34, %v9628_v17  ;;  %v2398_v42 = vsel %vm2397_vm4, %v2396_v44, 0 }
 0x1b7   : > { %v2336_v6 = vsel %vm2334_vm3, %v2335_v47, %v2333_v5  ;;  %14599 = vst [vmem:[#allocation6_spill] sm:$0xff] %v9700_v30  ;;  %vm2552_vm10 = vcmp.gt.s32.totalorder %v2551_v19, 0  ;;  %v1371_v53 = vmul.f32 %v8854_v58, %v9633_v51  ;;  %v2706_v56 = vadd.s32 1, %v8121_v16 }
 0x1b8   : > { %v2208_v22 = vadd.f32 -0.4999988, %v2207_v13  ;;  %v2215_v39 = vadd.f32 -0.16666654, %v2214_v26  ;;  %v2337_v23 = vclz %v2336_v6  ;;  %v1210_v13 = vmul.f32 %v8852_v57, %v1100_v61 }
 0x1b9   : > { %v8130_v28 = vadd.s32 4294967169, %v3165_v8  ;;  %v2855_v35 = vshrl.u32 %v2854_v15, 23  ;;  %v3009_v17 = vand.u32 2139095040, %v9700_v30  ;;  %v1211_v47 = vmul.f32 %v8852_v57, %v1105_v25  ;;  %v9740_v25 = vld [vmem:[%s8658_s9] ss:$0 sm:$0xff] }
 0x1ba   : > { %v2209_v59 = vmul.f32 %v2208_v22, %v2204_v9  ;;  %v2216_v2 = vmul.f32 %v2215_v39, %v2204_v9  ;;  %v8113_v21 = vadd.s32 4294967294, %v2337_v23  ;;  %v1403_v34 = vadd.f32 %v1371_v53, %v1210_v13  ;;  %v1120_v51 = vpop.permute.xlu2 %1119 }
 0x1bb   : > { %v9714_v49 = vand.u32 31, %v2398_v42  ;;  %vm2707_vm11 = vcmp.gt.s32.totalorder %v2706_v56, 0  ;;  %v3171_v24 = vadd.s32 1, %v8130_v28  ;;  %v8124_v31 = vadd.s32 4294967169, %v2855_v35 }
 0x1bc   : > { %v2210_v10 = vadd.f32 1.0, %v2209_v59  ;;  %v2217_v33 = vadd.f32 1.0, %v2216_v2  ;;  %vm8114_vm8 = vcmp.lt.s32.totalorder %v8113_v21, 0  ;;  %v9710_v2 = vpop.permute.xlu0 %1134  ;;  %v3010_v6 = vshrl.u32 %v3009_v17, 23 }
 0x1bd   : > { %v2340_v40 = vsel %vm8114_vm8, 0, %v8113_v21  ;;  %v1214_v23 = vmul.f32 %v8852_v57, %v1120_v51  ;;  %v9730_v21 = vsub.s32 32, %v9714_v49  ;;  %vm3172_vm12 = vcmp.gt.s32.totalorder %v3171_v24, 0 }
 0x1be   : > { %v2218_v9 = vmul.f32 %v2217_v33, %v2202_v50  ;;  %v2227_v20 = vxor.u32 2147483648, %v2210_v10  ;;  %v2341_v22 = vsub.s32 32, %v2340_v40  ;;  %v2345_v39 = vsub.s32 4294967266, %v2340_v40 }
 0x1bf   : > { %v2342_v61 = vshll.u32 %v2333_v5, %v2340_v40  ;;  %v1372_v5 = vmul.f32 %v8854_v58, %v9674_v63  ;;  %v1375_v63 = vmul.f32 %v8854_v58, %v9691_v11  ;;  %v2861_v40 = vadd.s32 1, %v8124_v31 }
 0x1c0   : > { %v2224_v36 = vxor.u32 2147483648, %v2218_v9  ;;  %v2228_v50 = vsel %vm2226_vm6, %v2227_v20, %v2218_v9  ;;  %v2343_v37 = vshrl.u32 %v2325_v1, %v2341_v22  ;;  %v2346_v59 = vadd.s32 127, %v2345_v39 }
 0x1c1   : > { %v9720_v9 = vadd.f32 %v8875_v32, %v1403_v34  ;;  %v1404_v20 = vadd.f32 %v1372_v5, %v1211_v47  ;;  %v1407_v22 = vadd.f32 %v1375_v63, %v1214_v23  ;;  %vm2233_vm13 = vcmp.lt.s32.totalorder %v9356_v60, 0 }
 0x1c2   : > { %v2225_v27 = vsel %vm2223_vm5, %v2210_v10, %v2224_v36  ;;  %v2344_v44 = vor.u32 %v2343_v37, %v2342_v61  ;;  %v2347_v52 = vshll.u32 %v2346_v59, 23  ;;  %v2553_v10 = vsel %vm2552_vm10, %v2551_v19, 0 }
 0x1c3   : > { %v2229_v26 = vsel %vm2222_vm7, %v2225_v27, %v2228_v50  ;;  %14600 = vst [vmem:[#allocation7_spill] sm:$0xff] %v9720_v9  ;;  %v9723_v36 = vshrl.u32 %v2398_v42, 5  ;;  %v1212_v19 = vmul.f32 %v8852_v57, %v9664_v12  ;;  %v9732_v15 = vand.u32 31, %v2553_v10  ;;  %v1288_v50 = vpop.permute.xlu1 %1287 }
 0x1c4   : > { %v2230_v29 = vsel %vm2219_vm9, nan, %v2229_v26  ;;  %v2348_v33 = vor.u32 4788187, %v2347_v52  ;;  %v2351_v8 = vcvt.s32.f32 %v2344_v44  ;;  %v2708_v27 = vsel %vm2707_vm11, %v2706_v56, 0  ;;  %v6693_v26 = vld [vmem:[%s14406_s12] sm:$0xff]  ;;  %v1316_v42 = vpop.permute.xlu0 %1315 }
 0x1c5   : > { %8197 = vmatmul.msk.f32.gmra.mxu0 %vm935_vm1, %v2230_v29  ;;  %v3319_v12 = vand.u32 2139095040, %v9720_v9  ;;  %v6697_v11 = vmul.f32 %v9740_v25, %v6693_v26  ;;  %v8127_v29 = vadd.s32 4294967169, %v3010_v6  ;;  %v9744_v1 = vadd.f32 %v8875_v32, %v1404_v20 }
 0x1c6   : > { %v2349_v16 = vand.u32 2147483647, %v2348_v33  ;;  %v1373_v53 = vmul.f32 %v8854_v58, %v1288_v50  ;;  %v2355_v56 = vsub.s32 4, %v9676_v3  ;;  %v9750_v37 = vshrl.u32 %v2553_v10, 5 }
 0x1c7   : > { %14601 = vst [vmem:[#allocation8_spill] sm:$0xff] %v9744_v1  ;;  %v6701_v61 = vsel %vm6427_vm0, %v6697_v11, 0.0  ;;  %v9752_v59 = vand.u32 31, %v2708_v27  ;;  %vm9756_vm14 = vcmp.le.f32.partialorder %v2231_v41, 0.7853982  ;;  %v9763_v17 = vsub.s32 32, %v9732_v15 }
 0x1c8   : > { %v2352_v13 = vmul.f32 %v2351_v8, %v2349_v16  ;;  %6702 = vadd.xlane.f32.xlu1 %v6701_v61  ;;  %v9765_v34 = vshrl.u32 %v2708_v27, 5  ;;  %v3320_v47 = vshrl.u32 %v3319_v12, 23  ;;  %v3173_v52 = vsel %vm3172_vm12, %v3171_v24, 0  ;;  %v6694_v16 = vld [vmem:[%s14406_s12 + $0x8] sm:$0xff] }
 0x1c9   : > { %vm2862_vm15 = vcmp.gt.s32.totalorder %v2861_v40, 0  ;;  %v3016_v41 = vadd.s32 1, %v8127_v29  ;;  %v3474_v10 = vand.u32 2139095040, %v9744_v1  ;;  %v9773_v5 = vadd.f32 %v8875_v32, %v1407_v22 }
 0x1ca   : > { %v2353_v39 = vxor.u32 2147483648, %v2352_v13  ;;  %v1405_v33 = vadd.f32 %v1373_v53, %v1212_v19  ;;  %v2356_v31 = vsel %vm2233_vm13, %v2355_v56, %v9676_v3  ;;  %v9779_v6 = vsub.s32 32, %v9752_v59 }
 0x1cb   : > { %14604 = vst [vmem:[#allocation9_spill] sm:$0xff] %v9773_v5  ;;  %v9783_v20 = vmul.f32 %v8852_v57, %v9710_v2  ;;  %v9788_v8 = vand.u32 31, %v3173_v52  ;;  %v2863_v19 = vsel %vm2862_vm15, %v2861_v40, 0  ;;  %v8133_v63 = vadd.s32 4294967169, %v3320_v47 }
 0x1cc   : > { %v2354_v35 = vsel %vm2233_vm13, %v2353_v39, %v2352_v13  ;;  %v6698_v27 = vmul.f32 %v9740_v25, %v6694_v16  ;;  %vm3017_vm2 = vcmp.gt.s32.totalorder %v3016_v41, 0  ;;  %v2358_v3 = vsel %vm9756_vm14, 0, %v2356_v31  ;;  %v1160_v28 = vpop.permute.xlu0 %1159 }
 0x1cd   : > { %v2357_v44 = vsel %vm9756_vm14, %v9356_v60, %v2354_v35  ;;  %14605 = vst [vmem:[#allocation10_spill] sm:$0xff] %v9788_v8  ;;  %v3475_v2 = vshrl.u32 %v3474_v10, 23  ;;  %v3939_v26 = vand.u32 2139095040, %v9773_v5  ;;  %v9795_v12 = vadd.f32 %v8875_v32, %v1405_v33 }
 0x1ce   : > { %v2359_v51 = vmul.f32 %v2357_v44, %v2357_v44  ;;  %v6704_v11 = vsel %vm6427_vm0, %v6698_v27, 0.0  ;;  %v9798_v29 = vshrl.u32 %v3173_v52, 5  ;;  %v9800_v40 = vand.u32 31, %v2863_v19 }
 0x1cf   : > { %14606 = vst [vmem:[#allocation11_spill] sm:$0xff] %v9795_v12  ;;  %6705 = vadd.xlane.f32.xlu2 %v6704_v11  ;;  %v9803_v53 = vsub.s32 32, %v9788_v8  ;;  %v3018_v56 = vsel %vm3017_vm2, %v3016_v41, 0  ;;  %v3326_v61 = vadd.s32 1, %v8133_v63  ;;  %v2375_v35 = vadd.s32 3, %v2358_v3 }
 0x1d0   : > { %v2360_v24 = vmul.f32 -0.001358992, %v2359_v51  ;;  %v2367_v23 = vmul.f32 -0.00019511016, %v2359_v51  ;;  %14607 = vst [vmem:[#allocation12_spill] sm:$0xff] %v9798_v29  ;;  %v9806_v47 = vmul.f32 %v8854_v58, %v1316_v42  ;;  %v9809_v31 = vshrl.u32 %v2863_v19, 5 }
 0x1d1   : > { %14608 = vst [vmem:[#allocation13_spill] sm:$0xff] %v9803_v53  ;;  %v14428_v52 = vand.u32 2147483647, %v9631_v54  ;;  %v3629_v16 = vand.u32 2139095040, %v9795_v12  ;;  %v9813_v27 = vsub.s32 32, %v9800_v40  ;;  %v9816_v41 = vmul.f32 %v8852_v57, %v1160_v28 }
 0x1d2   : > { %v2361_v50 = vadd.f32 0.041655596, %v2360_v24  ;;  %v2368_v13 = vadd.f32 0.008332121, %v2367_v23  ;;  %v8136_v24 = vadd.s32 4294967169, %v3475_v2  ;;  %v3940_v23 = vshrl.u32 %v3939_v26, 23 }
 0x1d3   : > { %14609 = vst [vmem:[#allocation14_spill] sm:$0xff] %v9816_v41  ;;  %v9818_v42 = vshrl.u32 %v3018_v56, 5  ;;  %v1213_v19 = vmul.f32 %v8852_v57, %v9696_v7  ;;  %vm3327_vm3 = vcmp.gt.s32.totalorder %v3326_v61, 0  ;;  %v2393_v11 = vand.u32 8388607, %v14428_v52 }
 0x1d4   : > { %v2362_v22 = vmul.f32 %v2361_v50, %v2359_v51  ;;  %v2369_v39 = vmul.f32 %v2368_v13, %v2359_v51  ;;  %v9820_v50 = vand.u32 31, %v3018_v56  ;;  %v2376_v13 = vand.u32 3, %v2375_v35 }
 0x1d5   : > { %14610 = vst [vmem:[#allocation15_spill] sm:$0xff] %v9818_v42  ;;  %v3630_v28 = vshrl.u32 %v3629_v16, 23  ;;  %vm2374_vm4 = vweird.f32 %v9356_v60  ;;  %v2407_v7 = vshrl.u32 %v14439_v48, %v9730_v21  ;;  %v2403_v35 = vshll.u32 %v14431_v43, %v9714_v49 }
 0x1d6   : > { %v2363_v10 = vadd.f32 -0.4999988, %v2362_v22  ;;  %v2370_v33 = vadd.f32 -0.16666654, %v2369_v39  ;;  %14611 = vst [vmem:[#allocation16_spill] sm:$0xff] %v9820_v50  ;;  %v3481_v22 = vadd.s32 1, %v8136_v24  ;;  %v2416_v5 = vshrl.u32 %v14443_v4, %v9730_v21 }
 0x1d7   : > { %v8145_v39 = vadd.s32 4294967169, %v3940_v23  ;;  %vm2377_vm5 = vcmp.lt.s32.totalorder %v2376_v13, 2  ;;  %vm2378_vm6 = vcmp.eq.s32.totalorder %v2376_v13, 0  ;;  %vm2381_vm7 = vcmp.eq.s32.totalorder %v2376_v13, 2 }
 0x1d8   : > { %v2364_v63 = vmul.f32 %v2363_v10, %v2359_v51  ;;  %v2371_v3 = vmul.f32 %v2370_v33, %v2359_v51  ;;  %v2404_v51 = vshrl.u32 %v14437_v45, %v9730_v21  ;;  %v2410_v33 = vshrl.u32 %v14441_v55, %v9730_v21 }
 0x1d9   : > { %v2394_v23 = vor.u32 8388608, %v2393_v11  ;;  %v1292_v11 = vpop.permute.xlu1 %1291  ;;  %vm3482_vm8 = vcmp.gt.s32.totalorder %v3481_v22, 0  ;;  %vm2418_vm9 = vcmp.lt.s32.totalorder %v9723_v36, 1  ;;  %vm2421_vm10 = vcmp.lt.s32.totalorder %v9723_v36, 4 }
 0x1da   : > { %v2365_v2 = vadd.f32 1.0, %v2364_v63  ;;  %v2372_v26 = vadd.f32 1.0, %v2371_v3  ;;  %v2405_v16 = vor.u32 %v2404_v51, %v2403_v35  ;;  %v2409_v63 = vshll.u32 %v14439_v48, %v9714_v49 }
 0x1db   : > { %v2412_v3 = vshll.u32 %v14441_v55, %v9714_v49  ;;  %v2415_v35 = vshll.u32 %v14445_v62, %v9714_v49  ;;  %v3328_v48 = vsel %vm3327_vm3, %v3326_v61, 0  ;;  %v3946_v55 = vadd.s32 1, %v8145_v39 }
 0x1dc   : > { %v2373_v10 = vmul.f32 %v2372_v26, %v2357_v44  ;;  %v2382_v56 = vxor.u32 2147483648, %v2365_v2  ;;  %v2406_v44 = vshll.u32 %v14437_v45, %v9714_v49  ;;  %v2413_v26 = vshrl.u32 %v14445_v62, %v9730_v21 }
 0x1dd   : > { %v2411_v45 = vor.u32 %v2410_v33, %v2409_v63  ;;  %vm2420_vm11 = vcmp.lt.s32.totalorder %v9723_v36, 3  ;;  %v9861_v60 = vsub.s32 32, %v9820_v50  ;;  %v9870_v13 = vsel %vm3482_vm8, %v3481_v22, 0  ;;  %v1336_v22 = vpop.permute.xlu0 %1335 }
 0x1de   : > { %v2379_v24 = vxor.u32 2147483648, %v2373_v10  ;;  %v2383_v0 = vsel %vm2381_vm7, %v2382_v56, %v2373_v10  ;;  %v2408_v43 = vor.u32 %v2407_v7, %v2406_v44  ;;  %v2414_v51 = vor.u32 %v2413_v26, %v2412_v3 }
 0x1df   : > { %v8139_v10 = vadd.s32 4294967169, %v3630_v28  ;;  %v2417_v56 = vor.u32 %v2416_v5, %v2415_v35  ;;  %14612 = vst [vmem:[#allocation17_spill] sm:$0xff] %v9861_v60  ;;  %v14614_v39 = vmov 683565275   ;;  %vm2419_vm12 = vcmp.lt.s32.totalorder %v9723_v36, 2 }
 0x1e0   : > { %v2380_v52 = vsel %vm2378_vm6, %v2365_v2, %v2379_v24  ;;  %v2426_v49 = vsel %vm2418_vm9, %v2405_v16, %v2408_v43  ;;  %v2427_v61 = vsel %vm2421_vm10, %v2414_v51, 920167782  ;;  %v2402_v28 = vshrl.u32 %v14614_v39, %v9730_v21 }
 0x1e1   : > { %v2384_v12 = vsel %vm2377_vm5, %v2380_v52, %v2383_v0  ;;  %v1374_v0 = vmul.f32 %v8854_v58, %v1292_v11  ;;  %v2428_v5 = vsel %vm2420_vm11, %v2411_v45, %v2427_v61  ;;  %v9867_v52 = vshll.u32 %v2394_v23, 8 }
 0x1e2   : > { %v2385_v2 = vsel %vm2374_vm4, nan, %v2384_v12  ;;  %v9863_v12 = vand.u32 31, %v3328_v48  ;;  %v2430_v7 = vsel %vm2418_vm9, %v2408_v43, %v2411_v45  ;;  %vm3947_vm13 = vcmp.gt.s32.totalorder %v3946_v55, 0 }
 0x1e3   : > { %8198 = vmatmul.msk.f32.gmra.mxu0 %vm935_vm1, %v2385_v2  ;;  %v2423_v33 = vsel %vm2421_vm10, %v2411_v45, 2102212464  ;;  %v2429_v24 = vsel %vm2419_vm12, %v2426_v49, %v2428_v5  ;;  %v2431_v23 = vsel %vm2421_vm10, %v2417_v56, 1326507024  ;;  %v9883_v44 = vadd.s32 1, %v8139_v10 }
 0x1e4   : > { %14613 = vst [vmem:[#allocation18_spill] sm:$0xff] %v9863_v12  ;;  %v1406_v63 = vadd.f32 %v1374_v0, %v1213_v19  ;;  %v2422_v21 = vsel %vm2418_vm9, %v2402_v28, %v2405_v16  ;;  %v2432_v3 = vsel %vm2420_vm11, %v2414_v51, %v2431_v23  ;;  %v2435_v45 = vand.u32 65535, %v9867_v52 }
 0x1e5   : > { %v2433_v26 = vsel %vm2419_vm12, %v2430_v7, %v2432_v3  ;;  %v2459_v11 = vand.u32 65535, %v2429_v24  ;;  %v2460_v35 = vshrl.u32 %v2429_v24, 16  ;;  %v2424_v2 = vsel %vm2420_vm11, %v2408_v43, %v2423_v33 }
 0x1e6   : > { %v2436_v10 = vshrl.u32 %v9867_v52, 16  ;;  %v2437_v56 = vand.u32 65535, %v2433_v26  ;;  %v2438_v19 = vshrl.u32 %v2433_v26, 16  ;;  %v9895_v0 = vshrl.u32 %v3328_v48, 5 }
 0x1e7   : > { %v9898_v16 = vsub.s32 32, %v9863_v12  ;;  %v9901_v51 = vmul.f32 %v8854_v58, %v1336_v22  ;;  %v2462_v49 = vmul.u32 %v2460_v35, %v2435_v45  ;;  %v9904_v61 = vand.u32 31, %v9870_v13 }
 0x1e8   : > { %14615 = vst [vmem:[#allocation19_spill] sm:$0xff] %v9895_v0  ;;  %v9907_v5 = vsel %vm3947_vm13, %v3946_v55, 0  ;;  %v2440_v43 = vmul.u32 %v2438_v19, %v2435_v45  ;;  %v2441_v28 = vmul.u32 %v2437_v56, %v2436_v10  ;;  %v9910_v7 = vadd.f32 %v8875_v32, %v1406_v63 }
 0x1e9   : > { %14616 = vst [vmem:[#allocation20_spill] sm:$0xff] %v9898_v16  ;;  %v9914_v48 = vsel %vm2419_vm12, %v2422_v21, %v2424_v2  ;;  %v2463_v33 = vmul.u32 %v2459_v11, %v2436_v10  ;;  %v2465_v24 = vshll.u32 %v2462_v49, 16  ;;  %vm3637_vm14 = vcmp.gt.s32.totalorder %v9883_v44, 0 }
 0x1ea   : > { %14617 = vst [vmem:[#allocation21_spill] sm:$0xff] %v9901_v51  ;;  %v2439_v23 = vmul.u32 %v2437_v56, %v2435_v45  ;;  %v2443_v22 = vshll.u32 %v2440_v43, 16  ;;  %v2461_v3 = vmul.u32 %v2459_v11, %v2435_v45  ;;  %v14452_v26 = vand.u32 2147483647, %v9655_v18 }
 0x1eb   : > { %14618 = vst [vmem:[#allocation22_spill] sm:$0xff] %v9904_v61  ;;  %v2442_v55 = vmul.u32 %v2438_v19, %v2436_v10  ;;  %v2444_v4 = vshrl.u32 %v2440_v43, 16  ;;  %v2464_v62 = vmul.u32 %v2460_v35, %v2436_v10  ;;  %v2466_v41 = vshrl.u32 %v2462_v49, 16 }
 0x1ec   : > { %14619 = vst [vmem:[#allocation23_spill] sm:$0xff] %v9910_v7  ;;  %v2445_v51 = vshll.u32 %v2441_v28, 16  ;;  %vm2447_vm15 = vc.u32 %v2439_v23, %v2443_v22  ;;  %v2449_v63 = vadd.s32 %v2443_v22, %v2439_v23  ;;  %vm2469_vm2 = vc.u32 %v2461_v3, %v2465_v24 }
 0x1ed   : > { %v14620_v36 = vmov 0   ;;  %v2467_v2 = vshll.u32 %v2463_v33, 16  ;;  %v2471_v0 = vadd.s32 %v2465_v24, %v2461_v3  ;;  %v2446_v12 = vshrl.u32 %v2441_v28, 16 }
 0x1ee   : > { %v2448_v21 = vsel %vm2447_vm15, 1, %v14620_v36  ;;  %v2470_v1 = vsel %vm2469_vm2, 1, %v14620_v36  ;;  %vm2451_vm3 = vc.u32 %v2449_v63, %v2445_v51  ;;  %v2468_v19 = vshrl.u32 %v2463_v33, 16 }
 0x1ef   : > { %v2450_v56 = vadd.s32 %v2448_v21, %v2442_v55  ;;  %v2472_v45 = vadd.s32 %v2470_v1, %v2464_v62  ;;  %v2452_v11 = vsel %vm2451_vm3, 1, %v14620_v36  ;;  %vm2473_vm4 = vc.u32 %v2471_v0, %v2467_v2  ;;  %v1185_v21 = vpop.permute.xlu0 %1184 }
 0x1f0   : > { %v2548_v35 = vand.u32 8388607, %v14452_v26  ;;  %v2474_v49 = vsel %vm2473_vm4, 1, %v14620_v36  ;;  %v9924_v43 = vadd.s32 %v2471_v0, %v2467_v2  ;;  %v2558_v23 = vshll.u32 %v14614_v39, %v9732_v15 }
 0x1f1   : > { %v2454_v10 = vadd.s32 %v2452_v11, %v2450_v56  ;;  %v2476_v24 = vadd.s32 %v2474_v49, %v2472_v45  ;;  %v14621_v28 = vmov 2475754826   ;;  %v14622_v1 = vmov 2131351028  }
 0x1f2   : > { %v2559_v51 = vshrl.u32 %v14621_v28, %v9763_v17  ;;  %v2561_v62 = vshll.u32 %v14621_v28, %v9732_v15  ;;  %v2562_v33 = vshrl.u32 %v14622_v1, %v9763_v17  ;;  %v2564_v3 = vshll.u32 %v14622_v1, %v9732_v15 }
 0x1f3   : > { %v2455_v22 = vadd.s32 %v2454_v10, %v2444_v4  ;;  %v14623_v0 = vmov 2102212464   ;;  %v2477_v2 = vadd.s32 %v2476_v24, %v2466_v41  ;;  %v14624_v11 = vmov 920167782  }
 0x1f4   : > { %v2565_v55 = vshrl.u32 %v14623_v0, %v9763_v17  ;;  %v2567_v63 = vshll.u32 %v14623_v0, %v9732_v15  ;;  %v9940_v56 = vor.u32 %v2559_v51, %v2558_v23  ;;  %v9942_v45 = vor.u32 %v2562_v33, %v2561_v62 }
 0x1f5   : > { %v2568_v49 = vshrl.u32 %v14624_v11, %v9763_v17  ;;  %v9946_v26 = vadd.s32 %v2455_v22, %v2446_v12  ;;  %v2570_v10 = vshll.u32 %v14624_v11, %v9732_v15  ;;  %v14625_v16 = vmov 1326507024  }
 0x1f6   : > { %v9948_v4 = vor.u32 %v2565_v55, %v2564_v3  ;;  %v2571_v9 = vshrl.u32 %v14625_v16, %v9763_v17  ;;  %v3638_v41 = vsel %vm3637_vm14, %v9883_v44, 0  ;;  %v3784_v23 = vand.u32 2139095040, %v9910_v7 }
 0x1f7   : > { %v2478_v24 = vadd.s32 %v2477_v2, %v2468_v19  ;;  %v2569_v51 = vor.u32 %v2568_v49, %v2567_v63  ;;  %v2479_v12 = vmul.u32 %v9867_v52, %v9914_v48  ;;  %vm2481_vm5 = vc.u32 %v9946_v26, %v9924_v43 }
 0x1f8   : > { %v2572_v62 = vor.u32 %v2571_v9, %v2570_v10  ;;  %vm2573_vm6 = vcmp.lt.s32.totalorder %v9750_v37, 1  ;;  %v2549_v33 = vor.u32 8388608, %v2548_v35  ;;  %vm2576_vm7 = vcmp.lt.s32.totalorder %v9750_v37, 4  ;;  %v1300_v10 = vpop.permute.xlu2 %1299 }
 0x1f9   : > { %v2482_v15 = vadd.s32 1, %v2478_v24  ;;  %v2581_v44 = vsel %vm2573_vm6, %v9940_v56, %v9942_v45  ;;  %vm2575_vm8 = vcmp.lt.s32.totalorder %v9750_v37, 3  ;;  %v2582_v52 = vsel %vm2576_vm7, %v2569_v51, 920167782 }
 0x1fa   : > { %v2585_v9 = vsel %vm2573_vm6, %v9942_v45, %v9948_v4  ;;  %v2586_v48 = vsel %vm2576_vm7, %v2572_v62, 1326507024  ;;  %vm2574_vm9 = vcmp.lt.s32.totalorder %v9750_v37, 2  ;;  %v2583_v35 = vsel %vm2575_vm8, %v9948_v4, %v2582_v52 }
 0x1fb   : > { %v2483_v19 = vsel %vm2481_vm5, %v2482_v15, %v2478_v24  ;;  %v2587_v22 = vsel %vm2575_vm8, %v2569_v51, %v2586_v48  ;;  %v9984_v3 = vand.u32 31, %v9907_v5  ;;  %v2584_v63 = vsel %vm2574_vm9, %v2581_v44, %v2583_v35 }
 0x1fc   : > { %v2484_v55 = vadd.s32 %v2483_v19, %v2479_v12  ;;  %v2588_v2 = vsel %vm2574_vm9, %v2585_v9, %v2587_v22  ;;  %v9991_v49 = vshrl.u32 %v9870_v13, 5  ;;  %v9993_v24 = vshll.u32 %v2549_v33, 8  ;;  %v1356_v9 = vpop.permute.xlu0 %1355 }
 0x1fd   : > { %14626 = vst [vmem:[#allocation24_spill] sm:$0xff] %v9984_v3  ;;  %v2592_v62 = vand.u32 65535, %v2588_v2  ;;  %v2593_v15 = vshrl.u32 %v2588_v2, 16  ;;  %v9996_v51 = vsub.s32 32, %v9904_v61  ;;  %v9998_v52 = vand.u32 31, %v3638_v41  ;;  %v1125_v2 = vpop.permute.xlu1 %1124 }
 0x1fe   : > { %14627 = vst [vmem:[#allocation25_spill] sm:$0xff] %v9991_v49  ;;  %v2485_v12 = vadd.s32 536870912, %v2484_v55  ;;  %v2615_v48 = vshrl.u32 %v2584_v63, 16  ;;  %v10001_v44 = vshrl.u32 %v9907_v5, 5  ;;  %v3785_v19 = vshrl.u32 %v3784_v23, 23 }
 0x1ff   : > { %14628 = vst [vmem:[#allocation26_spill] sm:$0xff] %v9996_v51  ;;  %v2590_v13 = vand.u32 65535, %v9993_v24  ;;  %v2591_v35 = vshrl.u32 %v9993_v24, 16  ;;  %v10006_v33 = vsub.s32 32, %v9984_v3  ;;  %v10009_v22 = vmul.f32 %v8852_v57, %v1185_v21 }
 0x200   : > { %14629 = vst [vmem:[#allocation27_spill] sm:$0xff] %v9998_v52  ;;  %v10011_v7 = vshrl.u32 %v2485_v12, 30  ;;  %v2614_v49 = vand.u32 65535, %v2584_v63  ;;  %v10013_v61 = vshrl.u32 %v3638_v41, 5  ;;  %v1376_v5 = vmul.f32 %v8854_v58, %v1300_v10 }
 0x201   : > { %14630 = vst [vmem:[#allocation28_spill] sm:$0xff] %v10001_v44  ;;  %v2595_v23 = vmul.u32 %v2593_v15, %v2590_v13  ;;  %v2596_v44 = vmul.u32 %v2592_v62, %v2591_v35  ;;  %v10017_v51 = vsub.s32 32, %v9998_v52  ;;  %v10020_v29 = vmul.f32 %v8854_v58, %v1356_v9 }
 0x202   : > { %14631 = vst [vmem:[#allocation29_spill] sm:$0xff] %v10006_v33  ;;  %v2487_v33 = vshll.u32 %v10011_v7, 30  ;;  %v2617_v21 = vmul.u32 %v2615_v48, %v2590_v13  ;;  %v1215_v12 = vmul.f32 %v8852_v57, %v1125_v2  ;;  %v2594_v3 = vmul.u32 %v2592_v62, %v2590_v13 }
 0x203   : > { %14632 = vst [vmem:[#allocation30_spill] sm:$0xff] %v10009_v22  ;;  %v8142_v22 = vadd.s32 4294967169, %v3785_v19  ;;  %v2598_v63 = vshll.u32 %v2595_v23, 16  ;;  %v2557_v10 = vshrl.u32 %v14614_v39, %v9763_v17  ;;  %v2618_v53 = vmul.u32 %v2614_v49, %v2591_v35  ;;  %v1304_v19 = vpop.permute.xlu2 %1303 }
 0x204   : > { %14633 = vst [vmem:[#allocation31_spill] sm:$0xff] %v10013_v61  ;;  %v10024_v41 = vsub.s32 %v2484_v55, %v2487_v33  ;;  %v2597_v61 = vmul.u32 %v2593_v15, %v2591_v35  ;;  %v2600_v52 = vshll.u32 %v2596_v44, 16  ;;  %v2620_v9 = vshll.u32 %v2617_v21, 16 }
 0x205   : > { %14634 = vst [vmem:[#allocation32_spill] sm:$0xff] %v10017_v51  ;;  %vm2602_vm10 = vc.u32 %v2594_v3, %v2598_v63  ;;  %v2604_v51 = vadd.s32 %v2598_v63, %v2594_v3  ;;  %v2578_v62 = vsel %vm2576_vm7, %v9948_v4, 2102212464  ;;  %v2599_v33 = vshrl.u32 %v2595_v23, 16 }
 0x206   : > { %14635 = vst [vmem:[#allocation33_spill] sm:$0xff] %v10020_v29  ;;  %vm2489_vm11 = vcmp.lt.s32.totalorder %v10024_v41, 0  ;;  %v2490_v29 = vsub.s32 0, %v10024_v41  ;;  %v2603_v55 = vsel %vm2602_vm10, 1, %v14620_v36  ;;  %v2616_v17 = vmul.u32 %v2614_v49, %v2590_v13 }
 0x207   : > { %v2605_v2 = vadd.s32 %v2603_v55, %v2597_v61  ;;  %vm2606_vm12 = vc.u32 %v2604_v51, %v2600_v52  ;;  %v2619_v63 = vmul.u32 %v2615_v48, %v2591_v35  ;;  %v2622_v8 = vshll.u32 %v2618_v53, 16 }
 0x208   : > { %v2491_v15 = vsel %vm2489_vm11, %v2490_v29, %v10024_v41  ;;  %v2607_v3 = vsel %vm2606_vm12, 1, %v14620_v36  ;;  %vm2624_vm13 = vc.u32 %v2616_v17, %v2620_v9  ;;  %v2626_v50 = vadd.s32 %v2620_v9, %v2616_v17 }
 0x209   : > { %v2492_v14 = vclz %v2491_v15  ;;  %v2609_v42 = vadd.s32 %v2607_v3, %v2605_v2  ;;  %v10037_v60 = vmul.f32 %v8854_v58, %v1304_v19  ;;  %v2577_v4 = vsel %vm2573_vm6, %v2557_v10, %v9940_v56 }
 0x20a   : > { %v2579_v61 = vsel %vm2575_vm8, %v9942_v45, %v2578_v62  ;;  %v2625_v29 = vsel %vm2624_vm13, 1, %v14620_v36  ;;  %vm2628_vm14 = vc.u32 %v2626_v50, %v2622_v8  ;;  %v10046_v48 = vadd.s32 1, %v8142_v22 }
 0x20b   : > { %v8116_v49 = vadd.s32 4294967294, %v2492_v14  ;;  %v2610_v51 = vadd.s32 %v2609_v42, %v2599_v33  ;;  %v2627_v52 = vadd.s32 %v2625_v29, %v2619_v63  ;;  %v1408_v13 = vadd.f32 %v1376_v5, %v1215_v12  ;;  %v6695_v63 = vld [vmem:[%s14406_s12 + $0x10] sm:$0xff] }
 0x20c   : > { %v2480_v35 = vadd.s32 %v9924_v43, %v9946_v26  ;;  %v2629_v23 = vsel %vm2628_vm14, 1, %v14620_v36  ;;  %v2601_v56 = vshrl.u32 %v2596_v44, 16  ;;  %v2621_v10 = vshrl.u32 %v2617_v21, 16 }
 0x20d   : > { %vm8117_vm15 = vcmp.lt.s32.totalorder %v8116_v49, 0  ;;  %v2631_v9 = vadd.s32 %v2629_v23, %v2627_v52  ;;  %v2580_v45 = vsel %vm2574_vm9, %v2577_v4, %v2579_v61  ;;  %v2623_v14 = vshrl.u32 %v2618_v53, 16  ;;  %v7219_v4 = vld [vmem:[%s14411_s17] sm:$0xff] }
 0x20e   : > { %v2495_v55 = vsel %vm8117_vm15, 0, %v8116_v49  ;;  %v14480_v42 = vand.u32 2147483647, %v9671_v38  ;;  %v10054_v19 = vadd.s32 %v2610_v51, %v2601_v56  ;;  %vm3792_vm2 = vcmp.gt.s32.totalorder %v10046_v48, 0 }
 0x20f   : > { %v2496_v62 = vsub.s32 32, %v2495_v55  ;;  %v2500_v22 = vsub.s32 4294967266, %v2495_v55  ;;  %v2632_v5 = vadd.s32 %v2631_v9, %v2621_v10  ;;  %v10058_v26 = vadd.f32 %v8875_v32, %v1408_v13 }
 0x210   : > { %v10060_v43 = vadd.s32 %v2626_v50, %v2622_v8  ;;  %v2717_v44 = vshrl.u32 %v14622_v1, %v9779_v6  ;;  %v2497_v37 = vshll.u32 %v10024_v41, %v2495_v55  ;;  %v2510_v33 = vsub.s32 4, %v10011_v7  ;;  %v10071_v8 = vpop.permute.xlu2 %1139 }
 0x211   : > { %14636 = vst [vmem:[#allocation34_spill] sm:$0xff] %v10058_v26  ;;  %v2498_v53 = vshrl.u32 %v2480_v35, %v2496_v62  ;;  %v2501_v21 = vadd.s32 127, %v2500_v22  ;;  %v2633_v12 = vadd.s32 %v2632_v5, %v2623_v14  ;;  %v2634_v2 = vmul.u32 %v9993_v24, %v2580_v45  ;;  %v6696_v24 = vld [vmem:[%s14406_s12 + $0x18] sm:$0xff] }
 0x212   : > { %v2703_v17 = vand.u32 8388607, %v14480_v42  ;;  %v2716_v15 = vshll.u32 %v14621_v28, %v9752_v59  ;;  %vm2636_vm3 = vc.u32 %v10054_v19, %v10060_v43  ;;  %v2719_v29 = vshll.u32 %v14622_v1, %v9752_v59 }
 0x213   : > { %v2499_v50 = vor.u32 %v2498_v53, %v2497_v37  ;;  %v2502_v3 = vshll.u32 %v2501_v21, 23  ;;  %v2637_v41 = vadd.s32 1, %v2633_v12  ;;  %v2720_v49 = vshrl.u32 %v14623_v0, %v9779_v6 }
 0x214   : > { %v10084_v61 = vor.u32 %v2717_v44, %v2716_v15  ;;  %v2726_v51 = vshrl.u32 %v14625_v16, %v9779_v6  ;;  %v6699_v13 = vmul.f32 %v9740_v25, %v6695_v63  ;;  %v2722_v35 = vshll.u32 %v14623_v0, %v9752_v59 }
 0x215   : > { %v2503_v52 = vor.u32 4788187, %v2502_v3  ;;  %v2723_v23 = vshrl.u32 %v14624_v11, %v9779_v6  ;;  %v6700_v56 = vmul.f32 %v9740_v25, %v6696_v24  ;;  %v7227_v10 = vmul.f32 %v9740_v25, %v7219_v4 }
 0x216   : > { %v2638_v9 = vsel %vm2636_vm3, %v2637_v41, %v2633_v12  ;;  %v2725_v55 = vshll.u32 %v14624_v11, %v9752_v59  ;;  %v2506_v14 = vcvt.s32.f32 %v2499_v50  ;;  %v6707_v62 = vsel %vm6427_vm0, %v6699_v13, 0.0 }
 0x217   : > { %v2504_v45 = vand.u32 2147483647, %v2503_v52  ;;  %v2639_v22 = vadd.s32 %v2638_v9, %v2634_v2  ;;  %6708 = vadd.xlane.f32.xlu0 %v6707_v62  ;;  %v6710_v5 = vsel %vm6427_vm0, %v6700_v56, 0.0  ;;  %v7235_v44 = vsel %vm6427_vm0, %v7227_v10, 0.0 }
 0x218   : > { %v10104_v37 = vor.u32 %v2720_v49, %v2719_v29  ;;  %v2727_v53 = vor.u32 %v2726_v51, %v2725_v55  ;;  %vm2388_vm4 = vcmp.lt.s32.totalorder %v9631_v54, 0  ;;  %6711 = vadd.xlane.f32.xlu1 %v6710_v5  ;;  %7236 = vadd.xlane.f32.xlu2 %v7235_v44  ;;  %v2724_v15 = vor.u32 %v2723_v23, %v2722_v35 }
 0x219   : > { %v2507_v21 = vmul.f32 %v2506_v14, %v2504_v45  ;;  %v2640_v12 = vadd.s32 536870912, %v2639_v22  ;;  %v10110_v50 = vsel %vm3792_vm2, %v10046_v48, 0  ;;  %v4094_v2 = vand.u32 2139095040, %v10058_v26 }
 0x21a   : > { %v2511_v3 = vsel %vm2388_vm4, %v2510_v33, %v10011_v7  ;;  %v2704_v41 = vor.u32 8388608, %v2703_v17  ;;  %vm2728_vm5 = vcmp.lt.s32.totalorder %v9765_v34, 1  ;;  %vm2731_vm6 = vcmp.lt.s32.totalorder %v9765_v34, 4  ;;  %v1130_v33 = vpop.permute.xlu1 %1129  ;;  %v1145_v17 = vpop.permute.xlu2 %1144 }
 0x21b   : > { %v2508_v63 = vxor.u32 2147483648, %v2507_v21  ;;  %v10116_v24 = vshrl.u32 %v2640_v12, 30  ;;  %v14637_v4 = vand.u32 2147483647, %v9631_v54  ;;  %vm2730_vm8 = vcmp.lt.s32.totalorder %v9765_v34, 3 }
 0x21c   : > { %v2740_v7 = vsel %vm2728_vm5, %v10084_v61, %v10104_v37  ;;  %v2741_v48 = vsel %vm2731_vm6, %v2727_v53, 1326507024  ;;  %v4095_v35 = vshrl.u32 %v4094_v2, 23  ;;  %vm2729_vm9 = vcmp.lt.s32.totalorder %v9765_v34, 2 }
 0x21d   : > { %vm10122_vm7 = vcmp.le.f32.partialorder %v14637_v4, 0.7853982  ;;  %v2509_v49 = vsel %vm2388_vm4, %v2508_v63, %v2507_v21  ;;  %v2642_v52 = vshll.u32 %v10116_v24, 30  ;;  %v2742_v13 = vsel %vm2730_vm8, %v2724_v15, %v2741_v48 }
 0x21e   : > { %v2513_v51 = vsel %vm10122_vm7, 0, %v2511_v3  ;;  %v2512_v23 = vsel %vm10122_vm7, %v9631_v54, %v2509_v49  ;;  %v10144_v56 = vshll.u32 %v2704_v41, 8  ;;  %v2714_v55 = vshrl.u32 %v14621_v28, %v9779_v6 }
 0x21f   : > { %v2514_v10 = vmul.f32 %v2512_v23, %v2512_v23  ;;  %v10146_v9 = vsub.s32 %v2639_v22, %v2642_v52  ;;  %v2743_v45 = vsel %vm2729_vm9, %v2740_v7, %v2742_v13  ;;  %v1216_v14 = vmul.f32 %v8852_v57, %v1130_v33 }
 0x220   : > { %v1219_v62 = vmul.f32 %v8852_v57, %v1145_v17  ;;  %v2530_v5 = vadd.s32 3, %v2513_v51  ;;  %v2713_v44 = vshll.u32 %v14614_v39, %v9752_v59  ;;  %v8148_v12 = vadd.s32 4294967169, %v4095_v35 }
 0x221   : > { %v2515_v53 = vmul.f32 -0.001358992, %v2514_v10  ;;  %v2522_v21 = vmul.f32 -0.00019511016, %v2514_v10  ;;  %vm2644_vm10 = vcmp.lt.s32.totalorder %v10146_v9, 0  ;;  %v2645_v22 = vsub.s32 0, %v10146_v9 }
 0x222   : > { %v10159_v2 = vand.u32 65535, %v10144_v56  ;;  %v2747_v3 = vand.u32 65535, %v2743_v45  ;;  %v2748_v41 = vshrl.u32 %v2743_v45, 16  ;;  %v10162_v7 = vor.u32 %v2714_v55, %v2713_v44 }
 0x223   : > { %v2516_v63 = vadd.f32 0.041655596, %v2515_v53  ;;  %v2523_v4 = vadd.f32 0.008332121, %v2522_v21  ;;  %v2646_v29 = vsel %vm2644_vm10, %v2645_v22, %v10146_v9  ;;  %v2737_v59 = vsel %vm2731_vm6, %v2724_v15, 920167782 }
 0x224   : > { %v2647_v48 = vclz %v2646_v29  ;;  %v10167_v33 = vshrl.u32 %v10144_v56, 16  ;;  %v10170_v17 = vmul.u32 %v2748_v41, %v10159_v2  ;;  %v10173_v49 = vand.u32 31, %v10110_v50 }
 0x225   : > { %v2517_v51 = vmul.f32 %v2516_v63, %v2514_v10  ;;  %v2524_v52 = vmul.f32 %v2523_v4, %v2514_v10  ;;  %v2531_v13 = vand.u32 3, %v2530_v5  ;;  %v10176_v35 = vadd.f32 %v10037_v60, %v1216_v14 }
 0x226   : > { %v10179_v55 = vadd.f32 %v9806_v47, %v1219_v62  ;;  %v8119_v45 = vadd.s32 4294967294, %v2647_v48  ;;  %v10182_v15 = vmul.u32 %v2747_v3, %v10167_v33  ;;  %v2736_v21 = vsel %vm2728_vm5, %v10162_v7, %v10084_v61 }
 0x227   : > { %v2518_v44 = vadd.f32 -0.4999988, %v2517_v51  ;;  %v2525_v53 = vadd.f32 -0.16666654, %v2524_v52  ;;  %v2738_v5 = vsel %vm2730_vm8, %v10104_v37, %v2737_v59  ;;  %v10191_v60 = vadd.s32 1, %v8148_v12 }
 0x228   : > { %v2635_v47 = vadd.s32 %v10060_v43, %v10054_v19  ;;  %vm8120_vm11 = vcmp.lt.s32.totalorder %v8119_v45, 0  ;;  %v2753_v14 = vshll.u32 %v10170_v17, 16  ;;  %vm2532_vm12 = vcmp.lt.s32.totalorder %v2531_v13, 2 }
 0x229   : > { %v2519_v62 = vmul.f32 %v2518_v44, %v2514_v10  ;;  %v2526_v22 = vmul.f32 %v2525_v53, %v2514_v10  ;;  %v2650_v63 = vsel %vm8120_vm11, 0, %v8119_v45  ;;  %v2749_v4 = vmul.u32 %v2747_v3, %v10159_v2 }
 0x22a   : > { %vm2529_vm13 = vweird.f32 %v9631_v54  ;;  %vm2543_vm14 = vcmp.lt.s32.totalorder %v9655_v18, 0  ;;  %v2651_v29 = vsub.s32 32, %v2650_v63  ;;  %v2655_v48 = vsub.s32 4294967266, %v2650_v63 }
 0x22b   : > { %v2739_v12 = vsel %vm2729_vm9, %v2736_v21, %v2738_v5  ;;  %v2755_v19 = vshll.u32 %v10182_v15, 16  ;;  %v2520_v43 = vadd.f32 1.0, %v2519_v62  ;;  %v2527_v59 = vadd.f32 1.0, %v2526_v22 }
 0x22c   : > { %vm2757_vm15 = vc.u32 %v2749_v4, %v2753_v14  ;;  %v2759_v51 = vadd.s32 %v2753_v14, %v2749_v4  ;;  %v2652_v10 = vshll.u32 %v10146_v9, %v2650_v63  ;;  %v2653_v52 = vshrl.u32 %v2635_v47, %v2651_v29  ;;  %v7220_v9 = vld [vmem:[%s14411_s17 + $0x8] sm:$0xff] }
 0x22d   : > { %v2656_v45 = vadd.s32 127, %v2655_v48  ;;  %v2758_v3 = vsel %vm2757_vm15, 1, %v14620_v36  ;;  %v2528_v44 = vmul.f32 %v2527_v59, %v2512_v23  ;;  %v2537_v53 = vxor.u32 2147483648, %v2520_v43  ;;  %v7221_v23 = vld [vmem:[%s14411_s17 + $0x10] sm:$0xff] }
 0x22e   : > { %v2752_v42 = vmul.u32 %v2748_v41, %v10167_v33  ;;  %vm2761_vm2 = vc.u32 %v2759_v51, %v2755_v19  ;;  %vm2533_vm3 = vcmp.eq.s32.totalorder %v2531_v13, 0  ;;  %v2654_v26 = vor.u32 %v2653_v52, %v2652_v10 }
 0x22f   : > { %v2657_v21 = vshll.u32 %v2656_v45, 23  ;;  %v2770_v5 = vshrl.u32 %v2739_v12, 16  ;;  %v2534_v30 = vxor.u32 2147483648, %v2528_v44  ;;  %vm2536_vm4 = vcmp.eq.s32.totalorder %v2531_v13, 2 }
 0x230   : > { %v2665_v62 = vsub.s32 4, %v10116_v24  ;;  %v2760_v47 = vadd.s32 %v2758_v3, %v2752_v42  ;;  %v7228_v41 = vmul.f32 %v9740_v25, %v7220_v9  ;;  %v2762_v22 = vsel %vm2761_vm2, 1, %v14620_v36 }
 0x231   : > { %v2658_v14 = vor.u32 4788187, %v2657_v21  ;;  %v2769_v63 = vand.u32 65535, %v2739_v12  ;;  %v2535_v4 = vsel %vm2533_vm3, %v2520_v43, %v2534_v30  ;;  %v2538_v29 = vsel %vm2536_vm4, %v2537_v53, %v2528_v44 }
 0x232   : > { %v2661_v48 = vcvt.s32.f32 %v2654_v26  ;;  %v7229_v19 = vmul.f32 %v9740_v25, %v7221_v23  ;;  %v2539_v59 = vsel %vm2532_vm12, %v2535_v4, %v2538_v29  ;;  %v7238_v10 = vsel %vm6427_vm0, %v7228_v41, 0.0 }
 0x233   : > { %v2659_v51 = vand.u32 2147483647, %v2658_v14  ;;  %v2772_v52 = vmul.u32 %v2770_v5, %v10159_v2  ;;  %v2540_v42 = vsel %vm2529_vm13, nan, %v2539_v59  ;;  %v2666_v45 = vsel %vm2543_vm14, %v2665_v62, %v10116_v24  ;;  %7239 = vadd.xlane.f32.xlu1 %v7238_v10 }
 0x234   : > { %v7241_v30 = vsel %vm6427_vm0, %v7229_v19, 0.0  ;;  %v2764_v26 = vadd.s32 %v2762_v22, %v2760_v47  ;;  %8199 = vmatmul.msk.f32.gmra.mxu0 %vm935_vm1, %v2540_v42  ;;  %v2771_v13 = vmul.u32 %v2769_v63, %v10159_v2  ;;  %v2773_v12 = vmul.u32 %v2769_v63, %v10167_v33 }
 0x235   : > { %v2662_v25 = vmul.f32 %v2661_v48, %v2659_v51  ;;  %7242 = vadd.xlane.f32.xlu2 %v7241_v30  ;;  %v2775_v43 = vshll.u32 %v2772_v52, 16  ;;  %v14640_v54 = vand.u32 2147483647, %v9655_v18  ;;  %v2712_v24 = vshrl.u32 %v14614_v39, %v9779_v6 }
 0x236   : > { %v2733_v44 = vsel %vm2731_vm6, %v10104_v37, 2102212464  ;;  %v2754_v53 = vshrl.u32 %v10170_v17, 16  ;;  %v2774_v62 = vmul.u32 %v2770_v5, %v10167_v33  ;;  %v2777_v23 = vshll.u32 %v2773_v12, 16 }
 0x237   : > { %vm10229_vm7 = vcmp.le.f32.partialorder %v14640_v54, 0.7853982  ;;  %v2663_v21 = vxor.u32 2147483648, %v2662_v25  ;;  %vm2779_vm10 = vc.u32 %v2771_v13, %v2775_v43  ;;  %v2781_v14 = vadd.s32 %v2775_v43, %v2771_v13 }
 0x238   : > { %v2668_v2 = vsel %vm10229_vm7, 0, %v2666_v45  ;;  %v2765_v9 = vadd.s32 %v2764_v26, %v2754_v53  ;;  %v2780_v47 = vsel %vm2779_vm10, 1, %v14620_v36  ;;  %v10245_v6 = vadd.f32 %v8875_v32, %v10176_v35 }
 0x239   : > { %v2664_v37 = vsel %vm2543_vm14, %v2663_v21, %v2662_v25  ;;  %v2732_v17 = vsel %vm2728_vm5, %v2712_v24, %v10162_v7  ;;  %v2782_v41 = vadd.s32 %v2780_v47, %v2774_v62  ;;  %v2734_v5 = vsel %vm2730_vm8, %v10084_v61, %v2733_v44 }
 0x23a   : > { %v2667_v33 = vsel %vm10229_vm7, %v9655_v18, %v2664_v37  ;;  %v2756_v22 = vshrl.u32 %v10182_v15, 16  ;;  %vm2783_vm6 = vc.u32 %v2781_v14, %v2777_v23  ;;  %vm4102_vm11 = vcmp.gt.s32.totalorder %v10191_v60, 0 }
 0x23b   : > { %v2669_v35 = vmul.f32 %v2667_v33, %v2667_v33  ;;  %v2685_v63 = vadd.s32 3, %v2668_v2  ;;  %v2784_v4 = vsel %vm2783_vm6, 1, %v14620_v36  ;;  %v2776_v7 = vshrl.u32 %v2772_v52, 16 }
 0x23c   : > { %v10261_v29 = vadd.s32 %v2765_v9, %v2756_v22  ;;  %v2786_v48 = vadd.s32 %v2784_v4, %v2782_v41  ;;  %v14486_v19 = vand.u32 2147483647, %v9694_v46  ;;  %v10266_v59 = vadd.f32 %v8875_v32, %v10179_v55 }
 0x23d   : > { %v2670_v61 = vmul.f32 -0.001358992, %v2669_v35  ;;  %v2677_v51 = vmul.f32 -0.00019511016, %v2669_v35  ;;  %v2735_v15 = vsel %vm2729_vm9, %v2732_v17, %v2734_v5  ;;  %v4249_v10 = vand.u32 2139095040, %v10245_v6 }
 0x23e   : > { %14643 = vst [vmem:[#allocation35_spill] sm:$0xff] %v10266_v59  ;;  %v2778_v42 = vshrl.u32 %v2773_v12, 16  ;;  %v10271_v45 = vadd.s32 %v2781_v14, %v2777_v23  ;;  %v2787_v30 = vadd.s32 %v2786_v48, %v2776_v7  ;;  %v10276_v52 = vsel %vm4102_vm11, %v10191_v60, 0 }
 0x23f   : > { %v2671_v26 = vadd.f32 0.041655596, %v2670_v61  ;;  %v2678_v25 = vadd.f32 0.008332121, %v2677_v51  ;;  %v2686_v55 = vand.u32 3, %v2685_v63  ;;  %v2789_v43 = vmul.u32 %v10144_v56, %v2735_v15 }
 0x240   : > { %v2788_v13 = vadd.s32 %v2787_v30, %v2778_v42  ;;  %vm2791_vm5 = vc.u32 %v10261_v29, %v10271_v45  ;;  %v2858_v34 = vand.u32 8388607, %v14486_v19  ;;  %v2868_v3 = vshll.u32 %v14614_v39, %v9800_v40 }
 0x241   : > { %v2672_v12 = vmul.f32 %v2671_v26, %v2669_v35  ;;  %v2679_v54 = vmul.f32 %v2678_v25, %v2669_v35  ;;  %v2869_v60 = vshrl.u32 %v14621_v28, %v9813_v27  ;;  %v2871_v44 = vshll.u32 %v14621_v28, %v9800_v40 }
 0x242   : > { %v2792_v24 = vadd.s32 1, %v2788_v13  ;;  %v2872_v56 = vshrl.u32 %v14622_v1, %v9813_v27  ;;  %v2875_v53 = vshrl.u32 %v14623_v0, %v9813_v27  ;;  %v2877_v62 = vshll.u32 %v14623_v0, %v9800_v40 }
 0x243   : > { %v2673_v21 = vadd.f32 -0.4999988, %v2672_v12  ;;  %v2680_v2 = vadd.f32 -0.16666654, %v2679_v54  ;;  %v2878_v9 = vshrl.u32 %v14624_v11, %v9813_v27  ;;  %v2874_v47 = vshll.u32 %v14622_v1, %v9800_v40 }
 0x244   : > { %v2793_v23 = vsel %vm2791_vm5, %v2792_v24, %v2788_v13  ;;  %v2880_v14 = vshll.u32 %v14624_v11, %v9800_v40  ;;  %v2881_v37 = vshrl.u32 %v14625_v16, %v9813_v27  ;;  %v10303_v63 = vor.u32 %v2869_v60, %v2868_v3 }
 0x245   : > { %v2674_v17 = vmul.f32 %v2673_v21, %v2669_v35  ;;  %v2681_v41 = vmul.f32 %v2680_v2, %v2669_v35  ;;  %v2794_v5 = vadd.s32 %v2793_v23, %v2789_v43  ;;  %v2879_v22 = vor.u32 %v2878_v9, %v2877_v62  ;;  %v1308_v2 = vpop.permute.xlu1 %1307 }
 0x246   : > { %v10305_v4 = vor.u32 %v2872_v56, %v2871_v44  ;;  %v10307_v7 = vor.u32 %v2875_v53, %v2874_v47  ;;  %v2882_v48 = vor.u32 %v2881_v37, %v2880_v14  ;;  %vm2886_vm8 = vcmp.lt.s32.totalorder %v9809_v31, 4 }
 0x247   : > { %v2675_v61 = vadd.f32 1.0, %v2674_v17  ;;  %v2682_v51 = vadd.f32 1.0, %v2681_v41  ;;  %v2795_v15 = vadd.s32 536870912, %v2794_v5  ;;  %v4714_v40 = vand.u32 2139095040, %v10266_v59 }
 0x248   : > { %vm2687_vm9 = vcmp.lt.s32.totalorder %v2686_v55, 2  ;;  %v2859_v42 = vor.u32 8388608, %v2858_v34  ;;  %v2892_v35 = vsel %vm2886_vm8, %v2879_v22, 920167782  ;;  %vm2883_vm12 = vcmp.lt.s32.totalorder %v9809_v31, 1 }
 0x249   : > { %v2683_v30 = vmul.f32 %v2682_v51, %v2667_v33  ;;  %v2692_v26 = vxor.u32 2147483648, %v2675_v61  ;;  %v10313_v25 = vshrl.u32 %v2795_v15, 30  ;;  %vm2688_vm13 = vcmp.eq.s32.totalorder %v2686_v55, 0 }
 0x24a   : > { %vm2885_vm14 = vcmp.lt.s32.totalorder %v9809_v31, 3  ;;  %v2895_v13 = vsel %vm2883_vm12, %v10305_v4, %v10307_v7  ;;  %v2896_v43 = vsel %vm2886_vm8, %v2882_v48, 1326507024  ;;  %v2891_v33 = vsel %vm2883_vm12, %v10303_v63, %v10305_v4 }
 0x24b   : > { %v2689_v34 = vxor.u32 2147483648, %v2683_v30  ;;  %v2797_v12 = vshll.u32 %v10313_v25, 30  ;;  %v2893_v54 = vsel %vm2885_vm14, %v10307_v7, %v2892_v35  ;;  %vm2691_vm15 = vcmp.eq.s32.totalorder %v2686_v55, 2 }
 0x24c   : > { %vm2884_vm2 = vcmp.lt.s32.totalorder %v9809_v31, 2  ;;  %v2897_v3 = vsel %vm2885_vm14, %v2879_v22, %v2896_v43  ;;  %v10334_v60 = vshll.u32 %v2859_v42, 8  ;;  %v2693_v44 = vsel %vm2691_vm15, %v2692_v26, %v2683_v30 }
 0x24d   : > { %v2690_v24 = vsel %vm2688_vm13, %v2675_v61, %v2689_v34  ;;  %v2798_v56 = vsub.s32 %v2794_v5, %v2797_v12  ;;  %v2898_v53 = vsel %vm2884_vm2, %v2895_v13, %v2897_v3  ;;  %v4250_v21 = vshrl.u32 %v4249_v10, 23 }
 0x24e   : > { %vm2684_vm3 = vweird.f32 %v9655_v18  ;;  %v2694_v62 = vsel %vm2687_vm9, %v2690_v24, %v2693_v44  ;;  %v2894_v9 = vsel %vm2884_vm2, %v2891_v33, %v2893_v54  ;;  %v4715_v23 = vshrl.u32 %v4714_v40, 23 }
 0x24f   : > { %v2695_v47 = vsel %vm2684_vm3, nan, %v2694_v62  ;;  %vm2799_vm4 = vcmp.lt.s32.totalorder %v2798_v56, 0  ;;  %v2800_v14 = vsub.s32 0, %v2798_v56  ;;  %v2900_v37 = vand.u32 65535, %v10334_v60 }
 0x250   : > { %8200 = vmatmul.msk.f32.gmra.mxu0 %vm935_vm1, %v2695_v47  ;;  %v2901_v17 = vshrl.u32 %v10334_v60, 16  ;;  %v2902_v41 = vand.u32 65535, %v2898_v53  ;;  %v2903_v10 = vshrl.u32 %v2898_v53, 16  ;;  %v10348_v5 = vshrl.u32 %v10110_v50, 5 }
 0x251   : > { %v1378_v18 = vmul.f32 %v8854_v58, %v1308_v2  ;;  %v2801_v55 = vsel %vm2799_vm4, %v2800_v14, %v2798_v56  ;;  %v2925_v22 = vshrl.u32 %v2894_v9, 16  ;;  %v2924_v15 = vand.u32 65535, %v2894_v9 }
 0x252   : > { %v2802_v48 = vclz %v2801_v55  ;;  %v2905_v61 = vmul.u32 %v2903_v10, %v2900_v37  ;;  %v10351_v51 = vmul.u32 %v2902_v41, %v2901_v17  ;;  %v10354_v40 = vsub.s32 32, %v10173_v49 }
 0x253   : > { %v10357_v42 = vshrl.u32 %v10276_v52, 5  ;;  %v10361_v35 = vmul.f32 %v8852_v57, %v10071_v8  ;;  %v8151_v50 = vadd.s32 4294967169, %v4250_v21  ;;  %v8160_v30 = vadd.s32 4294967169, %v4715_v23 }
 0x254   : > { %v8122_v26 = vadd.s32 4294967294, %v2802_v48  ;;  %v2904_v13 = vmul.u32 %v2902_v41, %v2900_v37  ;;  %v2908_v43 = vshll.u32 %v2905_v61, 16  ;;  %v1410_v34 = vadd.f32 %v1378_v18, %v9783_v20 }
 0x255   : > { %v2907_v12 = vmul.u32 %v2903_v10, %v2901_v17  ;;  %v2910_v33 = vshll.u32 %v10351_v51, 16  ;;  %v10365_v54 = vmul.u32 %v2925_v22, %v2900_v37  ;;  %v2926_v24 = vmul.u32 %v2924_v15, %v2900_v37 }
 0x256   : > { %vm8123_vm7 = vcmp.lt.s32.totalorder %v8122_v26, 0  ;;  %vm2912_vm10 = vc.u32 %v2904_v13, %v2908_v43  ;;  %v2914_v3 = vadd.s32 %v2908_v43, %v2904_v13  ;;  %v10368_v53 = vmul.u32 %v2924_v15, %v2901_v17  ;;  %v7222_v43 = vld [vmem:[%s14411_s17 + $0x18] sm:$0xff] }
 0x257   : > { %v2805_v44 = vsel %vm8123_vm7, 0, %v8122_v26  ;;  %v2913_v8 = vsel %vm2912_vm10, 1, %v14620_v36  ;;  %v2930_v21 = vshll.u32 %v10365_v54, 16  ;;  %v2790_v2 = vadd.s32 %v10271_v45, %v10261_v29 }
 0x258   : > { %v2806_v20 = vsub.s32 32, %v2805_v44  ;;  %v2810_v62 = vsub.s32 4294967266, %v2805_v44  ;;  %v2915_v9 = vadd.s32 %v2913_v8, %v2907_v12  ;;  %v4256_v23 = vadd.s32 1, %v8151_v50 }
 0x259   : > { %v2807_v47 = vshll.u32 %v2798_v56, %v2805_v44  ;;  %vm2916_vm6 = vc.u32 %v2914_v3, %v2910_v33  ;;  %vm2934_vm11 = vc.u32 %v2926_v24, %v2930_v21  ;;  %v2929_v55 = vmul.u32 %v2925_v22, %v2901_v17  ;;  %v7223_v17 = vld [vmem:[%s14411_s17 + $0x20] sm:$0xff]  ;;  %v7224_v22 = vld [vmem:[%s14411_s17 + $0x28] sm:$0xff] }
 0x25a   : > { %v2808_v14 = vshrl.u32 %v2790_v2, %v2806_v20  ;;  %v2811_v41 = vadd.s32 127, %v2810_v62  ;;  %v2917_v37 = vsel %vm2916_vm6, 1, %v14620_v36  ;;  %v2935_v10 = vsel %vm2934_vm11, 1, %v14620_v36 }
 0x25b   : > { %v2919_v18 = vadd.s32 %v2917_v37, %v2915_v9  ;;  %v2932_v48 = vshll.u32 %v10368_v53, 16  ;;  %v2936_v15 = vadd.s32 %v2930_v21, %v2926_v24  ;;  %v2867_v50 = vshrl.u32 %v14614_v39, %v9813_v27  ;;  %v1312_v21 = vpop.permute.xlu1 %1311 }
 0x25c   : > { %v2809_v29 = vor.u32 %v2808_v14, %v2807_v47  ;;  %v2812_v45 = vshll.u32 %v2811_v41, 23  ;;  %v2909_v56 = vshrl.u32 %v2905_v61, 16  ;;  %v4721_v26 = vadd.s32 1, %v8160_v30  ;;  %v10391_v61 = vld [vmem:[%s8658_s9] ss:$0 sm:$0xff] }
 0x25d   : > { %v10379_v13 = vadd.f32 %v8875_v32, %v1410_v34  ;;  %v2937_v12 = vadd.s32 %v2935_v10, %v2929_v55  ;;  %vm2938_vm5 = vc.u32 %v2936_v15, %v2932_v48  ;;  %v7230_v30 = vmul.f32 %v10391_v61, %v7222_v43  ;;  %v1320_v43 = vpop.permute.xlu2 %1319 }
 0x25e   : > { %v2813_v27 = vor.u32 4788187, %v2812_v45  ;;  %v2887_v34 = vsel %vm2883_vm12, %v2867_v50, %v10303_v63  ;;  %v2920_v33 = vadd.s32 %v2919_v18, %v2909_v56  ;;  %v7231_v3 = vmul.f32 %v10391_v61, %v7223_v17 }
 0x25f   : > { %14644 = vst [vmem:[#allocation36_spill] sm:$0xff] %v10379_v13  ;;  %v7232_v24 = vmul.f32 %v10391_v61, %v7224_v22  ;;  %v2888_v44 = vsel %vm2886_vm8, %v10307_v7, 2102212464  ;;  %v2911_v8 = vshrl.u32 %v10351_v51, 16  ;;  %v2816_v20 = vcvt.s32.f32 %v2809_v29 }
 0x260   : > { %v2814_v2 = vand.u32 2147483647, %v2813_v27  ;;  %v7244_v62 = vsel %vm6427_vm0, %v7230_v30, 0.0  ;;  %v2939_v9 = vsel %vm2938_vm5, 1, %v14620_v36  ;;  %v7247_v63 = vsel %vm6427_vm0, %v7231_v3, 0.0 }
 0x261   : > { %7245 = vadd.xlane.f32.xlu0 %v7244_v62  ;;  %v7250_v47 = vsel %vm6427_vm0, %v7232_v24, 0.0  ;;  %v2931_v14 = vshrl.u32 %v10365_v54, 16  ;;  %v2941_v41 = vadd.s32 %v2939_v9, %v2937_v12  ;;  %vm4257_vm9 = vcmp.gt.s32.totalorder %v4256_v23, 0  ;;  %7248 = vadd.xlane.f32.xlu1 %v7247_v63  ;;  %v14649_v24 = vld [vmem:[#allocation6_spill] sm:$0xff] }
 0x262   : > { %v2817_v37 = vmul.f32 %v2816_v20, %v2814_v2  ;;  %7251 = vadd.xlane.f32.xlu2 %v7250_v47  ;;  %v2889_v7 = vsel %vm2885_vm14, %v10305_v4, %v2888_v44  ;;  %v10411_v51 = vadd.s32 %v2920_v33, %v2911_v8  ;;  %v1379_v10 = vmul.f32 %v8854_v58, %v1312_v21 }
 0x263   : > { %v2820_v18 = vsub.s32 4, %v10313_v25  ;;  %v2933_v55 = vshrl.u32 %v10368_v53, 16  ;;  %v2942_v29 = vadd.s32 %v2941_v41, %v2931_v14  ;;  %v10417_v54 = vand.u32 31, %v10276_v52  ;;  %v14653_v41 = vld [vmem:[#allocation17_spill] sm:$0xff] }
 0x264   : > { %vm4722_vm8 = vcmp.gt.s32.totalorder %v4721_v26, 0  ;;  %v2818_v45 = vxor.u32 2147483648, %v2817_v37  ;;  %v10419_v50 = vadd.s32 %v2936_v15, %v2932_v48  ;;  %v4404_v56 = vand.u32 2139095040, %v10379_v13 }
 0x265   : > { %vm2698_vm12 = vcmp.lt.s32.totalorder %v9671_v38, 0  ;;  %v2890_v4 = vsel %vm2884_vm2, %v2887_v34, %v2889_v7  ;;  %v2943_v17 = vadd.s32 %v2942_v29, %v2933_v55  ;;  %v4258_v22 = vsel %vm4257_vm9, %v4256_v23, 0 }
 0x266   : > { %v14645_v53 = vand.u32 2147483647, %v9671_v38  ;;  %v2819_v12 = vsel %vm2698_vm12, %v2818_v45, %v2817_v37  ;;  %vm2946_vm14 = vc.u32 %v10411_v51, %v10419_v50  ;;  %v1411_v48 = vadd.f32 %v1379_v10, %v10361_v35 }
 0x267   : > { %v2821_v15 = vsel %vm2698_vm12, %v2820_v18, %v10313_v25  ;;  %v2947_v27 = vadd.s32 1, %v2943_v17  ;;  %v10440_v23 = vsel %vm4722_vm8, %v4721_v26, 0  ;;  %v10443_v30 = vmul.f32 %v8854_v58, %v1320_v43 }
 0x268   : > { %vm10428_vm13 = vcmp.le.f32.partialorder %v14645_v53, 0.7853982  ;;  %v2944_v33 = vmul.u32 %v10334_v60, %v2890_v4  ;;  %v10447_v3 = vsub.s32 32, %v10417_v54  ;;  %v10449_v35 = vshrl.u32 %v4258_v22, 5 }
 0x269   : > { %v2822_v31 = vsel %vm10428_vm13, %v9671_v38, %v2819_v12  ;;  %v2948_v25 = vsel %vm2946_vm14, %v2947_v27, %v2943_v17  ;;  %v14485_v44 = vand.u32 2147483647, %v14649_v24  ;;  %v2823_v8 = vsel %vm10428_vm13, 0, %v2821_v15 }
 0x26a   : > { %v2824_v34 = vmul.f32 %v2822_v31, %v2822_v31  ;;  %14648 = vst [vmem:[#allocation37_spill] sm:$0xff] %v10449_v35  ;;  %v2949_v2 = vadd.s32 %v2948_v25, %v2944_v33  ;;  %v10454_v20 = vand.u32 31, %v4258_v22  ;;  %v10457_v62 = vshrl.u32 %v10440_v23, 5 }
 0x26b   : > { %v10459_v60 = vshrl.u32 %v4404_v56, 23  ;;  %v10462_v9 = vadd.f32 %v8875_v32, %v1411_v48  ;;  %v3024_v37 = vshrl.u32 %v14621_v28, %v14653_v41  ;;  %v2840_v7 = vadd.s32 3, %v2823_v8  ;;  %v14654_v56 = vld [vmem:[#allocation16_spill] sm:$0xff] }
 0x26c   : > { %v2825_v21 = vmul.f32 -0.001358992, %v2824_v34  ;;  %v2832_v26 = vmul.f32 -0.00019511016, %v2824_v34  ;;  %14650 = vst [vmem:[#allocation6_spill] sm:$0xff] %v10454_v20  ;;  %v2950_v14 = vadd.s32 536870912, %v2949_v2  ;;  %v3027_v18 = vshrl.u32 %v14622_v1, %v14653_v41 }
 0x26d   : > { %14651 = vst [vmem:[#allocation38_spill] sm:$0xff] %v10457_v62  ;;  %v3013_v10 = vand.u32 8388607, %v14485_v44  ;;  %v3033_v55 = vshrl.u32 %v14624_v11, %v14653_v41  ;;  %v3023_v43 = vshll.u32 %v14614_v39, %v14654_v56  ;;  %v3030_v4 = vshrl.u32 %v14623_v0, %v14653_v41 }
 0x26e   : > { %14652 = vst [vmem:[#allocation39_spill] sm:$0xff] %v10462_v9  ;;  %v2826_v63 = vadd.f32 0.041655596, %v2825_v21  ;;  %v2833_v47 = vadd.f32 0.008332121, %v2832_v26  ;;  %v10476_v17 = vshrl.u32 %v2950_v14, 30  ;;  %v3026_v22 = vshll.u32 %v14621_v28, %v14654_v56 }
 0x26f   : > { %v3032_v53 = vshll.u32 %v14623_v0, %v14654_v56  ;;  %v3036_v52 = vshrl.u32 %v14625_v16, %v14653_v41  ;;  %v10484_v15 = vor.u32 %v3024_v37, %v3023_v43  ;;  %v3029_v27 = vshll.u32 %v14622_v1, %v14654_v56  ;;  %v14655_v37 = vld [vmem:[#allocation15_spill] sm:$0xff] }
 0x270   : > { %v2827_v29 = vmul.f32 %v2826_v63, %v2824_v34  ;;  %v2834_v45 = vmul.f32 %v2833_v47, %v2824_v34  ;;  %v2952_v33 = vshll.u32 %v10476_v17, 30  ;;  %v10489_v25 = vor.u32 %v3027_v18, %v3026_v22 }
 0x271   : > { %v3034_v8 = vor.u32 %v3033_v55, %v3032_v53  ;;  %v3035_v21 = vshll.u32 %v14624_v11, %v14654_v56  ;;  %v2841_v47 = vand.u32 3, %v2840_v7  ;;  %v3031_v14 = vor.u32 %v3030_v4, %v3029_v27 }
 0x272   : > { %v2828_v12 = vadd.f32 -0.4999988, %v2827_v29  ;;  %v2835_v48 = vadd.f32 -0.16666654, %v2834_v45  ;;  %v2953_v44 = vsub.s32 %v2949_v2, %v2952_v33  ;;  %v3014_v29 = vor.u32 8388608, %v3013_v10 }
 0x273   : > { %v3037_v45 = vor.u32 %v3036_v52, %v3035_v21  ;;  %vm3038_vm15 = vcmp.lt.s32.totalorder %v14655_v37, 1  ;;  %vm3040_vm2 = vcmp.lt.s32.totalorder %v14655_v37, 3  ;;  %vm3041_vm3 = vcmp.lt.s32.totalorder %v14655_v37, 4 }
 0x274   : > { %v2829_v26 = vmul.f32 %v2828_v12, %v2824_v34  ;;  %v2836_v63 = vmul.f32 %v2835_v48, %v2824_v34  ;;  %vm2954_vm4 = vcmp.lt.s32.totalorder %v2953_v44, 0  ;;  %v2955_v18 = vsub.s32 0, %v2953_v44 }
 0x275   : > { %v3046_v34 = vsel %vm3038_vm15, %v10484_v15, %v10489_v25  ;;  %v3047_v2 = vsel %vm3041_vm3, %v3034_v8, 920167782  ;;  %v3050_v56 = vsel %vm3038_vm15, %v10489_v25, %v3031_v14  ;;  %v4559_v4 = vand.u32 2139095040, %v10462_v9 }
 0x276   : > { %v2830_v43 = vadd.f32 1.0, %v2829_v26  ;;  %v2837_v19 = vadd.f32 1.0, %v2836_v63  ;;  %v3048_v55 = vsel %vm3040_vm2, %v3031_v14, %v3047_v2  ;;  %vm2842_vm7 = vcmp.lt.s32.totalorder %v2841_v47, 2 }
 0x277   : > { %v2956_v22 = vsel %vm2954_vm4, %v2955_v18, %v2953_v44  ;;  %v3051_v53 = vsel %vm3041_vm3, %v3037_v45, 1326507024  ;;  %vm3039_vm10 = vcmp.lt.s32.totalorder %v14655_v37, 2  ;;  %vm2843_vm6 = vcmp.eq.s32.totalorder %v2841_v47, 0  ;;  %v14662_v37 = vld [vmem:[#allocation10_spill] sm:$0xff] }
 0x278   : > { %v2838_v7 = vmul.f32 %v2837_v19, %v2822_v31  ;;  %v2847_v10 = vxor.u32 2147483648, %v2830_v43  ;;  %v2957_v12 = vclz %v2956_v22  ;;  %v3052_v19 = vsel %vm3040_vm2, %v3034_v8, %v3051_v53 }
 0x279   : > { %vm2846_vm11 = vcmp.eq.s32.totalorder %v2841_v47, 2  ;;  %v3049_v31 = vsel %vm3039_vm10, %v3046_v34, %v3048_v55  ;;  %v3053_v48 = vsel %vm3039_vm10, %v3050_v56, %v3052_v19  ;;  %v10517_v26 = vshll.u32 %v3014_v29, 8 }
 0x27a   : > { %v2844_v52 = vxor.u32 2147483648, %v2838_v7  ;;  %v2848_v33 = vsel %vm2846_vm11, %v2847_v10, %v2838_v7  ;;  %v8125_v21 = vadd.s32 4294967294, %v2957_v12  ;;  %vm2839_vm5 = vweird.f32 %v9671_v38 }
 0x27b   : > { %v3057_v45 = vand.u32 65535, %v3053_v48  ;;  %v3058_v18 = vshrl.u32 %v3053_v48, 16  ;;  %v10522_v8 = vand.u32 31, %v10440_v23  ;;  %v3080_v34 = vshrl.u32 %v3049_v31, 16 }
 0x27c   : > { %v2845_v27 = vsel %vm2843_vm6, %v2830_v43, %v2844_v52  ;;  %vm8126_vm9 = vcmp.lt.s32.totalorder %v8125_v21, 0  ;;  %v10525_v55 = vsub.s32 32, %v10454_v20  ;;  %v3055_v29 = vand.u32 65535, %v10517_v26 }
 0x27d   : > { %v2849_v63 = vsel %vm2842_vm7, %v2845_v27, %v2848_v33  ;;  %14656 = vst [vmem:[#allocation17_spill] sm:$0xff] %v10522_v8  ;;  %v2960_v43 = vsel %vm8126_vm9, 0, %v8125_v21  ;;  %v3056_v38 = vshrl.u32 %v10517_v26, 16  ;;  %v2945_v47 = vadd.s32 %v10419_v50, %v10411_v51 }
 0x27e   : > { %v2850_v2 = vsel %vm2839_vm5, nan, %v2849_v63  ;;  %14657 = vst [vmem:[#allocation16_spill] sm:$0xff] %v10525_v55  ;;  %v2961_v7 = vsub.s32 32, %v2960_v43  ;;  %v2965_v10 = vsub.s32 4294967266, %v2960_v43  ;;  %v3079_v23 = vand.u32 65535, %v3049_v31 }
 0x27f   : > { %8201 = vmatmul.msk.f32.gmra.mxu0 %vm935_vm1, %v2850_v2  ;;  %v10533_v56 = vadd.s32 4294967169, %v10459_v60  ;;  %v4560_v22 = vshrl.u32 %v4559_v4, 23  ;;  %v3060_v53 = vmul.u32 %v3058_v18, %v3055_v29  ;;  %v3061_v52 = vmul.u32 %v3057_v45, %v3056_v38  ;;  %v7225_v60 = vld [vmem:[%s14411_s17 + $0x30] sm:$0xff] }
 0x280   : > { %v2962_v12 = vshll.u32 %v2953_v44, %v2960_v43  ;;  %v2963_v19 = vshrl.u32 %v2945_v47, %v2961_v7  ;;  %v2966_v48 = vadd.s32 127, %v2965_v10  ;;  %v3082_v27 = vmul.u32 %v3080_v34, %v3055_v29  ;;  %v7226_v44 = vld [vmem:[%s14411_s17 + $0x38] sm:$0xff] }
 0x281   : > { %v2975_v33 = vsub.s32 4, %v10476_v17  ;;  %v3043_v21 = vsel %vm3041_vm3, %v3031_v14, 2102212464  ;;  %v3059_v63 = vmul.u32 %v3057_v45, %v3055_v29  ;;  %v3063_v51 = vshll.u32 %v3060_v53, 16 }
 0x282   : > { %v2964_v50 = vor.u32 %v2963_v19, %v2962_v12  ;;  %v2967_v2 = vshll.u32 %v2966_v48, 23  ;;  %v3062_v31 = vmul.u32 %v3058_v18, %v3056_v38  ;;  %v3083_v62 = vmul.u32 %v3079_v23, %v3056_v38 }
 0x283   : > { %v3065_v4 = vshll.u32 %v3061_v52, 16  ;;  %vm3067_vm8 = vc.u32 %v3059_v63, %v3063_v51  ;;  %v3069_v43 = vadd.s32 %v3063_v51, %v3059_v63  ;;  %v3085_v47 = vshll.u32 %v3082_v27, 16 }
 0x284   : > { %v2968_v7 = vor.u32 4788187, %v2967_v2  ;;  %v7233_v14 = vmul.f32 %v10391_v61, %v7225_v60  ;;  %v3064_v45 = vshrl.u32 %v3060_v53, 16  ;;  %v3081_v10 = vmul.u32 %v3079_v23, %v3055_v29 }
 0x285   : > { %v2971_v12 = vcvt.s32.f32 %v2964_v50  ;;  %v7234_v18 = vmul.f32 %v10391_v61, %v7226_v44  ;;  %v3068_v19 = vsel %vm3067_vm8, 1, %v14620_v36  ;;  %vm3071_vm12 = vc.u32 %v3069_v43, %v3065_v4 }
 0x286   : > { %v2969_v48 = vand.u32 2147483647, %v2968_v7  ;;  %v7253_v59 = vsel %vm6427_vm0, %v7233_v14, 0.0  ;;  %v3070_v9 = vadd.s32 %v3068_v19, %v3062_v31  ;;  %v3072_v13 = vsel %vm3071_vm12, 1, %v14620_v36 }
 0x287   : > { %7254 = vadd.xlane.f32.xlu0 %v7253_v59  ;;  %v7256_v63 = vsel %vm6427_vm0, %v7234_v18, 0.0  ;;  %v3084_v51 = vmul.u32 %v3080_v34, %v3056_v38  ;;  %v3087_v2 = vshll.u32 %v3083_v62, 16  ;;  %vm3089_vm13 = vc.u32 %v3081_v10, %v3085_v47 }
 0x288   : > { %v2972_v53 = vmul.f32 %v2971_v12, %v2969_v48  ;;  %7257 = vadd.xlane.f32.xlu1 %v7256_v63  ;;  %v3074_v29 = vadd.s32 %v3072_v13, %v3070_v9  ;;  %v3090_v61 = vsel %vm3089_vm13, 1, %v14620_v36  ;;  %v3091_v23 = vadd.s32 %v3085_v47, %v3081_v10 }
 0x289   : > { %v8157_v50 = vadd.s32 4294967169, %v4560_v22  ;;  %vm2853_vm14 = vcmp.lt.s32.totalorder %v9694_v46, 0  ;;  %v3022_v31 = vshrl.u32 %v14614_v39, %v14653_v41  ;;  %v3092_v60 = vadd.s32 %v3090_v61, %v3084_v51  ;;  %v1150_v22 = vpop.permute.xlu1 %1149 }
 0x28a   : > { %v2973_v44 = vxor.u32 2147483648, %v2972_v53  ;;  %v2976_v59 = vsel %vm2853_vm14, %v2975_v33, %v10476_v17  ;;  %v3075_v4 = vadd.s32 %v3074_v29, %v3064_v45  ;;  %vm3093_vm3 = vc.u32 %v3091_v23, %v3087_v2 }
 0x28b   : > { %v3042_v34 = vsel %vm3038_vm15, %v3022_v31, %v10484_v15  ;;  %v3044_v13 = vsel %vm3040_vm2, %v10489_v25, %v3043_v21  ;;  %v3066_v9 = vshrl.u32 %v3061_v52, 16  ;;  %v3094_v38 = vsel %vm3093_vm3, 1, %v14620_v36  ;;  %v14661_v21 = vld [vmem:[#allocation5_spill] sm:$0xff] }
 0x28c   : > { %v14658_v41 = vand.u32 2147483647, %v9694_v46  ;;  %v2974_v17 = vsel %vm2853_vm14, %v2973_v44, %v2972_v53  ;;  %v3086_v33 = vshrl.u32 %v3082_v27, 16  ;;  %v3096_v47 = vadd.s32 %v3094_v38, %v3092_v60 }
 0x28d   : > { %v10573_v52 = vadd.s32 %v3075_v4, %v3066_v9  ;;  %v14494_v7 = vand.u32 2147483647, %v14661_v21  ;;  %v3045_v45 = vsel %vm3039_vm10, %v3042_v34, %v3044_v13  ;;  %v3088_v10 = vshrl.u32 %v3083_v62, 16 }
 0x28e   : > { %vm10564_vm4 = vcmp.le.f32.partialorder %v14658_v41, 0.7853982  ;;  %v3097_v12 = vadd.s32 %v3096_v47, %v3086_v33  ;;  %v10579_v27 = vadd.s32 1, %v10533_v56  ;;  %v10581_v18 = vadd.s32 1, %v8157_v50 }
 0x28f   : > { %v2977_v15 = vsel %vm10564_vm4, %v9694_v46, %v2974_v17  ;;  %v2978_v25 = vsel %vm10564_vm4, 0, %v2976_v59  ;;  %v1220_v19 = vmul.f32 %v8852_v57, %v1150_v22  ;;  %v10584_v48 = vadd.s32 %v3091_v23, %v3087_v2  ;;  %v14663_v2 = vld [vmem:[#allocation13_spill] sm:$0xff] }
 0x290   : > { %v2979_v14 = vmul.f32 %v2977_v15, %v2977_v15  ;;  %v2995_v53 = vadd.s32 3, %v2978_v25  ;;  %v3098_v29 = vadd.s32 %v3097_v12, %v3088_v10  ;;  %v3099_v61 = vmul.u32 %v10517_v26, %v3045_v45 }
 0x291   : > { %vm3101_vm15 = vc.u32 %v10573_v52, %v10584_v48  ;;  %v3168_v62 = vand.u32 8388607, %v14494_v7  ;;  %v3178_v56 = vshll.u32 %v14614_v39, %v14662_v37  ;;  %v3188_v23 = vshrl.u32 %v14624_v11, %v14663_v2 }
 0x292   : > { %v2980_v63 = vmul.f32 -0.001358992, %v2979_v14  ;;  %v2987_v51 = vmul.f32 -0.00019511016, %v2979_v14  ;;  %v3102_v60 = vadd.s32 1, %v3098_v29  ;;  %v3179_v44 = vshrl.u32 %v14621_v28, %v14663_v2 }
 0x293   : > { %v3182_v26 = vshrl.u32 %v14622_v1, %v14663_v2  ;;  %v3185_v59 = vshrl.u32 %v14623_v0, %v14663_v2  ;;  %v3187_v4 = vshll.u32 %v14623_v0, %v14662_v37  ;;  %v3191_v38 = vshrl.u32 %v14625_v16, %v14663_v2 }
 0x294   : > { %v2981_v50 = vadd.f32 0.041655596, %v2980_v63  ;;  %v2988_v31 = vadd.f32 0.008332121, %v2987_v51  ;;  %v3103_v9 = vsel %vm3101_vm15, %v3102_v60, %v3098_v29  ;;  %v3181_v41 = vshll.u32 %v14621_v28, %v14662_v37 }
 0x295   : > { %v3104_v22 = vadd.s32 %v3103_v9, %v3099_v61  ;;  %v3184_v43 = vshll.u32 %v14622_v1, %v14662_v37  ;;  %v3189_v17 = vor.u32 %v3188_v23, %v3187_v4  ;;  %v2996_v25 = vand.u32 3, %v2995_v53 }
 0x296   : > { %v2982_v34 = vmul.f32 %v2981_v50, %v2979_v14  ;;  %v2989_v13 = vmul.f32 %v2988_v31, %v2979_v14  ;;  %v3190_v45 = vshll.u32 %v14624_v11, %v14662_v37  ;;  %v10611_v12 = vor.u32 %v3179_v44, %v3178_v56  ;;  %v14664_v31 = vld [vmem:[#allocation12_spill] sm:$0xff] }
 0x297   : > { %v3105_v10 = vadd.s32 536870912, %v3104_v22  ;;  %v10613_v63 = vor.u32 %v3182_v26, %v3181_v41  ;;  %v10615_v51 = vor.u32 %v3185_v59, %v3184_v43  ;;  %vm4412_vm2 = vcmp.gt.s32.totalorder %v10579_v27, 0 }
 0x298   : > { %v2983_v33 = vadd.f32 -0.4999988, %v2982_v34  ;;  %v2990_v47 = vadd.f32 -0.16666654, %v2989_v13  ;;  %v3192_v50 = vor.u32 %v3191_v38, %v3190_v45  ;;  %vm3196_vm7 = vcmp.lt.s32.totalorder %v14664_v31, 4 }
 0x299   : > { %v1413_v60 = vadd.f32 %v10443_v30, %v1220_v19  ;;  %v10620_v53 = vshrl.u32 %v3105_v10, 30  ;;  %v3169_v23 = vor.u32 8388608, %v3168_v62  ;;  %v3202_v37 = vsel %vm3196_vm7, %v3189_v17, 920167782 }
 0x29a   : > { %v2984_v29 = vmul.f32 %v2983_v33, %v2979_v14  ;;  %v2991_v61 = vmul.f32 %v2990_v47, %v2979_v14  ;;  %vm3193_vm10 = vcmp.lt.s32.totalorder %v14664_v31, 1  ;;  %vm3195_vm6 = vcmp.lt.s32.totalorder %v14664_v31, 3 }
 0x29b   : > { %vm2997_vm11 = vcmp.lt.s32.totalorder %v2996_v25, 2  ;;  %v3107_v14 = vshll.u32 %v10620_v53, 30  ;;  %v3201_v30 = vsel %vm3193_vm10, %v10611_v12, %v10613_v63  ;;  %v3203_v19 = vsel %vm3195_vm6, %v10615_v51, %v3202_v37 }
 0x29c   : > { %v2985_v56 = vadd.f32 1.0, %v2984_v29  ;;  %v2992_v44 = vadd.f32 1.0, %v2991_v61  ;;  %v3205_v59 = vsel %vm3193_vm10, %v10613_v63, %v10615_v51  ;;  %v3206_v4 = vsel %vm3196_vm7, %v3192_v50, 1326507024 }
 0x29d   : > { %v10640_v34 = vsub.s32 %v3104_v22, %v3107_v14  ;;  %vm3194_vm5 = vcmp.lt.s32.totalorder %v14664_v31, 2  ;;  %v3207_v13 = vsel %vm3195_vm6, %v3189_v17, %v3206_v4  ;;  %v10645_v9 = vshll.u32 %v3169_v23, 8 }
 0x29e   : > { %v2993_v62 = vmul.f32 %v2992_v44, %v2977_v15  ;;  %v3002_v26 = vxor.u32 2147483648, %v2985_v56  ;;  %vm2998_vm9 = vcmp.eq.s32.totalorder %v2996_v25, 0  ;;  %vm3001_vm8 = vcmp.eq.s32.totalorder %v2996_v25, 2 }
 0x29f   : > { %v3208_v38 = vsel %vm3194_vm5, %v3205_v59, %v3207_v13  ;;  %vm3109_vm12 = vcmp.lt.s32.totalorder %v10640_v34, 0  ;;  %v3110_v43 = vsub.s32 0, %v10640_v34  ;;  %v3204_v22 = vsel %vm3194_vm5, %v3201_v30, %v3203_v19 }
 0x2a0   : > { %v2999_v15 = vxor.u32 2147483648, %v2993_v62  ;;  %v3003_v41 = vsel %vm3001_vm8, %v3002_v26, %v2993_v62  ;;  %v3210_v47 = vand.u32 65535, %v10645_v9  ;;  %v3212_v17 = vand.u32 65535, %v3208_v38 }
 0x2a1   : > { %v3213_v45 = vshrl.u32 %v3208_v38, 16  ;;  %vm2994_vm13 = vweird.f32 %v9694_v46  ;;  %v3111_v29 = vsel %vm3109_vm12, %v3110_v43, %v10640_v34  ;;  %v3211_v61 = vshrl.u32 %v10645_v9, 16 }
 0x2a2   : > { %v3000_v33 = vsel %vm2998_vm9, %v2985_v56, %v2999_v15  ;;  %v10659_v50 = vsub.s32 32, %v10522_v8  ;;  %v3112_v37 = vclz %v3111_v29  ;;  %v10664_v56 = vsel %vm4412_vm2, %v10579_v27, 0 }
 0x2a3   : > { %v3004_v10 = vsel %vm2997_vm11, %v3000_v33, %v3003_v41  ;;  %v3215_v44 = vmul.u32 %v3213_v45, %v3210_v47  ;;  %vm4567_vm14 = vcmp.gt.s32.totalorder %v10581_v18, 0  ;;  %v3216_v46 = vmul.u32 %v3212_v17, %v3211_v61 }
 0x2a4   : > { %14665 = vst [vmem:[#allocation15_spill] sm:$0xff] %v10659_v50  ;;  %v3005_v23 = vsel %vm2994_vm13, nan, %v3004_v10  ;;  %v3234_v25 = vand.u32 65535, %v3204_v22  ;;  %v10669_v14 = vadd.f32 %v8875_v32, %v1413_v60  ;;  %v8128_v30 = vadd.s32 4294967294, %v3112_v37 }
 0x2a5   : > { %8202 = vmatmul.msk.f32.gmra.mxu0 %vm935_vm1, %v3005_v23  ;;  %v3214_v19 = vmul.u32 %v3212_v17, %v3210_v47  ;;  %v3218_v62 = vshll.u32 %v3215_v44, 16  ;;  %v3100_v26 = vadd.s32 %v10584_v48, %v10573_v52  ;;  %v3130_v59 = vsub.s32 4, %v10620_v53 }
 0x2a6   : > { %14666 = vst [vmem:[#allocation5_spill] sm:$0xff] %v10669_v14  ;;  %v3217_v4 = vmul.u32 %v3213_v45, %v3211_v61  ;;  %v3235_v27 = vshrl.u32 %v3204_v22, 16  ;;  %vm8129_vm3 = vcmp.lt.s32.totalorder %v8128_v30, 0  ;;  %v3220_v13 = vshll.u32 %v3216_v46, 16 }
 0x2a7   : > { %vm3222_vm4 = vc.u32 %v3214_v19, %v3218_v62  ;;  %v3224_v15 = vadd.s32 %v3218_v62, %v3214_v19  ;;  %v3115_v38 = vsel %vm8129_vm3, 0, %v8128_v30  ;;  %v3238_v60 = vmul.u32 %v3234_v25, %v3211_v61 }
 0x2a8   : > { %v3223_v41 = vsel %vm3222_vm4, 1, %v14620_v36  ;;  %v3237_v43 = vmul.u32 %v3235_v27, %v3210_v47  ;;  %v3116_v33 = vsub.s32 32, %v3115_v38  ;;  %v3120_v10 = vsub.s32 4294967266, %v3115_v38 }
 0x2a9   : > { %v3219_v17 = vshrl.u32 %v3215_v44, 16  ;;  %v3225_v29 = vadd.s32 %v3223_v41, %v3217_v4  ;;  %vm3226_vm15 = vc.u32 %v3224_v15, %v3220_v13  ;;  %v3236_v23 = vmul.u32 %v3234_v25, %v3210_v47  ;;  %v1155_v25 = vpop.permute.xlu1 %1154 }
 0x2aa   : > { %v3239_v52 = vmul.u32 %v3235_v27, %v3211_v61  ;;  %v3240_v48 = vshll.u32 %v3237_v43, 16  ;;  %v3117_v45 = vshll.u32 %v10640_v34, %v3115_v38  ;;  %v3118_v22 = vshrl.u32 %v3100_v26, %v3116_v33 }
 0x2ab   : > { %v3121_v37 = vadd.s32 127, %v3120_v10  ;;  %v3227_v7 = vsel %vm3226_vm15, 1, %v14620_v36  ;;  %v3242_v30 = vshll.u32 %v3238_v60, 16  ;;  %v10678_v50 = vand.u32 31, %v10664_v56 }
 0x2ac   : > { %v3229_v19 = vadd.s32 %v3227_v7, %v3225_v29  ;;  %vm3244_vm2 = vc.u32 %v3236_v23, %v3240_v48  ;;  %v3246_v62 = vadd.s32 %v3240_v48, %v3236_v23  ;;  %v3119_v8 = vor.u32 %v3118_v22, %v3117_v45  ;;  %v1324_v29 = vpop.permute.xlu2 %1323 }
 0x2ad   : > { %14667 = vst [vmem:[#allocation10_spill] sm:$0xff] %v10678_v50  ;;  %v3122_v44 = vshll.u32 %v3121_v37, 23  ;;  %v3245_v4 = vsel %vm3244_vm2, 1, %v14620_v36  ;;  %v10684_v47 = vsel %vm4567_vm14, %v10581_v18, 0  ;;  %v4869_v7 = vand.u32 2139095040, %v10669_v14 }
 0x2ae   : > { %v3230_v34 = vadd.s32 %v3229_v19, %v3219_v17  ;;  %v3247_v61 = vadd.s32 %v3245_v4, %v3239_v52  ;;  %vm3248_vm11 = vc.u32 %v3246_v62, %v3242_v30  ;;  %vm3008_vm9 = vcmp.lt.s32.totalorder %v14649_v24, 0 }
 0x2af   : > { %v3123_v26 = vor.u32 4788187, %v3122_v44  ;;  %v3198_v27 = vsel %vm3196_vm7, %v10615_v51, 2102212464  ;;  %v3131_v13 = vsel %vm3008_vm9, %v3130_v59, %v10620_v53  ;;  %v3177_v18 = vshrl.u32 %v14614_v39, %v14663_v2 }
 0x2b0   : > { %v3221_v15 = vshrl.u32 %v3216_v46, 16  ;;  %v3249_v38 = vsel %vm3248_vm11, 1, %v14620_v36  ;;  %v3126_v33 = vcvt.s32.f32 %v3119_v8  ;;  %v3241_v10 = vshrl.u32 %v3237_v43, 16 }
 0x2b1   : > { %v3124_v41 = vand.u32 2147483647, %v3123_v26  ;;  %v3251_v17 = vadd.s32 %v3249_v38, %v3247_v61  ;;  %v1221_v23 = vmul.f32 %v8852_v57, %v1155_v25  ;;  %v3197_v51 = vsel %vm3193_vm10, %v3177_v18, %v10611_v12 }
 0x2b2   : > { %v3199_v53 = vsel %vm3195_vm6, %v10613_v63, %v3198_v27  ;;  %v10704_v59 = vadd.s32 %v3230_v34, %v3221_v15  ;;  %v14668_v2 = vand.u32 2147483647, %v14649_v24  ;;  %v3243_v43 = vshrl.u32 %v3238_v60, 16  ;;  %v14672_v63 = vld [vmem:[#allocation7_spill] sm:$0xff] }
 0x2b3   : > { %v3127_v8 = vmul.f32 %v3126_v33, %v3124_v41  ;;  %v3252_v52 = vadd.s32 %v3251_v17, %v3241_v10  ;;  %v10713_v48 = vshrl.u32 %v10664_v56, 5  ;;  %v10717_v45 = vadd.s32 %v3246_v62, %v3242_v30  ;;  %v14676_v17 = vld [vmem:[#allocation18_spill] sm:$0xff] }
 0x2b4   : > { %vm10708_vm7 = vcmp.le.f32.partialorder %v14668_v2, 0.7853982  ;;  %v14498_v22 = vand.u32 2147483647, %v14672_v63  ;;  %v1382_v37 = vmul.f32 %v8854_v58, %v1324_v29  ;;  %v3200_v44 = vsel %vm3194_vm5, %v3197_v51, %v3199_v53 }
 0x2b5   : > { %14671 = vst [vmem:[#allocation13_spill] sm:$0xff] %v10713_v48  ;;  %v3133_v12 = vsel %vm10708_vm7, 0, %v3131_v13  ;;  %v3128_v19 = vxor.u32 2147483648, %v3127_v8  ;;  %v3253_v4 = vadd.s32 %v3252_v52, %v3243_v43  ;;  %v10724_v60 = vsub.s32 32, %v10678_v50  ;;  %v14675_v13 = vld [vmem:[#allocation20_spill] sm:$0xff]  ;;  %v14687_v48 = vld [vmem:[#allocation25_spill] sm:$0xff] }
 0x2b6   : > { %v10727_v56 = vshrl.u32 %v10684_v47, 5  ;;  %v4870_v34 = vshrl.u32 %v4869_v7, 23  ;;  %vm3256_vm10 = vc.u32 %v10704_v59, %v10717_v45  ;;  %v1414_v30 = vadd.f32 %v1382_v37, %v1221_v23 }
 0x2b7   : > { %14673 = vst [vmem:[#allocation12_spill] sm:$0xff] %v10724_v60  ;;  %v3129_v62 = vsel %vm3008_vm9, %v3128_v19, %v3127_v8  ;;  %v3150_v61 = vadd.s32 3, %v3133_v12  ;;  %v3257_v25 = vadd.s32 1, %v3253_v4  ;;  %v3254_v26 = vmul.u32 %v10645_v9, %v3200_v44 }
 0x2b8   : > { %14674 = vst [vmem:[#allocation7_spill] sm:$0xff] %v10727_v56  ;;  %v3132_v31 = vsel %vm10708_vm7, %v14649_v24, %v3129_v62  ;;  %v3323_v27 = vand.u32 8388607, %v14498_v22  ;;  %v3337_v7 = vshrl.u32 %v14622_v1, %v14675_v13  ;;  %v3340_v38 = vshrl.u32 %v14623_v0, %v14675_v13 }
 0x2b9   : > { %v3134_v18 = vmul.f32 %v3132_v31, %v3132_v31  ;;  %v3258_v15 = vsel %vm3256_vm10, %v3257_v25, %v3253_v4  ;;  %v3343_v41 = vshrl.u32 %v14624_v11, %v14675_v13  ;;  %v3334_v10 = vshrl.u32 %v14621_v28, %v14675_v13 }
 0x2ba   : > { %v3259_v33 = vadd.s32 %v3258_v15, %v3254_v26  ;;  %v3336_v9 = vshll.u32 %v14621_v28, %v14676_v17  ;;  %v3346_v29 = vshrl.u32 %v14625_v16, %v14675_v13  ;;  %v3339_v53 = vshll.u32 %v14622_v1, %v14676_v17 }
 0x2bb   : > { %v3135_v23 = vmul.f32 -0.001358992, %v3134_v18  ;;  %v3142_v51 = vmul.f32 -0.00019511016, %v3134_v18  ;;  %v3342_v2 = vshll.u32 %v14623_v0, %v14676_v17  ;;  %v3333_v8 = vshll.u32 %v14614_v39, %v14676_v17 }
 0x2bc   : > { %v3260_v46 = vadd.s32 536870912, %v3259_v33  ;;  %v10757_v43 = vor.u32 %v3337_v7, %v3336_v9  ;;  %v3345_v52 = vshll.u32 %v14624_v11, %v14676_v17  ;;  %v10761_v19 = vor.u32 %v3340_v38, %v3339_v53 }
 0x2bd   : > { %v3136_v12 = vadd.f32 0.041655596, %v3135_v23  ;;  %v3143_v37 = vadd.f32 0.008332121, %v3142_v51  ;;  %v3344_v44 = vor.u32 %v3343_v41, %v3342_v2  ;;  %v8163_v4 = vadd.s32 4294967169, %v4870_v34  ;;  %v14678_v23 = vld [vmem:[#allocation19_spill] sm:$0xff] }
 0x2be   : > { %v10764_v62 = vadd.f32 %v8875_v32, %v1414_v30  ;;  %v10766_v25 = vshrl.u32 %v3260_v46, 30  ;;  %v3347_v26 = vor.u32 %v3346_v29, %v3345_v52  ;;  %v3151_v14 = vand.u32 3, %v3150_v61 }
 0x2bf   : > { %v3137_v15 = vmul.f32 %v3136_v12, %v3134_v18  ;;  %v3144_v22 = vmul.f32 %v3143_v37, %v3134_v18  ;;  %v10768_v7 = vor.u32 %v3334_v10, %v3333_v8  ;;  %v3324_v17 = vor.u32 8388608, %v3323_v27 }
 0x2c0   : > { %14677 = vst [vmem:[#allocation20_spill] sm:$0xff] %v10764_v62  ;;  %v3262_v9 = vshll.u32 %v10766_v25, 30  ;;  %vm3348_vm6 = vcmp.lt.s32.totalorder %v14678_v23, 1  ;;  %vm3351_vm5 = vcmp.lt.s32.totalorder %v14678_v23, 4  ;;  %vm3349_vm8 = vcmp.lt.s32.totalorder %v14678_v23, 2 }
 0x2c1   : > { %v3138_v38 = vadd.f32 -0.4999988, %v3137_v15  ;;  %v3145_v34 = vadd.f32 -0.16666654, %v3144_v22  ;;  %v3357_v30 = vsel %vm3351_vm5, %v3344_v44, 920167782  ;;  %v3360_v41 = vsel %vm3348_vm6, %v10757_v43, %v10761_v19 }
 0x2c2   : > { %v10779_v61 = vsub.s32 %v3259_v33, %v3262_v9  ;;  %vm3350_vm12 = vcmp.lt.s32.totalorder %v14678_v23, 3  ;;  %v3361_v27 = vsel %vm3351_vm5, %v3347_v26, 1326507024  ;;  %v3356_v22 = vsel %vm3348_vm6, %v10768_v7, %v10757_v43 }
 0x2c3   : > { %v3139_v10 = vmul.f32 %v3138_v38, %v3134_v18  ;;  %v3146_v29 = vmul.f32 %v3145_v34, %v3134_v18  ;;  %v3362_v51 = vsel %vm3350_vm12, %v3344_v44, %v3361_v27  ;;  %v3358_v53 = vsel %vm3350_vm12, %v10761_v19, %v3357_v30 }
 0x2c4   : > { %vm3264_vm13 = vcmp.lt.s32.totalorder %v10779_v61, 0  ;;  %v3265_v33 = vsub.s32 0, %v10779_v61  ;;  %v3363_v2 = vsel %vm3349_vm8, %v3360_v41, %v3362_v51  ;;  %v10798_v18 = vadd.s32 1, %v8163_v4 }
 0x2c5   : > { %v3140_v46 = vadd.f32 1.0, %v3139_v10  ;;  %v3147_v8 = vadd.f32 1.0, %v3146_v29  ;;  %v10800_v52 = vshll.u32 %v3324_v17, 8  ;;  %v5024_v12 = vand.u32 2139095040, %v10764_v62 }
 0x2c6   : > { %v3266_v37 = vsel %vm3264_vm13, %v3265_v33, %v10779_v61  ;;  %v3367_v44 = vand.u32 65535, %v3363_v2  ;;  %v3368_v26 = vshrl.u32 %v3363_v2, 16  ;;  %v3359_v34 = vsel %vm3349_vm8, %v3356_v22, %v3358_v53 }
 0x2c7   : > { %v3148_v15 = vmul.f32 %v3147_v8, %v3132_v31  ;;  %v3157_v9 = vxor.u32 2147483648, %v3140_v46  ;;  %v3267_v38 = vclz %v3266_v37  ;;  %vm3149_vm14 = vweird.f32 %v14649_v24  ;;  %v10820_v24 = vpop.permute.xlu2 %1164 }
 0x2c8   : > { %vm3152_vm3 = vcmp.lt.s32.totalorder %v3151_v14, 2  ;;  %v3365_v4 = vand.u32 65535, %v10800_v52  ;;  %v3366_v17 = vshrl.u32 %v10800_v52, 16  ;;  %vm3153_vm4 = vcmp.eq.s32.totalorder %v3151_v14, 0 }
 0x2c9   : > { %v3154_v30 = vxor.u32 2147483648, %v3148_v15  ;;  %vm3156_vm15 = vcmp.eq.s32.totalorder %v3151_v14, 2  ;;  %v8131_v41 = vadd.s32 4294967294, %v3267_v38  ;;  %v3255_v27 = vadd.s32 %v10717_v45, %v10704_v59 }
 0x2ca   : > { %v3370_v31 = vmul.u32 %v3368_v26, %v3365_v4  ;;  %v10811_v10 = vmul.u32 %v3367_v44, %v3366_v17  ;;  %v3389_v29 = vand.u32 65535, %v3359_v34  ;;  %v3158_v22 = vsel %vm3156_vm15, %v3157_v9, %v3148_v15 }
 0x2cb   : > { %v3155_v51 = vsel %vm3153_vm4, %v3140_v46, %v3154_v30  ;;  %vm8132_vm2 = vcmp.lt.s32.totalorder %v8131_v41, 0  ;;  %v3390_v33 = vshrl.u32 %v3359_v34, 16  ;;  %v3369_v8 = vmul.u32 %v3367_v44, %v3365_v4 }
 0x2cc   : > { %v3159_v53 = vsel %vm3152_vm3, %v3155_v51, %v3158_v22  ;;  %v3270_v2 = vsel %vm8132_vm2, 0, %v8131_v41  ;;  %v3373_v37 = vshll.u32 %v3370_v31, 16  ;;  %v3372_v56 = vmul.u32 %v3368_v26, %v3366_v17 }
 0x2cd   : > { %v3160_v62 = vsel %vm3149_vm14, nan, %v3159_v53  ;;  %v3271_v14 = vsub.s32 32, %v3270_v2  ;;  %v3275_v38 = vsub.s32 4294967266, %v3270_v2  ;;  %v3272_v59 = vshll.u32 %v10779_v61, %v3270_v2 }
 0x2ce   : > { %8203 = vmatmul.msk.f32.gmra.mxu0 %vm935_vm1, %v3160_v62  ;;  %v3375_v45 = vshll.u32 %v10811_v10, 16  ;;  %vm3377_vm11 = vc.u32 %v3369_v8, %v3373_v37  ;;  %v3379_v46 = vadd.s32 %v3373_v37, %v3369_v8  ;;  %v3392_v44 = vmul.u32 %v3390_v33, %v3365_v4 }
 0x2cf   : > { %v3273_v15 = vshrl.u32 %v3255_v27, %v3271_v14  ;;  %v3276_v9 = vadd.s32 127, %v3275_v38  ;;  %v3378_v34 = vsel %vm3377_vm11, 1, %v14620_v36  ;;  %vm4877_vm9 = vcmp.gt.s32.totalorder %v10798_v18, 0 }
 0x2d0   : > { %v3380_v30 = vadd.s32 %v3378_v34, %v3372_v56  ;;  %vm3381_vm7 = vc.u32 %v3379_v46, %v3375_v45  ;;  %v3393_v26 = vmul.u32 %v3389_v29, %v3366_v17  ;;  %v3395_v51 = vshll.u32 %v3392_v44, 16 }
 0x2d1   : > { %v3274_v41 = vor.u32 %v3273_v15, %v3272_v59  ;;  %v3277_v62 = vshll.u32 %v3276_v9, 23  ;;  %v3382_v61 = vsel %vm3381_vm7, 1, %v14620_v36  ;;  %v5025_v22 = vshrl.u32 %v5024_v12, 23 }
 0x2d2   : > { %v3332_v27 = vshrl.u32 %v14614_v39, %v14675_v13  ;;  %v3384_v53 = vadd.s32 %v3382_v61, %v3380_v30  ;;  %v3391_v2 = vmul.u32 %v3389_v29, %v3365_v4  ;;  %v3285_v37 = vsub.s32 4, %v10766_v25 }
 0x2d3   : > { %v3278_v8 = vor.u32 4788187, %v3277_v62  ;;  %v3353_v56 = vsel %vm3351_vm5, %v10761_v19, 2102212464  ;;  %v3374_v14 = vshrl.u32 %v3370_v31, 16  ;;  %v3394_v38 = vmul.u32 %v3390_v33, %v3366_v17 }
 0x2d4   : > { %v3397_v59 = vshll.u32 %v3393_v26, 16  ;;  %vm3399_vm10 = vc.u32 %v3391_v2, %v3395_v51  ;;  %v3401_v45 = vadd.s32 %v3395_v51, %v3391_v2  ;;  %v3281_v15 = vcvt.s32.f32 %v3274_v41  ;;  %v14683_v2 = vld [vmem:[#allocation8_spill] sm:$0xff] }
 0x2d5   : > { %v3279_v46 = vand.u32 2147483647, %v3278_v8  ;;  %v3385_v12 = vadd.s32 %v3384_v53, %v3374_v14  ;;  %v3400_v9 = vsel %vm3399_vm10, 1, %v14620_v36  ;;  %vm3163_vm13 = vcmp.lt.s32.totalorder %v14661_v21, 0 }
 0x2d6   : > { %v3352_v13 = vsel %vm3348_vm6, %v3332_v27, %v10768_v7  ;;  %v3402_v4 = vadd.s32 %v3400_v9, %v3394_v38  ;;  %vm3403_vm14 = vc.u32 %v3401_v45, %v3397_v59  ;;  %v3354_v19 = vsel %vm3350_vm12, %v10757_v43, %v3353_v56 }
 0x2d7   : > { %v3282_v29 = vmul.f32 %v3281_v15, %v3279_v46  ;;  %v3376_v17 = vshrl.u32 %v10811_v10, 16  ;;  %v3404_v31 = vsel %vm3403_vm14, 1, %v14620_v36  ;;  %v10840_v33 = vand.u32 31, %v10684_v47  ;;  %v1170_v10 = vpop.permute.xlu2 %1169 }
 0x2d8   : > { %v3286_v34 = vsel %vm3163_vm13, %v3285_v37, %v10766_v25  ;;  %v3396_v30 = vshrl.u32 %v3392_v44, 16  ;;  %v3406_v7 = vadd.s32 %v3404_v31, %v3402_v4  ;;  %v10848_v41 = vsel %vm4877_vm9, %v10798_v18, 0 }
 0x2d9   : > { %14679 = vst [vmem:[#allocation18_spill] sm:$0xff] %v10840_v33  ;;  %v8166_v62 = vadd.s32 4294967169, %v5025_v22  ;;  %v3283_v43 = vxor.u32 2147483648, %v3282_v29  ;;  %v10850_v61 = vadd.s32 %v3385_v12, %v3376_v17  ;;  %v14680_v51 = vand.u32 2147483647, %v14661_v21  ;;  %v14685_v12 = vld [vmem:[#allocation26_spill] sm:$0xff] }
 0x2da   : > { %v3355_v25 = vsel %vm3349_vm8, %v3352_v13, %v3354_v19  ;;  %v3398_v44 = vshrl.u32 %v3393_v26, 16  ;;  %v3407_v27 = vadd.s32 %v3406_v7, %v3396_v30  ;;  %v10864_v53 = vadd.s32 %v3401_v45, %v3397_v59 }
 0x2db   : > { %vm10854_vm6 = vcmp.le.f32.partialorder %v14680_v51, 0.7853982  ;;  %v3284_v18 = vsel %vm3163_vm13, %v3283_v43, %v3282_v29  ;;  %v14504_v8 = vand.u32 2147483647, %v14683_v2  ;;  %v10868_v37 = vsub.s32 32, %v10840_v33 }
 0x2dc   : > { %v3288_v22 = vsel %vm10854_vm6, 0, %v3286_v34  ;;  %v10871_v56 = vand.u32 31, %v10848_v41  ;;  %v3287_v23 = vsel %vm10854_vm6, %v14661_v21, %v3284_v18  ;;  %v3408_v26 = vadd.s32 %v3407_v27, %v3398_v44  ;;  %v1328_v27 = vpop.permute.xlu1 %1327 }
 0x2dd   : > { %14684 = vst [vmem:[#allocation19_spill] sm:$0xff] %v10868_v37  ;;  %v10876_v14 = vadd.s32 1, %v8166_v62  ;;  %v1224_v38 = vmul.f32 %v8852_v57, %v1170_v10  ;;  %v3289_v46 = vmul.f32 %v3287_v23, %v3287_v23  ;;  %vm3411_vm5 = vc.u32 %v10850_v61, %v10864_v53 }
 0x2de   : > { %v3305_v59 = vadd.s32 3, %v3288_v22  ;;  %v3409_v45 = vmul.u32 %v10800_v52, %v3355_v25  ;;  %v3412_v15 = vadd.s32 1, %v3408_v26  ;;  %v3498_v9 = vshrl.u32 %v14624_v11, %v14685_v12  ;;  %v14686_v52 = vld [vmem:[#allocation22_spill] sm:$0xff] }
 0x2df   : > { %v3290_v13 = vmul.f32 -0.001358992, %v3289_v46  ;;  %v3297_v4 = vmul.f32 -0.00019511016, %v3289_v46  ;;  %v3478_v29 = vand.u32 8388607, %v14504_v8  ;;  %v3489_v19 = vshrl.u32 %v14621_v28, %v14685_v12 }
 0x2e0   : > { %v3413_v17 = vsel %vm3411_vm5, %v3412_v15, %v3408_v26  ;;  %v3492_v31 = vshrl.u32 %v14622_v1, %v14685_v12  ;;  %v3495_v34 = vshrl.u32 %v14623_v0, %v14685_v12  ;;  %v3497_v30 = vshll.u32 %v14623_v0, %v14686_v52 }
 0x2e1   : > { %v3291_v7 = vadd.f32 0.041655596, %v3290_v13  ;;  %v3298_v62 = vadd.f32 0.008332121, %v3297_v4  ;;  %v3414_v43 = vadd.s32 %v3413_v17, %v3409_v45  ;;  %v3501_v10 = vshrl.u32 %v14625_v16, %v14685_v12 }
 0x2e2   : > { %v3488_v51 = vshll.u32 %v14614_v39, %v14686_v52  ;;  %v3491_v47 = vshll.u32 %v14621_v28, %v14686_v52  ;;  %v3494_v25 = vshll.u32 %v14622_v1, %v14686_v52  ;;  %v3499_v44 = vor.u32 %v3498_v9, %v3497_v30 }
 0x2e3   : > { %v3292_v18 = vmul.f32 %v3291_v7, %v3289_v46  ;;  %v3299_v22 = vmul.f32 %v3298_v62, %v3289_v46  ;;  %v3479_v26 = vor.u32 8388608, %v3478_v29  ;;  %v3500_v45 = vshll.u32 %v14624_v11, %v14686_v52 }
 0x2e4   : > { %v3415_v15 = vadd.s32 536870912, %v3414_v43  ;;  %v10904_v13 = vor.u32 %v3489_v19, %v3488_v51  ;;  %v10906_v4 = vor.u32 %v3492_v31, %v3491_v47  ;;  %v3496_v17 = vor.u32 %v3495_v34, %v3494_v25  ;;  %v14688_v51 = vld [vmem:[#allocation21_spill] sm:$0xff] }
 0x2e5   : > { %v3293_v8 = vadd.f32 -0.4999988, %v3292_v18  ;;  %v3300_v33 = vadd.f32 -0.16666654, %v3299_v22  ;;  %v3502_v37 = vor.u32 %v3501_v10, %v3500_v45  ;;  %vm3506_vm8 = vcmp.lt.s32.totalorder %v14687_v48, 4 }
 0x2e6   : > { %v1383_v9 = vmul.f32 %v8854_v58, %v1328_v27  ;;  %v3306_v30 = vand.u32 3, %v3305_v59  ;;  %v10910_v7 = vshrl.u32 %v3415_v15, 30  ;;  %v3512_v29 = vsel %vm3506_vm8, %v3499_v44, 920167782 }
 0x2e7   : > { %v3294_v52 = vmul.f32 %v3293_v8, %v3289_v46  ;;  %v3301_v62 = vmul.f32 %v3300_v33, %v3289_v46  ;;  %vm3503_vm12 = vcmp.lt.s32.totalorder %v14687_v48, 1  ;;  %vm3505_vm3 = vcmp.lt.s32.totalorder %v14687_v48, 3 }
 0x2e8   : > { %v3417_v19 = vshll.u32 %v10910_v7, 30  ;;  %v3511_v31 = vsel %vm3503_vm12, %v10904_v13, %v10906_v4  ;;  %v3515_v59 = vsel %vm3503_vm12, %v10906_v4, %v3496_v17  ;;  %v10924_v34 = vshll.u32 %v3479_v26, 8 }
 0x2e9   : > { %v3295_v10 = vadd.f32 1.0, %v3294_v52  ;;  %v3302_v8 = vadd.f32 1.0, %v3301_v62  ;;  %v3513_v33 = vsel %vm3505_vm3, %v3496_v17, %v3512_v29  ;;  %v3516_v46 = vsel %vm3506_vm8, %v3502_v37, 1326507024 }
 0x2ea   : > { %v10931_v47 = vadd.f32 %v14688_v51, %v1224_v38  ;;  %v3418_v25 = vsub.s32 %v3414_v43, %v3417_v19  ;;  %vm3504_vm4 = vcmp.lt.s32.totalorder %v14687_v48, 2  ;;  %v3517_v27 = vsel %vm3505_vm3, %v3499_v44, %v3516_v46  ;;  %v14689_v46 = vld [vmem:[#allocation14_spill] sm:$0xff] }
 0x2eb   : > { %v3303_v18 = vmul.f32 %v3302_v8, %v3287_v23  ;;  %vm3311_vm15 = vcmp.eq.s32.totalorder %v3306_v30, 2  ;;  %v3312_v22 = vxor.u32 2147483648, %v3295_v10  ;;  %v3518_v26 = vsel %vm3504_vm4, %v3515_v59, %v3517_v27 }
 0x2ec   : > { %vm3419_vm2 = vcmp.lt.s32.totalorder %v3418_v25, 0  ;;  %v3420_v45 = vsub.s32 0, %v3418_v25  ;;  %v3514_v37 = vsel %vm3504_vm4, %v3511_v31, %v3513_v33  ;;  %v3522_v15 = vand.u32 65535, %v3518_v26 }
 0x2ed   : > { %v3309_v38 = vxor.u32 2147483648, %v3303_v18  ;;  %v3520_v43 = vand.u32 65535, %v10924_v34  ;;  %v3521_v29 = vshrl.u32 %v10924_v34, 16  ;;  %v3523_v52 = vshrl.u32 %v3518_v26, 16 }
 0x2ee   : > { %vm3307_vm11 = vcmp.lt.s32.totalorder %v3306_v30, 2  ;;  %vm3308_vm9 = vcmp.eq.s32.totalorder %v3306_v30, 0  ;;  %v3313_v23 = vsel %vm3311_vm15, %v3312_v22, %v3303_v18  ;;  %v3421_v44 = vsel %vm3419_vm2, %v3420_v45, %v3418_v25 }
 0x2ef   : > { %v3310_v62 = vsel %vm3308_vm9, %v3295_v10, %v3309_v38  ;;  %v3422_v19 = vclz %v3421_v44  ;;  %v3525_v8 = vmul.u32 %v3523_v52, %v3520_v43  ;;  %v3526_v59 = vmul.u32 %v3522_v15, %v3521_v29 }
 0x2f0   : > { %v1415_v51 = vadd.f32 %v1383_v9, %v14689_v46  ;;  %vm3304_vm7 = vweird.f32 %v14661_v21  ;;  %v3314_v31 = vsel %vm3307_vm11, %v3310_v62, %v3313_v23  ;;  %v3544_v33 = vand.u32 65535, %v3514_v37 }
 0x2f1   : > { %v3315_v27 = vsel %vm3304_vm7, nan, %v3314_v31  ;;  %v8134_v60 = vadd.s32 4294967294, %v3422_v19  ;;  %v3524_v50 = vmul.u32 %v3522_v15, %v3520_v43  ;;  %v3528_v35 = vshll.u32 %v3525_v8, 16 }
 0x2f2   : > { %8204 = vmatmul.msk.f32.gmra.mxu0 %vm935_vm1, %v3315_v27  ;;  %v3410_v30 = vadd.s32 %v10864_v53, %v10850_v61  ;;  %v3508_v10 = vsel %vm3506_vm8, %v3496_v17, 2102212464  ;;  %v3527_v18 = vmul.u32 %v3523_v52, %v3521_v29  ;;  %v3545_v22 = vshrl.u32 %v3514_v37, 16 }
 0x2f3   : > { %vm8135_vm10 = vcmp.lt.s32.totalorder %v8134_v60, 0  ;;  %v3530_v9 = vshll.u32 %v3526_v59, 16  ;;  %vm3532_vm13 = vc.u32 %v3524_v50, %v3528_v35  ;;  %v3534_v21 = vadd.s32 %v3528_v35, %v3524_v50 }
 0x2f4   : > { %v3425_v26 = vsel %vm8135_vm10, 0, %v8134_v60  ;;  %v3533_v45 = vsel %vm3532_vm13, 1, %v14620_v36  ;;  %v3547_v38 = vmul.u32 %v3545_v22, %v3520_v43  ;;  %v3548_v15 = vmul.u32 %v3544_v33, %v3521_v29 }
 0x2f5   : > { %v3426_v23 = vsub.s32 32, %v3425_v26  ;;  %v3430_v44 = vsub.s32 4294967266, %v3425_v26  ;;  %v3529_v62 = vshrl.u32 %v3525_v8, 16  ;;  %v3535_v19 = vadd.s32 %v3533_v45, %v3527_v18 }
 0x2f6   : > { %vm3536_vm14 = vc.u32 %v3534_v21, %v3530_v9  ;;  %v3546_v61 = vmul.u32 %v3544_v33, %v3520_v43  ;;  %v3549_v53 = vmul.u32 %v3545_v22, %v3521_v29  ;;  %v3550_v46 = vshll.u32 %v3547_v38, 16 }
 0x2f7   : > { %v3427_v17 = vshll.u32 %v3418_v25, %v3425_v26  ;;  %v3428_v52 = vshrl.u32 %v3410_v30, %v3426_v23  ;;  %v3431_v37 = vadd.s32 127, %v3430_v44  ;;  %v3537_v31 = vsel %vm3536_vm14, 1, %v14620_v36 }
 0x2f8   : > { %v3539_v27 = vadd.s32 %v3537_v31, %v3535_v19  ;;  %v3552_v35 = vshll.u32 %v3548_v15, 16  ;;  %vm3554_vm6 = vc.u32 %v3546_v61, %v3550_v46  ;;  %v3556_v50 = vadd.s32 %v3550_v46, %v3546_v61 }
 0x2f9   : > { %v3429_v60 = vor.u32 %v3428_v52, %v3427_v17  ;;  %v3432_v20 = vshll.u32 %v3431_v37, 23  ;;  %v3440_v55 = vsub.s32 4, %v10910_v7  ;;  %v3555_v8 = vsel %vm3554_vm6, 1, %v14620_v36 }
 0x2fa   : > { %v3487_v43 = vshrl.u32 %v14614_v39, %v14685_v12  ;;  %v3540_v29 = vadd.s32 %v3539_v27, %v3529_v62  ;;  %v3557_v33 = vadd.s32 %v3555_v8, %v3549_v53  ;;  %vm3558_vm5 = vc.u32 %v3556_v50, %v3552_v35  ;;  %v14695_v53 = vld [vmem:[#allocation11_spill] sm:$0xff] }
 0x2fb   : > { %vm3318_vm8 = vcmp.lt.s32.totalorder %v14672_v63, 0  ;;  %v3433_v25 = vor.u32 4788187, %v3432_v20  ;;  %v3531_v30 = vshrl.u32 %v3526_v59, 16  ;;  %v3559_v18 = vsel %vm3558_vm5, 1, %v14620_v36 }
 0x2fc   : > { %v3507_v22 = vsel %vm3503_vm12, %v3487_v43, %v10904_v13  ;;  %v3509_v9 = vsel %vm3505_vm3, %v10906_v4, %v3508_v10  ;;  %v3551_v21 = vshrl.u32 %v3547_v38, 16  ;;  %v3561_v26 = vadd.s32 %v3559_v18, %v3557_v33 }
 0x2fd   : > { %v3434_v12 = vand.u32 2147483647, %v3433_v25  ;;  %v3436_v45 = vcvt.s32.f32 %v3429_v60  ;;  %v3441_v23 = vsel %vm3318_vm8, %v3440_v55, %v10910_v7  ;;  %v10966_v20 = vadd.s32 %v3540_v29, %v3531_v30  ;;  %v14696_v60 = vld [vmem:[#allocation32_spill] sm:$0xff]  ;;  %v14697_v30 = vld [vmem:[#allocation27_spill] sm:$0xff] }
 0x2fe   : > { %vm5032_vm15 = vcmp.gt.s32.totalorder %v10876_v14, 0  ;;  %v10971_v59 = vadd.f32 %v8875_v32, %v10931_v47  ;;  %v3553_v13 = vshrl.u32 %v3548_v15, 16  ;;  %v3562_v44 = vadd.s32 %v3561_v26, %v3551_v21 }
 0x2ff   : > { %v10974_v4 = vadd.f32 %v8875_v32, %v1415_v51  ;;  %v14692_v10 = vand.u32 2147483647, %v14672_v63  ;;  %v3437_v55 = vmul.f32 %v3436_v45, %v3434_v12  ;;  %v10982_v7 = vadd.s32 %v3556_v50, %v3552_v35 }
 0x300   : > { %14690 = vst [vmem:[#allocation8_spill] sm:$0xff] %v10971_v59  ;;  %v10985_v62 = vshrl.u32 %v10848_v41, 5  ;;  %v3510_v15 = vsel %vm3504_vm4, %v3507_v22, %v3509_v9  ;;  %v3563_v51 = vadd.s32 %v3562_v44, %v3553_v13  ;;  %v10992_v19 = vsub.s32 32, %v10871_v56 }
 0x301   : > { %14691 = vst [vmem:[#allocation26_spill] sm:$0xff] %v10974_v4  ;;  %vm10978_vm12 = vcmp.le.f32.partialorder %v14692_v10, 0.7853982  ;;  %v3438_v61 = vxor.u32 2147483648, %v3437_v55  ;;  %vm3566_vm3 = vc.u32 %v10966_v20, %v10982_v7  ;;  %v14516_v46 = vand.u32 2147483647, %v14695_v53 }
 0x302   : > { %v3443_v47 = vsel %vm10978_vm12, 0, %v3441_v23  ;;  %v10999_v41 = vmul.f32 %v8852_v57, %v10820_v24  ;;  %v11004_v17 = vsel %vm5032_vm15, %v10876_v14, 0  ;;  %v5489_v48 = vand.u32 2139095040, %v10971_v59 }
 0x303   : > { %v3567_v52 = vadd.s32 1, %v3563_v51  ;;  %v5179_v37 = vand.u32 2139095040, %v10974_v4  ;;  %v3439_v31 = vsel %vm3318_vm8, %v3438_v61, %v3437_v55  ;;  %v3460_v27 = vadd.s32 3, %v3443_v47 }
 0x304   : > { %v3564_v35 = vmul.u32 %v10924_v34, %v3510_v15  ;;  %v3442_v24 = vsel %vm10978_vm12, %v14672_v63, %v3439_v31  ;;  %v3647_v14 = vshrl.u32 %v14622_v1, %v14696_v60  ;;  %v3650_v8 = vshrl.u32 %v14623_v0, %v14696_v60 }
 0x305   : > { %v3568_v50 = vsel %vm3566_vm3, %v3567_v52, %v3563_v51  ;;  %v3444_v43 = vmul.f32 %v3442_v24, %v3442_v24  ;;  %v3633_v33 = vand.u32 8388607, %v14516_v46  ;;  %v3653_v25 = vshrl.u32 %v14624_v11, %v14696_v60 }
 0x306   : > { %v3569_v29 = vadd.s32 %v3568_v50, %v3564_v35  ;;  %v3644_v34 = vshrl.u32 %v14621_v28, %v14696_v60  ;;  %v3646_v18 = vshll.u32 %v14621_v28, %v14697_v30  ;;  %v3649_v22 = vshll.u32 %v14622_v1, %v14697_v30 }
 0x307   : > { %v3656_v9 = vshrl.u32 %v14625_v16, %v14696_v60  ;;  %v3445_v21 = vmul.f32 -0.001358992, %v3444_v43  ;;  %v3452_v26 = vmul.f32 -0.00019511016, %v3444_v43  ;;  %v3652_v45 = vshll.u32 %v14623_v0, %v14697_v30 }
 0x308   : > { %v3570_v12 = vadd.s32 536870912, %v3569_v29  ;;  %v3643_v23 = vshll.u32 %v14614_v39, %v14697_v30  ;;  %v11034_v13 = vor.u32 %v3647_v14, %v3646_v18  ;;  %v11036_v44 = vor.u32 %v3650_v8, %v3649_v22  ;;  %v14698_v22 = vld [vmem:[#allocation31_spill] sm:$0xff] }
 0x309   : > { %v3655_v10 = vshll.u32 %v14624_v11, %v14697_v30  ;;  %v3446_v38 = vadd.f32 0.041655596, %v3445_v21  ;;  %v3453_v55 = vadd.f32 0.008332121, %v3452_v26  ;;  %v3654_v15 = vor.u32 %v3653_v25, %v3652_v45 }
 0x30a   : > { %v11040_v47 = vshrl.u32 %v3570_v12, 30  ;;  %v11043_v51 = vand.u32 31, %v11004_v17  ;;  %v5490_v61 = vshrl.u32 %v5489_v48, 23  ;;  %v11045_v52 = vshrl.u32 %v5179_v37, 23 }
 0x30b   : > { %v3657_v31 = vor.u32 %v3656_v9, %v3655_v10  ;;  %v3447_v35 = vmul.f32 %v3446_v38, %v3444_v43  ;;  %v3454_v50 = vmul.f32 %v3453_v55, %v3444_v43  ;;  %v3461_v14 = vand.u32 3, %v3460_v27 }
 0x30c   : > { %v11047_v8 = vor.u32 %v3644_v34, %v3643_v23  ;;  %v3572_v18 = vshll.u32 %v11040_v47, 30  ;;  %v3634_v30 = vor.u32 8388608, %v3633_v33  ;;  %vm3658_vm4 = vcmp.lt.s32.totalorder %v14698_v22, 1  ;;  %v1332_v34 = vpop.permute.xlu1 %1331 }
 0x30d   : > { %vm3661_vm2 = vcmp.lt.s32.totalorder %v14698_v22, 4  ;;  %v3448_v25 = vadd.f32 -0.4999988, %v3447_v35  ;;  %v3455_v21 = vadd.f32 -0.16666654, %v3454_v50  ;;  %v3670_v37 = vsel %vm3658_vm4, %v11034_v13, %v11036_v44 }
 0x30e   : > { %v3667_v48 = vsel %vm3661_vm2, %v3654_v15, 920167782  ;;  %v11058_v27 = vsub.s32 %v3569_v29, %v3572_v18  ;;  %vm3659_vm11 = vcmp.lt.s32.totalorder %v14698_v22, 2  ;;  %vm3660_vm9 = vcmp.lt.s32.totalorder %v14698_v22, 3 }
 0x30f   : > { %v3671_v33 = vsel %vm3661_vm2, %v3657_v31, 1326507024  ;;  %v3449_v9 = vmul.f32 %v3448_v25, %v3444_v43  ;;  %v3456_v26 = vmul.f32 %v3455_v21, %v3444_v43  ;;  %v3666_v12 = vsel %vm3658_vm4, %v11047_v8, %v11034_v13 }
 0x310   : > { %v3672_v45 = vsel %vm3660_vm9, %v3654_v15, %v3671_v33  ;;  %vm3574_vm7 = vcmp.lt.s32.totalorder %v11058_v27, 0  ;;  %v3575_v29 = vsub.s32 0, %v11058_v27  ;;  %v3668_v23 = vsel %vm3660_vm9, %v11036_v44, %v3667_v48 }
 0x311   : > { %v3673_v10 = vsel %vm3659_vm11, %v3670_v37, %v3672_v45  ;;  %v8175_v43 = vadd.s32 4294967169, %v5490_v61  ;;  %v3450_v38 = vadd.f32 1.0, %v3449_v9  ;;  %v3457_v55 = vadd.f32 1.0, %v3456_v26 }
 0x312   : > { %v11077_v31 = vshll.u32 %v3634_v30, 8  ;;  %v1384_v35 = vmul.f32 %v8854_v58, %v1332_v34  ;;  %v3576_v15 = vsel %vm3574_vm7, %v3575_v29, %v11058_v27  ;;  %v3677_v50 = vand.u32 65535, %v3673_v10 }
 0x313   : > { %v3678_v18 = vshrl.u32 %v3673_v10, 16  ;;  %v3458_v25 = vmul.f32 %v3457_v55, %v3442_v24  ;;  %v3467_v21 = vxor.u32 2147483648, %v3450_v38  ;;  %v3577_v33 = vclz %v3576_v15 }
 0x314   : > { %v3669_v48 = vsel %vm3659_vm11, %v3666_v12, %v3668_v23  ;;  %vm3459_vm10 = vweird.f32 %v14672_v63  ;;  %vm3462_vm13 = vcmp.lt.s32.totalorder %v3461_v14, 2  ;;  %v3675_v61 = vand.u32 65535, %v11077_v31 }
 0x315   : > { %v3676_v30 = vshrl.u32 %v11077_v31, 16  ;;  %vm3463_vm14 = vcmp.eq.s32.totalorder %v3461_v14, 0  ;;  %v3464_v37 = vxor.u32 2147483648, %v3458_v25  ;;  %vm3466_vm6 = vcmp.eq.s32.totalorder %v3461_v14, 2 }
 0x316   : > { %v8137_v34 = vadd.s32 4294967294, %v3577_v33  ;;  %v3565_v9 = vadd.s32 %v10982_v7, %v10966_v20  ;;  %v3680_v24 = vmul.u32 %v3678_v18, %v3675_v61  ;;  %v3699_v45 = vand.u32 65535, %v3669_v48 }
 0x317   : > { %v11088_v26 = vmul.u32 %v3677_v50, %v3676_v30  ;;  %v3465_v29 = vsel %vm3463_vm14, %v3450_v38, %v3464_v37  ;;  %v3468_v12 = vsel %vm3466_vm6, %v3467_v21, %v3458_v25  ;;  %v3700_v23 = vshrl.u32 %v3669_v48, 16 }
 0x318   : > { %vm8138_vm5 = vcmp.lt.s32.totalorder %v8137_v34, 0  ;;  %v3469_v10 = vsel %vm3462_vm13, %v3465_v29, %v3468_v12  ;;  %v3679_v15 = vmul.u32 %v3677_v50, %v3675_v61  ;;  %v3683_v46 = vshll.u32 %v3680_v24, 16 }
 0x319   : > { %v3580_v55 = vsel %vm8138_vm5, 0, %v8137_v34  ;;  %v3470_v59 = vsel %vm3459_vm10, nan, %v3469_v10  ;;  %v3682_v4 = vmul.u32 %v3678_v18, %v3676_v30  ;;  %v3685_v7 = vshll.u32 %v11088_v26, 16 }
 0x31a   : > { %v3581_v14 = vsub.s32 32, %v3580_v55  ;;  %v3585_v33 = vsub.s32 4294967266, %v3580_v55  ;;  %8205 = vmatmul.msk.f32.gmra.mxu0 %vm935_vm1, %v3470_v59  ;;  %v3582_v20 = vshll.u32 %v11058_v27, %v3580_v55  ;;  %vm3687_vm8 = vc.u32 %v3679_v15, %v3683_v46 }
 0x31b   : > { %v3689_v38 = vadd.s32 %v3683_v46, %v3679_v15  ;;  %v3688_v48 = vsel %vm3687_vm8, 1, %v14620_v36  ;;  %v3702_v50 = vmul.u32 %v3700_v23, %v3675_v61  ;;  %v5496_v37 = vadd.s32 1, %v8175_v43 }
 0x31c   : > { %v3583_v25 = vshrl.u32 %v3565_v9, %v3581_v14  ;;  %v3586_v21 = vadd.s32 127, %v3585_v33  ;;  %v3690_v34 = vadd.s32 %v3688_v48, %v3682_v4  ;;  %v3703_v63 = vmul.u32 %v3699_v45, %v3676_v30 }
 0x31d   : > { %vm3691_vm15 = vc.u32 %v3689_v38, %v3685_v7  ;;  %v3705_v59 = vshll.u32 %v3702_v50, 16  ;;  %v1416_v27 = vadd.f32 %v1384_v35, %v10999_v41  ;;  %v3642_v10 = vshrl.u32 %v14614_v39, %v14696_v60 }
 0x31e   : > { %v3584_v29 = vor.u32 %v3583_v25, %v3582_v20  ;;  %v3587_v12 = vshll.u32 %v3586_v21, 23  ;;  %v3692_v18 = vsel %vm3691_vm15, 1, %v14620_v36  ;;  %v3701_v9 = vmul.u32 %v3699_v45, %v3675_v61 }
 0x31f   : > { %v3694_v46 = vadd.s32 %v3692_v18, %v3690_v34  ;;  %v3595_v15 = vsub.s32 4, %v11040_v47  ;;  %v3663_v4 = vsel %vm3661_vm2, %v11036_v44, 2102212464  ;;  %v3684_v43 = vshrl.u32 %v3680_v24, 16 }
 0x320   : > { %v3588_v55 = vor.u32 4788187, %v3587_v12  ;;  %v3704_v14 = vmul.u32 %v3700_v23, %v3676_v30  ;;  %v3707_v33 = vshll.u32 %v3703_v63, 16  ;;  %vm3709_vm12 = vc.u32 %v3701_v9, %v3705_v59 }
 0x321   : > { %v3711_v20 = vadd.s32 %v3705_v59, %v3701_v9  ;;  %v3591_v38 = vcvt.s32.f32 %v3584_v29  ;;  %v3695_v41 = vadd.s32 %v3694_v46, %v3684_v43  ;;  %v3710_v35 = vsel %vm3709_vm12, 1, %v14620_v36 }
 0x322   : > { %v3589_v7 = vand.u32 2147483647, %v3588_v55  ;;  %vm3473_vm3 = vcmp.lt.s32.totalorder %v14683_v2, 0  ;;  %v3662_v60 = vsel %vm3658_vm4, %v3642_v10, %v11047_v8  ;;  %v3712_v61 = vadd.s32 %v3710_v35, %v3704_v14  ;;  %v14703_v10 = vld [vmem:[#allocation23_spill] sm:$0xff] }
 0x323   : > { %vm3713_vm7 = vc.u32 %v3711_v20, %v3707_v33  ;;  %v3664_v44 = vsel %vm3660_vm9, %v11034_v13, %v3663_v4  ;;  %v3686_v30 = vshrl.u32 %v11088_v26, 16  ;;  %v8169_v23 = vadd.s32 4294967169, %v11045_v52  ;;  %v1340_v13 = vpop.permute.xlu2 %1339 }
 0x324   : > { %v3592_v45 = vmul.f32 %v3591_v38, %v3589_v7  ;;  %v3714_v24 = vsel %vm3713_vm7, 1, %v14620_v36  ;;  %v3596_v25 = vsel %vm3473_vm3, %v3595_v15, %v11040_v47  ;;  %v3706_v21 = vshrl.u32 %v3702_v50, 16 }
 0x325   : > { %v3716_v48 = vadd.s32 %v3714_v24, %v3712_v61  ;;  %vm5497_vm4 = vcmp.gt.s32.totalorder %v5496_v37, 0  ;;  %v11119_v8 = vadd.f32 %v8875_v32, %v1416_v27  ;;  %v11121_v29 = vadd.s32 %v3695_v41, %v3686_v30 }
 0x326   : > { %v3593_v34 = vxor.u32 2147483648, %v3592_v45  ;;  %v14700_v26 = vand.u32 2147483647, %v14683_v2  ;;  %v3665_v52 = vsel %vm3659_vm11, %v3662_v60, %v3664_v44  ;;  %v3708_v47 = vshrl.u32 %v3703_v63, 16 }
 0x327   : > { %14699 = vst [vmem:[#allocation22_spill] sm:$0xff] %v11119_v8  ;;  %v3717_v50 = vadd.s32 %v3716_v48, %v3706_v21  ;;  %v11135_v27 = vadd.s32 %v3711_v20, %v3707_v33  ;;  %v14521_v46 = vand.u32 2147483647, %v14703_v10  ;;  %v11138_v9 = vsel %vm5497_vm4, %v5496_v37, 0 }
 0x328   : > { %vm11125_vm2 = vcmp.le.f32.partialorder %v14700_v26, 0.7853982  ;;  %v3594_v18 = vsel %vm3473_vm3, %v3593_v34, %v3592_v45  ;;  %v11140_v55 = vadd.s32 1, %v8169_v23  ;;  %v11146_v15 = vmul.f32 %v8854_v58, %v1340_v13 }
 0x329   : > { %v3598_v59 = vsel %vm11125_vm2, 0, %v3596_v25  ;;  %v3597_v22 = vsel %vm11125_vm2, %v14683_v2, %v3594_v18  ;;  %v3718_v63 = vadd.s32 %v3717_v50, %v3708_v47  ;;  %v5334_v4 = vand.u32 2139095040, %v11119_v8 }
 0x32a   : > { %v3599_v43 = vmul.f32 %v3597_v22, %v3597_v22  ;;  %vm3721_vm11 = vc.u32 %v11121_v29, %v11135_v27  ;;  %v3615_v14 = vadd.s32 3, %v3598_v59  ;;  %v3719_v37 = vmul.u32 %v11077_v31, %v3665_v52 }
 0x32b   : > { %v3722_v33 = vadd.s32 1, %v3718_v63  ;;  %v3808_v20 = vshrl.u32 %v14624_v11, %v10354_v40  ;;  %v3788_v41 = vand.u32 8388607, %v14521_v46  ;;  %v3799_v35 = vshrl.u32 %v14621_v28, %v10354_v40 }
 0x32c   : > { %v3600_v7 = vmul.f32 -0.001358992, %v3599_v43  ;;  %v3607_v38 = vmul.f32 -0.00019511016, %v3599_v43  ;;  %v3802_v61 = vshrl.u32 %v14622_v1, %v10354_v40  ;;  %v3805_v45 = vshrl.u32 %v14623_v0, %v10354_v40 }
 0x32d   : > { %v3723_v60 = vsel %vm3721_vm11, %v3722_v33, %v3718_v63  ;;  %v3807_v31 = vshll.u32 %v14623_v0, %v10173_v49  ;;  %v3811_v23 = vshrl.u32 %v14625_v16, %v10354_v40  ;;  %v3798_v25 = vshll.u32 %v14614_v39, %v10173_v49 }
 0x32e   : > { %v3601_v44 = vadd.f32 0.041655596, %v3600_v7  ;;  %v3608_v30 = vadd.f32 0.008332121, %v3607_v38  ;;  %v3724_v24 = vadd.s32 %v3723_v60, %v3719_v37  ;;  %v3801_v21 = vshll.u32 %v14621_v28, %v10173_v49 }
 0x32f   : > { %v3804_v48 = vshll.u32 %v14622_v1, %v10173_v49  ;;  %v3809_v34 = vor.u32 %v3808_v20, %v3807_v31  ;;  %v3789_v12 = vor.u32 8388608, %v3788_v41  ;;  %v3810_v52 = vshll.u32 %v14624_v11, %v10173_v49  ;;  %v1175_v41 = vpop.permute.xlu1 %1174 }
 0x330   : > { %v3602_v13 = vmul.f32 %v3601_v44, %v3599_v43  ;;  %v3609_v26 = vmul.f32 %v3608_v30, %v3599_v43  ;;  %v3725_v47 = vadd.s32 536870912, %v3724_v24  ;;  %v11174_v50 = vor.u32 %v3799_v35, %v3798_v25 }
 0x331   : > { %v11176_v18 = vor.u32 %v3802_v61, %v3801_v21  ;;  %v11178_v59 = vor.u32 %v3805_v45, %v3804_v48  ;;  %v3812_v33 = vor.u32 %v3811_v23, %v3810_v52  ;;  %vm3816_vm9 = vcmp.lt.s32.totalorder %v10348_v5, 4 }
 0x332   : > { %v3603_v63 = vadd.f32 -0.4999988, %v3602_v13  ;;  %v3610_v37 = vadd.f32 -0.16666654, %v3609_v26  ;;  %v11181_v7 = vshrl.u32 %v5334_v4, 23  ;;  %v3616_v20 = vand.u32 3, %v3615_v14 }
 0x333   : > { %v11183_v38 = vshrl.u32 %v3725_v47, 30  ;;  %v3822_v49 = vsel %vm3816_vm9, %v3809_v34, 920167782  ;;  %vm3813_vm10 = vcmp.lt.s32.totalorder %v10348_v5, 1  ;;  %vm3815_vm13 = vcmp.lt.s32.totalorder %v10348_v5, 3 }
 0x334   : > { %v3604_v35 = vmul.f32 %v3603_v63, %v3599_v43  ;;  %v3611_v60 = vmul.f32 %v3610_v37, %v3599_v43  ;;  %v3821_v4 = vsel %vm3813_vm10, %v11174_v50, %v11176_v18  ;;  %v3825_v14 = vsel %vm3813_vm10, %v11176_v18, %v11178_v59 }
 0x335   : > { %v3727_v61 = vshll.u32 %v11183_v38, 30  ;;  %v11198_v45 = vshll.u32 %v3789_v12, 8  ;;  %v3823_v44 = vsel %vm3815_vm13, %v11178_v59, %v3822_v49  ;;  %v3826_v30 = vsel %vm3816_vm9, %v3812_v33, 1326507024 }
 0x336   : > { %v3605_v31 = vadd.f32 1.0, %v3604_v35  ;;  %v3612_v43 = vadd.f32 1.0, %v3611_v60  ;;  %v1225_v23 = vmul.f32 %v8852_v57, %v1175_v41  ;;  %vm3814_vm14 = vcmp.lt.s32.totalorder %v10348_v5, 2 }
 0x337   : > { %v3728_v25 = vsub.s32 %v3724_v24, %v3727_v61  ;;  %v3827_v21 = vsel %vm3815_vm13, %v3809_v34, %v3826_v30  ;;  %vm3621_vm6 = vcmp.eq.s32.totalorder %v3616_v20, 2  ;;  %v3824_v52 = vsel %vm3814_vm14, %v3821_v4, %v3823_v44 }
 0x338   : > { %v3613_v48 = vmul.f32 %v3612_v43, %v3597_v22  ;;  %v3622_v13 = vxor.u32 2147483648, %v3605_v31  ;;  %v3828_v26 = vsel %vm3814_vm14, %v3825_v14, %v3827_v21  ;;  %v3830_v24 = vand.u32 65535, %v11198_v45 }
 0x339   : > { %vm3729_vm5 = vcmp.lt.s32.totalorder %v3728_v25, 0  ;;  %v3730_v12 = vsub.s32 0, %v3728_v25  ;;  %v3832_v47 = vand.u32 65535, %v3828_v26  ;;  %v3831_v37 = vshrl.u32 %v11198_v45, 16 }
 0x33a   : > { %v3619_v63 = vxor.u32 2147483648, %v3613_v48  ;;  %v3833_v33 = vshrl.u32 %v3828_v26, 16  ;;  %vm3617_vm8 = vcmp.lt.s32.totalorder %v3616_v20, 2  ;;  %vm3618_vm15 = vcmp.eq.s32.totalorder %v3616_v20, 0 }
 0x33b   : > { %v3623_v22 = vsel %vm3621_vm6, %v3622_v13, %v3613_v48  ;;  %v3731_v34 = vsel %vm3729_vm5, %v3730_v12, %v3728_v25  ;;  %v3836_v60 = vmul.u32 %v3832_v47, %v3831_v37  ;;  %v1418_v61 = vadd.f32 %v11146_v15, %v1225_v23 }
 0x33c   : > { %v3620_v49 = vsel %vm3618_vm15, %v3605_v31, %v3619_v63  ;;  %v3732_v41 = vclz %v3731_v34  ;;  %v3835_v35 = vmul.u32 %v3833_v33, %v3830_v24  ;;  %vm3614_vm12 = vweird.f32 %v14683_v2 }
 0x33d   : > { %v3624_v4 = vsel %vm3617_vm8, %v3620_v49, %v3623_v22  ;;  %v3854_v14 = vand.u32 65535, %v3824_v52  ;;  %v3834_v30 = vmul.u32 %v3832_v47, %v3830_v24  ;;  %v3720_v20 = vadd.s32 %v11135_v27, %v11121_v29 }
 0x33e   : > { %v3625_v43 = vsel %vm3614_vm12, nan, %v3624_v4  ;;  %v8140_v44 = vadd.s32 4294967294, %v3732_v41  ;;  %v3838_v21 = vshll.u32 %v3835_v35, 16  ;;  %v3750_v31 = vsub.s32 4, %v11183_v38 }
 0x33f   : > { %8206 = vmatmul.msk.f32.gmra.mxu0 %vm935_vm1, %v3625_v43  ;;  %v3837_v48 = vmul.u32 %v3833_v33, %v3831_v37  ;;  %v3855_v13 = vshrl.u32 %v3824_v52, 16  ;;  %v3840_v26 = vshll.u32 %v3836_v60, 16  ;;  %v3858_v63 = vmul.u32 %v3854_v14, %v3831_v37 }
 0x340   : > { %vm8141_vm3 = vcmp.lt.s32.totalorder %v8140_v44, 0  ;;  %vm3842_vm7 = vc.u32 %v3834_v30, %v3838_v21  ;;  %v3844_v15 = vadd.s32 %v3838_v21, %v3834_v30  ;;  %v3839_v34 = vshrl.u32 %v3835_v35, 16 }
 0x341   : > { %v3735_v2 = vsel %vm8141_vm3, 0, %v8140_v44  ;;  %v3843_v23 = vsel %vm3842_vm7, 1, %v14620_v36  ;;  %v3857_v12 = vmul.u32 %v3855_v13, %v3830_v24  ;;  %v3856_v41 = vmul.u32 %v3854_v14, %v3830_v24 }
 0x342   : > { %v3736_v47 = vsub.s32 32, %v3735_v2  ;;  %v3740_v22 = vsub.s32 4294967266, %v3735_v2  ;;  %v3845_v49 = vadd.s32 %v3843_v23, %v3837_v48  ;;  %vm3846_vm4 = vc.u32 %v3844_v15, %v3840_v26 }
 0x343   : > { %v3859_v29 = vmul.u32 %v3855_v13, %v3831_v37  ;;  %v3860_v27 = vshll.u32 %v3857_v12, 16  ;;  %v3737_v4 = vshll.u32 %v3728_v25, %v3735_v2  ;;  %v3847_v43 = vsel %vm3846_vm4, 1, %v14620_v36 }
 0x344   : > { %v3738_v33 = vshrl.u32 %v3720_v20, %v3736_v47  ;;  %v3741_v52 = vadd.s32 127, %v3740_v22  ;;  %v3849_v46 = vadd.s32 %v3847_v43, %v3845_v49  ;;  %v3862_v30 = vshll.u32 %v3858_v63, 16 }
 0x345   : > { %vm3864_vm2 = vc.u32 %v3856_v41, %v3860_v27  ;;  %v3866_v44 = vadd.s32 %v3860_v27, %v3856_v41  ;;  %vm5187_vm11 = vcmp.gt.s32.totalorder %v11140_v55, 0  ;;  %v11226_v48 = vadd.f32 %v8875_v32, %v1418_v61 }
 0x346   : > { %v3739_v21 = vor.u32 %v3738_v33, %v3737_v4  ;;  %v3742_v8 = vshll.u32 %v3741_v52, 23  ;;  %v3865_v35 = vsel %vm3864_vm2, 1, %v14620_v36  ;;  %v3850_v24 = vadd.s32 %v3849_v46, %v3839_v34 }
 0x347   : > { %14704 = vst [vmem:[#allocation25_spill] sm:$0xff] %v11226_v48  ;;  %v3867_v37 = vadd.s32 %v3865_v35, %v3859_v29  ;;  %vm3868_vm6 = vc.u32 %v3866_v44, %v3862_v30  ;;  %v8172_v25 = vadd.s32 4294967169, %v11181_v7  ;;  %vm3628_vm5 = vcmp.lt.s32.totalorder %v14695_v53, 0 }
 0x348   : > { %v3743_v14 = vor.u32 4788187, %v3742_v8  ;;  %v3818_v20 = vsel %vm3816_vm9, %v11178_v59, 2102212464  ;;  %v3751_v13 = vsel %vm3628_vm5, %v3750_v31, %v11183_v38  ;;  %v3797_v61 = vshrl.u32 %v14614_v39, %v10354_v40 }
 0x349   : > { %v3841_v26 = vshrl.u32 %v3836_v60, 16  ;;  %v3869_v46 = vsel %vm3868_vm6, 1, %v14620_v36  ;;  %v3746_v2 = vcvt.s32.f32 %v3739_v21  ;;  %v3861_v7 = vshrl.u32 %v3857_v12, 16 }
 0x34a   : > { %v3744_v15 = vand.u32 2147483647, %v3743_v14  ;;  %v3871_v23 = vadd.s32 %v3869_v46, %v3867_v37  ;;  %v5644_v8 = vand.u32 2139095040, %v11226_v48  ;;  %v3817_v59 = vsel %vm3813_vm10, %v3797_v61, %v11174_v50 }
 0x34b   : > { %v3819_v38 = vsel %vm3815_vm13, %v11176_v18, %v3818_v20  ;;  %v11246_v31 = vadd.s32 %v3850_v24, %v3841_v26  ;;  %v14705_v40 = vand.u32 2147483647, %v14695_v53  ;;  %v3863_v47 = vshrl.u32 %v3858_v63, 16  ;;  %v14708_v18 = vld [vmem:[#allocation34_spill] sm:$0xff] }
 0x34c   : > { %v3747_v12 = vmul.f32 %v3746_v2, %v3744_v15  ;;  %v3872_v22 = vadd.s32 %v3871_v23, %v3861_v7  ;;  %v11255_v34 = vshrl.u32 %v11004_v17, 5  ;;  %v11259_v49 = vadd.s32 %v3866_v44, %v3862_v30 }
 0x34d   : > { %vm11250_vm9 = vcmp.le.f32.partialorder %v14705_v40, 0.7853982  ;;  %v14524_v41 = vand.u32 2147483647, %v14708_v18  ;;  %v11263_v29 = vsub.s32 32, %v11043_v51  ;;  %v3820_v4 = vsel %vm3814_vm14, %v3817_v59, %v3819_v38 }
 0x34e   : > { %v3753_v50 = vsel %vm11250_vm9, 0, %v3751_v13  ;;  %v3748_v27 = vxor.u32 2147483648, %v3747_v12  ;;  %v3873_v33 = vadd.s32 %v3872_v22, %v3863_v47  ;;  %v11268_v63 = vand.u32 31, %v11138_v9 }
 0x34f   : > { %v11273_v17 = vsel %vm5187_vm11, %v11140_v55, 0  ;;  %v11275_v52 = vadd.s32 1, %v8172_v25  ;;  %vm3876_vm10 = vc.u32 %v11246_v31, %v11259_v49  ;;  %v11279_v43 = vshrl.u32 %v5644_v8, 23 }
 0x350   : > { %14709 = vst [vmem:[#allocation21_spill] sm:$0xff] %v11268_v63  ;;  %v3749_v5 = vsel %vm3628_vm5, %v3748_v27, %v3747_v12  ;;  %v3770_v30 = vadd.s32 3, %v3753_v50  ;;  %v3877_v44 = vadd.s32 1, %v3873_v33  ;;  %v3874_v55 = vmul.u32 %v11198_v45, %v3820_v4 }
 0x351   : > { %v11286_v21 = vsel %vm11250_vm9, %v14695_v53, %v3749_v5  ;;  %v4098_v35 = vand.u32 8388607, %v14524_v41  ;;  %v4118_v24 = vshrl.u32 %v14624_v11, %v10447_v3  ;;  %v4112_v14 = vshrl.u32 %v14622_v1, %v10447_v3 }
 0x352   : > { %v3754_v37 = vmul.f32 %v11286_v21, %v11286_v21  ;;  %v3878_v25 = vsel %vm3876_vm10, %v3877_v44, %v3873_v33  ;;  %v4115_v20 = vshrl.u32 %v14623_v0, %v10447_v3  ;;  %v4109_v45 = vshrl.u32 %v14621_v28, %v10447_v3 }
 0x353   : > { %v3879_v13 = vadd.s32 %v3878_v25, %v3874_v55  ;;  %v4117_v61 = vshll.u32 %v14623_v0, %v10417_v54  ;;  %v4121_v26 = vshrl.u32 %v14625_v16, %v10447_v3  ;;  %v4111_v2 = vshll.u32 %v14621_v28, %v10417_v54 }
 0x354   : > { %v3755_v46 = vmul.f32 -0.001358992, %v3754_v37  ;;  %v3762_v15 = vmul.f32 -0.00019511016, %v3754_v37  ;;  %v4114_v7 = vshll.u32 %v14622_v1, %v10417_v54  ;;  %v4108_v8 = vshll.u32 %v14614_v39, %v10417_v54 }
 0x355   : > { %v3880_v23 = vadd.s32 536870912, %v3879_v13  ;;  %v4119_v59 = vor.u32 %v4118_v24, %v4117_v61  ;;  %v4120_v38 = vshll.u32 %v14624_v11, %v10417_v54  ;;  %v11313_v12 = vor.u32 %v4112_v14, %v4111_v2 }
 0x356   : > { %v3756_v40 = vadd.f32 0.041655596, %v3755_v46  ;;  %v3763_v60 = vadd.f32 0.008332121, %v3762_v15  ;;  %v4116_v47 = vor.u32 %v4115_v20, %v4114_v7  ;;  %v11315_v22 = vand.u32 3, %v3770_v30 }
 0x357   : > { %vm3783_vm13 = vcmp.lt.s32.totalorder %v14703_v10, 0  ;;  %v3881_v50 = vshrl.u32 %v3880_v23, 30  ;;  %v4110_v27 = vor.u32 %v4109_v45, %v4108_v8  ;;  %v4122_v4 = vor.u32 %v4121_v26, %v4120_v38 }
 0x358   : > { %v3757_v33 = vmul.f32 %v3756_v40, %v3754_v37  ;;  %v3764_v5 = vmul.f32 %v3763_v60, %v3754_v37  ;;  %v4099_v44 = vor.u32 8388608, %v4098_v35  ;;  %vm4126_vm14 = vcmp.lt.s32.totalorder %v10357_v42, 4 }
 0x359   : > { %v3882_v55 = vshll.u32 %v3881_v50, 30  ;;  %vm4123_vm8 = vcmp.lt.s32.totalorder %v10357_v42, 1  ;;  %vm4124_vm15 = vcmp.lt.s32.totalorder %v10357_v42, 2  ;;  %v4132_v54 = vsel %vm4126_vm14, %v4119_v59, 920167782 }
 0x35a   : > { %v3758_v30 = vadd.f32 -0.4999988, %v3757_v33  ;;  %v3765_v24 = vadd.f32 -0.16666654, %v3764_v5  ;;  %v14710_v25 = vand.u32 2147483647, %v14703_v10  ;;  %v4135_v35 = vsel %vm4123_vm8, %v11313_v12, %v4116_v47 }
 0x35b   : > { %vm4125_vm3 = vcmp.lt.s32.totalorder %v10357_v42, 3  ;;  %vm3773_vm7 = vcmp.eq.s32.totalorder %v11315_v22, 0  ;;  %v11334_v20 = vsub.s32 %v3879_v13, %v3882_v55  ;;  %v3905_v45 = vsub.s32 4, %v3881_v50 }
 0x35c   : > { %vm11325_vm12 = vcmp.le.f32.partialorder %v14710_v25, 0.7853982  ;;  %v4131_v61 = vsel %vm4123_vm8, %v4110_v27, %v11313_v12  ;;  %v4136_v26 = vsel %vm4126_vm14, %v4122_v4, 1326507024  ;;  %v3759_v46 = vmul.f32 %v3758_v30, %v3754_v37 }
 0x35d   : > { %v3766_v15 = vmul.f32 %v3765_v24, %v3754_v37  ;;  %vm3772_vm4 = vcmp.lt.s32.totalorder %v11315_v22, 2  ;;  %v4133_v2 = vsel %vm4125_vm3, %v4116_v47, %v4132_v54  ;;  %v4137_v7 = vsel %vm4125_vm3, %v4119_v59, %v4136_v26 }
 0x35e   : > { %vm3769_vm2 = vweird.f32 %v14695_v53  ;;  %vm3776_vm11 = vcmp.eq.s32.totalorder %v11315_v22, 2  ;;  %vm3884_vm6 = vcmp.lt.s32.totalorder %v11334_v20, 0  ;;  %v3885_v13 = vsub.s32 0, %v11334_v20 }
 0x35f   : > { %v4138_v23 = vsel %vm4124_vm15, %v4135_v35, %v4137_v7  ;;  %v3760_v37 = vadd.f32 1.0, %v3759_v46  ;;  %v3767_v8 = vadd.f32 1.0, %v3766_v15  ;;  %v4107_v38 = vshrl.u32 %v14614_v39, %v10447_v3 }
 0x360   : > { %v11354_v40 = vshll.u32 %v4099_v44, 8  ;;  %v3886_v59 = vsel %vm3884_vm6, %v3885_v13, %v11334_v20  ;;  %v4134_v60 = vsel %vm4124_vm15, %v4131_v61, %v4133_v2  ;;  %v4142_v4 = vand.u32 65535, %v4138_v23 }
 0x361   : > { %v4143_v33 = vshrl.u32 %v4138_v23, 16  ;;  %v3768_v5 = vmul.f32 %v3767_v8, %v11286_v21  ;;  %v3777_v55 = vxor.u32 2147483648, %v3760_v37  ;;  %v3887_v54 = vclz %v3886_v59 }
 0x362   : > { %v3906_v30 = vsel %vm3783_vm13, %v3905_v45, %v3881_v50  ;;  %v3875_v24 = vadd.s32 %v11259_v49, %v11246_v31  ;;  %v11366_v3 = vsel %vm4123_vm8, %v4107_v38, %v4110_v27  ;;  %v4140_v44 = vand.u32 65535, %v11354_v40 }
 0x363   : > { %v4141_v25 = vshrl.u32 %v11354_v40, 16  ;;  %v3774_v35 = vxor.u32 2147483648, %v3768_v5  ;;  %v8143_v61 = vadd.s32 4294967294, %v3887_v54  ;;  %v4128_v21 = vsel %vm4126_vm14, %v4116_v47, 2102212464 }
 0x364   : > { %v4164_v26 = vand.u32 65535, %v4134_v60  ;;  %v3778_v50 = vsel %vm3776_vm11, %v3777_v55, %v3768_v5  ;;  %v3908_v31 = vsel %vm11325_vm12, 0, %v3906_v30  ;;  %v4145_v49 = vmul.u32 %v4143_v33, %v4140_v44 }
 0x365   : > { %v4146_v45 = vmul.u32 %v4142_v4, %v4141_v25  ;;  %v3775_v27 = vsel %vm3773_vm7, %v3760_v37, %v3774_v35  ;;  %vm8144_vm5 = vcmp.lt.s32.totalorder %v8143_v61, 0  ;;  %v4144_v46 = vmul.u32 %v4142_v4, %v4140_v44 }
 0x366   : > { %v4165_v15 = vshrl.u32 %v4134_v60, 16  ;;  %v3779_v2 = vsel %vm3772_vm4, %v3775_v27, %v3778_v50  ;;  %v3890_v7 = vsel %vm8144_vm5, 0, %v8143_v61  ;;  %v4147_v47 = vmul.u32 %v4143_v33, %v4141_v25 }
 0x367   : > { %v4148_v13 = vshll.u32 %v4145_v49, 16  ;;  %v3780_v23 = vsel %vm3769_vm2, nan, %v3779_v2  ;;  %v3891_v8 = vsub.s32 32, %v3890_v7  ;;  %v3895_v38 = vsub.s32 4294967266, %v3890_v7 }
 0x368   : > { %v4168_v59 = vmul.u32 %v4164_v26, %v4141_v25  ;;  %8207 = vmatmul.msk.f32.gmra.mxu0 %vm935_vm1, %v3780_v23  ;;  %v3892_v5 = vshll.u32 %v11334_v20, %v3890_v7  ;;  %v4150_v37 = vshll.u32 %v4146_v45, 16  ;;  %v4167_v54 = vmul.u32 %v4165_v15, %v4140_v44  ;;  %v1344_v7 = vpop.permute.xlu2 %1343 }
 0x369   : > { %vm4152_vm9 = vc.u32 %v4144_v46, %v4148_v13  ;;  %v4154_v4 = vadd.s32 %v4148_v13, %v4144_v46  ;;  %v3893_v60 = vshrl.u32 %v3875_v24, %v3891_v8  ;;  %v3896_v55 = vadd.s32 127, %v3895_v38 }
 0x36a   : > { %v4153_v22 = vsel %vm4152_vm9, 1, %v14620_v36  ;;  %v4129_v53 = vsel %vm4125_vm3, %v11313_v12, %v4128_v21  ;;  %v4166_v30 = vmul.u32 %v4164_v26, %v4140_v44  ;;  %v4170_v20 = vshll.u32 %v4167_v54, 16  ;;  %v1180_v44 = vpop.permute.xlu1 %1179 }
 0x36b   : > { %v4155_v33 = vadd.s32 %v4153_v22, %v4147_v47  ;;  %vm4156_vm10 = vc.u32 %v4154_v4, %v4150_v37  ;;  %v3894_v35 = vor.u32 %v3893_v60, %v3892_v5  ;;  %v3897_v61 = vshll.u32 %v3896_v55, 23  ;;  %v14713_v5 = vld [vmem:[#allocation9_spill] sm:$0xff] }
 0x36c   : > { %v4157_v50 = vsel %vm4156_vm10, 1, %v14620_v36  ;;  %v3925_v27 = vadd.s32 3, %v3908_v31  ;;  %v4149_v2 = vshrl.u32 %v4145_v49, 16  ;;  %v4169_v24 = vmul.u32 %v4165_v15, %v4141_v25 }
 0x36d   : > { %v4159_v46 = vadd.s32 %v4157_v50, %v4155_v33  ;;  %v3898_v13 = vor.u32 4788187, %v3897_v61  ;;  %v4172_v23 = vshll.u32 %v4168_v59, 16  ;;  %vm4174_vm14 = vc.u32 %v4166_v30, %v4170_v20 }
 0x36e   : > { %v4176_v8 = vadd.s32 %v4170_v20, %v4166_v30  ;;  %v3901_v38 = vcvt.s32.f32 %v3894_v35  ;;  %v4151_v41 = vshrl.u32 %v4146_v45, 16  ;;  %v4175_v21 = vsel %vm4174_vm14, 1, %v14620_v36  ;;  %v14715_v20 = vld [vmem:[#allocation29_spill] sm:$0xff] }
 0x36f   : > { %v4160_v12 = vadd.s32 %v4159_v46, %v4149_v2  ;;  %v3899_v26 = vand.u32 2147483647, %v3898_v13  ;;  %v4177_v47 = vadd.s32 %v4175_v21, %v4169_v24  ;;  %v14525_v37 = vand.u32 2147483647, %v14713_v5 }
 0x370   : > { %vm4178_vm8 = vc.u32 %v4176_v8, %v4172_v23  ;;  %v1387_v31 = vmul.f32 %v8854_v58, %v1344_v7  ;;  %v11393_v25 = vadd.s32 4294967169, %v11279_v43  ;;  %v4171_v45 = vshrl.u32 %v4167_v54, 16  ;;  %v14714_v54 = vld [vmem:[#allocation24_spill] sm:$0xff] }
 0x371   : > { %v11395_v49 = vadd.s32 %v4160_v12, %v4151_v41  ;;  %v4179_v15 = vsel %vm4178_vm8, 1, %v14620_v36  ;;  %v3902_v4 = vmul.f32 %v3901_v38, %v3899_v26  ;;  %v11398_v60 = vadd.s32 %v4176_v8, %v4172_v23 }
 0x372   : > { %v4181_v55 = vadd.s32 %v4179_v15, %v4177_v47  ;;  %v1226_v22 = vmul.f32 %v8852_v57, %v1180_v44  ;;  %v11401_v33 = vand.u32 3, %v3925_v27  ;;  %v4130_v30 = vsel %vm4124_vm15, %v11366_v3, %v4129_v53 }
 0x373   : > { %v4173_v35 = vshrl.u32 %v4168_v59, 16  ;;  %v3903_v43 = vxor.u32 2147483648, %v3902_v4  ;;  %vm4186_vm3 = vc.u32 %v11395_v49, %v11398_v60  ;;  %v3943_v41 = vand.u32 8388607, %v14525_v37 }
 0x374   : > { %v4182_v61 = vadd.s32 %v4181_v55, %v4171_v45  ;;  %vm5342_vm7 = vcmp.gt.s32.totalorder %v11275_v52, 0  ;;  %v3953_v50 = vshll.u32 %v14614_v39, %v14714_v54  ;;  %v3954_v27 = vshrl.u32 %v14621_v28, %v14715_v20 }
 0x375   : > { %v3957_v42 = vshrl.u32 %v14622_v1, %v14715_v20  ;;  %v3960_v3 = vshrl.u32 %v14623_v0, %v14715_v20  ;;  %v3904_v59 = vsel %vm3783_vm13, %v3903_v43, %v3902_v4  ;;  %v3962_v2 = vshll.u32 %v14623_v0, %v14714_v54 }
 0x376   : > { %v4183_v53 = vadd.s32 %v4182_v61, %v4173_v35  ;;  %v3963_v46 = vshrl.u32 %v14624_v11, %v14715_v20  ;;  %v3907_v24 = vsel %vm11325_vm12, %v14703_v10, %v3904_v59  ;;  %v3956_v7 = vshll.u32 %v14621_v28, %v14714_v54  ;;  %v14716_v61 = vld [vmem:[#allocation28_spill] sm:$0xff] }
 0x377   : > { %v3959_v13 = vshll.u32 %v14622_v1, %v14714_v54  ;;  %v3965_v23 = vshll.u32 %v14624_v11, %v14714_v54  ;;  %v3909_v8 = vmul.f32 %v3907_v24, %v3907_v24  ;;  %v3966_v21 = vshrl.u32 %v14625_v16, %v14715_v20 }
 0x378   : > { %v4187_v38 = vadd.s32 1, %v4183_v53  ;;  %v3964_v12 = vor.u32 %v3963_v46, %v3962_v2  ;;  %v4184_v44 = vmul.u32 %v11354_v40, %v4130_v30  ;;  %v11437_v26 = vor.u32 %v3954_v27, %v3953_v50 }
 0x379   : > { %v11439_v14 = vor.u32 %v3957_v42, %v3956_v7  ;;  %v11441_v47 = vor.u32 %v3960_v3, %v3959_v13  ;;  %v3910_v15 = vmul.f32 -0.001358992, %v3909_v8  ;;  %v3917_v4 = vmul.f32 -0.00019511016, %v3909_v8 }
 0x37a   : > { %v4188_v45 = vsel %vm4186_vm3, %v4187_v38, %v4183_v53  ;;  %v3967_v55 = vor.u32 %v3966_v21, %v3965_v23  ;;  %v3944_v43 = vor.u32 8388608, %v3943_v41  ;;  %vm3968_vm13 = vcmp.lt.s32.totalorder %v14716_v61, 1 }
 0x37b   : > { %v4189_v35 = vadd.s32 %v4188_v45, %v4184_v44  ;;  %vm3971_vm15 = vcmp.lt.s32.totalorder %v14716_v61, 4  ;;  %v1419_v40 = vadd.f32 %v1387_v31, %v1226_v22  ;;  %v3911_v30 = vadd.f32 0.041655596, %v3910_v15 }
 0x37c   : > { %v3918_v54 = vadd.f32 0.008332121, %v3917_v4  ;;  %v3977_v50 = vsel %vm3971_vm15, %v3964_v12, 920167782  ;;  %vm3970_vm12 = vcmp.lt.s32.totalorder %v14716_v61, 3  ;;  %v3976_v42 = vsel %vm3968_vm13, %v11437_v26, %v11439_v14 }
 0x37d   : > { %v4190_v27 = vadd.s32 536870912, %v4189_v35  ;;  %v3980_v41 = vsel %vm3968_vm13, %v11439_v14, %v11441_v47  ;;  %v3912_v3 = vmul.f32 %v3911_v30, %v3909_v8  ;;  %v3978_v22 = vsel %vm3970_vm12, %v11441_v47, %v3977_v50 }
 0x37e   : > { %v3919_v31 = vmul.f32 %v3918_v54, %v3909_v8  ;;  %v3981_v59 = vsel %vm3971_vm15, %v3967_v55, 1326507024  ;;  %vm3969_vm4 = vcmp.lt.s32.totalorder %v14716_v61, 2  ;;  %v11469_v46 = vshll.u32 %v3944_v43, 8 }
 0x37f   : > { %v11464_v53 = vshrl.u32 %v4190_v27, 30  ;;  %v3982_v2 = vsel %vm3970_vm12, %v3964_v12, %v3981_v59  ;;  %v11474_v7 = vsel %vm5342_vm7, %v11275_v52, 0  ;;  %v3913_v13 = vadd.f32 -0.4999988, %v3912_v3 }
 0x380   : > { %v3920_v23 = vadd.f32 -0.16666654, %v3919_v31  ;;  %v3983_v38 = vsel %vm3969_vm4, %v3980_v41, %v3982_v2  ;;  %v11479_v21 = vadd.s32 1, %v11393_v25  ;;  %v11482_v44 = vadd.f32 %v8875_v32, %v1419_v40 }
 0x381   : > { %v4192_v12 = vshll.u32 %v11464_v53, 30  ;;  %v3979_v15 = vsel %vm3969_vm4, %v3976_v42, %v3978_v22  ;;  %v3914_v4 = vmul.f32 %v3913_v13, %v3909_v8  ;;  %v3987_v52 = vand.u32 65535, %v3983_v38 }
 0x382   : > { %14717 = vst [vmem:[#allocation14_spill] sm:$0xff] %v11482_v44  ;;  %v3921_v45 = vmul.f32 %v3920_v23, %v3909_v8  ;;  %v3988_v55 = vshrl.u32 %v3983_v38, 16  ;;  %vm3924_vm2 = vweird.f32 %v14703_v10  ;;  %vm3927_vm11 = vcmp.lt.s32.totalorder %v11401_v33, 2 }
 0x383   : > { %v4193_v43 = vsub.s32 %v4189_v35, %v4192_v12  ;;  %v3985_v25 = vand.u32 65535, %v11469_v46  ;;  %v3915_v30 = vadd.f32 1.0, %v3914_v4  ;;  %vm3928_vm6 = vcmp.eq.s32.totalorder %v11401_v33, 0 }
 0x384   : > { %v3922_v54 = vadd.f32 1.0, %v3921_v45  ;;  %v3986_v40 = vshrl.u32 %v11469_v46, 16  ;;  %v4010_v42 = vshrl.u32 %v3979_v15, 16  ;;  %vm3931_vm9 = vcmp.eq.s32.totalorder %v11401_v33, 2 }
 0x385   : > { %vm4194_vm5 = vcmp.lt.s32.totalorder %v4193_v43, 0  ;;  %v4195_v50 = vsub.s32 0, %v4193_v43  ;;  %v3990_v27 = vmul.u32 %v3988_v55, %v3985_v25  ;;  %v3932_v41 = vxor.u32 2147483648, %v3915_v30 }
 0x386   : > { %v3923_v8 = vmul.f32 %v3922_v54, %v3907_v24  ;;  %v3991_v3 = vmul.u32 %v3987_v52, %v3986_v40  ;;  %v4185_v35 = vadd.s32 %v11398_v60, %v11395_v49  ;;  %v4009_v59 = vand.u32 65535, %v3979_v15 }
 0x387   : > { %v4196_v31 = vsel %vm4194_vm5, %v4195_v50, %v4193_v43  ;;  %v3993_v22 = vshll.u32 %v3990_v27, 16  ;;  %v4215_v23 = vsub.s32 4, %v11464_v53  ;;  %v3989_v38 = vmul.u32 %v3987_v52, %v3985_v25 }
 0x388   : > { %v3929_v2 = vxor.u32 2147483648, %v3923_v8  ;;  %v4197_v13 = vclz %v4196_v31  ;;  %v3933_v12 = vsel %vm3931_vm9, %v3932_v41, %v3923_v8  ;;  %v3992_v4 = vmul.u32 %v3988_v55, %v3986_v40 }
 0x389   : > { %v3995_v45 = vshll.u32 %v3991_v3, 16  ;;  %v4012_v37 = vmul.u32 %v4010_v42, %v3985_v25  ;;  %vm4093_vm10 = vcmp.lt.s32.totalorder %v14708_v18, 0  ;;  %vm3997_vm14 = vc.u32 %v3989_v38, %v3993_v22 }
 0x38a   : > { %v3930_v24 = vsel %vm3928_vm6, %v3915_v30, %v3929_v2  ;;  %v8149_v54 = vadd.s32 4294967294, %v4197_v13  ;;  %v3999_v49 = vadd.s32 %v3993_v22, %v3989_v38  ;;  %v3998_v15 = vsel %vm3997_vm14, 1, %v14620_v36 }
 0x38b   : > { %v3934_v60 = vsel %vm3927_vm11, %v3930_v24, %v3933_v12  ;;  %v4011_v50 = vmul.u32 %v4009_v59, %v3985_v25  ;;  %v4013_v31 = vmul.u32 %v4009_v59, %v3986_v40  ;;  %v4000_v55 = vadd.s32 %v3998_v15, %v3992_v4 }
 0x38c   : > { %v3935_v52 = vsel %vm3924_vm2, nan, %v3934_v60  ;;  %vm8150_vm8 = vcmp.lt.s32.totalorder %v8149_v54, 0  ;;  %vm4001_vm3 = vc.u32 %v3999_v49, %v3995_v45  ;;  %v3994_v8 = vshrl.u32 %v3990_v27, 16 }
 0x38d   : > { %8208 = vmatmul.msk.f32.gmra.mxu0 %vm935_vm1, %v3935_v52  ;;  %v4200_v30 = vsel %vm8150_vm8, 0, %v8149_v54  ;;  %v4002_v41 = vsel %vm4001_vm3, 1, %v14620_v36  ;;  %v4015_v22 = vshll.u32 %v4012_v37, 16  ;;  %v4014_v38 = vmul.u32 %v4010_v42, %v3986_v40 }
 0x38e   : > { %v4201_v2 = vsub.s32 32, %v4200_v30  ;;  %v4205_v33 = vsub.s32 4294967266, %v4200_v30  ;;  %v4004_v13 = vadd.s32 %v4002_v41, %v4000_v55  ;;  %v4202_v12 = vshll.u32 %v4193_v43, %v4200_v30 }
 0x38f   : > { %v4017_v25 = vshll.u32 %v4013_v31, 16  ;;  %vm4019_vm7 = vc.u32 %v4011_v50, %v4015_v22  ;;  %v4021_v59 = vadd.s32 %v4015_v22, %v4011_v50  ;;  %v3952_v45 = vshrl.u32 %v14614_v39, %v14715_v20 }
 0x390   : > { %v4203_v10 = vshrl.u32 %v4185_v35, %v4201_v2  ;;  %v4206_v24 = vadd.s32 127, %v4205_v33  ;;  %v4005_v60 = vadd.s32 %v4004_v13, %v3994_v8  ;;  %v4020_v4 = vsel %vm4019_vm7, 1, %v14620_v36 }
 0x391   : > { %v3973_v27 = vsel %vm3971_vm15, %v11441_v47, 2102212464  ;;  %v4022_v54 = vadd.s32 %v4020_v4, %v4014_v38  ;;  %vm4023_vm2 = vc.u32 %v4021_v59, %v4017_v25  ;;  %v3996_v43 = vshrl.u32 %v3991_v3, 16 }
 0x392   : > { %v4204_v49 = vor.u32 %v4203_v10, %v4202_v12  ;;  %v4207_v40 = vshll.u32 %v4206_v24, 23  ;;  %v4024_v42 = vsel %vm4023_vm2, 1, %v14620_v36  ;;  %v5799_v35 = vand.u32 2139095040, %v11482_v44 }
 0x393   : > { %v4216_v15 = vsel %vm4093_vm10, %v4215_v23, %v11464_v53  ;;  %v4016_v50 = vshrl.u32 %v4012_v37, 16  ;;  %v4026_v52 = vadd.s32 %v4024_v42, %v4022_v54  ;;  %v3972_v47 = vsel %vm3968_vm13, %v3952_v45, %v11437_v26 }
 0x394   : > { %v4208_v20 = vor.u32 4788187, %v4207_v40  ;;  %v3974_v55 = vsel %vm3970_vm12, %v11439_v14, %v3973_v27  ;;  %v4006_v3 = vadd.s32 %v4005_v60, %v3996_v43  ;;  %v14718_v30 = vand.u32 2147483647, %v14708_v18 }
 0x395   : > { %v4018_v41 = vshrl.u32 %v4013_v31, 16  ;;  %v4027_v53 = vadd.s32 %v4026_v52, %v4016_v50  ;;  %v14526_v37 = vand.u32 2147483647, %v10245_v6  ;;  %v4211_v22 = vcvt.s32.f32 %v4204_v49  ;;  %v14725_v52 = vld [vmem:[#allocation16_spill] sm:$0xff] }
 0x396   : > { %vm11525_vm15 = vcmp.le.f32.partialorder %v14718_v30, 0.7853982  ;;  %v4209_v23 = vand.u32 2147483647, %v4208_v20  ;;  %v4025_v2 = vadd.s32 %v4021_v59, %v4017_v25  ;;  %v11533_v33 = vand.u32 31, %v11273_v17  ;;  %v14726_v30 = vld [vmem:[#allocation6_spill] sm:$0xff] }
 0x397   : > { %v4218_v26 = vsel %vm11525_vm15, 0, %v4216_v15  ;;  %v11536_v14 = vand.u32 31, %v11474_v7  ;;  %v3975_v13 = vsel %vm3969_vm4, %v3972_v47, %v3974_v55  ;;  %v4028_v38 = vadd.s32 %v4027_v53, %v4018_v41 }
 0x398   : > { %v11541_v31 = vshrl.u32 %v11138_v9, 5  ;;  %v5800_v12 = vshrl.u32 %v5799_v35, 23  ;;  %v4212_v10 = vmul.f32 %v4211_v22, %v4209_v23  ;;  %vm4031_vm13 = vc.u32 %v4006_v3, %v4025_v2 }
 0x399   : > { %14721 = vst [vmem:[#allocation11_spill] sm:$0xff] %v11536_v14  ;;  %vm5652_vm12 = vcmp.gt.s32.totalorder %v11479_v21, 0  ;;  %v4235_v24 = vadd.s32 3, %v4218_v26  ;;  %v4032_v25 = vadd.s32 1, %v4028_v38  ;;  %v4253_v59 = vand.u32 8388607, %v14526_v37 }
 0x39a   : > { %14722 = vst [vmem:[#allocation32_spill] sm:$0xff] %v11541_v31  ;;  %v11547_v60 = vsub.s32 32, %v11268_v63  ;;  %v11550_v61 = vshrl.u32 %v11273_v17, 5  ;;  %v4213_v4 = vxor.u32 2147483648, %v4212_v10  ;;  %v4029_v9 = vmul.u32 %v11469_v46, %v3975_v13 }
 0x39b   : > { %v11554_v45 = vsub.s32 32, %v11533_v33  ;;  %v11557_v27 = vshrl.u32 %v11474_v7, 5  ;;  %v11560_v54 = vsub.s32 32, %v11536_v14  ;;  %v4033_v49 = vsel %vm4031_vm13, %v4032_v25, %v4028_v38 }
 0x39c   : > { %14723 = vst [vmem:[#allocation27_spill] sm:$0xff] %v11547_v60  ;;  %v11563_v40 = vsel %vm5652_vm12, %v11479_v21, 0  ;;  %v11565_v43 = vadd.s32 4294967169, %v5800_v12  ;;  %v4214_v17 = vsel %vm4093_vm10, %v4213_v4, %v4212_v10  ;;  %v4034_v42 = vadd.s32 %v4033_v49, %v4029_v9 }
 0x39d   : > { %14724 = vst [vmem:[#allocation31_spill] sm:$0xff] %v11557_v27  ;;  %v11572_v46 = vsel %vm11525_vm15, %v14708_v18, %v4214_v17  ;;  %v11574_v7 = vand.u32 3, %v4235_v24  ;;  %v11576_v35 = vadd.s32 %v4025_v2, %v4006_v3  ;;  %v4254_v15 = vor.u32 8388608, %v4253_v59 }
 0x39e   : > { %v4219_v21 = vmul.f32 %v11572_v46, %v11572_v46  ;;  %vm3938_vm4 = vcmp.lt.s32.totalorder %v14713_v5, 0  ;;  %v4035_v50 = vadd.s32 536870912, %v4034_v42  ;;  %v4264_v20 = vshrl.u32 %v14621_v28, %v14725_v52 }
 0x39f   : > { %v4273_v47 = vshrl.u32 %v14624_v11, %v14725_v52  ;;  %v4267_v55 = vshrl.u32 %v14622_v1, %v14725_v52  ;;  %v4270_v3 = vshrl.u32 %v14623_v0, %v14725_v52  ;;  %v4272_v8 = vshll.u32 %v14623_v0, %v14726_v30 }
 0x3a0   : > { %v4276_v41 = vshrl.u32 %v14625_v16, %v14725_v52  ;;  %v4220_v53 = vmul.f32 -0.001358992, %v4219_v21  ;;  %v4227_v23 = vmul.f32 -0.00019511016, %v4219_v21  ;;  %v4036_v22 = vshrl.u32 %v4035_v50, 30 }
 0x3a1   : > { %v4263_v26 = vshll.u32 %v14614_v39, %v14726_v30  ;;  %v4266_v2 = vshll.u32 %v14621_v28, %v14726_v30  ;;  %v4269_v13 = vshll.u32 %v14622_v1, %v14726_v30  ;;  %v4274_v38 = vor.u32 %v4273_v47, %v4272_v8 }
 0x3a2   : > { %v4275_v12 = vshll.u32 %v14624_v11, %v14726_v30  ;;  %v4221_v10 = vadd.f32 0.041655596, %v4220_v53  ;;  %v4228_v24 = vadd.f32 0.008332121, %v4227_v23  ;;  %v14727_v25 = vand.u32 2147483647, %v14713_v5 }
 0x3a3   : > { %v4037_v4 = vshll.u32 %v4036_v22, 30  ;;  %v4265_v9 = vor.u32 %v4264_v20, %v4263_v26  ;;  %v4060_v49 = vsub.s32 4, %v4036_v22  ;;  %v11607_v17 = vor.u32 %v4267_v55, %v4266_v2  ;;  %v14730_v30 = vld [vmem:[#allocation37_spill] sm:$0xff] }
 0x3a4   : > { %vm11603_vm11 = vcmp.le.f32.partialorder %v14727_v25, 0.7853982  ;;  %v4271_v50 = vor.u32 %v4270_v3, %v4269_v13  ;;  %v4277_v37 = vor.u32 %v4276_v41, %v4275_v12  ;;  %v4222_v44 = vmul.f32 %v4221_v10, %v4219_v21 }
 0x3a5   : > { %v4229_v47 = vmul.f32 %v4228_v24, %v4219_v21  ;;  %v11609_v8 = vsub.s32 %v4034_v42, %v4037_v4  ;;  %vm4281_vm6 = vcmp.lt.s32.totalorder %v14730_v30, 4  ;;  %vm4278_vm5 = vcmp.lt.s32.totalorder %v14730_v30, 1  ;;  %v14731_v4 = vld [vmem:[#allocation36_spill] sm:$0xff] }
 0x3a6   : > { %vm4280_vm9 = vcmp.lt.s32.totalorder %v14730_v30, 3  ;;  %v4287_v53 = vsel %vm4281_vm6, %v4274_v38, 920167782  ;;  %v11616_v23 = vshll.u32 %v4254_v15, 8  ;;  %v4223_v20 = vadd.f32 -0.4999988, %v4222_v44 }
 0x3a7   : > { %v4230_v55 = vadd.f32 -0.16666654, %v4229_v47  ;;  %vm4241_vm10 = vcmp.eq.s32.totalorder %v11574_v7, 2  ;;  %vm4039_vm14 = vcmp.lt.s32.totalorder %v11609_v8, 0  ;;  %v4040_v42 = vsub.s32 0, %v11609_v8 }
 0x3a8   : > { %vm4238_vm8 = vcmp.eq.s32.totalorder %v11574_v7, 0  ;;  %v4061_v3 = vsel %vm3938_vm4, %v4060_v49, %v4036_v22  ;;  %v4286_v41 = vsel %vm4278_vm5, %v4265_v9, %v11607_v17  ;;  %v4290_v44 = vsel %vm4278_vm5, %v11607_v17, %v4271_v50 }
 0x3a9   : > { %v4291_v15 = vsel %vm4281_vm6, %v4277_v37, 1326507024  ;;  %v4224_v26 = vmul.f32 %v4223_v20, %v4219_v21  ;;  %v4231_v2 = vmul.f32 %v4230_v55, %v4219_v21  ;;  %vm4237_vm3 = vcmp.lt.s32.totalorder %v11574_v7, 2 }
 0x3aa   : > { %v4041_v13 = vsel %vm4039_vm14, %v4040_v42, %v11609_v8  ;;  %v4288_v22 = vsel %vm4280_vm9, %v4271_v50, %v4287_v53  ;;  %vm4234_vm7 = vweird.f32 %v14708_v18  ;;  %v4262_v10 = vshrl.u32 %v14614_v39, %v14725_v52 }
 0x3ab   : > { %v4042_v12 = vclz %v4041_v13  ;;  %vm4279_vm2 = vcmp.lt.s32.totalorder %v14730_v30, 2  ;;  %v4292_v37 = vsel %vm4280_vm9, %v4274_v38, %v4291_v15  ;;  %v4225_v24 = vadd.f32 1.0, %v4224_v26 }
 0x3ac   : > { %v4232_v21 = vadd.f32 1.0, %v4231_v2  ;;  %v4293_v25 = vsel %vm4279_vm2, %v4290_v44, %v4292_v37  ;;  %v4063_v53 = vsel %vm11603_vm11, 0, %v4061_v3  ;;  %v4282_v20 = vsel %vm4278_vm5, %v4262_v10, %v4265_v9 }
 0x3ad   : > { %v8146_v47 = vadd.s32 4294967294, %v4042_v12  ;;  %v4289_v52 = vsel %vm4279_vm2, %v4286_v41, %v4288_v22  ;;  %v4242_v38 = vxor.u32 2147483648, %v4225_v24  ;;  %v4297_v42 = vand.u32 65535, %v4293_v25 }
 0x3ae   : > { %v4233_v55 = vmul.f32 %v4232_v21, %v11572_v46  ;;  %v4298_v15 = vshrl.u32 %v4293_v25, 16  ;;  %v4283_v44 = vsel %vm4281_vm6, %v4271_v50, 2102212464  ;;  %v4295_v26 = vand.u32 65535, %v11616_v23 }
 0x3af   : > { %vm8147_vm15 = vcmp.lt.s32.totalorder %v8146_v47, 0  ;;  %v4296_v2 = vshrl.u32 %v11616_v23, 16  ;;  %v4319_v12 = vand.u32 65535, %v4289_v52  ;;  %v4320_v9 = vshrl.u32 %v4289_v52, 16 }
 0x3b0   : > { %v4239_v3 = vxor.u32 2147483648, %v4233_v55  ;;  %v4045_v13 = vsel %vm8147_vm15, 0, %v8146_v47  ;;  %v4243_v41 = vsel %vm4241_vm10, %v4242_v38, %v4233_v55  ;;  %v4300_v10 = vmul.u32 %v4298_v15, %v4295_v26 }
 0x3b1   : > { %v4046_v22 = vsub.s32 32, %v4045_v13  ;;  %v4050_v46 = vsub.s32 4294967266, %v4045_v13  ;;  %v4047_v21 = vshll.u32 %v11609_v8, %v4045_v13  ;;  %v4299_v50 = vmul.u32 %v4297_v42, %v4295_v26 }
 0x3b2   : > { %v4240_v37 = vsel %vm4238_vm8, %v4225_v24, %v4239_v3  ;;  %v4301_v25 = vmul.u32 %v4297_v42, %v4296_v2  ;;  %v4303_v52 = vshll.u32 %v4300_v10, 16  ;;  %v4284_v38 = vsel %vm4280_vm9, %v11607_v17, %v4283_v44 }
 0x3b3   : > { %v4244_v49 = vsel %vm4237_vm3, %v4240_v37, %v4243_v41  ;;  %v4048_v47 = vshrl.u32 %v11576_v35, %v4046_v22  ;;  %v4051_v48 = vadd.s32 127, %v4050_v46  ;;  %v4302_v31 = vmul.u32 %v4298_v15, %v4296_v2 }
 0x3b4   : > { %v4245_v55 = vsel %vm4234_vm7, nan, %v4244_v49  ;;  %v4305_v24 = vshll.u32 %v4301_v25, 16  ;;  %vm4307_vm13 = vc.u32 %v4299_v50, %v4303_v52  ;;  %v4309_v7 = vadd.s32 %v4303_v52, %v4299_v50 }
 0x3b5   : > { %8210 = vmatmul.msk.f32.vlgmr.msra.gmra.mxu2 %vm935_vm1, %v4245_v55  ;;  %v4049_v8 = vor.u32 %v4048_v47, %v4047_v21  ;;  %v4052_v42 = vshll.u32 %v4051_v48, 23  ;;  %v4308_v3 = vsel %vm4307_vm13, 1, %v14620_v36  ;;  %v4322_v35 = vmul.u32 %v4320_v9, %v4295_v26 }
 0x3b6   : > { %v4323_v13 = vmul.u32 %v4319_v12, %v4296_v2  ;;  %v14732_v41 = vand.u32 2147483647, %v14731_v4  ;;  %v4080_v22 = vadd.s32 3, %v4063_v53  ;;  %v4310_v46 = vadd.s32 %v4308_v3, %v4302_v31  ;;  %v14734_v3 = vld [vmem:[#allocation12_spill] sm:$0xff] }
 0x3b7   : > { %v4053_v49 = vor.u32 4788187, %v4052_v42  ;;  %vm4311_vm12 = vc.u32 %v4309_v7, %v4305_v24  ;;  %v11677_v17 = vsel %vm4279_vm2, %v4282_v20, %v4284_v38  ;;  %v4321_v15 = vmul.u32 %v4319_v12, %v4295_v26 }
 0x3b8   : > { %v11673_v18 = vand.u32 8388607, %v14732_v41  ;;  %v4312_v48 = vsel %vm4311_vm12, 1, %v14620_v36  ;;  %v4325_v44 = vshll.u32 %v4322_v35, 16  ;;  %v4056_v21 = vcvt.s32.f32 %v4049_v8 }
 0x3b9   : > { %v4054_v37 = vand.u32 2147483647, %v4053_v49  ;;  %v4304_v50 = vshrl.u32 %v4300_v10, 16  ;;  %v4314_v47 = vadd.s32 %v4312_v48, %v4310_v46  ;;  %v4324_v52 = vmul.u32 %v4320_v9, %v4296_v2  ;;  %v14733_v10 = vld [vmem:[#allocation10_spill] sm:$0xff] }
 0x3ba   : > { %v4327_v55 = vshll.u32 %v4323_v13, 16  ;;  %vm4329_vm6 = vc.u32 %v4321_v15, %v4325_v44  ;;  %v4331_v41 = vadd.s32 %v4325_v44, %v4321_v15  ;;  %v11680_v53 = vand.u32 3, %v4080_v22 }
 0x3bb   : > { %v4057_v42 = vmul.f32 %v4056_v21, %v4054_v37  ;;  %v4315_v31 = vadd.s32 %v4314_v47, %v4304_v50  ;;  %v4330_v30 = vsel %vm4329_vm6, 1, %v14620_v36  ;;  %v4306_v20 = vshrl.u32 %v4301_v25, 16 }
 0x3bc   : > { %v4326_v38 = vshrl.u32 %v4322_v35, 16  ;;  %v4332_v24 = vadd.s32 %v4330_v30, %v4324_v52  ;;  %vm4333_vm5 = vc.u32 %v4331_v41, %v4327_v55  ;;  %v4328_v12 = vshrl.u32 %v4323_v13, 16 }
 0x3bd   : > { %v4058_v26 = vxor.u32 2147483648, %v4057_v42  ;;  %v4334_v8 = vsel %vm4333_vm5, 1, %v14620_v36  ;;  %v4418_v2 = vshll.u32 %v14614_v39, %v14733_v10  ;;  %v11686_v9 = vadd.s32 %v4315_v31, %v4306_v20 }
 0x3be   : > { %v4336_v7 = vadd.s32 %v4334_v8, %v4332_v24  ;;  %v4422_v49 = vshrl.u32 %v14622_v1, %v14734_v3  ;;  %v4425_v22 = vshrl.u32 %v14623_v0, %v14734_v3  ;;  %v11694_v35 = vadd.s32 %v4331_v41, %v4327_v55 }
 0x3bf   : > { %v4059_v25 = vsel %vm3938_vm4, %v4058_v26, %v4057_v42  ;;  %v4419_v13 = vshrl.u32 %v14621_v28, %v14734_v3  ;;  %v4421_v46 = vshll.u32 %v14621_v28, %v14733_v10  ;;  %v4424_v44 = vshll.u32 %v14622_v1, %v14733_v10 }
 0x3c0   : > { %v11703_v48 = vsel %vm11603_vm11, %v14713_v5, %v4059_v25  ;;  %v4337_v15 = vadd.s32 %v4336_v7, %v4326_v38  ;;  %v4427_v37 = vshll.u32 %v14623_v0, %v14733_v10  ;;  %v4428_v50 = vshrl.u32 %v14624_v11, %v14734_v3  ;;  %v14735_v7 = vld [vmem:[#allocation13_spill] sm:$0xff] }
 0x3c1   : > { %v4064_v21 = vmul.f32 %v11703_v48, %v11703_v48  ;;  %v4430_v47 = vshll.u32 %v14624_v11, %v14733_v10  ;;  %v4431_v59 = vshrl.u32 %v14625_v16, %v14734_v3  ;;  %vm4341_vm4 = vc.u32 %v11686_v9, %v11694_v35 }
 0x3c2   : > { %v4338_v52 = vadd.s32 %v4337_v15, %v4328_v12  ;;  %v11719_v55 = vor.u32 %v4422_v49, %v4421_v46  ;;  %v11721_v41 = vor.u32 %v4425_v22, %v4424_v44  ;;  %v4429_v30 = vor.u32 %v4428_v50, %v4427_v37 }
 0x3c3   : > { %v4065_v42 = vmul.f32 -0.001358992, %v4064_v21  ;;  %v4072_v31 = vmul.f32 -0.00019511016, %v4064_v21  ;;  %v4432_v20 = vor.u32 %v4431_v59, %v4430_v47  ;;  %v4339_v38 = vmul.u32 %v11616_v23, %v11677_v17 }
 0x3c4   : > { %v4342_v24 = vadd.s32 1, %v4338_v52  ;;  %v4409_v26 = vor.u32 8388608, %v11673_v18  ;;  %v11726_v8 = vor.u32 %v4419_v13, %v4418_v2  ;;  %vm4433_vm11 = vcmp.lt.s32.totalorder %v14735_v7, 1 }
 0x3c5   : > { %v4066_v12 = vadd.f32 0.041655596, %v4065_v42  ;;  %v4073_v10 = vadd.f32 0.008332121, %v4072_v31  ;;  %vm4436_vm9 = vcmp.lt.s32.totalorder %v14735_v7, 4  ;;  %vm4435_vm10 = vcmp.lt.s32.totalorder %v14735_v7, 3 }
 0x3c6   : > { %v4343_v49 = vsel %vm4341_vm4, %v4342_v24, %v4338_v52  ;;  %v4442_v22 = vsel %vm4436_vm9, %v4429_v30, 920167782  ;;  %v4446_v23 = vsel %vm4436_vm9, %v4432_v20, 1326507024  ;;  %v4445_v2 = vsel %vm4433_vm11, %v11719_v55, %v11721_v41 }
 0x3c7   : > { %v4067_v17 = vmul.f32 %v4066_v12, %v4064_v21  ;;  %v4074_v25 = vmul.f32 %v4073_v10, %v4064_v21  ;;  %v4344_v18 = vadd.s32 %v4343_v49, %v4339_v38  ;;  %vm4434_vm14 = vcmp.lt.s32.totalorder %v14735_v7, 2 }
 0x3c8   : > { %v4441_v13 = vsel %vm4433_vm11, %v11726_v8, %v11719_v55  ;;  %v4447_v46 = vsel %vm4435_vm10, %v4429_v30, %v4446_v23  ;;  %v11746_v15 = vshll.u32 %v4409_v26, 8  ;;  %v4443_v47 = vsel %vm4435_vm10, %v11721_v41, %v4442_v22 }
 0x3c9   : > { %v4068_v44 = vadd.f32 -0.4999988, %v4067_v17  ;;  %v4075_v37 = vadd.f32 -0.16666654, %v4074_v25  ;;  %v4345_v50 = vadd.s32 536870912, %v4344_v18  ;;  %v11752_v59 = vshrl.u32 %v11563_v40, 5 }
 0x3ca   : > { %v11755_v52 = vand.u32 31, %v11563_v40  ;;  %v11758_v42 = vadd.s32 1, %v11565_v43  ;;  %v4448_v31 = vsel %vm4434_vm14, %v4445_v2, %v4447_v46  ;;  %vm4082_vm8 = vcmp.lt.s32.totalorder %v11680_v53, 2 }
 0x3cb   : > { %14736 = vst [vmem:[#allocation23_spill] sm:$0xff] %v11752_v59  ;;  %v4069_v30 = vmul.f32 %v4068_v44, %v4064_v21  ;;  %v4076_v20 = vmul.f32 %v4075_v37, %v4064_v21  ;;  %v4346_v38 = vshrl.u32 %v4345_v50, 30  ;;  %v4452_v24 = vand.u32 65535, %v4448_v31  ;;  %v11776_v44 = vpop.permute.xlu2 %1189 }
 0x3cc   : > { %14737 = vst [vmem:[#allocation34_spill] sm:$0xff] %v11755_v52  ;;  %vm4079_vm3 = vweird.f32 %v14713_v5  ;;  %v4444_v26 = vsel %vm4434_vm14, %v4441_v13, %v4443_v47  ;;  %v4450_v40 = vand.u32 65535, %v11746_v15  ;;  %v4451_v12 = vshrl.u32 %v11746_v15, 16 }
 0x3cd   : > { %v4453_v43 = vshrl.u32 %v4448_v31, 16  ;;  %v4070_v10 = vadd.f32 1.0, %v4069_v30  ;;  %v4077_v49 = vadd.f32 1.0, %v4076_v20  ;;  %vm4083_vm7 = vcmp.eq.s32.totalorder %v11680_v53, 0 }
 0x3ce   : > { %v4347_v22 = vshll.u32 %v4346_v38, 30  ;;  %vm4086_vm2 = vcmp.eq.s32.totalorder %v11680_v53, 2  ;;  %vm4248_vm15 = vcmp.lt.s32.totalorder %v10245_v6, 0  ;;  %v4417_v21 = vshrl.u32 %v14614_v39, %v14734_v3 }
 0x3cf   : > { %v4455_v23 = vmul.u32 %v4453_v43, %v4450_v40  ;;  %v4456_v17 = vmul.u32 %v4452_v24, %v4451_v12  ;;  %v4078_v25 = vmul.f32 %v4077_v49, %v11703_v48  ;;  %v4087_v2 = vxor.u32 2147483648, %v4070_v10 }
 0x3d0   : > { %v11774_v13 = vsub.s32 %v4344_v18, %v4347_v22  ;;  %v4475_v46 = vshrl.u32 %v4444_v26, 16  ;;  %v4370_v37 = vsub.s32 4, %v4346_v38  ;;  %v4454_v50 = vmul.u32 %v4452_v24, %v4450_v40 }
 0x3d1   : > { %v4458_v47 = vshll.u32 %v4455_v23, 16  ;;  %v4474_v31 = vand.u32 65535, %v4444_v26  ;;  %v4084_v30 = vxor.u32 2147483648, %v4078_v25  ;;  %v4457_v3 = vmul.u32 %v4453_v43, %v4451_v12 }
 0x3d2   : > { %vm4349_vm13 = vcmp.lt.s32.totalorder %v11774_v13, 0  ;;  %v4350_v20 = vsub.s32 0, %v11774_v13  ;;  %v4088_v59 = vsel %vm4086_vm2, %v4087_v2, %v4078_v25  ;;  %v4460_v48 = vshll.u32 %v4456_v17, 16 }
 0x3d3   : > { %vm4462_vm12 = vc.u32 %v4454_v50, %v4458_v47  ;;  %v4464_v18 = vadd.s32 %v4458_v47, %v4454_v50  ;;  %v4085_v49 = vsel %vm4083_vm7, %v4070_v10, %v4084_v30  ;;  %v4477_v26 = vmul.u32 %v4475_v46, %v4450_v40 }
 0x3d4   : > { %v4351_v22 = vsel %vm4349_vm13, %v4350_v20, %v11774_v13  ;;  %v4463_v24 = vsel %vm4462_vm12, 1, %v14620_v36  ;;  %v4089_v63 = vsel %vm4082_vm8, %v4085_v49, %v4088_v59  ;;  %v4438_v43 = vsel %vm4436_vm9, %v11721_v41, 2102212464 }
 0x3d5   : > { %v4352_v60 = vclz %v4351_v22  ;;  %v4465_v25 = vadd.s32 %v4463_v24, %v4457_v3  ;;  %v4090_v2 = vsel %vm4079_vm3, nan, %v4089_v63  ;;  %vm4466_vm6 = vc.u32 %v4464_v18, %v4460_v48 }
 0x3d6   : > { %v4478_v50 = vmul.u32 %v4474_v31, %v4451_v12  ;;  %v4480_v10 = vshll.u32 %v4477_v26, 16  ;;  %8209 = vmatmul.msk.f32.gmra.mxu0 %vm935_vm1, %v4090_v2  ;;  %v4340_v47 = vadd.s32 %v11694_v35, %v11686_v9  ;;  %v4437_v53 = vsel %vm4433_vm11, %v4417_v21, %v11726_v8 }
 0x3d7   : > { %v8152_v30 = vadd.s32 4294967294, %v4352_v60  ;;  %v4476_v59 = vmul.u32 %v4474_v31, %v4450_v40  ;;  %v11801_v41 = vsel %vm4248_vm15, %v4370_v37, %v4346_v38  ;;  %v4439_v63 = vsel %vm4435_vm10, %v11719_v55, %v4438_v43  ;;  %v1195_v40 = vpop.permute.xlu2 %1194 }
 0x3d8   : > { %v4459_v5 = vshrl.u32 %v4455_v23, 16  ;;  %v4467_v20 = vsel %vm4466_vm6, 1, %v14620_v36  ;;  %v4479_v35 = vmul.u32 %v4475_v46, %v4451_v12  ;;  %v4482_v48 = vshll.u32 %v4478_v50, 16  ;;  %v14738_v23 = vld [vmem:[#allocation39_spill] sm:$0xff] }
 0x3d9   : > { %vm8153_vm5 = vcmp.lt.s32.totalorder %v8152_v30, 0  ;;  %v4469_v3 = vadd.s32 %v4467_v20, %v4465_v25  ;;  %vm4484_vm4 = vc.u32 %v4476_v59, %v4480_v10  ;;  %v4486_v60 = vadd.s32 %v4480_v10, %v4476_v59 }
 0x3da   : > { %v4355_v9 = vsel %vm8153_vm5, 0, %v8152_v30  ;;  %v4485_v8 = vsel %vm4484_vm4, 1, %v14620_v36  ;;  %v4461_v37 = vshrl.u32 %v4456_v17, 16  ;;  %v14536_v49 = vand.u32 2147483647, %v14738_v23 }
 0x3db   : > { %v4356_v21 = vsub.s32 32, %v4355_v9  ;;  %v4360_v38 = vsub.s32 4294967266, %v4355_v9  ;;  %v4470_v31 = vadd.s32 %v4469_v3, %v4459_v5  ;;  %v4357_v18 = vshll.u32 %v11774_v13, %v4355_v9 }
 0x3dc   : > { %v4487_v55 = vadd.s32 %v4485_v8, %v4479_v35  ;;  %vm4488_vm11 = vc.u32 %v4486_v60, %v4482_v48  ;;  %v11814_v46 = vsub.s32 32, %v11755_v52  ;;  %v1229_v25 = vmul.f32 %v8852_v57, %v1195_v40 }
 0x3dd   : > { %v4358_v22 = vshrl.u32 %v4340_v47, %v4356_v21  ;;  %v4361_v24 = vadd.s32 127, %v4360_v38  ;;  %v11810_v43 = vadd.s32 %v4470_v31, %v4461_v37  ;;  %v4489_v12 = vsel %vm4488_vm11, 1, %v14620_v36 }
 0x3de   : > { %14739 = vst [vmem:[#allocation9_spill] sm:$0xff] %v11814_v46  ;;  %v4481_v2 = vshrl.u32 %v4477_v26, 16  ;;  %v4491_v17 = vadd.s32 %v4489_v12, %v4487_v55  ;;  %v14740_v10 = vand.u32 2147483647, %v10245_v6  ;;  %v11823_v59 = vadd.s32 %v4486_v60, %v4482_v48  ;;  %v14743_v60 = vld [vmem:[#allocation19_spill] sm:$0xff] }
 0x3df   : > { %v4359_v30 = vor.u32 %v4358_v22, %v4357_v18  ;;  %v4362_v47 = vshll.u32 %v4361_v24, 23  ;;  %v4440_v20 = vsel %vm4434_vm14, %v4437_v53, %v4439_v63  ;;  %v4483_v3 = vshrl.u32 %v4478_v50, 16 }
 0x3e0   : > { %vm11819_vm9 = vcmp.le.f32.partialorder %v14740_v10, 0.7853982  ;;  %v4492_v26 = vadd.s32 %v4491_v17, %v4481_v2  ;;  %vm5807_vm10 = vcmp.gt.s32.totalorder %v11758_v42, 0  ;;  %vm4496_vm8 = vc.u32 %v11810_v43, %v11823_v59 }
 0x3e1   : > { %v4373_v5 = vsel %vm11819_vm9, 0, %v11801_v41  ;;  %v4363_v9 = vor.u32 4788187, %v4362_v47  ;;  %v4563_v35 = vand.u32 8388607, %v14536_v49  ;;  %v4574_v48 = vshrl.u32 %v14621_v28, %v14743_v60  ;;  %v14744_v41 = vld [vmem:[#allocation18_spill] sm:$0xff] }
 0x3e2   : > { %v4366_v8 = vcvt.s32.f32 %v4359_v30  ;;  %v4493_v40 = vadd.s32 %v4492_v26, %v4483_v3  ;;  %v4576_v7 = vshll.u32 %v14621_v28, %v14744_v41  ;;  %v4577_v50 = vshrl.u32 %v14622_v1, %v14743_v60  ;;  %v14745_v3 = vld [vmem:[#allocation33_spill] sm:$0xff] }
 0x3e3   : > { %v4364_v53 = vand.u32 2147483647, %v4363_v9  ;;  %v4579_v63 = vshll.u32 %v14622_v1, %v14744_v41  ;;  %v4580_v21 = vshrl.u32 %v14623_v0, %v14743_v60  ;;  %v4583_v38 = vshrl.u32 %v14624_v11, %v14743_v60 }
 0x3e4   : > { %v4497_v37 = vadd.s32 1, %v4493_v40  ;;  %v4582_v31 = vshll.u32 %v14623_v0, %v14744_v41  ;;  %v4585_v18 = vshll.u32 %v14624_v11, %v14744_v41  ;;  %v4586_v55 = vshrl.u32 %v14625_v16, %v14743_v60 }
 0x3e5   : > { %v4367_v22 = vmul.f32 %v4366_v8, %v4364_v53  ;;  %v4494_v24 = vmul.u32 %v11746_v15, %v4440_v20  ;;  %v11854_v12 = vor.u32 %v4577_v50, %v4576_v7  ;;  %v4581_v2 = vor.u32 %v4580_v21, %v4579_v63  ;;  %v14746_v15 = vld [vmem:[#allocation7_spill] sm:$0xff] }
 0x3e6   : > { %v4498_v17 = vsel %vm4496_vm8, %v4497_v37, %v4493_v40  ;;  %v4573_v10 = vshll.u32 %v14614_v39, %v14744_v41  ;;  %v4584_v30 = vor.u32 %v4583_v38, %v4582_v31  ;;  %v4587_v47 = vor.u32 %v4586_v55, %v4585_v18 }
 0x3e7   : > { %v1422_v26 = vadd.f32 %v14745_v3, %v1229_v25  ;;  %v4368_v9 = vxor.u32 2147483648, %v4367_v22  ;;  %v4499_v49 = vadd.s32 %v4498_v17, %v4494_v24  ;;  %v4564_v52 = vor.u32 8388608, %v4563_v35 }
 0x3e8   : > { %v4390_v8 = vadd.s32 3, %v4373_v5  ;;  %v11862_v53 = vor.u32 %v4574_v48, %v4573_v10  ;;  %vm4588_vm14 = vcmp.lt.s32.totalorder %v14746_v15, 1  ;;  %vm4589_vm3 = vcmp.lt.s32.totalorder %v14746_v15, 2 }
 0x3e9   : > { %v4369_v20 = vsel %vm4248_vm15, %v4368_v9, %v4367_v22  ;;  %v4500_v40 = vadd.s32 536870912, %v4499_v49  ;;  %vm4591_vm7 = vcmp.lt.s32.totalorder %v14746_v15, 4  ;;  %v4600_v25 = vsel %vm4588_vm14, %v11854_v12, %v4581_v2 }
 0x3ea   : > { %v11875_v5 = vsel %vm11819_vm9, %v10245_v6, %v4369_v20  ;;  %vm4590_vm2 = vcmp.lt.s32.totalorder %v14746_v15, 3  ;;  %v4597_v35 = vsel %vm4591_vm7, %v4584_v30, 920167782  ;;  %v4601_v48 = vsel %vm4591_vm7, %v4587_v47, 1326507024 }
 0x3eb   : > { %v4374_v41 = vmul.f32 %v11875_v5, %v11875_v5  ;;  %v11884_v7 = vshrl.u32 %v4500_v40, 30  ;;  %v4602_v50 = vsel %vm4590_vm2, %v4584_v30, %v4601_v48  ;;  %v11888_v63 = vshll.u32 %v4564_v52, 8 }
 0x3ec   : > { %v11893_v13 = vsel %vm5807_vm10, %v11758_v42, 0  ;;  %v11896_v21 = vadd.f32 %v8875_v32, %v1422_v26  ;;  %v4596_v38 = vsel %vm4588_vm14, %v11862_v53, %v11854_v12  ;;  %v4603_v37 = vsel %vm4589_vm3, %v4600_v25, %v4602_v50 }
 0x3ed   : > { %v4375_v31 = vmul.f32 -0.001358992, %v4374_v41  ;;  %v4382_v18 = vmul.f32 -0.00019511016, %v4374_v41  ;;  %v4502_v52 = vshll.u32 %v11884_v7, 30  ;;  %v4598_v55 = vsel %vm4590_vm2, %v4581_v2, %v4597_v35 }
 0x3ee   : > { %14747 = vst [vmem:[#allocation24_spill] sm:$0xff] %v11896_v21  ;;  %v4605_v42 = vand.u32 65535, %v11888_v63  ;;  %v11909_v22 = vshrl.u32 %v11888_v63, 16  ;;  %v4607_v24 = vand.u32 65535, %v4603_v37  ;;  %v4608_v17 = vshrl.u32 %v4603_v37, 16 }
 0x3ef   : > { %v4376_v10 = vadd.f32 0.041655596, %v4375_v31  ;;  %v4383_v30 = vadd.f32 0.008332121, %v4382_v18  ;;  %v11911_v47 = vand.u32 3, %v4390_v8  ;;  %v11913_v3 = vsub.s32 %v4499_v49, %v4502_v52 }
 0x3f0   : > { %v4572_v26 = vshrl.u32 %v14614_v39, %v14743_v60  ;;  %v4599_v9 = vsel %vm4589_vm3, %v4596_v38, %v4598_v55  ;;  %v4610_v20 = vmul.u32 %v4608_v17, %v4605_v42  ;;  %v11920_v40 = vmul.u32 %v4607_v24, %v11909_v22 }
 0x3f1   : > { %v4377_v25 = vmul.f32 %v4376_v10, %v4374_v41  ;;  %v4384_v35 = vmul.f32 %v4383_v30, %v4374_v41  ;;  %vm4403_vm15 = vcmp.lt.s32.totalorder %v14731_v4, 0  ;;  %vm4504_vm13 = vcmp.lt.s32.totalorder %v11913_v3, 0 }
 0x3f2   : > { %v4505_v8 = vsub.s32 0, %v11913_v3  ;;  %v4495_v49 = vadd.s32 %v11823_v59, %v11810_v43  ;;  %v4593_v60 = vsel %vm4591_vm7, %v4581_v2, 2102212464  ;;  %v4609_v48 = vmul.u32 %v4607_v24, %v4605_v42 }
 0x3f3   : > { %v4613_v50 = vshll.u32 %v4610_v20, 16  ;;  %v4378_v38 = vadd.f32 -0.4999988, %v4377_v25  ;;  %v4385_v37 = vadd.f32 -0.16666654, %v4384_v35  ;;  %v4630_v18 = vshrl.u32 %v4599_v9, 16 }
 0x3f4   : > { %v4506_v31 = vsel %vm4504_vm13, %v4505_v8, %v11913_v3  ;;  %vm4393_vm12 = vcmp.eq.s32.totalorder %v11911_v47, 0  ;;  %vm4396_vm6 = vcmp.eq.s32.totalorder %v11911_v47, 2  ;;  %v4612_v55 = vmul.u32 %v4608_v17, %v11909_v22 }
 0x3f5   : > { %v4507_v52 = vclz %v4506_v31  ;;  %v4615_v10 = vshll.u32 %v11920_v40, 16  ;;  %vm4617_vm5 = vc.u32 %v4609_v48, %v4613_v50  ;;  %v4379_v43 = vmul.f32 %v4378_v38, %v4374_v41 }
 0x3f6   : > { %v4386_v59 = vmul.f32 %v4385_v37, %v4374_v41  ;;  %vm4392_vm4 = vcmp.lt.s32.totalorder %v11911_v47, 2  ;;  %v4618_v2 = vsel %vm4617_vm5, 1, %v14620_v36  ;;  %v4619_v24 = vadd.s32 %v4613_v50, %v4609_v48 }
 0x3f7   : > { %vm4389_vm11 = vweird.f32 %v10245_v6  ;;  %v8155_v30 = vadd.s32 4294967294, %v4507_v52  ;;  %v4525_v25 = vsub.s32 4, %v11884_v7  ;;  %v4592_v35 = vsel %vm4588_vm14, %v4572_v26, %v11862_v53  ;;  %v11978_v6 = vld [vmem:[%s8658_s9] ss:$0 sm:$0xff] }
 0x3f8   : > { %v4629_v17 = vand.u32 65535, %v4599_v9  ;;  %v4380_v8 = vadd.f32 1.0, %v4379_v43  ;;  %v4387_v31 = vadd.f32 1.0, %v4386_v59  ;;  %v14748_v38 = vand.u32 2147483647, %v14731_v4 }
 0x3f9   : > { %v4620_v37 = vadd.s32 %v4618_v2, %v4612_v55  ;;  %vm4621_vm10 = vc.u32 %v4619_v24, %v4615_v10  ;;  %vm8156_vm8 = vcmp.lt.s32.totalorder %v8155_v30, 0  ;;  %v4594_v48 = vsel %vm4590_vm2, %v11854_v12, %v4593_v60 }
 0x3fa   : > { %vm11943_vm9 = vcmp.le.f32.partialorder %v14748_v38, 0.7853982  ;;  %v4622_v50 = vsel %vm4621_vm10, 1, %v14620_v36  ;;  %v4632_v52 = vmul.u32 %v4630_v18, %v4605_v42  ;;  %v4388_v53 = vmul.f32 %v4387_v31, %v11875_v5 }
 0x3fb   : > { %v4397_v26 = vxor.u32 2147483648, %v4380_v8  ;;  %v4510_v9 = vsel %vm8156_vm8, 0, %v8155_v30  ;;  %v4624_v43 = vadd.s32 %v4622_v50, %v4620_v37  ;;  %v4526_v55 = vsel %vm4403_vm15, %v4525_v25, %v11884_v7 }
 0x3fc   : > { %v4511_v59 = vsub.s32 32, %v4510_v9  ;;  %v4515_v38 = vsub.s32 4294967266, %v4510_v9  ;;  %v4614_v10 = vshrl.u32 %v4610_v20, 16  ;;  %v4394_v2 = vxor.u32 2147483648, %v4388_v53 }
 0x3fd   : > { %v4512_v24 = vshll.u32 %v11913_v3, %v4510_v9  ;;  %v4631_v46 = vmul.u32 %v4629_v17, %v4605_v42  ;;  %v4633_v12 = vmul.u32 %v4629_v17, %v11909_v22  ;;  %v4635_v5 = vshll.u32 %v4632_v52, 16  ;;  %v7440_v17 = vld [vmem:[%s14414_s20] sm:$0xff] }
 0x3fe   : > { %v4513_v60 = vshrl.u32 %v4495_v49, %v4511_v59  ;;  %v4516_v27 = vadd.s32 127, %v4515_v38  ;;  %v4625_v14 = vadd.s32 %v4624_v43, %v4614_v10  ;;  %v4395_v30 = vsel %vm4393_vm12, %v4380_v8, %v4394_v2  ;;  %v7441_v8 = vld [vmem:[%s14414_s20 + $0x8] sm:$0xff]  ;;  %v14751_v38 = vld [vmem:[#allocation35_spill] sm:$0xff] }
 0x3ff   : > { %v4398_v31 = vsel %vm4396_vm6, %v4397_v26, %v4388_v53  ;;  %v4616_v7 = vshrl.u32 %v11920_v40, 16  ;;  %v4634_v20 = vmul.u32 %v4630_v18, %v11909_v22  ;;  %vm4639_vm14 = vc.u32 %v4631_v46, %v4635_v5 }
 0x400   : > { %v4399_v42 = vsel %vm4392_vm4, %v4395_v30, %v4398_v31  ;;  %v4514_v3 = vor.u32 %v4513_v60, %v4512_v24  ;;  %v4517_v25 = vshll.u32 %v4516_v27, 23  ;;  %v4637_v40 = vshll.u32 %v4633_v12, 16 }
 0x401   : > { %v4400_v49 = vsel %vm4389_vm11, nan, %v4399_v42  ;;  %v4640_v22 = vsel %vm4639_vm14, 1, %v14620_v36  ;;  %v4641_v18 = vadd.s32 %v4635_v5, %v4631_v46  ;;  %v4528_v27 = vsel %vm11943_vm9, 0, %v4526_v55 }
 0x402   : > { %8211 = vmatmul.msk.f32.gmra.mxu2 %vm935_vm1, %v4400_v49  ;;  %v4518_v47 = vor.u32 4788187, %v4517_v25  ;;  %v7448_v37 = vmul.f32 %v11978_v6, %v7440_v17  ;;  %v11981_v50 = vadd.s32 %v4625_v14, %v4616_v7  ;;  %v4521_v53 = vcvt.s32.f32 %v4514_v3  ;;  %v14753_v25 = vld [vmem:[#allocation15_spill] sm:$0xff] }
 0x403   : > { %v7449_v26 = vmul.f32 %v11978_v6, %v7441_v8  ;;  %v4642_v9 = vadd.s32 %v4640_v22, %v4634_v20  ;;  %vm4643_vm7 = vc.u32 %v4641_v18, %v4637_v40  ;;  %v14544_v10 = vand.u32 2147483647, %v14751_v38 }
 0x404   : > { %v4519_v43 = vand.u32 2147483647, %v4518_v47  ;;  %v7456_v46 = vsel %vm6427_vm0, %v7448_v37, 0.0  ;;  %v4644_v59 = vsel %vm4643_vm7, 1, %v14620_v36  ;;  %v4595_v2 = vsel %vm4589_vm3, %v4592_v35, %v4594_v48  ;;  %v14752_v48 = vld [vmem:[#allocation17_spill] sm:$0xff] }
 0x405   : > { %7457 = vadd.xlane.f32.xlu2 %v7456_v46  ;;  %v7459_v55 = vsel %vm6427_vm0, %v7449_v26, 0.0  ;;  %v4636_v14 = vshrl.u32 %v4632_v52, 16  ;;  %v4646_v24 = vadd.s32 %v4644_v59, %v4642_v9  ;;  %v11992_v60 = vmul.f32 %v8852_v57, %v11776_v44  ;;  %v14754_v59 = vld [vmem:[#allocation38_spill] sm:$0xff] }
 0x406   : > { %v11995_v5 = vshrl.u32 %v11893_v13, 5  ;;  %v4522_v30 = vmul.f32 %v4521_v53, %v4519_v43  ;;  %7460 = vadd.xlane.f32.xlu0 %v7459_v55  ;;  %v11997_v31 = vadd.s32 %v4641_v18, %v4637_v40  ;;  %v6264_v7 = vand.u32 2139095040, %v11896_v21 }
 0x407   : > { %v4545_v20 = vadd.s32 3, %v4528_v27  ;;  %v4638_v42 = vshrl.u32 %v4633_v12, 16  ;;  %v4647_v3 = vadd.s32 %v4646_v24, %v4636_v14  ;;  %v4649_v35 = vmul.u32 %v11888_v63, %v4595_v2 }
 0x408   : > { %v4523_v15 = vxor.u32 2147483648, %v4522_v30  ;;  %vm4651_vm3 = vc.u32 %v11981_v50, %v11997_v31  ;;  %v4718_v57 = vand.u32 8388607, %v14544_v10  ;;  %v4728_v52 = vshll.u32 %v14614_v39, %v14752_v48 }
 0x409   : > { %v4648_v44 = vadd.s32 %v4647_v3, %v4638_v42  ;;  %v4732_v49 = vshrl.u32 %v14622_v1, %v14753_v25  ;;  %v4735_v12 = vshrl.u32 %v14623_v0, %v14753_v25  ;;  %v4729_v63 = vshrl.u32 %v14621_v28, %v14753_v25 }
 0x40a   : > { %v4524_v17 = vsel %vm4403_vm15, %v4523_v15, %v4522_v30  ;;  %v4737_v8 = vshll.u32 %v14623_v0, %v14752_v48  ;;  %v4738_v40 = vshrl.u32 %v14624_v11, %v14753_v25  ;;  %v4731_v47 = vshll.u32 %v14621_v28, %v14752_v48 }
 0x40b   : > { %v4527_v22 = vsel %vm11943_vm9, %v14731_v4, %v4524_v17  ;;  %v4652_v18 = vadd.s32 1, %v4648_v44  ;;  %v4734_v27 = vshll.u32 %v14622_v1, %v14752_v48  ;;  %v4740_v26 = vshll.u32 %v14624_v11, %v14752_v48 }
 0x40c   : > { %v4529_v37 = vmul.f32 %v4527_v22, %v4527_v22  ;;  %v4739_v53 = vor.u32 %v4738_v40, %v4737_v8  ;;  %v4741_v9 = vshrl.u32 %v14625_v16, %v14753_v25  ;;  %v12033_v43 = vor.u32 %v4732_v49, %v4731_v47 }
 0x40d   : > { %v4653_v41 = vsel %vm4651_vm3, %v4652_v18, %v4648_v44  ;;  %v4736_v46 = vor.u32 %v4735_v12, %v4734_v27  ;;  %vm4746_vm2 = vcmp.lt.s32.totalorder %v14754_v59, 4  ;;  %v12037_v30 = vand.u32 31, %v11893_v13 }
 0x40e   : > { %v4530_v55 = vmul.f32 -0.001358992, %v4529_v37  ;;  %v4537_v2 = vmul.f32 -0.00019511016, %v4529_v37  ;;  %v4654_v14 = vadd.s32 %v4653_v41, %v4649_v35  ;;  %v4742_v24 = vor.u32 %v4741_v9, %v4740_v26 }
 0x40f   : > { %v4719_v42 = vor.u32 8388608, %v4718_v57  ;;  %v4730_v3 = vor.u32 %v4729_v63, %v4728_v52  ;;  %v4752_v15 = vsel %vm4746_vm2, %v4739_v53, 920167782  ;;  %v6265_v48 = vshrl.u32 %v6264_v7, 23 }
 0x410   : > { %v4531_v17 = vadd.f32 0.041655596, %v4530_v55  ;;  %v4538_v44 = vadd.f32 0.008332121, %v4537_v2  ;;  %v4655_v49 = vadd.s32 536870912, %v4654_v14  ;;  %v4546_v8 = vand.u32 3, %v4545_v20 }
 0x411   : > { %vm4743_vm15 = vcmp.lt.s32.totalorder %v14754_v59, 1  ;;  %vm4745_vm13 = vcmp.lt.s32.totalorder %v14754_v59, 3  ;;  %v4756_v35 = vsel %vm4746_vm2, %v4742_v24, 1326507024  ;;  %v12057_v63 = vshll.u32 %v4719_v42, 8 }
 0x412   : > { %v4532_v12 = vmul.f32 %v4531_v17, %v4529_v37  ;;  %v4539_v13 = vmul.f32 %v4538_v44, %v4529_v37  ;;  %v12045_v40 = vshrl.u32 %v4655_v49, 30  ;;  %v4755_v57 = vsel %vm4743_vm15, %v12033_v43, %v4736_v46 }
 0x413   : > { %v4751_v7 = vsel %vm4743_vm15, %v4730_v3, %v12033_v43  ;;  %v4753_v20 = vsel %vm4745_vm13, %v4736_v46, %v4752_v15  ;;  %v4757_v52 = vsel %vm4745_vm13, %v4739_v53, %v4756_v35  ;;  %vm4744_vm12 = vcmp.lt.s32.totalorder %v14754_v59, 2 }
 0x414   : > { %v4533_v18 = vadd.f32 -0.4999988, %v4532_v12  ;;  %v4540_v47 = vadd.f32 -0.16666654, %v4539_v13  ;;  %v4657_v27 = vshll.u32 %v12045_v40, 30  ;;  %v12061_v26 = vadd.s32 4294967169, %v6265_v48 }
 0x415   : > { %vm4548_vm6 = vcmp.eq.s32.totalorder %v4546_v8, 0  ;;  %vm4551_vm5 = vcmp.eq.s32.totalorder %v4546_v8, 2  ;;  %v4758_v9 = vsel %vm4744_vm12, %v4755_v57, %v4757_v52  ;;  %vm4547_vm4 = vcmp.lt.s32.totalorder %v4546_v8, 2 }
 0x416   : > { %v4534_v41 = vmul.f32 %v4533_v18, %v4529_v37  ;;  %v4541_v55 = vmul.f32 %v4540_v47, %v4529_v37  ;;  %v4658_v2 = vsub.s32 %v4654_v14, %v4657_v27  ;;  %v4754_v53 = vsel %vm4744_vm12, %v4751_v7, %v4753_v20 }
 0x417   : > { %vm4544_vm11 = vweird.f32 %v14731_v4  ;;  %v4760_v24 = vand.u32 65535, %v12057_v63  ;;  %v4761_v42 = vshrl.u32 %v12057_v63, 16  ;;  %v4762_v15 = vand.u32 65535, %v4758_v9 }
 0x418   : > { %v4763_v48 = vshrl.u32 %v4758_v9, 16  ;;  %v4535_v17 = vadd.f32 1.0, %v4534_v41  ;;  %v4542_v44 = vadd.f32 1.0, %v4541_v55  ;;  %vm4659_vm9 = vcmp.lt.s32.totalorder %v4658_v2, 0 }
 0x419   : > { %v4660_v49 = vsub.s32 0, %v4658_v2  ;;  %v4727_v37 = vshrl.u32 %v14614_v39, %v14753_v25  ;;  %v4748_v14 = vsel %vm4746_vm2, %v4736_v46, 2102212464  ;;  %v12074_v12 = vmul.u32 %v4762_v15, %v4761_v42 }
 0x41a   : > { %v4765_v35 = vmul.u32 %v4763_v48, %v4760_v24  ;;  %v4543_v13 = vmul.f32 %v4542_v44, %v4527_v22  ;;  %v4552_v57 = vxor.u32 2147483648, %v4535_v17  ;;  %v4785_v20 = vshrl.u32 %v4754_v53, 16 }
 0x41b   : > { %v4661_v7 = vsel %vm4659_vm9, %v4660_v49, %v4658_v2  ;;  %v4650_v52 = vadd.s32 %v11997_v31, %v11981_v50  ;;  %v4784_v27 = vand.u32 65535, %v4754_v53  ;;  %v4747_v25 = vsel %vm4743_vm15, %v4727_v37, %v4730_v3 }
 0x41c   : > { %v4662_v18 = vclz %v4661_v7  ;;  %v4768_v47 = vshll.u32 %v4765_v35, 16  ;;  %v4549_v9 = vxor.u32 2147483648, %v4543_v13  ;;  %v4749_v46 = vsel %vm4745_vm13, %v12033_v43, %v4748_v14 }
 0x41d   : > { %v4764_v41 = vmul.u32 %v4762_v15, %v4760_v24  ;;  %v4553_v22 = vsel %vm4551_vm5, %v4552_v57, %v4543_v13  ;;  %vm4558_vm10 = vcmp.lt.s32.totalorder %v14738_v23, 0  ;;  %v4767_v44 = vmul.u32 %v4763_v48, %v4761_v42 }
 0x41e   : > { %v8158_v55 = vadd.s32 4294967294, %v4662_v18  ;;  %v4770_v50 = vshll.u32 %v12074_v12, 16  ;;  %v4550_v31 = vsel %vm4548_vm6, %v4535_v17, %v4549_v9  ;;  %v4787_v49 = vmul.u32 %v4785_v20, %v4760_v24 }
 0x41f   : > { %vm4772_vm8 = vc.u32 %v4764_v41, %v4768_v47  ;;  %v4774_v53 = vadd.s32 %v4768_v47, %v4764_v41  ;;  %v4554_v3 = vsel %vm4547_vm4, %v4550_v31, %v4553_v22  ;;  %v4788_v43 = vmul.u32 %v4784_v27, %v4761_v42 }
 0x420   : > { %vm8159_vm14 = vcmp.lt.s32.totalorder %v8158_v55, 0  ;;  %v4773_v37 = vsel %vm4772_vm8, 1, %v14620_v36  ;;  %v4555_v15 = vsel %vm4544_vm11, nan, %v4554_v3  ;;  %v4680_v17 = vsub.s32 4, %v12045_v40 }
 0x421   : > { %v4665_v14 = vsel %vm8159_vm14, 0, %v8158_v55  ;;  %v4775_v13 = vadd.s32 %v4773_v37, %v4767_v44  ;;  %vm4776_vm7 = vc.u32 %v4774_v53, %v4770_v50  ;;  %8212 = vmatmul.msk.f32.gmra.mxu2 %vm935_vm1, %v4555_v15  ;;  %v4769_v8 = vshrl.u32 %v4765_v35, 16  ;;  %v7444_v35 = vld [vmem:[%s14414_s20 + $0x20] sm:$0xff] }
 0x422   : > { %v4666_v48 = vsub.s32 32, %v4665_v14  ;;  %v4670_v57 = vsub.s32 4294967266, %v4665_v14  ;;  %v4777_v7 = vsel %vm4776_vm7, 1, %v14620_v36  ;;  %v4786_v47 = vmul.u32 %v4784_v27, %v4760_v24 }
 0x423   : > { %v4779_v18 = vadd.s32 %v4777_v7, %v4775_v13  ;;  %v4790_v9 = vshll.u32 %v4787_v49, 16  ;;  %v4667_v41 = vshll.u32 %v4658_v2, %v4665_v14  ;;  %v4789_v4 = vmul.u32 %v4785_v20, %v4761_v42  ;;  %v7442_v2 = vld [vmem:[%s14414_s20 + $0x10] sm:$0xff]  ;;  %v7443_v42 = vld [vmem:[%s14414_s20 + $0x18] sm:$0xff] }
 0x424   : > { %v4668_v22 = vshrl.u32 %v4650_v52, %v4666_v48  ;;  %v4671_v31 = vadd.s32 127, %v4670_v57  ;;  %v4792_v55 = vshll.u32 %v4788_v43, 16  ;;  %v4750_v37 = vsel %vm4744_vm12, %v4747_v25, %v4749_v46 }
 0x425   : > { %v4780_v3 = vadd.s32 %v4779_v18, %v4769_v8  ;;  %vm4794_vm3 = vc.u32 %v4786_v47, %v4790_v9  ;;  %v4796_v44 = vadd.s32 %v4790_v9, %v4786_v47  ;;  %v4681_v24 = vsel %vm4558_vm10, %v4680_v17, %v12045_v40  ;;  %v14758_v9 = vld [vmem:[#allocation5_spill] sm:$0xff] }
 0x426   : > { %v4669_v50 = vor.u32 %v4668_v22, %v4667_v41  ;;  %v4672_v53 = vshll.u32 %v4671_v31, 23  ;;  %v4795_v15 = vsel %vm4794_vm3, 1, %v14620_v36  ;;  %v4771_v59 = vshrl.u32 %v12074_v12, 16 }
 0x427   : > { %v4797_v20 = vadd.s32 %v4795_v15, %v4789_v4  ;;  %vm4798_vm2 = vc.u32 %v4796_v44, %v4792_v55  ;;  %v7450_v27 = vmul.f32 %v11978_v6, %v7442_v2  ;;  %v7451_v40 = vmul.f32 %v11978_v6, %v7443_v42 }
 0x428   : > { %v4673_v52 = vor.u32 4788187, %v4672_v53  ;;  %v4791_v25 = vshrl.u32 %v4787_v49, 16  ;;  %v4676_v46 = vcvt.s32.f32 %v4669_v50  ;;  %v7452_v14 = vmul.f32 %v11978_v6, %v7444_v35 }
 0x429   : > { %v12113_v13 = vadd.s32 %v4780_v3, %v4771_v59  ;;  %v4799_v48 = vsel %vm4798_vm2, 1, %v14620_v36  ;;  %v7462_v17 = vsel %vm6427_vm0, %v7450_v27, 0.0  ;;  %v7465_v12 = vsel %vm6427_vm0, %v7451_v40, 0.0 }
 0x42a   : > { %v4674_v57 = vand.u32 2147483647, %v4673_v52  ;;  %v4801_v7 = vadd.s32 %v4799_v48, %v4797_v20  ;;  %v12119_v8 = vsub.s32 32, %v12037_v30  ;;  %v14755_v18 = vand.u32 2147483647, %v14738_v23  ;;  %7463 = vadd.xlane.f32.xlu1 %v7462_v17  ;;  %7466 = vadd.xlane.f32.xlu2 %v7465_v12 }
 0x42b   : > { %v7468_v47 = vsel %vm6427_vm0, %v7452_v14, 0.0  ;;  %v14543_v41 = vand.u32 2147483647, %v14758_v9  ;;  %v4793_v31 = vshrl.u32 %v4788_v43, 16  ;;  %v12129_v4 = vadd.s32 %v4796_v44, %v4792_v55 }
 0x42c   : > { %vm12123_vm15 = vcmp.le.f32.partialorder %v14755_v18, 0.7853982  ;;  %v4677_v22 = vmul.f32 %v4676_v46, %v4674_v57  ;;  %7469 = vadd.xlane.f32.xlu0 %v7468_v47  ;;  %v4802_v3 = vadd.s32 %v4801_v7, %v4791_v25  ;;  %v6271_v50 = vadd.s32 1, %v12061_v26 }
 0x42d   : > { %v4683_v53 = vsel %vm12123_vm15, 0, %v4681_v24  ;;  %v4804_v15 = vmul.u32 %v12057_v63, %v4750_v37  ;;  %v4887_v2 = vshrl.u32 %v14622_v1, %v10992_v19  ;;  %vm4806_vm13 = vc.u32 %v12113_v13, %v12129_v4 }
 0x42e   : > { %v4678_v42 = vxor.u32 2147483648, %v4677_v22  ;;  %v4803_v35 = vadd.s32 %v4802_v3, %v4793_v31  ;;  %v4890_v43 = vshrl.u32 %v14623_v0, %v10992_v19  ;;  %v4873_v55 = vand.u32 8388607, %v14543_v41 }
 0x42f   : > { %v4884_v26 = vshrl.u32 %v14621_v28, %v10992_v19  ;;  %v4886_v63 = vshll.u32 %v14621_v28, %v10871_v56  ;;  %v4893_v44 = vshrl.u32 %v14624_v11, %v10992_v19  ;;  %v4889_v59 = vshll.u32 %v14622_v1, %v10871_v56 }
 0x430   : > { %v4679_v37 = vsel %vm4558_vm10, %v4678_v42, %v4677_v22  ;;  %v4807_v24 = vadd.s32 1, %v4803_v35  ;;  %v4892_v20 = vshll.u32 %v14623_v0, %v10871_v56  ;;  %v4895_v40 = vshll.u32 %v14624_v11, %v10871_v56 }
 0x431   : > { %v4682_v52 = vsel %vm12123_vm15, %v14738_v23, %v4679_v37  ;;  %v12158_v27 = vor.u32 %v4887_v2, %v4886_v63  ;;  %v4896_v25 = vshrl.u32 %v14625_v16, %v10992_v19  ;;  %v12164_v48 = vor.u32 %v4890_v43, %v4889_v59 }
 0x432   : > { %v4684_v46 = vmul.f32 %v4682_v52, %v4682_v52  ;;  %v4808_v14 = vsel %vm4806_vm13, %v4807_v24, %v4803_v35  ;;  %v4894_v57 = vor.u32 %v4893_v44, %v4892_v20  ;;  %v4874_v12 = vor.u32 8388608, %v4873_v55  ;;  %v1348_v35 = vpop.permute.xlu1 %1347 }
 0x433   : > { %v4809_v17 = vadd.s32 %v4808_v14, %v4804_v15  ;;  %v4883_v7 = vshll.u32 %v14614_v39, %v10871_v56  ;;  %v4897_v18 = vor.u32 %v4896_v25, %v4895_v40  ;;  %vm6272_vm12 = vcmp.gt.s32.totalorder %v6271_v50, 0 }
 0x434   : > { %v4685_v49 = vmul.f32 -0.001358992, %v4684_v46  ;;  %v4692_v47 = vmul.f32 -0.00019511016, %v4684_v46  ;;  %v4700_v22 = vadd.s32 3, %v4683_v53  ;;  %vm4898_vm6 = vcmp.lt.s32.totalorder %v10985_v62, 1 }
 0x435   : > { %v4810_v31 = vadd.s32 536870912, %v4809_v17  ;;  %v12168_v3 = vor.u32 %v4884_v26, %v4883_v7  ;;  %vm4901_vm5 = vcmp.lt.s32.totalorder %v10985_v62, 4  ;;  %v4910_v56 = vsel %vm4898_vm6, %v12158_v27, %v12164_v48 }
 0x436   : > { %v4686_v2 = vadd.f32 0.041655596, %v4685_v49  ;;  %v4693_v42 = vadd.f32 0.008332121, %v4692_v47  ;;  %v4907_v15 = vsel %vm4901_vm5, %v4894_v57, 920167782  ;;  %v1388_v25 = vmul.f32 %v8854_v58, %v1348_v35 }
 0x437   : > { %v12178_v43 = vshrl.u32 %v4810_v31, 30  ;;  %vm4900_vm4 = vcmp.lt.s32.totalorder %v10985_v62, 3  ;;  %v4911_v53 = vsel %vm4901_vm5, %v4897_v18, 1326507024  ;;  %v12183_v55 = vshll.u32 %v4874_v12, 8  ;;  %v14759_v35 = vld [vmem:[#allocation30_spill] sm:$0xff] }
 0x438   : > { %v4687_v26 = vmul.f32 %v4686_v2, %v4684_v46  ;;  %v4694_v63 = vmul.f32 %v4693_v42, %v4684_v46  ;;  %vm4899_vm11 = vcmp.lt.s32.totalorder %v10985_v62, 2  ;;  %v4912_v44 = vsel %vm4900_vm4, %v4894_v57, %v4911_v53 }
 0x439   : > { %v4812_v37 = vshll.u32 %v12178_v43, 30  ;;  %v4906_v24 = vsel %vm4898_vm6, %v12168_v3, %v12158_v27  ;;  %v4908_v59 = vsel %vm4900_vm4, %v12164_v48, %v4907_v15  ;;  %v4913_v20 = vsel %vm4899_vm11, %v4910_v56, %v4912_v44 }
 0x43a   : > { %v12199_v40 = vsel %vm6272_vm12, %v6271_v50, 0  ;;  %v4688_v14 = vadd.f32 -0.4999988, %v4687_v26  ;;  %v4695_v57 = vadd.f32 -0.16666654, %v4694_v63  ;;  %v4915_v7 = vand.u32 65535, %v12183_v55 }
 0x43b   : > { %v4813_v12 = vsub.s32 %v4809_v17, %v4812_v37  ;;  %v4917_v18 = vand.u32 65535, %v4913_v20  ;;  %v4918_v49 = vshrl.u32 %v4913_v20, 16  ;;  %v4701_v2 = vand.u32 3, %v4700_v22 }
 0x43c   : > { %v4689_v47 = vmul.f32 %v4688_v14, %v4684_v46  ;;  %v4696_v31 = vmul.f32 %v4695_v57, %v4684_v46  ;;  %v12205_v42 = vsel %vm4899_vm11, %v4906_v24, %v4908_v59  ;;  %v4916_v50 = vshrl.u32 %v12183_v55, 16 }
 0x43d   : > { %vm4814_vm9 = vcmp.lt.s32.totalorder %v4813_v12, 0  ;;  %v4815_v15 = vsub.s32 0, %v4813_v12  ;;  %v12208_v56 = vmul.u32 %v4918_v49, %v4915_v7  ;;  %v1420_v53 = vadd.f32 %v1388_v25, %v14759_v35 }
 0x43e   : > { %v4690_v17 = vadd.f32 1.0, %v4689_v47  ;;  %v4697_v26 = vadd.f32 1.0, %v4696_v31  ;;  %vm4699_vm10 = vweird.f32 %v14738_v23  ;;  %v12212_v44 = vmul.u32 %v4917_v18, %v4916_v50 }
 0x43f   : > { %v4816_v63 = vsel %vm4814_vm9, %v4815_v15, %v4813_v12  ;;  %v4923_v46 = vshll.u32 %v12208_v56, 16  ;;  %v4940_v22 = vshrl.u32 %v12205_v42, 16  ;;  %v4919_v20 = vmul.u32 %v4917_v18, %v4915_v7 }
 0x440   : > { %v4698_v37 = vmul.f32 %v4697_v26, %v4682_v52  ;;  %v4707_v24 = vxor.u32 2147483648, %v4690_v17  ;;  %v4817_v59 = vclz %v4816_v63  ;;  %vm4702_vm8 = vcmp.lt.s32.totalorder %v4701_v2, 2 }
 0x441   : > { %vm4703_vm14 = vcmp.eq.s32.totalorder %v4701_v2, 0  ;;  %vm4706_vm7 = vcmp.eq.s32.totalorder %v4701_v2, 2  ;;  %v4939_v25 = vand.u32 65535, %v12205_v42  ;;  %v4922_v47 = vmul.u32 %v4918_v49, %v4916_v50 }
 0x442   : > { %v4704_v14 = vxor.u32 2147483648, %v4698_v37  ;;  %v8161_v57 = vadd.s32 4294967294, %v4817_v59  ;;  %vm4927_vm3 = vc.u32 %v4919_v20, %v4923_v46  ;;  %v4925_v31 = vshll.u32 %v12212_v44, 16 }
 0x443   : > { %v4928_v15 = vsel %vm4927_vm3, 1, %v14620_v36  ;;  %v4929_v35 = vadd.s32 %v4923_v46, %v4919_v20  ;;  %v12219_v41 = vmul.u32 %v4940_v22, %v4915_v7  ;;  %v4708_v26 = vsel %vm4706_vm7, %v4707_v24, %v4698_v37 }
 0x444   : > { %v4705_v52 = vsel %vm4703_vm14, %v4690_v17, %v4704_v14  ;;  %vm8162_vm2 = vcmp.lt.s32.totalorder %v8161_v57, 0  ;;  %v4930_v18 = vadd.s32 %v4928_v15, %v4922_v47  ;;  %v4805_v42 = vadd.s32 %v12129_v4, %v12113_v13 }
 0x445   : > { %v4709_v63 = vsel %vm4702_vm8, %v4705_v52, %v4708_v26  ;;  %v4820_v10 = vsel %vm8162_vm2, 0, %v8161_v57  ;;  %vm4931_vm15 = vc.u32 %v4929_v35, %v4925_v31  ;;  %v4903_v46 = vsel %vm4901_vm5, %v12164_v48, 2102212464  ;;  %v7447_v26 = vld [vmem:[%s14414_s20 + $0x38] sm:$0xff] }
 0x446   : > { %v4710_v49 = vsel %vm4699_vm10, nan, %v4709_v63  ;;  %v4821_v59 = vsub.s32 32, %v4820_v10  ;;  %v4825_v21 = vsub.s32 4294967266, %v4820_v10  ;;  %v4932_v17 = vsel %vm4931_vm15, 1, %v14620_v36 }
 0x447   : > { %8213 = vmatmul.msk.f32.gmra.mxu2 %vm935_vm1, %v4710_v49  ;;  %v4941_v2 = vmul.u32 %v4939_v25, %v4915_v7  ;;  %v12231_v37 = vmul.u32 %v4939_v25, %v4916_v50  ;;  %v4945_v13 = vshll.u32 %v12219_v41, 16  ;;  %v4822_v4 = vshll.u32 %v4813_v12, %v4820_v10  ;;  %v7445_v10 = vld [vmem:[%s14414_s20 + $0x28] sm:$0xff] }
 0x448   : > { %v4823_v24 = vshrl.u32 %v4805_v42, %v4821_v59  ;;  %v4826_v20 = vadd.s32 127, %v4825_v21  ;;  %v4934_v23 = vadd.s32 %v4932_v17, %v4930_v18  ;;  %v12235_v14 = vadd.f32 %v8875_v32, %v1420_v53  ;;  %v7446_v21 = vld [vmem:[%s14414_s20 + $0x30] sm:$0xff]  ;;  %v6597_v17 = vpop.f32.mrf.mxu0 }
 0x449   : > { %v4882_v57 = vshrl.u32 %v14614_v39, %v10992_v19  ;;  %vm4949_vm13 = vc.u32 %v4941_v2, %v4945_v13  ;;  %v4951_v48 = vadd.s32 %v4945_v13, %v4941_v2  ;;  %v4924_v7 = vshrl.u32 %v12208_v56, 16 }
 0x44a   : > { %v4824_v47 = vor.u32 %v4823_v24, %v4822_v4  ;;  %v4827_v31 = vshll.u32 %v4826_v20, 23  ;;  %v4950_v25 = vsel %vm4949_vm13, 1, %v14620_v36  ;;  %v4904_v12 = vsel %vm4900_vm4, %v12158_v27, %v4903_v46 }
 0x44b   : > { %v4902_v19 = vsel %vm4898_vm6, %v4882_v57, %v12168_v3  ;;  %v4944_v53 = vmul.u32 %v4940_v22, %v4916_v50  ;;  %v4947_v56 = vshll.u32 %v12231_v37, 16  ;;  %v4835_v35 = vsub.s32 4, %v12178_v43  ;;  %v12268_v50 = vld [vmem:[%s14405_s11] ss:$0 sm:$0xff] }
 0x44c   : > { %v4828_v15 = vor.u32 4788187, %v4827_v31  ;;  %v7453_v52 = vmul.f32 %v11978_v6, %v7445_v10  ;;  %v4935_v18 = vadd.s32 %v4934_v23, %v4924_v7  ;;  %v7454_v63 = vmul.f32 %v11978_v6, %v7446_v21 }
 0x44d   : > { %v7455_v3 = vmul.f32 %v11978_v6, %v7447_v26  ;;  %v4952_v42 = vadd.s32 %v4950_v25, %v4944_v53  ;;  %vm12261_vm12 = vc.u32 %v4951_v48, %v4947_v56  ;;  %v5954_v22 = vand.u32 2139095040, %v12235_v14 }
 0x44e   : > { %v4829_v49 = vand.u32 2147483647, %v4828_v15  ;;  %v4831_v59 = vcvt.s32.f32 %v4824_v47  ;;  %v7471_v46 = vsel %vm6427_vm0, %v7453_v52, 0.0  ;;  %vm4713_vm6 = vcmp.lt.s32.totalorder %v14751_v38, 0 }
 0x44f   : > { %7472 = vadd.xlane.f32.xlu1 %v7471_v46  ;;  %v7474_v6 = vsel %vm6427_vm0, %v7454_v63, 0.0  ;;  %v7477_v2 = vsel %vm6427_vm0, %v7455_v3, 0.0  ;;  %v4926_v13 = vshrl.u32 %v12212_v44, 16  ;;  %v4836_v24 = vsel %vm4713_vm6, %v4835_v35, %v12178_v43  ;;  %v14762_v44 = vld [vmem:[#allocation20_spill] sm:$0xff] }
 0x450   : > { %v4832_v4 = vmul.f32 %v4831_v59, %v4829_v49  ;;  %7475 = vadd.xlane.f32.xlu2 %v7474_v6  ;;  %7478 = vadd.xlane.f32.xlu0 %v7477_v2  ;;  %v4905_v20 = vsel %vm4899_vm11, %v4902_v19, %v4904_v12  ;;  %v4954_v23 = vsel %vm12261_vm12, 1, %v14620_v36  ;;  %v4946_v47 = vshrl.u32 %v12219_v41, 16 }
 0x451   : > { %v12284_v57 = vadd.s32 %v4935_v18, %v4926_v13  ;;  %v4956_v31 = vadd.s32 %v4954_v23, %v4952_v42  ;;  %v14548_v7 = vand.u32 2147483647, %v14762_v44  ;;  %v12289_v25 = vshrl.u32 %v12199_v40, 5 }
 0x452   : > { %v12292_v43 = vadd.f32 %v12268_v50, %v6597_v17  ;;  %v5955_v10 = vshrl.u32 %v5954_v22, 23  ;;  %v4833_v62 = vxor.u32 2147483648, %v4832_v4  ;;  %v14765_v21 = vand.u32 2147483647, %v14751_v38 }
 0x453   : > { %14763 = vst [vmem:[#allocation29_spill] sm:$0xff] %v12289_v25  ;;  %v4948_v12 = vshrl.u32 %v12231_v37, 16  ;;  %v12301_v41 = vadd.s32 %v4951_v48, %v4947_v56  ;;  %v4957_v53 = vadd.s32 %v4956_v31, %v4946_v47  ;;  %v4959_v52 = vmul.u32 %v12183_v55, %v4905_v20 }
 0x454   : > { %14764 = vst [vmem:[#allocation28_spill] sm:$0xff] %v12292_v43  ;;  %vm12296_vm5 = vcmp.le.f32.partialorder %v14765_v21, 0.7853982  ;;  %v4834_v15 = vsel %vm4713_vm6, %v4833_v62, %v4832_v4  ;;  %v5039_v26 = vshrl.u32 %v14621_v28, %v11263_v29  ;;  %v5028_v37 = vand.u32 8388607, %v14548_v7 }
 0x455   : > { %v4838_v35 = vsel %vm12296_vm5, 0, %v4836_v24  ;;  %v4837_v18 = vsel %vm12296_vm5, %v14751_v38, %v4834_v15  ;;  %v4958_v63 = vadd.s32 %v4957_v53, %v4948_v12  ;;  %vm4961_vm4 = vc.u32 %v12284_v57, %v12301_v41  ;;  %v1352_v53 = vpop.permute.xlu1 %1351 }
 0x456   : > { %v4839_v48 = vmul.f32 %v4837_v18, %v4837_v18  ;;  %v5038_v56 = vshll.u32 %v14614_v39, %v11043_v51  ;;  %v5041_v55 = vshll.u32 %v14621_v28, %v11043_v51  ;;  %v5042_v3 = vshrl.u32 %v14622_v1, %v11263_v29 }
 0x457   : > { %v4962_v42 = vadd.s32 1, %v4958_v63  ;;  %v5045_v27 = vshrl.u32 %v14623_v0, %v11263_v29  ;;  %v5047_v22 = vshll.u32 %v14623_v0, %v11043_v51  ;;  %v5048_v49 = vshrl.u32 %v14624_v11, %v11263_v29 }
 0x458   : > { %v4840_v59 = vmul.f32 -0.001358992, %v4839_v48  ;;  %v4847_v46 = vmul.f32 -0.00019511016, %v4839_v48  ;;  %v12329_v17 = vor.u32 %v5039_v26, %v5038_v56  ;;  %v5044_v6 = vshll.u32 %v14622_v1, %v11043_v51 }
 0x459   : > { %v4963_v2 = vsel %vm4961_vm4, %v4962_v42, %v4958_v63  ;;  %v5049_v13 = vor.u32 %v5048_v49, %v5047_v22  ;;  %v5050_v4 = vshll.u32 %v14624_v11, %v11043_v51  ;;  %v5051_v24 = vshrl.u32 %v14625_v16, %v11263_v29 }
 0x45a   : > { %v4841_v20 = vadd.f32 0.041655596, %v4840_v59  ;;  %v4848_v23 = vadd.f32 0.008332121, %v4847_v46  ;;  %v4964_v47 = vadd.s32 %v4963_v2, %v4959_v52  ;;  %v12337_v31 = vor.u32 %v5042_v3, %v5041_v55 }
 0x45b   : > { %v8184_v62 = vadd.s32 4294967169, %v5955_v10  ;;  %v4855_v21 = vadd.s32 3, %v4838_v35  ;;  %v12339_v19 = vor.u32 %v5045_v27, %v5044_v6  ;;  %v5052_v12 = vor.u32 %v5051_v24, %v5050_v4 }
 0x45c   : > { %v4842_v15 = vmul.f32 %v4841_v20, %v4839_v48  ;;  %v4849_v26 = vmul.f32 %v4848_v23, %v4839_v48  ;;  %v4965_v63 = vadd.s32 536870912, %v4964_v47  ;;  %vm5056_vm11 = vcmp.lt.s32.totalorder %v11255_v34, 4 }
 0x45d   : > { %v5029_v51 = vor.u32 8388608, %v5028_v37  ;;  %vm5053_vm9 = vcmp.lt.s32.totalorder %v11255_v34, 1  ;;  %vm5055_vm10 = vcmp.lt.s32.totalorder %v11255_v34, 3  ;;  %v5062_v52 = vsel %vm5056_vm11, %v5049_v13, 920167782 }
 0x45e   : > { %v4843_v56 = vadd.f32 -0.4999988, %v4842_v15  ;;  %v4850_v10 = vadd.f32 -0.16666654, %v4849_v26  ;;  %v12346_v35 = vshrl.u32 %v4965_v63, 30  ;;  %v5061_v55 = vsel %vm5053_vm9, %v12329_v17, %v12337_v31 }
 0x45f   : > { %v1389_v3 = vmul.f32 %v8854_v58, %v1352_v53  ;;  %vm5054_vm8 = vcmp.lt.s32.totalorder %v11255_v34, 2  ;;  %v5063_v37 = vsel %vm5055_vm10, %v12339_v19, %v5062_v52  ;;  %v5066_v42 = vsel %vm5056_vm11, %v5052_v12, 1326507024 }
 0x460   : > { %v4844_v27 = vmul.f32 %v4843_v56, %v4839_v48  ;;  %v4851_v22 = vmul.f32 %v4850_v10, %v4839_v48  ;;  %v4967_v49 = vshll.u32 %v12346_v35, 30  ;;  %v5065_v59 = vsel %vm5053_vm9, %v12337_v31, %v12339_v19 }
 0x461   : > { %v4856_v46 = vand.u32 3, %v4855_v21  ;;  %v5064_v58 = vsel %vm5054_vm8, %v5061_v55, %v5063_v37  ;;  %v5067_v6 = vsel %vm5055_vm10, %v5049_v13, %v5066_v42  ;;  %v12368_v2 = vshll.u32 %v5029_v51, 8 }
 0x462   : > { %v12371_v4 = vand.u32 31, %v12199_v40  ;;  %v4845_v48 = vadd.f32 1.0, %v4844_v27  ;;  %v4852_v24 = vadd.f32 1.0, %v4851_v22  ;;  %v4968_v20 = vsub.s32 %v4964_v47, %v4967_v49 }
 0x463   : > { %v12373_v23 = vadd.s32 1, %v8184_v62  ;;  %v1421_v12 = vadd.f32 %v1389_v3, %v11992_v60  ;;  %v5068_v21 = vsel %vm5054_vm8, %v5065_v59, %v5067_v6  ;;  %v5095_v53 = vshrl.u32 %v5064_v58, 16 }
 0x464   : > { %14768 = vst [vmem:[#allocation16_spill] sm:$0xff] %v12371_v4  ;;  %v4853_v15 = vmul.f32 %v4852_v24, %v4837_v18  ;;  %v4862_v26 = vxor.u32 2147483648, %v4845_v48  ;;  %vm4969_vm14 = vcmp.lt.s32.totalorder %v4968_v20, 0  ;;  %v4970_v13 = vsub.s32 0, %v4968_v20 }
 0x465   : > { %vm4857_vm7 = vcmp.lt.s32.totalorder %v4856_v46, 2  ;;  %v5070_v63 = vand.u32 65535, %v12368_v2  ;;  %v5072_v40 = vand.u32 65535, %v5068_v21  ;;  %v5073_v51 = vshrl.u32 %v5068_v21, 16 }
 0x466   : > { %vm4858_vm3 = vcmp.eq.s32.totalorder %v4856_v46, 0  ;;  %v4859_v52 = vxor.u32 2147483648, %v4853_v15  ;;  %v4971_v47 = vsel %vm4969_vm14, %v4970_v13, %v4968_v20  ;;  %v5071_v62 = vshrl.u32 %v12368_v2, 16 }
 0x467   : > { %vm4861_vm2 = vcmp.eq.s32.totalorder %v4856_v46, 2  ;;  %v4972_v60 = vclz %v4971_v47  ;;  %v5075_v56 = vmul.u32 %v5073_v51, %v5070_v63  ;;  %v5094_v10 = vand.u32 65535, %v5064_v58 }
 0x468   : > { %v4860_v55 = vsel %vm4858_vm3, %v4845_v48, %v4859_v52  ;;  %v4863_v3 = vsel %vm4861_vm2, %v4862_v26, %v4853_v15  ;;  %v12380_v18 = vmul.u32 %v5072_v40, %v5071_v62  ;;  %v12382_v37 = vmul.u32 %v5095_v53, %v5070_v63 }
 0x469   : > { %v12385_v42 = vadd.f32 %v8875_v32, %v1421_v12  ;;  %vm4854_vm15 = vweird.f32 %v14751_v38  ;;  %v4864_v27 = vsel %vm4857_vm7, %v4860_v55, %v4863_v3  ;;  %v8164_v22 = vadd.s32 4294967294, %v4972_v60 }
 0x46a   : > { %v4865_v49 = vsel %vm4854_vm15, nan, %v4864_v27  ;;  %v4960_v59 = vadd.s32 %v12301_v41, %v12284_v57  ;;  %v5074_v6 = vmul.u32 %v5072_v40, %v5070_v63  ;;  %v5078_v58 = vshll.u32 %v5075_v56, 16 }
 0x46b   : > { %8214 = vmatmul.msk.f32.gmra.mxu2 %vm935_vm1, %v4865_v49  ;;  %vm8165_vm13 = vcmp.lt.s32.totalorder %v8164_v22, 0  ;;  %v5077_v48 = vmul.u32 %v5073_v51, %v5071_v62  ;;  %v5080_v24 = vshll.u32 %v12380_v18, 16  ;;  %v12393_v21 = vmul.u32 %v5094_v10, %v5071_v62 }
 0x46c   : > { %v4975_v32 = vsel %vm8165_vm13, 0, %v8164_v22  ;;  %vm5082_vm12 = vc.u32 %v5074_v6, %v5078_v58  ;;  %v5084_v38 = vadd.s32 %v5078_v58, %v5074_v6  ;;  %v5100_v46 = vshll.u32 %v12382_v37, 16 }
 0x46d   : > { %v4976_v12 = vsub.s32 32, %v4975_v32  ;;  %v4980_v15 = vsub.s32 4294967266, %v4975_v32  ;;  %v5083_v26 = vsel %vm5082_vm12, 1, %v14620_v36  ;;  %v5096_v57 = vmul.u32 %v5094_v10, %v5070_v63  ;;  %v6713_v63 = vld [vmem:[%s14407_s13] sm:$0xff] }
 0x46e   : > { %v5079_v41 = vshrl.u32 %v5075_v56, 16  ;;  %v5085_v13 = vadd.s32 %v5083_v26, %v5077_v48  ;;  %vm5086_vm6 = vc.u32 %v5084_v38, %v5080_v24  ;;  %v5099_v40 = vmul.u32 %v5095_v53, %v5071_v62  ;;  %v6715_v26 = vld [vmem:[%s14407_s13 + $0x10] sm:$0xff] }
 0x46f   : > { %v4977_v52 = vshll.u32 %v4968_v20, %v4975_v32  ;;  %v4978_v51 = vshrl.u32 %v4960_v59, %v4976_v12  ;;  %v4981_v47 = vadd.s32 127, %v4980_v15  ;;  %v5087_v60 = vsel %vm5086_vm6, 1, %v14620_v36  ;;  %v6703_v59 = vpop.xlane.xlu1 %6702  ;;  %v6714_v12 = vld [vmem:[%s14407_s13 + $0x8] sm:$0xff]  ;;  %v6706_v15 = vpop.xlane.xlu2 %6705 }
 0x470   : > { %v5089_v55 = vadd.s32 %v5087_v60, %v5085_v13  ;;  %v5102_v3 = vshll.u32 %v12393_v21, 16  ;;  %vm5104_vm5 = vc.u32 %v5096_v57, %v5100_v46  ;;  %v5106_v27 = vadd.s32 %v5100_v46, %v5096_v57  ;;  %v6709_v57 = vpop.xlane.xlu0 %6708 }
 0x471   : > { %v12400_v22 = vsub.s32 32, %v12371_v4  ;;  %v4979_v56 = vor.u32 %v4978_v51, %v4977_v52  ;;  %v4982_v10 = vshll.u32 %v4981_v47, 23  ;;  %v5105_v20 = vsel %vm5104_vm5, 1, %v14620_v36  ;;  %v6600_v51 = vpop.f32.mrf.mxu0 }
 0x472   : > { %vm5962_vm4 = vcmp.gt.s32.totalorder %v12373_v23, 0  ;;  %v5090_v53 = vadd.s32 %v5089_v55, %v5079_v41  ;;  %v5107_v62 = vadd.s32 %v5105_v20, %v5099_v40  ;;  %vm5108_vm14 = vc.u32 %v5106_v27, %v5102_v3 }
 0x473   : > { %14769 = vst [vmem:[#allocation6_spill] sm:$0xff] %v12400_v22  ;;  %v6109_v49 = vand.u32 2139095040, %v12385_v42  ;;  %v4983_v6 = vor.u32 4788187, %v4982_v10  ;;  %v4990_v58 = vsub.s32 4, %v12346_v35  ;;  %v12412_v24 = vmul.f32 %v6713_v63, %v6703_v59 }
 0x474   : > { %v5058_v48 = vsel %vm5056_vm11, %v12339_v19, 2102212464  ;;  %v5037_v32 = vshrl.u32 %v14614_v39, %v11263_v29  ;;  %v5081_v38 = vshrl.u32 %v12380_v18, 16  ;;  %v5109_v46 = vsel %vm5108_vm14, 1, %v14620_v36 }
 0x475   : > { %v4984_v19 = vand.u32 2147483647, %v4983_v6  ;;  %v4986_v41 = vcvt.s32.f32 %v4979_v56  ;;  %v5101_v13 = vshrl.u32 %v12382_v37, 16  ;;  %v5111_v40 = vadd.s32 %v5109_v46, %v5107_v62  ;;  %v14774_v6 = vld [vmem:[#allocation26_spill] sm:$0xff] }
 0x476   : > { %vm4868_vm11 = vcmp.lt.s32.totalorder %v14758_v9, 0  ;;  %v5057_v29 = vsel %vm5053_vm9, %v5037_v32, %v12329_v17  ;;  %v5059_v18 = vsel %vm5055_vm10, %v12337_v31, %v5058_v48  ;;  %v12432_v52 = vadd.s32 %v5090_v53, %v5081_v38 }
 0x477   : > { %v4987_v47 = vmul.f32 %v4986_v41, %v4984_v19  ;;  %v4991_v60 = vsel %vm4868_vm11, %v4990_v58, %v12346_v35  ;;  %v5103_v37 = vshrl.u32 %v12393_v21, 16  ;;  %v5112_v55 = vadd.s32 %v5111_v40, %v5101_v13 }
 0x478   : > { %v12438_v63 = vmul.f32 %v6714_v12, %v6706_v15  ;;  %v12440_v56 = vmul.f32 %v6715_v26, %v6709_v57  ;;  %v14770_v17 = vand.u32 2147483647, %v14758_v9  ;;  %v12448_v31 = vadd.s32 %v5106_v27, %v5102_v3 }
 0x479   : > { %v6721_v20 = vmul.f32 %v12412_v24, %v12412_v24  ;;  %v4988_v53 = vxor.u32 2147483648, %v4987_v47  ;;  %v5060_v35 = vsel %vm5054_vm8, %v5057_v29, %v5059_v18  ;;  %v5113_v21 = vadd.s32 %v5112_v55, %v5103_v37 }
 0x47a   : > { %vm12444_vm9 = vcmp.le.f32.partialorder %v14770_v17, 0.7853982  ;;  %v12455_v62 = vadd.f32 %v12268_v50, %v6600_v51  ;;  %vm5116_vm10 = vc.u32 %v12432_v52, %v12448_v31  ;;  %v14547_v3 = vand.u32 2147483647, %v14774_v6 }
 0x47b   : > { %v4993_v59 = vsel %vm12444_vm9, 0, %v4991_v60  ;;  %v12465_v27 = vsel %vm5962_vm4, %v12373_v23, 0  ;;  %v12467_v58 = vshrl.u32 %v6109_v49, 23  ;;  %v4989_v34 = vsel %vm4868_vm11, %v4988_v53, %v4987_v47 }
 0x47c   : > { %14773 = vst [vmem:[#allocation37_spill] sm:$0xff] %v12455_v62  ;;  %v5117_v50 = vadd.s32 1, %v5113_v21  ;;  %v6722_v48 = vmul.f32 %v12438_v63, %v12438_v63  ;;  %v6723_v32 = vmul.f32 %v12440_v56, %v12440_v56  ;;  %v4992_v38 = vsel %vm12444_vm9, %v14758_v9, %v4989_v34 }
 0x47d   : > { %v5114_v46 = vmul.u32 %v12368_v2, %v5060_v35  ;;  %v6725_v23 = vsel %vm6427_vm0, %v6721_v20, 0.0  ;;  %v4994_v49 = vmul.f32 %v4992_v38, %v4992_v38  ;;  %v5010_v12 = vadd.s32 3, %v4993_v59 }
 0x47e   : > { %v5118_v15 = vsel %vm5116_vm10, %v5117_v50, %v5113_v21  ;;  %v5183_v57 = vand.u32 8388607, %v14547_v3  ;;  %v5197_v19 = vshrl.u32 %v14622_v1, %v11554_v45  ;;  %v5203_v41 = vshrl.u32 %v14624_v11, %v11554_v45 }
 0x47f   : > { %v5119_v26 = vadd.s32 %v5118_v15, %v5114_v46  ;;  %v4995_v13 = vmul.f32 -0.001358992, %v4994_v49  ;;  %v5002_v40 = vmul.f32 -0.00019511016, %v4994_v49  ;;  %v5200_v2 = vshrl.u32 %v14623_v0, %v11554_v45 }
 0x480   : > { %v5206_v29 = vshrl.u32 %v14625_v16, %v11554_v45  ;;  %v5194_v51 = vshrl.u32 %v14621_v28, %v11554_v45  ;;  %v5196_v47 = vshll.u32 %v14621_v28, %v11533_v33  ;;  %v5202_v60 = vshll.u32 %v14623_v0, %v11533_v33 }
 0x481   : > { %v5120_v18 = vadd.s32 536870912, %v5119_v26  ;;  %v4996_v37 = vadd.f32 0.041655596, %v4995_v13  ;;  %v5003_v55 = vadd.f32 0.008332121, %v5002_v40  ;;  %v5199_v17 = vshll.u32 %v14622_v1, %v11533_v33 }
 0x482   : > { %v5205_v10 = vshll.u32 %v14624_v11, %v11533_v33  ;;  %v5193_v53 = vshll.u32 %v14614_v39, %v11533_v33  ;;  %v12504_v35 = vor.u32 %v5197_v19, %v5196_v47  ;;  %v5204_v21 = vor.u32 %v5203_v41, %v5202_v60  ;;  %v6716_v60 = vld [vmem:[%s14407_s13 + $0x18] sm:$0xff] }
 0x483   : > { %v12500_v20 = vshrl.u32 %v5120_v18, 30  ;;  %v4997_v59 = vmul.f32 %v4996_v37, %v4994_v49  ;;  %v5004_v34 = vmul.f32 %v5003_v55, %v4994_v49  ;;  %v12506_v50 = vor.u32 %v5200_v2, %v5199_v17  ;;  %v6712_v37 = vpop.xlane.xlu1 %6711 }
 0x484   : > { %v5207_v46 = vor.u32 %v5206_v29, %v5205_v10  ;;  %v6726_v15 = vsel %vm6427_vm0, %v6722_v48, 0.0  ;;  %v5011_v13 = vand.u32 3, %v5010_v12  ;;  %v12510_v3 = vor.u32 %v5194_v51, %v5193_v53 }
 0x485   : > { %v5122_v40 = vshll.u32 %v12500_v20, 30  ;;  %v4998_v18 = vadd.f32 -0.4999988, %v4997_v59  ;;  %v5005_v7 = vadd.f32 -0.16666654, %v5004_v34  ;;  %v5184_v25 = vor.u32 8388608, %v5183_v57 }
 0x486   : > { %vm5211_vm8 = vcmp.lt.s32.totalorder %v11550_v61, 4  ;;  %vm5208_vm7 = vcmp.lt.s32.totalorder %v11550_v61, 1  ;;  %vm5209_vm3 = vcmp.lt.s32.totalorder %v11550_v61, 2  ;;  %vm5009_vm2 = vweird.f32 %v14758_v9 }
 0x487   : > { %v12513_v33 = vsub.s32 %v5119_v26, %v5122_v40  ;;  %v5217_v19 = vsel %vm5211_vm8, %v5204_v21, 920167782  ;;  %v4999_v48 = vmul.f32 %v4998_v18, %v4994_v49  ;;  %v5006_v12 = vmul.f32 %v5005_v7, %v4994_v49 }
 0x488   : > { %v5220_v41 = vsel %vm5208_vm7, %v12504_v35, %v12506_v50  ;;  %v5221_v57 = vsel %vm5211_vm8, %v5207_v46, 1326507024  ;;  %vm5210_vm13 = vcmp.lt.s32.totalorder %v11550_v61, 3  ;;  %v5216_v7 = vsel %vm5208_vm7, %v12510_v3, %v12504_v35 }
 0x489   : > { %vm5124_vm15 = vcmp.lt.s32.totalorder %v12513_v33, 0  ;;  %v5125_v26 = vsub.s32 0, %v12513_v33  ;;  %v5000_v49 = vadd.f32 1.0, %v4999_v48  ;;  %v5007_v2 = vadd.f32 1.0, %v5006_v12 }
 0x48a   : > { %v5218_v29 = vsel %vm5210_vm13, %v12506_v50, %v5217_v19  ;;  %v5222_v51 = vsel %vm5210_vm13, %v5204_v21, %v5221_v57  ;;  %v6728_v47 = vsel %vm6427_vm0, %v6723_v32, 0.0  ;;  %v12545_v10 = vshll.u32 %v5184_v25, 8 }
 0x48b   : > { %v5126_v55 = vsel %vm5124_vm15, %v5125_v26, %v12513_v33  ;;  %v5223_v17 = vsel %vm5209_vm3, %v5220_v41, %v5222_v51  ;;  %v6727_v53 = vadd.f32 %v6726_v15, %v6725_v23  ;;  %v5008_v59 = vmul.f32 %v5007_v2, %v4992_v38 }
 0x48c   : > { %v5017_v34 = vxor.u32 2147483648, %v5000_v49  ;;  %v5127_v46 = vclz %v5126_v55  ;;  %vm5012_vm12 = vcmp.lt.s32.totalorder %v5011_v13, 2  ;;  %vm5013_vm6 = vcmp.eq.s32.totalorder %v5011_v13, 0 }
 0x48d   : > { %vm5016_vm5 = vcmp.eq.s32.totalorder %v5011_v13, 2  ;;  %v5219_v32 = vsel %vm5209_vm3, %v5216_v7, %v5218_v29  ;;  %v5014_v21 = vxor.u32 2147483648, %v5008_v59  ;;  %v12549_v40 = vmul.f32 %v6716_v60, %v6712_v37 }
 0x48e   : > { %v8167_v18 = vadd.s32 4294967294, %v5127_v46  ;;  %v5227_v19 = vand.u32 65535, %v5223_v17  ;;  %v5115_v48 = vadd.s32 %v12448_v31, %v12432_v52  ;;  %v5225_v25 = vand.u32 65535, %v12545_v10 }
 0x48f   : > { %v5226_v38 = vshrl.u32 %v12545_v10, 16  ;;  %v5228_v23 = vshrl.u32 %v5223_v17, 16  ;;  %v5015_v15 = vsel %vm5013_vm6, %v5000_v49, %v5014_v21  ;;  %v5018_v12 = vsel %vm5016_vm5, %v5017_v34, %v5008_v59 }
 0x490   : > { %vm8168_vm4 = vcmp.lt.s32.totalorder %v8167_v18, 0  ;;  %v5250_v41 = vshrl.u32 %v5219_v32, 16  ;;  %v5019_v57 = vsel %vm5012_vm12, %v5015_v15, %v5018_v12  ;;  %v5192_v52 = vshrl.u32 %v14614_v39, %v11554_v45 }
 0x491   : > { %v5130_v26 = vsel %vm8168_vm4, 0, %v8167_v18  ;;  %v5230_v7 = vmul.u32 %v5228_v23, %v5225_v25  ;;  %v5231_v2 = vmul.u32 %v5227_v19, %v5226_v38  ;;  %v5020_v29 = vsel %vm5009_vm2, nan, %v5019_v57 }
 0x492   : > { %v5131_v51 = vsub.s32 32, %v5130_v26  ;;  %v5135_v60 = vsub.s32 4294967266, %v5130_v26  ;;  %8215 = vmatmul.msk.f32.gmra.mxu2 %vm935_vm1, %v5020_v29  ;;  %vm5023_vm14 = vcmp.lt.s32.totalorder %v14762_v44, 0  ;;  %v5213_v31 = vsel %vm5211_vm8, %v12506_v50, 2102212464 }
 0x493   : > { %v5229_v13 = vmul.u32 %v5227_v19, %v5225_v25  ;;  %v5233_v49 = vshll.u32 %v5230_v7, 16  ;;  %v5249_v37 = vand.u32 65535, %v5219_v32  ;;  %v5132_v55 = vshll.u32 %v12513_v33, %v5130_v26 }
 0x494   : > { %v5133_v9 = vshrl.u32 %v5115_v48, %v5131_v51  ;;  %v5136_v17 = vadd.s32 127, %v5135_v60  ;;  %v5252_v59 = vmul.u32 %v5250_v41, %v5225_v25  ;;  %v5232_v34 = vmul.u32 %v5228_v23, %v5226_v38  ;;  %v7259_v23 = vld [vmem:[%s14412_s18] sm:$0xff] }
 0x495   : > { %v5235_v46 = vshll.u32 %v5231_v2, 16  ;;  %vm5237_vm11 = vc.u32 %v5229_v13, %v5233_v49  ;;  %v5239_v45 = vadd.s32 %v5233_v49, %v5229_v13  ;;  %v5251_v50 = vmul.u32 %v5249_v37, %v5225_v25  ;;  %v7237_v49 = vpop.xlane.xlu2 %7236 }
 0x496   : > { %v5134_v21 = vor.u32 %v5133_v9, %v5132_v55  ;;  %v5137_v18 = vshll.u32 %v5136_v17, 23  ;;  %v5238_v15 = vsel %vm5237_vm11, 1, %v14620_v36  ;;  %v5255_v12 = vshll.u32 %v5252_v59, 16 }
 0x497   : > { %v5240_v57 = vadd.s32 %v5238_v15, %v5232_v34  ;;  %vm5241_vm9 = vc.u32 %v5239_v45, %v5235_v46  ;;  %v5253_v19 = vmul.u32 %v5249_v37, %v5226_v38  ;;  %v6729_v29 = vadd.f32 %v6728_v47, %v6727_v53 }
 0x498   : > { %v6724_v33 = vmul.f32 %v12549_v40, %v12549_v40  ;;  %v5138_v32 = vor.u32 4788187, %v5137_v18  ;;  %v5145_v48 = vsub.s32 4, %v12500_v20  ;;  %v5212_v26 = vsel %vm5208_vm7, %v5192_v52, %v12510_v3 }
 0x499   : > { %v5214_v25 = vsel %vm5210_vm13, %v12504_v35, %v5213_v31  ;;  %v5242_v47 = vsel %vm5241_vm9, 1, %v14620_v36  ;;  %vm5259_vm10 = vc.u32 %v5251_v50, %v5255_v12  ;;  %v5141_v51 = vcvt.s32.f32 %v5134_v21 }
 0x49a   : > { %v5139_v53 = vand.u32 2147483647, %v5138_v32  ;;  %v5234_v60 = vshrl.u32 %v5230_v7, 16  ;;  %v5244_v13 = vadd.s32 %v5242_v47, %v5240_v57  ;;  %v5254_v37 = vmul.u32 %v5250_v41, %v5226_v38  ;;  %v14779_v32 = vld [vmem:[#allocation22_spill] sm:$0xff] }
 0x49b   : > { %v5257_v55 = vshll.u32 %v5253_v19, 16  ;;  %v5260_v9 = vsel %vm5259_vm10, 1, %v14620_v36  ;;  %v5261_v17 = vadd.s32 %v5255_v12, %v5251_v50  ;;  %v12581_v34 = vmul.f32 %v7259_v23, %v7237_v49 }
 0x49c   : > { %v5142_v3 = vmul.f32 %v5141_v51, %v5139_v53  ;;  %v5146_v35 = vsel %vm5023_vm14, %v5145_v48, %v12500_v20  ;;  %v5245_v52 = vadd.s32 %v5244_v13, %v5234_v60  ;;  %v6730_v31 = vsel %vm6427_vm0, %v6724_v33, 0.0  ;;  %v14780_v60 = vld [vmem:[#allocation11_spill] sm:$0xff] }
 0x49d   : > { %14775 = vst [vmem:[#allocation36_spill] sm:$0xff] %v12581_v34  ;;  %v5236_v46 = vshrl.u32 %v5231_v2, 16  ;;  %v5262_v45 = vadd.s32 %v5260_v9, %v5254_v37  ;;  %vm5263_vm8 = vc.u32 %v5261_v17, %v5257_v55  ;;  %v14776_v7 = vand.u32 2147483647, %v14762_v44 }
 0x49e   : > { %v5143_v41 = vxor.u32 2147483648, %v5142_v3  ;;  %v5215_v21 = vsel %vm5209_vm3, %v5212_v26, %v5214_v25  ;;  %v5264_v18 = vsel %vm5263_vm8, 1, %v14620_v36  ;;  %v5256_v2 = vshrl.u32 %v5252_v59, 16 }
 0x49f   : > { %vm12589_vm7 = vcmp.le.f32.partialorder %v14776_v7, 0.7853982  ;;  %v12598_v15 = vadd.s32 %v5245_v52, %v5236_v46  ;;  %v5266_v12 = vadd.s32 %v5264_v18, %v5262_v45  ;;  %v6731_v57 = vadd.f32 %v6730_v31, %v6729_v29 }
 0x4a0   : > { %v5148_v20 = vsel %vm12589_vm7, 0, %v5146_v35  ;;  %v7275_v50 = vmul.f32 %v12581_v34, %v12581_v34  ;;  %v5144_v33 = vsel %vm5023_vm14, %v5143_v41, %v5142_v3  ;;  %v14550_v48 = vand.u32 2147483647, %v14779_v32 }
 0x4a1   : > { %v5147_v61 = vsel %vm12589_vm7, %v14762_v44, %v5144_v33  ;;  %v5258_v23 = vshrl.u32 %v5253_v19, 16  ;;  %v12608_v26 = vadd.s32 %v5261_v17, %v5257_v55  ;;  %v5267_v25 = vadd.s32 %v5266_v12, %v5256_v2 }
 0x4a2   : > { %v5149_v47 = vmul.f32 %v5147_v61, %v5147_v61  ;;  %v5165_v59 = vadd.s32 3, %v5148_v20  ;;  %v5269_v29 = vmul.u32 %v12545_v10, %v5215_v21  ;;  %v5349_v53 = vshrl.u32 %v14621_v28, %v11560_v54 }
 0x4a3   : > { %v5268_v51 = vadd.s32 %v5267_v25, %v5258_v23  ;;  %vm5271_vm3 = vc.u32 %v12598_v15, %v12608_v26  ;;  %v5348_v13 = vshll.u32 %v14614_v39, %v14780_v60  ;;  %v5352_v19 = vshrl.u32 %v14622_v1, %v11560_v54 }
 0x4a4   : > { %v5150_v49 = vmul.f32 -0.001358992, %v5149_v47  ;;  %v5157_v37 = vmul.f32 -0.00019511016, %v5149_v47  ;;  %v5338_v55 = vand.u32 8388607, %v14550_v48  ;;  %v5351_v10 = vshll.u32 %v14621_v28, %v14780_v60 }
 0x4a5   : > { %v5272_v9 = vadd.s32 1, %v5268_v51  ;;  %v12623_v17 = vor.u32 %v5349_v53, %v5348_v13  ;;  %v5354_v3 = vshll.u32 %v14622_v1, %v14780_v60  ;;  %v5355_v35 = vshrl.u32 %v14623_v0, %v11560_v54 }
 0x4a6   : > { %v5151_v52 = vadd.f32 0.041655596, %v5150_v49  ;;  %v5158_v31 = vadd.f32 0.008332121, %v5157_v37  ;;  %v5357_v46 = vshll.u32 %v14623_v0, %v14780_v60  ;;  %v5358_v45 = vshrl.u32 %v14624_v11, %v11560_v54 }
 0x4a7   : > { %v5273_v7 = vsel %vm5271_vm3, %v5272_v9, %v5268_v51  ;;  %v12633_v38 = vor.u32 %v5352_v19, %v5351_v10  ;;  %v5360_v41 = vshll.u32 %v14624_v11, %v14780_v60  ;;  %v5361_v21 = vshrl.u32 %v14625_v16, %v11560_v54  ;;  %v14781_v19 = vld [vmem:[#allocation31_spill] sm:$0xff] }
 0x4a8   : > { %v5152_v18 = vmul.f32 %v5151_v52, %v5149_v47  ;;  %v5159_v20 = vmul.f32 %v5158_v31, %v5149_v47  ;;  %v5274_v2 = vadd.s32 %v5273_v7, %v5269_v29  ;;  %v5359_v12 = vor.u32 %v5358_v45, %v5357_v46  ;;  %v7260_v45 = vld [vmem:[%s14412_s18 + $0x8] sm:$0xff] }
 0x4a9   : > { %v6732_v33 = vrot.slane %v6731_v57, 4  ;;  %v5166_v23 = vand.u32 3, %v5165_v59  ;;  %v12639_v25 = vor.u32 %v5355_v35, %v5354_v3  ;;  %v5362_v53 = vor.u32 %v5361_v21, %v5360_v41 }
 0x4aa   : > { %v5153_v13 = vadd.f32 -0.4999988, %v5152_v18  ;;  %v5160_v49 = vadd.f32 -0.16666654, %v5159_v20  ;;  %v5275_v51 = vadd.s32 536870912, %v5274_v2  ;;  %vm5366_vm2 = vcmp.lt.s32.totalorder %v14781_v19, 4 }
 0x4ab   : > { %v5339_v37 = vor.u32 8388608, %v5338_v55  ;;  %vm5363_vm15 = vcmp.lt.s32.totalorder %v14781_v19, 1  ;;  %vm5365_vm13 = vcmp.lt.s32.totalorder %v14781_v19, 3  ;;  %v5372_v60 = vsel %vm5366_vm2, %v5359_v12, 920167782 }
 0x4ac   : > { %v5154_v29 = vmul.f32 %v5153_v13, %v5149_v47  ;;  %v5161_v10 = vmul.f32 %v5160_v49, %v5149_v47  ;;  %v12646_v9 = vshrl.u32 %v5275_v51, 30  ;;  %v5371_v59 = vsel %vm5363_vm15, %v12623_v17, %v12633_v38 }
 0x4ad   : > { %v12653_v3 = vsel %vm6427_vm0, %v7275_v50, 0.0  ;;  %vm5164_vm12 = vweird.f32 %v14762_v44  ;;  %vm5364_vm6 = vcmp.lt.s32.totalorder %v14781_v19, 2  ;;  %v5373_v55 = vsel %vm5365_vm13, %v12639_v25, %v5372_v60 }
 0x4ae   : > { %v5376_v47 = vsel %vm5366_vm2, %v5362_v53, 1326507024  ;;  %v5155_v35 = vadd.f32 1.0, %v5154_v29  ;;  %v5162_v52 = vadd.f32 1.0, %v5161_v10  ;;  %v5277_v31 = vshll.u32 %v12646_v9, 30 }
 0x4af   : > { %v5375_v50 = vsel %vm5363_vm15, %v12633_v38, %v12639_v25  ;;  %v12667_v46 = vadd.f32 %v6732_v33, %v6731_v57  ;;  %v5374_v7 = vsel %vm5364_vm6, %v5371_v59, %v5373_v55  ;;  %v5377_v41 = vsel %vm5365_vm13, %v5359_v12, %v5376_v47  ;;  %v7240_v57 = vpop.xlane.xlu1 %7239  ;;  %v7262_v55 = vld [vmem:[%s14412_s18 + $0x18] sm:$0xff] }
 0x4b0   : > { %v12676_v21 = vshll.u32 %v5339_v37, 8  ;;  %v5163_v18 = vmul.f32 %v5162_v52, %v5147_v61  ;;  %vm5167_vm5 = vcmp.lt.s32.totalorder %v5166_v23, 2  ;;  %v5172_v20 = vxor.u32 2147483648, %v5155_v35  ;;  %v7261_v61 = vld [vmem:[%s14412_s18 + $0x10] sm:$0xff] }
 0x4b1   : > { %v12678_v53 = vsub.s32 %v5274_v2, %v5277_v31  ;;  %vm5168_vm4 = vcmp.eq.s32.totalorder %v5166_v23, 0  ;;  %vm5171_vm14 = vcmp.eq.s32.totalorder %v5166_v23, 2  ;;  %v5378_v33 = vsel %vm5364_vm6, %v5375_v50, %v5377_v41 }
 0x4b2   : > { %v5405_v13 = vshrl.u32 %v5374_v7, 16  ;;  %v5169_v49 = vxor.u32 2147483648, %v5163_v18  ;;  %v12682_v51 = vmul.f32 %v7260_v45, %v7240_v57  ;;  %v5380_v2 = vand.u32 65535, %v12676_v21  ;;  %v7243_v45 = vpop.xlane.xlu2 %7242 }
 0x4b3   : > { %vm5279_vm11 = vcmp.lt.s32.totalorder %v12678_v53, 0  ;;  %v5280_v12 = vsub.s32 0, %v12678_v53  ;;  %v5381_v37 = vshrl.u32 %v12676_v21, 16  ;;  %v5382_v60 = vand.u32 65535, %v5378_v33 }
 0x4b4   : > { %14782 = vst [vmem:[#allocation10_spill] sm:$0xff] %v12682_v51  ;;  %v5383_v29 = vshrl.u32 %v5378_v33, 16  ;;  %v5170_v10 = vsel %vm5168_vm4, %v5155_v35, %v5169_v49  ;;  %v5173_v59 = vsel %vm5171_vm14, %v5172_v20, %v5163_v18  ;;  %v5404_v52 = vand.u32 65535, %v5374_v7  ;;  %v7246_v18 = vpop.xlane.xlu0 %7245 }
 0x4b5   : > { %v5281_v47 = vsel %vm5279_vm11, %v5280_v12, %v12678_v53  ;;  %v5174_v50 = vsel %vm5167_vm5, %v5170_v10, %v5173_v59  ;;  %v12697_v57 = vmul.u32 %v5405_v13, %v5380_v2  ;;  %v12701_v35 = vmul.f32 %v7261_v61, %v7243_v45 }
 0x4b6   : > { %v5282_v41 = vclz %v5281_v47  ;;  %v5175_v33 = vsel %vm5164_vm12, nan, %v5174_v50  ;;  %v5385_v20 = vmul.u32 %v5383_v29, %v5380_v2  ;;  %v5386_v49 = vmul.u32 %v5382_v60, %v5381_v37 }
 0x4b7   : > { %14783 = vst [vmem:[#allocation12_spill] sm:$0xff] %v12701_v35  ;;  %8216 = vmatmul.msk.f32.gmra.mxu2 %vm935_vm1, %v5175_v33  ;;  %v7276_v7 = vmul.f32 %v12682_v51, %v12682_v51  ;;  %v12706_v12 = vmul.f32 %v7262_v55, %v7246_v18  ;;  %v5270_v23 = vadd.s32 %v12608_v26, %v12598_v15  ;;  %vm5178_vm9 = vcmp.lt.s32.totalorder %v14774_v6, 0 }
 0x4b8   : > { %v8170_v10 = vadd.s32 4294967294, %v5282_v41  ;;  %v5300_v44 = vsub.s32 4, %v12646_v9  ;;  %v5384_v61 = vmul.u32 %v5382_v60, %v5380_v2  ;;  %v5388_v59 = vshll.u32 %v5385_v20, 16 }
 0x4b9   : > { %14784 = vst [vmem:[#allocation13_spill] sm:$0xff] %v12706_v12  ;;  %v5406_v47 = vmul.u32 %v5404_v52, %v5380_v2  ;;  %v5387_v50 = vmul.u32 %v5383_v29, %v5381_v37  ;;  %v5408_v45 = vmul.u32 %v5404_v52, %v5381_v37  ;;  %v5410_v33 = vshll.u32 %v12697_v57, 16 }
 0x4ba   : > { %vm8171_vm10 = vcmp.lt.s32.totalorder %v8170_v10, 0  ;;  %v5390_v31 = vshll.u32 %v5386_v49, 16  ;;  %vm5392_vm8 = vc.u32 %v5384_v61, %v5388_v59  ;;  %v5394_v55 = vadd.s32 %v5388_v59, %v5384_v61 }
 0x4bb   : > { %v5285_v48 = vsel %vm8171_vm10, 0, %v8170_v10  ;;  %v14785_v18 = vand.u32 2147483647, %v14774_v6  ;;  %v5393_v60 = vsel %vm5392_vm8, 1, %v14620_v36  ;;  %v5409_v2 = vmul.u32 %v5405_v13, %v5381_v37 }
 0x4bc   : > { %v5286_v26 = vsub.s32 32, %v5285_v48  ;;  %v5290_v41 = vsub.s32 4294967266, %v5285_v48  ;;  %v5287_v29 = vshll.u32 %v12678_v53, %v5285_v48  ;;  %v5395_v52 = vadd.s32 %v5393_v60, %v5387_v50 }
 0x4bd   : > { %vm12715_vm7 = vcmp.le.f32.partialorder %v14785_v18, 0.7853982  ;;  %vm5396_vm3 = vc.u32 %v5394_v55, %v5390_v31  ;;  %vm5414_vm12 = vc.u32 %v5406_v47, %v5410_v33  ;;  %v5389_v18 = vshrl.u32 %v5385_v20, 16 }
 0x4be   : > { %v5288_v10 = vshrl.u32 %v5270_v23, %v5286_v26  ;;  %v5291_v34 = vadd.s32 127, %v5290_v41  ;;  %v5397_v61 = vsel %vm5396_vm3, 1, %v14620_v36  ;;  %v5415_v59 = vsel %vm5414_vm12, 1, %v14620_v36 }
 0x4bf   : > { %v5399_v51 = vadd.s32 %v5397_v61, %v5395_v52  ;;  %v5412_v4 = vshll.u32 %v5408_v45, 16  ;;  %v5416_v22 = vadd.s32 %v5410_v33, %v5406_v47  ;;  %v5368_v13 = vsel %vm5366_vm2, %v12639_v25, 2102212464 }
 0x4c0   : > { %v5289_v62 = vor.u32 %v5288_v10, %v5287_v29  ;;  %v5292_v43 = vshll.u32 %v5291_v34, 23  ;;  %v5417_v48 = vadd.s32 %v5415_v59, %v5409_v2  ;;  %v7277_v53 = vmul.f32 %v12701_v35, %v12701_v35 }
 0x4c1   : > { %v5347_v37 = vshrl.u32 %v14614_v39, %v11560_v54  ;;  %v5400_v31 = vadd.s32 %v5399_v51, %v5389_v18  ;;  %vm5418_vm5 = vc.u32 %v5416_v22, %v5412_v4  ;;  %v7284_v20 = vsel %vm6427_vm0, %v7276_v7, 0.0 }
 0x4c2   : > { %v7278_v23 = vmul.f32 %v12706_v12, %v12706_v12  ;;  %v5293_v47 = vor.u32 4788187, %v5292_v43  ;;  %v5301_v34 = vsel %vm5178_vm9, %v5300_v44, %v12646_v9  ;;  %v5369_v54 = vsel %vm5365_vm13, %v12633_v38, %v5368_v13 }
 0x4c3   : > { %v5367_v25 = vsel %vm5363_vm15, %v5347_v37, %v12623_v17  ;;  %v5391_v51 = vshrl.u32 %v5386_v49, 16  ;;  %v5419_v50 = vsel %vm5418_vm5, 1, %v14620_v36  ;;  %v5296_v33 = vcvt.s32.f32 %v5289_v62  ;;  %v14788_v49 = vld [vmem:[#allocation8_spill] sm:$0xff] }
 0x4c4   : > { %v5294_v7 = vand.u32 2147483647, %v5293_v47  ;;  %v5411_v55 = vshrl.u32 %v12697_v57, 16  ;;  %v5421_v43 = vadd.s32 %v5419_v50, %v5417_v48  ;;  %v7285_v26 = vadd.f32 %v7284_v20, %v12653_v3  ;;  %v14790_v48 = vld [vmem:[#allocation27_spill] sm:$0xff] }
 0x4c5   : > { %v7286_v9 = vsel %vm6427_vm0, %v7277_v53, 0.0  ;;  %v5303_v44 = vsel %vm12715_vm7, 0, %v5301_v34  ;;  %v12748_v17 = vadd.s32 %v5400_v31, %v5391_v51  ;;  %v5413_v60 = vshrl.u32 %v5408_v45, 16 }
 0x4c6   : > { %v5297_v41 = vmul.f32 %v5296_v33, %v5294_v7  ;;  %v5422_v38 = vadd.s32 %v5421_v43, %v5411_v55  ;;  %v14556_v2 = vand.u32 2147483647, %v14788_v49  ;;  %v12752_v29 = vshrl.u32 %v12465_v27, 5 }
 0x4c7   : > { %v12755_v62 = vand.u32 31, %v12465_v27  ;;  %v5370_v3 = vsel %vm5364_vm6, %v5367_v25, %v5369_v54  ;;  %v12759_v57 = vadd.s32 %v5416_v22, %v5412_v4  ;;  %v12762_v52 = vadd.s32 4294967169, %v12467_v58 }
 0x4c8   : > { %v14789_v45 = vrot.slane %v12667_v46, 2  ;;  %v5298_v61 = vxor.u32 2147483648, %v5297_v41  ;;  %v5423_v59 = vadd.s32 %v5422_v38, %v5413_v60  ;;  %v7287_v18 = vadd.f32 %v7286_v9, %v7285_v26 }
 0x4c9   : > { %v7288_v13 = vsel %vm6427_vm0, %v7278_v23, 0.0  ;;  %v5320_v27 = vadd.s32 3, %v5303_v44  ;;  %vm5426_vm2 = vc.u32 %v12748_v17, %v12759_v57  ;;  %v5424_v22 = vmul.u32 %v12676_v21, %v5370_v3  ;;  %v14791_v23 = vld [vmem:[#allocation21_spill] sm:$0xff] }
 0x4ca   : > { %v12767_v10 = vadd.f32 %v14789_v45, %v12667_v46  ;;  %v5299_v4 = vsel %vm5178_vm9, %v5298_v61, %v5297_v41  ;;  %v5427_v58 = vadd.s32 1, %v5423_v59  ;;  %v5493_v19 = vand.u32 8388607, %v14556_v2 }
 0x4cb   : > { %v12780_v46 = vsel %vm12715_vm7, %v14774_v6, %v5299_v4  ;;  %v5504_v53 = vshrl.u32 %v14621_v28, %v14790_v48  ;;  %v5507_v37 = vshrl.u32 %v14622_v1, %v14790_v48  ;;  %v5510_v31 = vshrl.u32 %v14623_v0, %v14790_v48  ;;  %v14792_v4 = vld [vmem:[#allocation32_spill] sm:$0xff] }
 0x4cc   : > { %v5304_v21 = vmul.f32 %v12780_v46, %v12780_v46  ;;  %v5428_v20 = vsel %vm5426_vm2, %v5427_v58, %v5423_v59  ;;  %v5506_v47 = vshll.u32 %v14621_v28, %v14791_v23  ;;  %v5513_v15 = vshrl.u32 %v14624_v11, %v14790_v48 }
 0x4cd   : > { %v5429_v34 = vadd.s32 %v5428_v20, %v5424_v22  ;;  %v5509_v25 = vshll.u32 %v14622_v1, %v14791_v23  ;;  %v5512_v54 = vshll.u32 %v14623_v0, %v14791_v23  ;;  %v5516_v51 = vshrl.u32 %v14625_v16, %v14790_v48 }
 0x4ce   : > { %v5305_v50 = vmul.f32 -0.001358992, %v5304_v21  ;;  %v5312_v7 = vmul.f32 -0.00019511016, %v5304_v21  ;;  %v5503_v33 = vshll.u32 %v14614_v39, %v14791_v23  ;;  %v5515_v55 = vshll.u32 %v14624_v11, %v14791_v23 }
 0x4cf   : > { %v5430_v43 = vadd.s32 536870912, %v5429_v34  ;;  %v12804_v26 = vor.u32 %v5507_v37, %v5506_v47  ;;  %v12806_v9 = vor.u32 %v5510_v31, %v5509_v25  ;;  %v5514_v44 = vor.u32 %v5513_v15, %v5512_v54  ;;  %v7263_v37 = vld [vmem:[%s14412_s18 + $0x20] sm:$0xff]  ;;  %v7252_v15 = vpop.xlane.xlu2 %7251  ;;  %v7265_v54 = vld [vmem:[%s14412_s18 + $0x30] sm:$0xff] }
 0x4d0   : > { %v5306_v41 = vadd.f32 0.041655596, %v5305_v50  ;;  %v5313_v60 = vadd.f32 0.008332121, %v5312_v7  ;;  %v12808_v38 = vand.u32 3, %v5320_v27  ;;  %v5517_v3 = vor.u32 %v5516_v51, %v5515_v55  ;;  %v7264_v27 = vld [vmem:[%s14412_s18 + $0x28] sm:$0xff]  ;;  %v7255_v51 = vpop.xlane.xlu0 %7254 }
 0x4d1   : > { %v12810_v45 = vshrl.u32 %v5430_v43, 30  ;;  %v5494_v61 = vor.u32 8388608, %v5493_v19  ;;  %v12812_v59 = vor.u32 %v5504_v53, %v5503_v33  ;;  %vm5518_vm15 = vcmp.lt.s32.totalorder %v14792_v4, 1  ;;  %v7249_v43 = vpop.xlane.xlu1 %7248 }
 0x4d2   : > { %v5307_v22 = vmul.f32 %v5306_v41, %v5304_v21  ;;  %v5314_v58 = vmul.f32 %v5313_v60, %v5304_v21  ;;  %vm5519_vm13 = vcmp.lt.s32.totalorder %v14792_v4, 2  ;;  %vm5521_vm6 = vcmp.lt.s32.totalorder %v14792_v4, 4 }
 0x4d3   : > { %v5432_v19 = vshll.u32 %v12810_v45, 30  ;;  %vm5520_vm4 = vcmp.lt.s32.totalorder %v14792_v4, 3  ;;  %v5527_v53 = vsel %vm5521_vm6, %v5514_v44, 920167782  ;;  %v5530_v31 = vsel %vm5518_vm15, %v12804_v26, %v12806_v9 }
 0x4d4   : > { %v12831_v20 = vadd.f32 %v7288_v13, %v7287_v18  ;;  %v5308_v23 = vadd.f32 -0.4999988, %v5307_v22  ;;  %v5315_v47 = vadd.f32 -0.16666654, %v5314_v58  ;;  %v5531_v25 = vsel %vm5521_vm6, %v5517_v3, 1326507024 }
 0x4d5   : > { %vm5323_vm14 = vcmp.eq.s32.totalorder %v12808_v38, 0  ;;  %vm5326_vm11 = vcmp.eq.s32.totalorder %v12808_v38, 2  ;;  %v12840_v50 = vsub.s32 %v5429_v34, %v5432_v19  ;;  %v5526_v18 = vsel %vm5518_vm15, %v12812_v59, %v12804_v26 }
 0x4d6   : > { %v5532_v13 = vsel %vm5520_vm4, %v5514_v44, %v5531_v25  ;;  %v12848_v7 = vshll.u32 %v5494_v61, 8  ;;  %v5309_v33 = vmul.f32 %v5308_v23, %v5304_v21  ;;  %v5316_v55 = vmul.f32 %v5315_v47, %v5304_v21 }
 0x4d7   : > { %vm5322_vm9 = vcmp.lt.s32.totalorder %v12808_v38, 2  ;;  %v5528_v34 = vsel %vm5520_vm4, %v12806_v9, %v5527_v53  ;;  %v5533_v41 = vsel %vm5519_vm13, %v5530_v31, %v5532_v13  ;;  %vm5319_vm10 = vweird.f32 %v14774_v6 }
 0x4d8   : > { %v12857_v60 = vmul.f32 %v7263_v37, %v7249_v43  ;;  %v12859_v3 = vmul.f32 %v7264_v27, %v7252_v15  ;;  %vm5434_vm8 = vcmp.lt.s32.totalorder %v12840_v50, 0  ;;  %v5435_v21 = vsub.s32 0, %v12840_v50 }
 0x4d9   : > { %v5310_v44 = vadd.f32 1.0, %v5309_v33  ;;  %v5317_v61 = vadd.f32 1.0, %v5316_v55  ;;  %v12863_v22 = vmul.f32 %v7265_v54, %v7255_v51  ;;  %v5537_v58 = vand.u32 65535, %v5533_v41 }
 0x4da   : > { %14793 = vst [vmem:[#allocation39_spill] sm:$0xff] %v12857_v60  ;;  %v5436_v19 = vsel %vm5434_vm8, %v5435_v21, %v12840_v50  ;;  %v5529_v53 = vsel %vm5519_vm13, %v5526_v18, %v5528_v34  ;;  %v5535_v31 = vand.u32 65535, %v12848_v7  ;;  %v5538_v37 = vshrl.u32 %v5533_v41, 16 }
 0x4db   : > { %14794 = vst [vmem:[#allocation19_spill] sm:$0xff] %v12859_v3  ;;  %v5318_v27 = vmul.f32 %v5317_v61, %v12780_v46  ;;  %v5327_v23 = vxor.u32 2147483648, %v5310_v44  ;;  %v5437_v47 = vclz %v5436_v19  ;;  %v5536_v15 = vshrl.u32 %v12848_v7, 16 }
 0x4dc   : > { %14795 = vst [vmem:[#allocation18_spill] sm:$0xff] %v12863_v22  ;;  %v7279_v25 = vmul.f32 %v12857_v60, %v12857_v60  ;;  %v7280_v54 = vmul.f32 %v12859_v3, %v12859_v3  ;;  %v5425_v51 = vadd.s32 %v12759_v57, %v12748_v17  ;;  %v5540_v13 = vmul.u32 %v5538_v37, %v5535_v31 }
 0x4dd   : > { %v5324_v18 = vxor.u32 2147483648, %v5318_v27  ;;  %v8173_v33 = vadd.s32 4294967294, %v5437_v47  ;;  %v5455_v55 = vsub.s32 4, %v12810_v45  ;;  %v12878_v43 = vmul.u32 %v5537_v58, %v5536_v15 }
 0x4de   : > { %vm5333_vm7 = vcmp.lt.s32.totalorder %v14779_v32, 0  ;;  %v5539_v46 = vmul.u32 %v5537_v58, %v5535_v31  ;;  %v5543_v34 = vshll.u32 %v5540_v13, 16  ;;  %v5559_v41 = vand.u32 65535, %v5529_v53 }
 0x4df   : > { %v5560_v21 = vshrl.u32 %v5529_v53, 16  ;;  %v5325_v61 = vsel %vm5323_vm14, %v5310_v44, %v5324_v18  ;;  %v5328_v19 = vsel %vm5326_vm11, %v5327_v23, %v5318_v27  ;;  %vm8174_vm3 = vcmp.lt.s32.totalorder %v8173_v33, 0 }
 0x4e0   : > { %v5545_v17 = vshll.u32 %v12878_v43, 16  ;;  %v5329_v57 = vsel %vm5322_vm9, %v5325_v61, %v5328_v19  ;;  %v5440_v47 = vsel %vm8174_vm3, 0, %v8173_v33  ;;  %vm5547_vm12 = vc.u32 %v5539_v46, %v5543_v34 }
 0x4e1   : > { %v5549_v2 = vadd.s32 %v5543_v34, %v5539_v46  ;;  %v5330_v58 = vsel %vm5319_vm10, nan, %v5329_v57  ;;  %v14796_v53 = vand.u32 2147483647, %v14779_v32  ;;  %v5441_v44 = vsub.s32 32, %v5440_v47 }
 0x4e2   : > { %v5445_v27 = vsub.s32 4294967266, %v5440_v47  ;;  %v5542_v23 = vmul.u32 %v5538_v37, %v5536_v15  ;;  %8217 = vmatmul.msk.f32.gmra.mxu2 %vm935_vm1, %v5330_v58  ;;  %v5442_v38 = vshll.u32 %v12840_v50, %v5440_v47  ;;  %v5548_v18 = vsel %vm5547_vm12, 1, %v14620_v36 }
 0x4e3   : > { %vm12892_vm5 = vcmp.le.f32.partialorder %v14796_v53, 0.7853982  ;;  %vm5551_vm2 = vc.u32 %v5549_v2, %v5545_v17  ;;  %v5562_v33 = vmul.u32 %v5560_v21, %v5535_v31  ;;  %v5443_v46 = vshrl.u32 %v5425_v51, %v5441_v44 }
 0x4e4   : > { %v5446_v6 = vadd.s32 127, %v5445_v27  ;;  %v5550_v34 = vadd.s32 %v5548_v18, %v5542_v23  ;;  %v5552_v61 = vsel %vm5551_vm2, 1, %v14620_v36  ;;  %v7290_v19 = vsel %vm6427_vm0, %v7279_v25, 0.0 }
 0x4e5   : > { %v5561_v57 = vmul.u32 %v5559_v41, %v5535_v31  ;;  %v5563_v53 = vmul.u32 %v5559_v41, %v5536_v15  ;;  %v5565_v12 = vshll.u32 %v5562_v33, 16  ;;  %v7292_v37 = vsel %vm6427_vm0, %v7280_v54, 0.0 }
 0x4e6   : > { %v5444_v60 = vor.u32 %v5443_v46, %v5442_v38  ;;  %v5447_v58 = vshll.u32 %v5446_v6, 23  ;;  %v5554_v3 = vadd.s32 %v5552_v61, %v5550_v34  ;;  %v5544_v50 = vshrl.u32 %v5540_v13, 16 }
 0x4e7   : > { %v5567_v47 = vshll.u32 %v5563_v53, 16  ;;  %vm5569_vm14 = vc.u32 %v5561_v57, %v5565_v12  ;;  %v5571_v2 = vadd.s32 %v5565_v12, %v5561_v57  ;;  %v7291_v51 = vadd.f32 %v7290_v19, %v12831_v20  ;;  %v7266_v12 = vld [vmem:[%s14412_s18 + $0x38] sm:$0xff]  ;;  %v7258_v20 = vpop.xlane.xlu1 %7257 }
 0x4e8   : > { %v5448_v17 = vor.u32 4788187, %v5447_v58  ;;  %v5456_v44 = vsel %vm5333_vm7, %v5455_v55, %v12810_v45  ;;  %v5564_v25 = vmul.u32 %v5560_v21, %v5536_v15  ;;  %v5523_v31 = vsel %vm5521_vm6, %v12806_v9, 2102212464 }
 0x4e9   : > { %v5555_v54 = vadd.s32 %v5554_v3, %v5544_v50  ;;  %v5570_v41 = vsel %vm5569_vm14, 1, %v14620_v36  ;;  %vm5573_vm11 = vc.u32 %v5571_v2, %v5567_v47  ;;  %v5451_v27 = vcvt.s32.f32 %v5444_v60  ;;  %v6603_v60 = vpop.f32.mrf.mxu0 }
 0x4ea   : > { %v5449_v13 = vand.u32 2147483647, %v5448_v17  ;;  %v5572_v23 = vadd.s32 %v5570_v41, %v5564_v25  ;;  %v5574_v38 = vsel %vm5573_vm11, 1, %v14620_v36  ;;  %v7281_v45 = vmul.f32 %v12863_v22, %v12863_v22 }
 0x4eb   : > { %v5458_v9 = vsel %vm12892_vm5, 0, %v5456_v44  ;;  %v5502_v3 = vshrl.u32 %v14614_v39, %v14790_v48  ;;  %v5546_v15 = vshrl.u32 %v12878_v43, 16  ;;  %v7293_v55 = vadd.f32 %v7292_v37, %v7291_v51 }
 0x4ec   : > { %v5452_v21 = vmul.f32 %v5451_v27, %v5449_v13  ;;  %v5566_v18 = vshrl.u32 %v5562_v33, 16  ;;  %v5576_v46 = vadd.s32 %v5574_v38, %v5572_v23  ;;  %v12921_v6 = vmul.f32 %v7266_v12, %v7258_v20  ;;  %v12937_v33 = vld [vmem:[%s14405_s11] ss:$0 sm:$0xff] }
 0x4ed   : > { %v5522_v34 = vsel %vm5518_vm15, %v5502_v3, %v12812_v59  ;;  %v5524_v61 = vsel %vm5520_vm4, %v12804_v26, %v5523_v31  ;;  %v12929_v19 = vadd.s32 %v5555_v54, %v5546_v15  ;;  %v5475_v57 = vadd.s32 3, %v5458_v9  ;;  %v14799_v13 = vld [vmem:[#allocation25_spill] sm:$0xff] }
 0x4ee   : > { %v5453_v48 = vxor.u32 2147483648, %v5452_v21  ;;  %v5568_v43 = vshrl.u32 %v5563_v53, 16  ;;  %v5577_v58 = vadd.s32 %v5576_v46, %v5566_v18  ;;  %v12932_v37 = vsub.s32 32, %v12755_v62  ;;  %v14800_v12 = vld [vmem:[#allocation9_spill] sm:$0xff] }
 0x4ef   : > { %v12940_v59 = vadd.f32 %v12937_v33, %v6603_v60  ;;  %v7294_v50 = vsel %vm6427_vm0, %v7281_v45, 0.0  ;;  %v12943_v26 = vadd.s32 %v5571_v2, %v5567_v47  ;;  %v12946_v51 = vadd.s32 1, %v12762_v52  ;;  %v14801_v60 = vld [vmem:[#allocation34_spill] sm:$0xff] }
 0x4f0   : > { %v5454_v53 = vsel %vm5333_vm7, %v5453_v48, %v5452_v21  ;;  %v5525_v17 = vsel %vm5519_vm13, %v5522_v34, %v5524_v61  ;;  %v5578_v44 = vadd.s32 %v5577_v58, %v5568_v43  ;;  %v6736_v25 = vrot.slane %v12767_v10, 1 }
 0x4f1   : > { %v5457_v31 = vsel %vm12892_vm5, %v14779_v32, %v5454_v53  ;;  %v7282_v47 = vmul.f32 %v12921_v6, %v12921_v6  ;;  %vm5581_vm15 = vc.u32 %v12929_v19, %v12943_v26  ;;  %v7295_v52 = vadd.f32 %v7294_v50, %v7293_v55 }
 0x4f2   : > { %v5459_v2 = vmul.f32 %v5457_v31, %v5457_v31  ;;  %v12960_v54 = vand.u32 3, %v5475_v57  ;;  %v5582_v41 = vadd.s32 1, %v5578_v44  ;;  %v5579_v4 = vmul.u32 %v12848_v7, %v5525_v17 }
 0x4f3   : > { %v14561_v27 = vand.u32 2147483647, %v14799_v13  ;;  %v5662_v20 = vshrl.u32 %v14622_v1, %v14800_v12  ;;  %v5665_v35 = vshrl.u32 %v14623_v0, %v14800_v12  ;;  %v5671_v9 = vshrl.u32 %v14625_v16, %v14800_v12 }
 0x4f4   : > { %v5460_v23 = vmul.f32 -0.001358992, %v5459_v2  ;;  %v5467_v38 = vmul.f32 -0.00019511016, %v5459_v2  ;;  %v5583_v45 = vsel %vm5581_vm15, %v5582_v41, %v5578_v44  ;;  %v7296_v3 = vsel %vm6427_vm0, %v7282_v47, 0.0 }
 0x4f5   : > { %v5584_v15 = vadd.s32 %v5583_v45, %v5579_v4  ;;  %v5661_v7 = vshll.u32 %v14621_v28, %v14801_v60  ;;  %v5664_v55 = vshll.u32 %v14622_v1, %v14801_v60  ;;  %v5668_v46 = vshrl.u32 %v14624_v11, %v14800_v12 }
 0x4f6   : > { %v5461_v21 = vadd.f32 0.041655596, %v5460_v23  ;;  %v5468_v18 = vadd.f32 0.008332121, %v5467_v38  ;;  %v5670_v34 = vshll.u32 %v14624_v11, %v14801_v60  ;;  %v5648_v48 = vand.u32 8388607, %v14561_v27 }
 0x4f7   : > { %v5585_v61 = vadd.s32 536870912, %v5584_v15  ;;  %v12981_v57 = vor.u32 %v5662_v20, %v5661_v7  ;;  %v5667_v43 = vshll.u32 %v14623_v0, %v14801_v60  ;;  %v12985_v53 = vor.u32 %v5665_v35, %v5664_v55  ;;  %v14802_v55 = vld [vmem:[#allocation23_spill] sm:$0xff] }
 0x4f8   : > { %v5462_v58 = vmul.f32 %v5461_v21, %v5459_v2  ;;  %v5469_v50 = vmul.f32 %v5468_v18, %v5459_v2  ;;  %v5672_v17 = vor.u32 %v5671_v9, %v5670_v34  ;;  %v12988_v44 = vadd.f32 %v6736_v25, %v12767_v10 }
 0x4f9   : > { %v7297_v47 = vadd.f32 %v7296_v3, %v7295_v52  ;;  %v12990_v41 = vshrl.u32 %v5585_v61, 30  ;;  %v5659_v4 = vshrl.u32 %v14621_v28, %v14800_v12  ;;  %v5658_v38 = vshll.u32 %v14614_v39, %v14801_v60 }
 0x4fa   : > { %v5463_v23 = vadd.f32 -0.4999988, %v5462_v58  ;;  %v5470_v20 = vadd.f32 -0.16666654, %v5469_v50  ;;  %v5669_v45 = vor.u32 %v5668_v46, %v5667_v43  ;;  %v5649_v35 = vor.u32 8388608, %v5648_v48 }
 0x4fb   : > { %v5587_v7 = vshll.u32 %v12990_v41, 30  ;;  %vm5673_vm13 = vcmp.lt.s32.totalorder %v14802_v55, 1  ;;  %vm5676_vm6 = vcmp.lt.s32.totalorder %v14802_v55, 4  ;;  %vm5477_vm4 = vcmp.lt.s32.totalorder %v12960_v54, 2 }
 0x4fc   : > { %v5464_v10 = vmul.f32 %v5463_v23, %v5459_v2  ;;  %v5471_v25 = vmul.f32 %v5470_v20, %v5459_v2  ;;  %v5685_v52 = vsel %vm5673_vm13, %v12981_v57, %v12985_v53  ;;  %v5686_v9 = vsel %vm5676_vm6, %v5672_v17, 1326507024 }
 0x4fd   : > { %vm5474_vm9 = vweird.f32 %v14779_v32  ;;  %v7298_v3 = vrot.slane %v7297_v47, 4  ;;  %v13007_v60 = vsub.s32 %v5584_v15, %v5587_v7  ;;  %v5660_v21 = vor.u32 %v5659_v4, %v5658_v38 }
 0x4fe   : > { %vm5675_vm10 = vcmp.lt.s32.totalorder %v14802_v55, 3  ;;  %v5465_v18 = vadd.f32 1.0, %v5464_v10  ;;  %v5472_v2 = vadd.f32 1.0, %v5471_v25  ;;  %vm5674_vm8 = vcmp.lt.s32.totalorder %v14802_v55, 2 }
 0x4ff   : > { %v5687_v46 = vsel %vm5675_vm10, %v5669_v45, %v5686_v9  ;;  %vm5589_vm7 = vcmp.lt.s32.totalorder %v13007_v60, 0  ;;  %v5590_v34 = vsub.s32 0, %v13007_v60  ;;  %v5682_v61 = vsel %vm5676_vm6, %v5669_v45, 920167782 }
 0x500   : > { %v5688_v15 = vsel %vm5674_vm8, %v5685_v52, %v5687_v46  ;;  %v5473_v48 = vmul.f32 %v5472_v2, %v5457_v31  ;;  %vm5478_vm3 = vcmp.eq.s32.totalorder %v12960_v54, 0  ;;  %v5482_v43 = vxor.u32 2147483648, %v5465_v18 }
 0x501   : > { %v13020_v58 = vshll.u32 %v5649_v35, 8  ;;  %v13022_v50 = vadd.f32 %v7298_v3, %v7297_v47  ;;  %v5591_v17 = vsel %vm5589_vm7, %v5590_v34, %v13007_v60  ;;  %v5692_v4 = vand.u32 65535, %v5688_v15 }
 0x502   : > { %v5693_v23 = vshrl.u32 %v5688_v15, 16  ;;  %v5479_v20 = vxor.u32 2147483648, %v5473_v48  ;;  %v5592_v38 = vclz %v5591_v17  ;;  %v5681_v45 = vsel %vm5673_vm13, %v5660_v21, %v12981_v57 }
 0x503   : > { %v5683_v31 = vsel %vm5675_vm10, %v12985_v53, %v5682_v61  ;;  %vm5481_vm12 = vcmp.eq.s32.totalorder %v12960_v54, 2  ;;  %v5657_v47 = vshrl.u32 %v14614_v39, %v14800_v12  ;;  %v5690_v7 = vand.u32 65535, %v13020_v58 }
 0x504   : > { %v5691_v35 = vshrl.u32 %v13020_v58, 16  ;;  %v5480_v10 = vsel %vm5478_vm3, %v5465_v18, %v5479_v20  ;;  %v5483_v25 = vsel %vm5481_vm12, %v5482_v43, %v5473_v48  ;;  %v5580_v52 = vadd.s32 %v12943_v26, %v12929_v19 }
 0x505   : > { %v8176_v9 = vadd.s32 4294967294, %v5592_v38  ;;  %v5484_v3 = vsel %vm5477_vm4, %v5480_v10, %v5483_v25  ;;  %vm5488_vm5 = vcmp.lt.s32.totalorder %v14788_v49, 0  ;;  %v5684_v2 = vsel %vm5674_vm8, %v5681_v45, %v5683_v31 }
 0x506   : > { %v5695_v46 = vmul.u32 %v5693_v23, %v5690_v7  ;;  %v5696_v12 = vmul.u32 %v5692_v4, %v5691_v35  ;;  %v5485_v34 = vsel %vm5474_vm9, nan, %v5484_v3  ;;  %v7300_v18 = vrot.slane %v13022_v50, 2 }
 0x507   : > { %vm8177_vm2 = vcmp.lt.s32.totalorder %v8176_v9, 0  ;;  %v5677_v19 = vsel %vm5673_vm13, %v5657_v47, %v5660_v21  ;;  %8218 = vmatmul.msk.f32.gmra.mxu2 %vm935_vm1, %v5485_v34  ;;  %v5610_v54 = vsub.s32 4, %v12990_v41  ;;  %v5694_v61 = vmul.u32 %v5692_v4, %v5690_v7 }
 0x508   : > { %v5595_v26 = vsel %vm8177_vm2, 0, %v8176_v9  ;;  %v5698_v15 = vshll.u32 %v5695_v46, 16  ;;  %vm6117_vm14 = vcmp.gt.s32.totalorder %v12946_v51, 0  ;;  %v5697_v17 = vmul.u32 %v5693_v23, %v5691_v35 }
 0x509   : > { %v5596_v48 = vsub.s32 32, %v5595_v26  ;;  %v5600_v43 = vsub.s32 4294967266, %v5595_v26  ;;  %v5714_v32 = vand.u32 65535, %v5684_v2  ;;  %v5700_v20 = vshll.u32 %v5696_v12, 16 }
 0x50a   : > { %vm5702_vm11 = vc.u32 %v5694_v61, %v5698_v15  ;;  %v5704_v38 = vadd.s32 %v5698_v15, %v5694_v61  ;;  %v5715_v45 = vshrl.u32 %v5684_v2, 16  ;;  %v5597_v31 = vshll.u32 %v13007_v60, %v5595_v26 }
 0x50b   : > { %v5598_v21 = vshrl.u32 %v5580_v52, %v5596_v48  ;;  %v5601_v47 = vadd.s32 127, %v5600_v43  ;;  %v5703_v10 = vsel %vm5702_vm11, 1, %v14620_v36  ;;  %v5678_v4 = vsel %vm5676_vm6, %v12985_v53, 2102212464 }
 0x50c   : > { %v5705_v25 = vadd.s32 %v5703_v10, %v5697_v17  ;;  %vm5706_vm15 = vc.u32 %v5704_v38, %v5700_v20  ;;  %v5717_v9 = vmul.u32 %v5715_v45, %v5690_v7  ;;  %v5699_v34 = vshrl.u32 %v5695_v46, 16 }
 0x50d   : > { %v5599_v3 = vor.u32 %v5598_v21, %v5597_v31  ;;  %v5602_v23 = vshll.u32 %v5601_v47, 23  ;;  %v5707_v27 = vsel %vm5706_vm15, 1, %v14620_v36  ;;  %v5716_v2 = vmul.u32 %v5714_v32, %v5690_v7 }
 0x50e   : > { %v5709_v61 = vadd.s32 %v5707_v27, %v5705_v25  ;;  %v5718_v15 = vmul.u32 %v5714_v32, %v5691_v35  ;;  %v5720_v60 = vshll.u32 %v5717_v9, 16  ;;  %v5611_v26 = vsel %vm5488_vm5, %v5610_v54, %v12990_v41 }
 0x50f   : > { %v5603_v52 = vor.u32 4788187, %v5602_v23  ;;  %v5679_v53 = vsel %vm5675_vm10, %v12981_v57, %v5678_v4  ;;  %v5701_v48 = vshrl.u32 %v5696_v12, 16  ;;  %v5606_v43 = vcvt.s32.f32 %v5599_v3  ;;  %v14806_v12 = vld [vmem:[#allocation14_spill] sm:$0xff] }
 0x510   : > { %v5710_v17 = vadd.s32 %v5709_v61, %v5699_v34  ;;  %v5719_v20 = vmul.u32 %v5715_v45, %v5691_v35  ;;  %vm5724_vm13 = vc.u32 %v5716_v2, %v5720_v60  ;;  %v5722_v38 = vshll.u32 %v5718_v15, 16 }
 0x511   : > { %v5604_v46 = vand.u32 2147483647, %v5603_v52  ;;  %v5725_v27 = vsel %vm5724_vm13, 1, %v14620_v36  ;;  %v5726_v7 = vadd.s32 %v5720_v60, %v5716_v2  ;;  %v14803_v32 = vand.u32 2147483647, %v14788_v49 }
 0x512   : > { %v5680_v41 = vsel %vm5674_vm8, %v5677_v19, %v5679_v53  ;;  %v5727_v57 = vadd.s32 %v5725_v27, %v5719_v20  ;;  %v14562_v54 = vand.u32 2147483647, %v14806_v12  ;;  %v13075_v45 = vadd.s32 %v5710_v17, %v5701_v48 }
 0x513   : > { %vm13066_vm6 = vcmp.le.f32.partialorder %v14803_v32, 0.7853982  ;;  %v5607_v21 = vmul.f32 %v5606_v43, %v5604_v46  ;;  %vm5728_vm4 = vc.u32 %v5726_v7, %v5722_v38  ;;  %v13080_v47 = vsel %vm6117_vm14, %v12946_v51, 0 }
 0x514   : > { %v5613_v35 = vsel %vm13066_vm6, 0, %v5611_v26  ;;  %v13083_v10 = vadd.f32 1e-08, %v12988_v44  ;;  %v13086_v55 = vadd.f32 %v7300_v18, %v13022_v50  ;;  %v5729_v19 = vsel %vm5728_vm4, 1, %v14620_v36 }
 0x515   : > { %v5608_v4 = vxor.u32 2147483648, %v5607_v21  ;;  %v5721_v25 = vshrl.u32 %v5717_v9, 16  ;;  %v13089_v3 = vadd.s32 %v5726_v7, %v5722_v38  ;;  %v5731_v23 = vadd.s32 %v5729_v19, %v5727_v57 }
 0x516   : > { %v5630_v34 = vadd.s32 3, %v5613_v35  ;;  %v5723_v61 = vshrl.u32 %v5718_v15, 16  ;;  %v5734_v2 = vmul.u32 %v13020_v58, %v5680_v41  ;;  %v5803_v51 = vand.u32 8388607, %v14562_v54 }
 0x517   : > { %v5609_v44 = vsel %vm5488_vm5, %v5608_v4, %v5607_v21  ;;  %v5732_v60 = vadd.s32 %v5731_v23, %v5721_v25  ;;  %vm5736_vm9 = vc.u32 %v13075_v45, %v13089_v3  ;;  %v5813_v50 = vshll.u32 %v14614_v39, %v12037_v30 }
 0x518   : > { %v13103_v18 = vsel %vm13066_vm6, %v14788_v49, %v5609_v44  ;;  %v5814_v58 = vshrl.u32 %v14621_v28, %v12119_v8  ;;  %v5817_v9 = vshrl.u32 %v14622_v1, %v12119_v8  ;;  %v5820_v15 = vshrl.u32 %v14623_v0, %v12119_v8 }
 0x519   : > { %v5614_v52 = vmul.f32 %v13103_v18, %v13103_v18  ;;  %v5733_v26 = vadd.s32 %v5732_v60, %v5723_v61  ;;  %v5822_v53 = vshll.u32 %v14623_v0, %v12037_v30  ;;  %v5823_v48 = vshrl.u32 %v14624_v11, %v12119_v8 }
 0x51a   : > { %v5816_v43 = vshll.u32 %v14621_v28, %v12037_v30  ;;  %v5819_v17 = vshll.u32 %v14622_v1, %v12037_v30  ;;  %v5825_v20 = vshll.u32 %v14624_v11, %v12037_v30  ;;  %v5826_v46 = vshrl.u32 %v14625_v16, %v12119_v8 }
 0x51b   : > { %v5615_v38 = vmul.f32 -0.001358992, %v5614_v52  ;;  %v5622_v27 = vmul.f32 -0.00019511016, %v5614_v52  ;;  %v5737_v7 = vadd.s32 1, %v5733_v26  ;;  %v5824_v32 = vor.u32 %v5823_v48, %v5822_v53 }
 0x51c   : > { %v5815_v31 = vor.u32 %v5814_v58, %v5813_v50  ;;  %v13125_v41 = vor.u32 %v5817_v9, %v5816_v43  ;;  %v13127_v57 = vor.u32 %v5820_v15, %v5819_v17  ;;  %v5827_v21 = vor.u32 %v5826_v46, %v5825_v20 }
 0x51d   : > { %v5616_v35 = vadd.f32 0.041655596, %v5615_v38  ;;  %v5623_v19 = vadd.f32 0.008332121, %v5622_v27  ;;  %v5738_v4 = vsel %vm5736_vm9, %v5737_v7, %v5733_v26  ;;  %vm5831_vm10 = vcmp.lt.s32.totalorder %v11995_v5, 4 }
 0x51e   : > { %v5631_v30 = vand.u32 3, %v5630_v34  ;;  %v5739_v25 = vadd.s32 %v5738_v4, %v5734_v2  ;;  %v5804_v23 = vor.u32 8388608, %v5803_v51  ;;  %v5837_v61 = vsel %vm5831_vm10, %v5824_v32, 920167782 }
 0x51f   : > { %v5617_v44 = vmul.f32 %v5616_v35, %v5614_v52  ;;  %v5624_v60 = vmul.f32 %v5623_v19, %v5614_v52  ;;  %vm5828_vm8 = vcmp.lt.s32.totalorder %v11995_v5, 1  ;;  %vm5830_vm7 = vcmp.lt.s32.totalorder %v11995_v5, 3 }
 0x520   : > { %v5740_v50 = vadd.s32 536870912, %v5739_v25  ;;  %v5836_v58 = vsel %vm5828_vm8, %v5815_v31, %v13125_v41  ;;  %v5838_v34 = vsel %vm5830_vm7, %v13127_v57, %v5837_v61  ;;  %v5840_v2 = vsel %vm5828_vm8, %v13125_v41, %v13127_v57 }
 0x521   : > { %8452 = vrsqrt.f32 %v13083_v10  ;;  %v5618_v51 = vadd.f32 -0.4999988, %v5617_v44  ;;  %v5625_v9 = vadd.f32 -0.16666654, %v5624_v60  ;;  %v5841_v15 = vsel %vm5831_vm10, %v5827_v21, 1326507024 }
 0x522   : > { %v5741_v26 = vshrl.u32 %v5740_v50, 30  ;;  %vm5829_vm3 = vcmp.lt.s32.totalorder %v11995_v5, 2  ;;  %v5842_v53 = vsel %vm5830_vm7, %v5824_v32, %v5841_v15  ;;  %v13153_v48 = vshll.u32 %v5804_v23, 8 }
 0x523   : > { %v5619_v43 = vmul.f32 %v5618_v51, %v5614_v52  ;;  %v5626_v17 = vmul.f32 %v5625_v9, %v5614_v52  ;;  %vm5643_vm12 = vcmp.lt.s32.totalorder %v14799_v13, 0  ;;  %v5839_v20 = vsel %vm5829_vm3, %v5836_v58, %v5838_v34 }
 0x524   : > { %v5843_v46 = vsel %vm5829_vm3, %v5840_v2, %v5842_v53  ;;  %vm5629_vm5 = vweird.f32 %v14788_v49  ;;  %vm5632_vm2 = vcmp.lt.s32.totalorder %v5631_v30, 2  ;;  %vm5633_vm14 = vcmp.eq.s32.totalorder %v5631_v30, 0 }
 0x525   : > { %v5742_v27 = vshll.u32 %v5741_v26, 30  ;;  %v5620_v7 = vadd.f32 1.0, %v5619_v43  ;;  %v5627_v32 = vadd.f32 1.0, %v5626_v17  ;;  %v5847_v21 = vand.u32 65535, %v5843_v46 }
 0x526   : > { %v5848_v35 = vshrl.u32 %v5843_v46, 16  ;;  %vm5636_vm11 = vcmp.eq.s32.totalorder %v5631_v30, 2  ;;  %v5845_v19 = vand.u32 65535, %v13153_v48  ;;  %v5870_v4 = vshrl.u32 %v5839_v20, 16 }
 0x527   : > { %v13162_v52 = vsub.s32 %v5739_v25, %v5742_v27  ;;  %v13165_v23 = vpop.eup %8452  ;;  %v5628_v61 = vmul.f32 %v5627_v32, %v13103_v18  ;;  %v5637_v44 = vxor.u32 2147483648, %v5620_v7  ;;  %v14807_v60 = vand.u32 2147483647, %v14799_v13 }
 0x528   : > { %v5812_v58 = vshrl.u32 %v14614_v39, %v12119_v8  ;;  %v5846_v25 = vshrl.u32 %v13153_v48, 16  ;;  %v5765_v2 = vsub.s32 4, %v5741_v26  ;;  %v5850_v51 = vmul.u32 %v5848_v35, %v5845_v19 }
 0x529   : > { %vm13170_vm15 = vcmp.le.f32.partialorder %v14807_v60, 0.7853982  ;;  %vm5744_vm13 = vcmp.lt.s32.totalorder %v13162_v52, 0  ;;  %v5745_v34 = vsub.s32 0, %v13162_v52  ;;  %v5634_v9 = vxor.u32 2147483648, %v5628_v61 }
 0x52a   : > { %v5735_v18 = vadd.s32 %v13089_v3, %v13075_v45  ;;  %v5832_v15 = vsel %vm5828_vm8, %v5812_v58, %v5815_v31  ;;  %v5851_v53 = vmul.u32 %v5847_v21, %v5846_v25  ;;  %v5853_v17 = vshll.u32 %v5850_v51, 16 }
 0x52b   : > { %v5746_v43 = vsel %vm5744_vm13, %v5745_v34, %v13162_v52  ;;  %v5869_v8 = vand.u32 65535, %v5839_v20  ;;  %v5872_v46 = vmul.u32 %v5870_v4, %v5845_v19  ;;  %v5635_v27 = vsel %vm5633_vm14, %v5620_v7, %v5634_v9 }
 0x52c   : > { %v5638_v32 = vsel %vm5636_vm11, %v5637_v44, %v5628_v61  ;;  %v5747_v60 = vclz %v5746_v43  ;;  %v5849_v54 = vmul.u32 %v5847_v21, %v5845_v19  ;;  %v5766_v45 = vsel %vm5643_vm12, %v5765_v2, %v5741_v26 }
 0x52d   : > { %v5639_v38 = vsel %vm5632_vm2, %v5635_v27, %v5638_v32  ;;  %v5852_v3 = vmul.u32 %v5848_v35, %v5846_v25  ;;  %v5855_v22 = vshll.u32 %v5851_v53, 16  ;;  %v5833_v7 = vsel %vm5831_vm10, %v13127_v57, 2102212464 }
 0x52e   : > { %v5640_v31 = vsel %vm5629_vm5, nan, %v5639_v38  ;;  %v8179_v58 = vadd.s32 4294967294, %v5747_v60  ;;  %vm5857_vm6 = vc.u32 %v5849_v54, %v5853_v17  ;;  %v5859_v20 = vadd.s32 %v5853_v17, %v5849_v54 }
 0x52f   : > { %8219 = vmatmul.msk.f32.gmra.mxu2 %vm935_vm1, %v5640_v31  ;;  %v5858_v30 = vsel %vm5857_vm6, 1, %v14620_v36  ;;  %v5873_v21 = vmul.u32 %v5869_v8, %v5846_v25  ;;  %v5875_v61 = vshll.u32 %v5872_v46, 16  ;;  %v5871_v35 = vmul.u32 %v5869_v8, %v5845_v19 }
 0x530   : > { %vm8180_vm4 = vcmp.lt.s32.totalorder %v8179_v58, 0  ;;  %v5860_v26 = vadd.s32 %v5858_v30, %v5852_v3  ;;  %vm5861_vm9 = vc.u32 %v5859_v20, %v5855_v22  ;;  %v5768_v49 = vsel %vm13170_vm15, 0, %v5766_v45 }
 0x531   : > { %v5750_v44 = vsel %vm8180_vm4, 0, %v8179_v58  ;;  %v5854_v38 = vshrl.u32 %v5850_v51, 16  ;;  %v5862_v54 = vsel %vm5861_vm9, 1, %v14620_v36  ;;  %v5874_v43 = vmul.u32 %v5870_v4, %v5846_v25 }
 0x532   : > { %v5751_v34 = vsub.s32 32, %v5750_v44  ;;  %v5755_v2 = vsub.s32 4294967266, %v5750_v44  ;;  %v5864_v9 = vadd.s32 %v5862_v54, %v5860_v26  ;;  %v5752_v57 = vshll.u32 %v13162_v52, %v5750_v44 }
 0x533   : > { %v5877_v17 = vshll.u32 %v5873_v21, 16  ;;  %vm5879_vm10 = vc.u32 %v5871_v35, %v5875_v61  ;;  %v5881_v27 = vadd.s32 %v5875_v61, %v5871_v35  ;;  %v5785_v8 = vadd.s32 3, %v5768_v49 }
 0x534   : > { %v5753_v32 = vshrl.u32 %v5735_v18, %v5751_v34  ;;  %v5756_v60 = vadd.s32 127, %v5755_v2  ;;  %v5865_v22 = vadd.s32 %v5864_v9, %v5854_v38  ;;  %v5880_v19 = vsel %vm5879_vm10, 1, %v14620_v36 }
 0x535   : > { %v5834_v51 = vsel %vm5830_vm7, %v13125_v41, %v5833_v7  ;;  %v5882_v45 = vadd.s32 %v5880_v19, %v5874_v43  ;;  %vm5883_vm8 = vc.u32 %v5881_v27, %v5877_v17  ;;  %v5856_v4 = vshrl.u32 %v5851_v53, 16 }
 0x536   : > { %v5754_v3 = vor.u32 %v5753_v32, %v5752_v57  ;;  %v5757_v31 = vshll.u32 %v5756_v60, 23  ;;  %v5884_v52 = vsel %vm5883_vm8, 1, %v14620_v36  ;;  %v13206_v25 = vand.u32 31, %v13080_v47 }
 0x537   : > { %v6740_v18 = vmul.f32 %v13165_v23, %v13083_v10  ;;  %v5876_v58 = vshrl.u32 %v5872_v46, 16  ;;  %v5886_v20 = vadd.s32 %v5884_v52, %v5882_v45  ;;  %v14810_v30 = vrot.slane %v13086_v55, 1 }
 0x538   : > { %v5758_v41 = vor.u32 4788187, %v5757_v31  ;;  %v5835_v7 = vsel %vm5829_vm3, %v5832_v15, %v5834_v51  ;;  %v13217_v53 = vadd.s32 %v5865_v22, %v5856_v4  ;;  %v13219_v26 = vand.u32 3, %v5785_v8 }
 0x539   : > { %v13213_v61 = vadd.f32 %v14810_v30, %v13086_v55  ;;  %v6741_v35 = vmul.f32 %v13165_v23, %v6740_v18  ;;  %v5878_v44 = vshrl.u32 %v5873_v21, 16  ;;  %v5887_v49 = vadd.s32 %v5886_v20, %v5876_v58 }
 0x53a   : > { %v5759_v38 = vand.u32 2147483647, %v5758_v41  ;;  %v5761_v46 = vcvt.s32.f32 %v5754_v3  ;;  %v13222_v54 = vadd.s32 %v5881_v27, %v5877_v17  ;;  %v5951_v34 = vand.u32 2147483647, %v12235_v14 }
 0x53b   : > { %v6742_v55 = vmul.f32 0.5, %v6741_v35  ;;  %vm6745_vm7 = vweird.f32 %v13083_v10  ;;  %vm6746_vm5 = vweird.f32 %v13165_v23  ;;  %v5888_v5 = vadd.s32 %v5887_v49, %v5878_v44 }
 0x53c   : > { %v5762_v15 = vmul.f32 %v5761_v46, %v5759_v38  ;;  %v5889_v2 = vmul.u32 %v13153_v48, %v5835_v7  ;;  %vm5891_vm3 = vc.u32 %v13217_v53, %v13222_v54  ;;  %v5972_v21 = vshrl.u32 %v14622_v1, %v12932_v37  ;;  %vm6747_vm2 = vmor %vm6745_vm7, %vm6746_vm5 }
 0x53d   : > { %v6743_v9 = vsub.f32 1.5, %v6742_v55  ;;  %v5892_v43 = vadd.s32 1, %v5888_v5  ;;  %v5971_v57 = vshll.u32 %v14621_v28, %v12755_v62  ;;  %v5975_v10 = vshrl.u32 %v14623_v0, %v12932_v37 }
 0x53e   : > { %v5763_v17 = vxor.u32 2147483648, %v5762_v15  ;;  %v5958_v27 = vand.u32 8388607, %v5951_v34  ;;  %v5969_v48 = vshrl.u32 %v14621_v28, %v12932_v37  ;;  %v5974_v32 = vshll.u32 %v14622_v1, %v12755_v62 }
 0x53f   : > { %v6744_v60 = vmul.f32 %v13165_v23, %v6743_v9  ;;  %v5893_v22 = vsel %vm5891_vm3, %v5892_v43, %v5888_v5  ;;  %v13243_v19 = vor.u32 %v5972_v21, %v5971_v57  ;;  %v5978_v8 = vshrl.u32 %v14624_v11, %v12932_v37  ;;  %v13285_v21 = vpop.f32.mrf.mxu0 }
 0x540   : > { %v5764_v51 = vsel %vm5643_vm12, %v5763_v17, %v5762_v15  ;;  %v5894_v45 = vadd.s32 %v5893_v22, %v5889_v2  ;;  %v5977_v3 = vshll.u32 %v14623_v0, %v12755_v62  ;;  %v5981_v31 = vshrl.u32 %v14625_v16, %v12932_v37 }
 0x541   : > { %v13256_v4 = vsel %vm13170_vm15, %v14799_v13, %v5764_v51  ;;  %v13259_v52 = vsel %vm6747_vm2, %v13165_v23, %v6744_v60  ;;  %v5976_v18 = vor.u32 %v5975_v10, %v5974_v32  ;;  %v5980_v58 = vshll.u32 %v14624_v11, %v12755_v62 }
 0x542   : > { %v5769_v20 = vmul.f32 %v13256_v4, %v13256_v4  ;;  %v6752_v30 = vmul.f32 %v13259_v52, %v12549_v40  ;;  %v6751_v41 = vmul.f32 %v13259_v52, %v12440_v56  ;;  %v5895_v7 = vadd.s32 536870912, %v5894_v45 }
 0x543   : > { %v5959_v50 = vor.u32 8388608, %v5958_v27  ;;  %v5968_v35 = vshll.u32 %v14614_v39, %v12755_v62  ;;  %v5979_v23 = vor.u32 %v5978_v8, %v5977_v3  ;;  %v5982_v44 = vor.u32 %v5981_v31, %v5980_v58 }
 0x544   : > { %v5770_v49 = vmul.f32 -0.001358992, %v5769_v20  ;;  %v5777_v38 = vmul.f32 -0.00019511016, %v5769_v20  ;;  %6865 = vmatpush.msra.mxu1 %v6752_v30  ;;  %8362 = vmatpush.msra.mxu3 %v6752_v30  ;;  %v13271_v46 = vshrl.u32 %v5895_v7, 30  ;;  %vm5986_vm12 = vcmp.lt.s32.totalorder %v12752_v29, 4 }
 0x545   : > { %v5970_v55 = vor.u32 %v5969_v48, %v5968_v35  ;;  %vm5983_vm14 = vcmp.lt.s32.totalorder %v12752_v29, 1  ;;  %vm5985_vm11 = vcmp.lt.s32.totalorder %v12752_v29, 3  ;;  %v5996_v56 = vsel %vm5986_vm12, %v5982_v44, 1326507024 }
 0x546   : > { %v5771_v40 = vadd.f32 0.041655596, %v5770_v49  ;;  %v5778_v62 = vadd.f32 0.008332121, %v5777_v38  ;;  %6866 = vmatpush.msra.mxu1 %v6751_v41  ;;  %8363 = vmatpush.msra.mxu3 %v6751_v41  ;;  %v5897_v5 = vshll.u32 %v13271_v46, 30  ;;  %v5995_v15 = vsel %vm5983_vm14, %v13243_v19, %v5976_v18 }
 0x547   : > { %v13283_v2 = vshrl.u32 %v13080_v47, 5  ;;  %vm5984_vm15 = vcmp.lt.s32.totalorder %v12752_v29, 2  ;;  %v5997_v9 = vsel %vm5985_vm11, %v5979_v23, %v5996_v56  ;;  %v13290_v43 = vshll.u32 %v5959_v50, 8 }
 0x548   : > { %v5772_v57 = vmul.f32 %v5771_v40, %v5769_v20  ;;  %v5779_v10 = vmul.f32 %v5778_v62, %v5769_v20  ;;  %v13292_v17 = vsub.s32 %v5894_v45, %v5897_v5  ;;  %v5992_v27 = vsel %vm5986_vm12, %v5979_v23, 920167782 }
 0x549   : > { %v13297_v48 = vsub.s32 32, %v13206_v25  ;;  %v13300_v47 = vadd.f32 1e-08, %v13213_v61  ;;  %v5991_v32 = vsel %vm5983_vm14, %v5970_v55, %v13243_v19  ;;  %v5998_v60 = vsel %vm5984_vm15, %v5995_v15, %v5997_v9 }
 0x54a   : > { %v5773_v22 = vadd.f32 -0.4999988, %v5772_v57  ;;  %v5780_v8 = vadd.f32 -0.16666654, %v5779_v10  ;;  %vm5791_vm13 = vcmp.eq.s32.totalorder %v13219_v26, 2  ;;  %vm5899_vm6 = vcmp.lt.s32.totalorder %v13292_v17, 0  ;;  %v6609_v57 = vpop.f32.mrf.mxu0 }
 0x54b   : > { %v5900_v51 = vsub.s32 0, %v13292_v17  ;;  %vm5788_vm4 = vcmp.eq.s32.totalorder %v13219_v26, 0  ;;  %v5993_v61 = vsel %vm5985_vm11, %v5976_v18, %v5992_v27  ;;  %v6000_v45 = vand.u32 65535, %v13290_v43 }
 0x54c   : > { %v13315_v3 = vshrl.u32 %v13290_v43, 16  ;;  %v6002_v31 = vand.u32 65535, %v5998_v60  ;;  %v5774_v58 = vmul.f32 %v5773_v22, %v5769_v20  ;;  %v5781_v30 = vmul.f32 %v5780_v8, %v5769_v20 }
 0x54d   : > { %vm5787_vm9 = vcmp.lt.s32.totalorder %v13219_v26, 2  ;;  %v5901_v41 = vsel %vm5899_vm6, %v5900_v51, %v13292_v17  ;;  %v6003_v7 = vshrl.u32 %v5998_v60, 16  ;;  %vm5784_vm10 = vweird.f32 %v14799_v13 }
 0x54e   : > { %v5890_v50 = vadd.s32 %v13222_v54, %v13217_v53  ;;  %v5902_v35 = vclz %v5901_v41  ;;  %v5967_v23 = vshrl.u32 %v14614_v39, %v12932_v37  ;;  %v13325_v44 = vmul.u32 %v6002_v31, %v13315_v3 }
 0x54f   : > { %v5775_v49 = vadd.f32 1.0, %v5774_v58  ;;  %v5782_v38 = vadd.f32 1.0, %v5781_v30  ;;  %v5988_v20 = vsel %vm5986_vm12, %v5976_v18, 2102212464  ;;  %v6005_v56 = vmul.u32 %v6003_v7, %v6000_v45 }
 0x550   : > { %v8182_v40 = vadd.s32 4294967294, %v5902_v35  ;;  %v5920_v62 = vsub.s32 4, %v13271_v46  ;;  %v13332_v5 = vsel %vm5983_vm14, %v5967_v23, %v5970_v55  ;;  %v5994_v53 = vsel %vm5984_vm15, %v5991_v32, %v5993_v61 }
 0x551   : > { %v5783_v37 = vmul.f32 %v5782_v38, %v13256_v4  ;;  %v5792_v54 = vxor.u32 2147483648, %v5775_v49  ;;  %vm5798_vm8 = vcmp.lt.s32.totalorder %v14806_v12, 0  ;;  %v6004_v15 = vmul.u32 %v6002_v31, %v6000_v45 }
 0x552   : > { %v6008_v9 = vshll.u32 %v6005_v56, 16  ;;  %vm8183_vm7 = vcmp.lt.s32.totalorder %v8182_v40, 0  ;;  %v5989_v18 = vsel %vm5985_vm11, %v13243_v19, %v5988_v20  ;;  %v6007_v10 = vmul.u32 %v6003_v7, %v13315_v3 }
 0x553   : > { %v6010_v55 = vshll.u32 %v13325_v44, 16  ;;  %v5789_v27 = vxor.u32 2147483648, %v5783_v37  ;;  %v5905_v60 = vsel %vm8183_vm7, 0, %v8182_v40  ;;  %v6024_v32 = vand.u32 65535, %v5994_v53 }
 0x554   : > { %vm6012_vm5 = vc.u32 %v6004_v15, %v6008_v9  ;;  %v5793_v4 = vsel %vm5791_vm13, %v5792_v54, %v5783_v37  ;;  %v14811_v22 = vand.u32 2147483647, %v14806_v12  ;;  %v5906_v51 = vsub.s32 32, %v5905_v60 }
 0x555   : > { %v5910_v61 = vsub.s32 4294967266, %v5905_v60  ;;  %v6013_v19 = vsel %vm6012_vm5, 1, %v14620_v36  ;;  %v5790_v31 = vsel %vm5788_vm4, %v5775_v49, %v5789_v27  ;;  %v6014_v58 = vadd.s32 %v6008_v9, %v6004_v15 }
 0x556   : > { %vm13347_vm3 = vcmp.le.f32.partialorder %v14811_v22, 0.7853982  ;;  %v6015_v30 = vadd.s32 %v6013_v19, %v6007_v10  ;;  %v6025_v41 = vshrl.u32 %v5994_v53, 16  ;;  %v5794_v7 = vsel %vm5787_vm9, %v5790_v31, %v5793_v4 }
 0x557   : > { %v5907_v35 = vshll.u32 %v13292_v17, %v5905_v60  ;;  %v5908_v23 = vshrl.u32 %v5890_v50, %v5906_v51  ;;  %v5911_v38 = vadd.s32 127, %v5910_v61  ;;  %v5795_v20 = vsel %vm5784_vm10, nan, %v5794_v7 }
 0x558   : > { %v6009_v40 = vshrl.u32 %v6005_v56, 16  ;;  %vm6016_vm2 = vc.u32 %v6014_v58, %v6010_v55  ;;  %v6027_v37 = vmul.u32 %v6025_v41, %v6000_v45  ;;  %8220 = vmatmul.msk.f32.gmra.mxu2 %vm935_vm1, %v5795_v20  ;;  %v6028_v53 = vmul.u32 %v6024_v32, %v13315_v3 }
 0x559   : > { %v5909_v54 = vor.u32 %v5908_v23, %v5907_v35  ;;  %v5912_v49 = vshll.u32 %v5911_v38, 23  ;;  %v6017_v15 = vsel %vm6016_vm2, 1, %v14620_v36  ;;  %v6750_v26 = vmul.f32 %v13259_v52, %v12438_v63  ;;  %v6612_v63 = vpop.f32.mrf.mxu0 }
 0x55a   : > { %v6019_v17 = vadd.s32 %v6017_v15, %v6015_v30  ;;  %v6026_v50 = vmul.u32 %v6024_v32, %v6000_v45  ;;  %v6030_v9 = vshll.u32 %v6027_v37, 16  ;;  %v5921_v13 = vsel %vm5798_vm8, %v5920_v62, %v13271_v46  ;;  %v14814_v62 = vld [vmem:[#allocation28_spill] sm:$0xff] }
 0x55b   : > { %v5913_v10 = vor.u32 4788187, %v5912_v49  ;;  %v6011_v56 = vshrl.u32 %v13325_v44, 16  ;;  %v6029_v55 = vmul.u32 %v6025_v41, %v13315_v3  ;;  %v5916_v27 = vcvt.s32.f32 %v5909_v54  ;;  %6867 = vmatpush.msra.mxu1 %v6750_v26  ;;  %8364 = vmatpush.msra.mxu3 %v6750_v26 }
 0x55c   : > { %v6749_v60 = vmul.f32 %v13259_v52, %v12412_v24  ;;  %v6020_v4 = vadd.s32 %v6019_v17, %v6009_v40  ;;  %vm6034_vm12 = vc.u32 %v6026_v50, %v6030_v9  ;;  %v6032_v32 = vshll.u32 %v6028_v53, 16 }
 0x55d   : > { %v5914_v45 = vand.u32 2147483647, %v5913_v10  ;;  %v6035_v22 = vsel %vm6034_vm12, 1, %v14620_v36  ;;  %v6036_v51 = vadd.s32 %v6030_v9, %v6026_v50  ;;  %v13374_v46 = vadd.f32 %v12937_v33, %v13285_v21 }
 0x55e   : > { %v5923_v3 = vsel %vm13347_vm3, 0, %v5921_v13  ;;  %6868 = vmatpush.msra.mxu1 %v6749_v60  ;;  %8365 = vmatpush.msra.mxu3 %v6749_v60  ;;  %v6037_v44 = vadd.s32 %v6035_v22, %v6029_v55  ;;  %v6106_v24 = vand.u32 2147483647, %v12385_v42  ;;  %v5990_v61 = vsel %vm5984_vm15, %v13332_v5, %v5989_v18  ;;  %v14815_v55 = vld [vmem:[#allocation37_spill] sm:$0xff] }
 0x55f   : > { %v5917_v52 = vmul.f32 %v5916_v27, %v5914_v45  ;;  %8225 = vmatmul.msk.f32.vlgmr.msra.gmra.mxu1 %vm935_vm1, %v14814_v62  ;;  %v13384_v19 = vadd.s32 %v6020_v4, %v6011_v56  ;;  %vm6038_vm14 = vc.u32 %v6036_v51, %v6032_v32  ;;  %v13387_v21 = vadd.f32 %v12937_v33, %v6609_v57 }
 0x560   : > { %v13390_v31 = vadd.f32 %v12937_v33, %v6612_v63  ;;  %8454 = vrsqrt.f32 %v13300_v47  ;;  %v6039_v58 = vsel %vm6038_vm14, 1, %v14620_v36  ;;  %v6031_v41 = vshrl.u32 %v6027_v37, 16 }
 0x561   : > { %v5918_v30 = vxor.u32 2147483648, %v5917_v52  ;;  %v13394_v7 = vadd.s32 %v6036_v51, %v6032_v32  ;;  %v6041_v35 = vadd.s32 %v6039_v58, %v6037_v44  ;;  %v5940_v29 = vadd.s32 3, %v5923_v3  ;;  %v6615_v51 = vpop.f32.mrf.mxu0 }
 0x562   : > { %v6033_v5 = vshrl.u32 %v6028_v53, 16  ;;  %v6044_v18 = vmul.u32 %v13290_v43, %v5990_v61  ;;  %v6113_v57 = vand.u32 8388607, %v6106_v24  ;;  %v6123_v38 = vshll.u32 %v14614_v39, %v13206_v25 }
 0x563   : > { %v5919_v33 = vsel %vm5798_vm8, %v5918_v30, %v5917_v52  ;;  %v6042_v23 = vadd.s32 %v6041_v35, %v6031_v41  ;;  %vm6046_vm11 = vc.u32 %v13384_v19, %v13394_v7  ;;  %v6124_v43 = vshrl.u32 %v14621_v28, %v13297_v48 }
 0x564   : > { %v13408_v20 = vsel %vm13347_vm3, %v14806_v12, %v5919_v33  ;;  %v6127_v40 = vshrl.u32 %v14622_v1, %v13297_v48  ;;  %v6130_v37 = vshrl.u32 %v14623_v0, %v13297_v48  ;;  %v6132_v15 = vshll.u32 %v14623_v0, %v13206_v25 }
 0x565   : > { %v5924_v54 = vmul.f32 %v13408_v20, %v13408_v20  ;;  %v6043_v49 = vadd.s32 %v6042_v23, %v6033_v5  ;;  %v6133_v8 = vshrl.u32 %v14624_v11, %v13297_v48  ;;  %v6126_v26 = vshll.u32 %v14621_v28, %v13206_v25  ;;  %v13458_v5 = vld [vmem:[%s14405_s11] ss:$0 sm:$0xff] }
 0x566   : > { %v13422_v53 = vpop.eup %8454  ;;  %v6129_v17 = vshll.u32 %v14622_v1, %v13206_v25  ;;  %v6135_v50 = vshll.u32 %v14624_v11, %v13206_v25  ;;  %v6136_v9 = vshrl.u32 %v14625_v16, %v13297_v48  ;;  %v13434_v60 = vor.u32 %v6124_v43, %v6123_v38 }
 0x567   : > { %v5925_v10 = vmul.f32 -0.001358992, %v5924_v54  ;;  %v5932_v13 = vmul.f32 -0.00019511016, %v5924_v54  ;;  %v6047_v56 = vadd.s32 1, %v6043_v49  ;;  %8226 = vmatmul.msk.f32.gmra.mxu1 %vm935_vm1, %v14815_v55  ;;  %v6134_v27 = vor.u32 %v6133_v8, %v6132_v15 }
 0x568   : > { %v13436_v4 = vor.u32 %v6127_v40, %v6126_v26  ;;  %v6131_v63 = vor.u32 %v6130_v37, %v6129_v17  ;;  %v6137_v45 = vor.u32 %v6136_v9, %v6135_v50  ;;  %vm6141_vm15 = vcmp.lt.s32.totalorder %v13283_v2, 4 }
 0x569   : > { %v5926_v32 = vadd.f32 0.041655596, %v5925_v10  ;;  %v5933_v22 = vadd.f32 0.008332121, %v5932_v13  ;;  %v6048_v25 = vsel %vm6046_vm11, %v6047_v56, %v6043_v49  ;;  %v5941_v3 = vand.u32 3, %v5940_v29 }
 0x56a   : > { %v6049_v44 = vadd.s32 %v6048_v25, %v6044_v18  ;;  %v6114_v52 = vor.u32 8388608, %v6113_v57  ;;  %v6147_v62 = vsel %vm6141_vm15, %v6134_v27, 920167782  ;;  %vm6138_vm13 = vcmp.lt.s32.totalorder %v13283_v2, 1 }
 0x56b   : > { %v5927_v61 = vmul.f32 %v5926_v32, %v5924_v54  ;;  %v5934_v58 = vmul.f32 %v5933_v22, %v5924_v54  ;;  %vm6140_vm6 = vcmp.lt.s32.totalorder %v13283_v2, 3  ;;  %v6146_v41 = vsel %vm6138_vm13, %v13434_v60, %v13436_v4 }
 0x56c   : > { %v6050_v30 = vadd.s32 536870912, %v6049_v44  ;;  %v6148_v35 = vsel %vm6140_vm6, %v6131_v63, %v6147_v62  ;;  %v6150_v29 = vsel %vm6138_vm13, %v13436_v4, %v6131_v63  ;;  %v13461_v18 = vadd.f32 %v13458_v5, %v6615_v51 }
 0x56d   : > { %v5928_v57 = vadd.f32 -0.4999988, %v5927_v61  ;;  %v5935_v33 = vadd.f32 -0.16666654, %v5934_v58  ;;  %v6151_v23 = vsel %vm6141_vm15, %v6137_v45, 1326507024  ;;  %v13480_v26 = vmul.f32 %v13422_v53, %v13300_v47 }
 0x56e   : > { %v13465_v38 = vshrl.u32 %v6050_v30, 30  ;;  %vm6139_vm4 = vcmp.lt.s32.totalorder %v13283_v2, 2  ;;  %v6152_v43 = vsel %vm6140_vm6, %v6134_v27, %v6151_v23  ;;  %v13470_v40 = vshll.u32 %v6114_v52, 8 }
 0x56f   : > { %v5929_v37 = vmul.f32 %v5928_v57, %v5924_v54  ;;  %v5936_v49 = vmul.f32 %v5935_v33, %v5924_v54  ;;  %v6149_v15 = vsel %vm6139_vm4, %v6146_v41, %v6148_v35  ;;  %v6153_v8 = vsel %vm6139_vm4, %v6150_v29, %v6152_v43  ;;  %8227 = vmatmul.msk.f32.gmra.mxu1 %vm935_vm1, %v12940_v59 }
 0x570   : > { %vm5939_vm9 = vweird.f32 %v14806_v12  ;;  %vm5942_vm10 = vcmp.lt.s32.totalorder %v5941_v3, 2  ;;  %v6052_v17 = vshll.u32 %v13465_v38, 30  ;;  %v6157_v9 = vand.u32 65535, %v6153_v8 }
 0x571   : > { %v5930_v50 = vadd.f32 1.0, %v5929_v37  ;;  %v5937_v54 = vadd.f32 1.0, %v5936_v49  ;;  %v6158_v10 = vshrl.u32 %v6153_v8, 16  ;;  %vm5943_vm8 = vcmp.eq.s32.totalorder %v5941_v3, 0 }
 0x572   : > { %v13484_v13 = vsub.s32 %v6049_v44, %v6052_v17  ;;  %v6155_v56 = vand.u32 65535, %v13470_v40  ;;  %v6180_v55 = vshrl.u32 %v6149_v15, 16  ;;  %vm5946_vm7 = vcmp.eq.s32.totalorder %v5941_v3, 2 }
 0x573   : > { %v5938_v59 = vmul.f32 %v5937_v54, %v13408_v20  ;;  %v5947_v27 = vxor.u32 2147483648, %v5930_v50  ;;  %v6156_v45 = vshrl.u32 %v13470_v40, 16  ;;  %v6122_v22 = vshrl.u32 %v14614_v39, %v13297_v48 }
 0x574   : > { %vm6054_vm5 = vcmp.lt.s32.totalorder %v13484_v13, 0  ;;  %v6055_v32 = vsub.s32 0, %v13484_v13  ;;  %v6160_v25 = vmul.u32 %v6158_v10, %v6155_v56  ;;  %v6045_v44 = vadd.s32 %v13394_v7, %v13384_v19 }
 0x575   : > { %v5944_v51 = vxor.u32 2147483648, %v5938_v59  ;;  %v6143_v52 = vsel %vm6141_vm15, %v6131_v63, 2102212464  ;;  %v6161_v20 = vmul.u32 %v6157_v9, %v6156_v45  ;;  %v6179_v58 = vand.u32 65535, %v6149_v15 }
 0x576   : > { %v6056_v62 = vsel %vm6054_vm5, %v6055_v32, %v13484_v13  ;;  %v6163_v61 = vshll.u32 %v6160_v25, 16  ;;  %v6182_v30 = vmul.u32 %v6180_v55, %v6155_v56  ;;  %v5948_v35 = vsel %vm5946_vm7, %v5947_v27, %v5938_v59 }
 0x577   : > { %v5945_v41 = vsel %vm5943_vm8, %v5930_v50, %v5944_v51  ;;  %v6057_v29 = vclz %v6056_v62  ;;  %v6159_v48 = vmul.u32 %v6157_v9, %v6155_v56  ;;  %8228 = vmatmul.msk.f32.gmra.mxu1 %vm935_vm1, %v13374_v46  ;;  %v6142_v7 = vsel %vm6138_vm13, %v6122_v22, %v13434_v60 }
 0x578   : > { %v5949_v19 = vsel %vm5942_vm10, %v5945_v41, %v5948_v35  ;;  %v6162_v63 = vmul.u32 %v6158_v10, %v6156_v45  ;;  %v6165_v57 = vshll.u32 %v6161_v20, 16  ;;  %v6144_v46 = vsel %vm6140_vm6, %v13436_v4, %v6143_v52 }
 0x579   : > { %v5950_v33 = vsel %vm5939_vm9, nan, %v5949_v19  ;;  %v8185_v23 = vadd.s32 4294967294, %v6057_v29  ;;  %vm6167_vm3 = vc.u32 %v6159_v48, %v6163_v61  ;;  %v6169_v43 = vadd.s32 %v6163_v61, %v6159_v48 }
 0x57a   : > { %8221 = vmatmul.msk.f32.gmra.mxu2 %vm935_vm1, %v5950_v33  ;;  %v6168_v3 = vsel %vm6167_vm3, 1, %v14620_v36  ;;  %v6183_v37 = vmul.u32 %v6179_v58, %v6156_v45  ;;  %v6185_v49 = vshll.u32 %v6182_v30, 16  ;;  %v6075_v60 = vsub.s32 4, %v13465_v38 }
 0x57b   : > { %vm8186_vm2 = vcmp.lt.s32.totalorder %v8185_v23, 0  ;;  %v6170_v15 = vadd.s32 %v6168_v3, %v6162_v63  ;;  %vm6171_vm12 = vc.u32 %v6169_v43, %v6165_v57  ;;  %v6164_v8 = vshrl.u32 %v6160_v25, 16 }
 0x57c   : > { %v6060_v12 = vsel %vm8186_vm2, 0, %v8185_v23  ;;  %v6172_v17 = vsel %vm6171_vm12, 1, %v14620_v36  ;;  %v6181_v50 = vmul.u32 %v6179_v58, %v6155_v56  ;;  %v6184_v59 = vmul.u32 %v6180_v55, %v6156_v45  ;;  %v14816_v58 = vld [vmem:[#allocation24_spill] sm:$0xff] }
 0x57d   : > { %v6061_v54 = vsub.s32 32, %v6060_v12  ;;  %v6065_v9 = vsub.s32 4294967266, %v6060_v12  ;;  %v6174_v10 = vadd.s32 %v6172_v17, %v6170_v15  ;;  %v6062_v4 = vshll.u32 %v13484_v13, %v6060_v12 }
 0x57e   : > { %v6187_v27 = vshll.u32 %v6183_v37, 16  ;;  %vm6189_vm14 = vc.u32 %v6181_v50, %v6185_v49  ;;  %v6191_v32 = vadd.s32 %v6185_v49, %v6181_v50  ;;  %v6145_v56 = vsel %vm6139_vm4, %v6142_v7, %v6144_v46 }
 0x57f   : > { %v6063_v22 = vshrl.u32 %v6045_v44, %v6061_v54  ;;  %v6066_v51 = vadd.s32 127, %v6065_v9  ;;  %v6175_v52 = vadd.s32 %v6174_v10, %v6164_v8  ;;  %v6190_v62 = vsel %vm6189_vm14, 1, %v14620_v36  ;;  %8229 = vmatmul.msk.f32.gmra.mxu1 %vm935_vm1, %v13387_v21  ;;  %v13523_v44 = vpop.f32.mrf.mxu0 }
 0x580   : > { %v6166_v25 = vshrl.u32 %v6161_v20, 16  ;;  %v6192_v61 = vadd.s32 %v6190_v62, %v6184_v59  ;;  %vm6193_vm11 = vc.u32 %v6191_v32, %v6187_v27  ;;  %v6261_v41 = vand.u32 2147483647, %v14816_v58 }
 0x581   : > { %v6064_v55 = vor.u32 %v6063_v22, %v6062_v4  ;;  %v6067_v45 = vshll.u32 %v6066_v51, 23  ;;  %v6194_v13 = vsel %vm6193_vm11, 1, %v14620_v36  ;;  %vm5953_vm15 = vcmp.lt.s32.totalorder %v12235_v14, 0 }
 0x582   : > { %v13526_v35 = vadd.s32 %v6175_v52, %v6166_v25  ;;  %v6186_v29 = vshrl.u32 %v6182_v30, 16  ;;  %v6196_v21 = vadd.s32 %v6194_v13, %v6192_v61  ;;  %v7307_v2 = vmul.f32 %v13422_v53, %v13480_v26  ;;  %v14821_v52 = vld [vmem:[#allocation29_spill] sm:$0xff] }
 0x583   : > { %vm13532_vm13 = vcmp.le.f32.partialorder %v5951_v34, 0.7853982  ;;  %v6068_v48 = vor.u32 4788187, %v6067_v45  ;;  %v6076_v19 = vsel %vm5953_vm15, %v6075_v60, %v13465_v38  ;;  %v6188_v7 = vshrl.u32 %v6183_v37, 16  ;;  %v14819_v34 = vld [vmem:[#allocation6_spill] sm:$0xff] }
 0x584   : > { %v13539_v63 = vadd.s32 %v6191_v32, %v6187_v27  ;;  %v6197_v57 = vadd.s32 %v6196_v21, %v6186_v29  ;;  %v6199_v30 = vmul.u32 %v13470_v40, %v6145_v56  ;;  %v6071_v23 = vcvt.s32.f32 %v6064_v55  ;;  %v14820_v40 = vld [vmem:[#allocation16_spill] sm:$0xff] }
 0x585   : > { %v6069_v33 = vand.u32 2147483647, %v6068_v48  ;;  %v6268_v26 = vand.u32 8388607, %v6261_v41  ;;  %v6282_v43 = vshrl.u32 %v14622_v1, %v14819_v34  ;;  %v6279_v38 = vshrl.u32 %v14621_v28, %v14819_v34 }
 0x586   : > { %v6198_v46 = vadd.s32 %v6197_v57, %v6188_v7  ;;  %vm6201_vm6 = vc.u32 %v13526_v35, %v13539_v63  ;;  %v6285_v3 = vshrl.u32 %v14623_v0, %v14819_v34  ;;  %v6281_v49 = vshll.u32 %v14621_v28, %v14820_v40 }
 0x587   : > { %v6072_v37 = vmul.f32 %v6071_v23, %v6069_v33  ;;  %v6284_v60 = vshll.u32 %v14622_v1, %v14820_v40  ;;  %v6288_v15 = vshrl.u32 %v14624_v11, %v14819_v34  ;;  %8230 = vmatmul.msk.f32.gmra.mxu1 %vm935_vm1, %v13390_v31  ;;  %v6287_v8 = vshll.u32 %v14623_v0, %v14820_v40  ;;  %v6621_v32 = vpop.f32.mrf.mxu0 }
 0x588   : > { %v6202_v12 = vadd.s32 1, %v6198_v46  ;;  %v6290_v17 = vshll.u32 %v14624_v11, %v14820_v40  ;;  %v6291_v50 = vshrl.u32 %v14625_v16, %v14819_v34  ;;  %v6269_v54 = vor.u32 8388608, %v6268_v26 }
 0x589   : > { %v6073_v28 = vxor.u32 2147483648, %v6072_v37  ;;  %v6278_v1 = vshll.u32 %v14614_v39, %v14820_v40  ;;  %v13568_v9 = vor.u32 %v6282_v43, %v6281_v49  ;;  %v13573_v10 = vor.u32 %v6285_v3, %v6284_v60 }
 0x58a   : > { %v6203_v31 = vsel %vm6201_vm6, %v6202_v12, %v6198_v46  ;;  %v6289_v0 = vor.u32 %v6288_v15, %v6287_v8  ;;  %v6292_v59 = vor.u32 %v6291_v50, %v6290_v17  ;;  %v7308_v4 = vmul.f32 0.5, %v7307_v2 }
 0x58b   : > { %v6074_v11 = vsel %vm5953_vm15, %v6073_v28, %v6072_v37  ;;  %v6078_v16 = vsel %vm13532_vm13, 0, %v6076_v19  ;;  %v6204_v27 = vadd.s32 %v6203_v31, %v6199_v30  ;;  %v13584_v51 = vor.u32 %v6279_v38, %v6278_v1 }
 0x58c   : > { %v13582_v22 = vsel %vm13532_vm13, %v12235_v14, %v6074_v11  ;;  %vm6293_vm4 = vcmp.lt.s32.totalorder %v14821_v52, 1  ;;  %vm6294_vm9 = vcmp.lt.s32.totalorder %v14821_v52, 2  ;;  %vm6295_vm10 = vcmp.lt.s32.totalorder %v14821_v52, 3 }
 0x58d   : > { %v6079_v62 = vmul.f32 %v13582_v22, %v13582_v22  ;;  %v6205_v56 = vadd.s32 536870912, %v6204_v27  ;;  %vm6296_vm8 = vcmp.lt.s32.totalorder %v14821_v52, 4  ;;  %v6305_v61 = vsel %vm6293_vm4, %v13568_v9, %v13573_v10 }
 0x58e   : > { %v6302_v25 = vsel %vm6296_vm8, %v6289_v0, 920167782  ;;  %v6306_v55 = vsel %vm6296_vm8, %v6292_v59, 1326507024  ;;  %v13600_v45 = vshll.u32 %v6269_v54, 8  ;;  %v7309_v20 = vsub.f32 1.5, %v7308_v4 }
 0x58f   : > { %v6080_v13 = vmul.f32 -0.001358992, %v6079_v62  ;;  %v6087_v29 = vmul.f32 -0.00019511016, %v6079_v62  ;;  %v13602_v21 = vshrl.u32 %v6205_v56, 30  ;;  %v6307_v2 = vsel %vm6295_vm10, %v6289_v0, %v6306_v55  ;;  %8231 = vmatmul.msk.f32.gmra.mxu1 %vm935_vm1, %v13461_v18  ;;  %v6624_v28 = vpop.f32.mrf.mxu0 }
 0x590   : > { %v6095_v48 = vadd.s32 3, %v6078_v16  ;;  %v6301_v19 = vsel %vm6293_vm4, %v13584_v51, %v13568_v9  ;;  %v6308_v7 = vsel %vm6294_vm9, %v6305_v61, %v6307_v2  ;;  %v6303_v23 = vsel %vm6295_vm10, %v13573_v10, %v6302_v25 }
 0x591   : > { %v6081_v57 = vadd.f32 0.041655596, %v6080_v13  ;;  %v6088_v30 = vadd.f32 0.008332121, %v6087_v29  ;;  %v6207_v33 = vshll.u32 %v13602_v21, 30  ;;  %v6310_v18 = vand.u32 65535, %v13600_v45 }
 0x592   : > { %v13620_v26 = vshrl.u32 %v13600_v45, 16  ;;  %v6312_v43 = vand.u32 65535, %v6308_v7  ;;  %v6313_v46 = vshrl.u32 %v6308_v7, 16  ;;  %v6619_v38 = vadd.f32 %v13458_v5, %v13523_v44 }
 0x593   : > { %v6082_v3 = vmul.f32 %v6081_v57, %v6079_v62  ;;  %v6089_v37 = vmul.f32 %v6088_v30, %v6079_v62  ;;  %v13624_v40 = vsub.s32 %v6204_v27, %v6207_v33  ;;  %v6622_v49 = vadd.f32 %v13458_v5, %v6621_v32 }
 0x594   : > { %v6304_v60 = vsel %vm6294_vm9, %v6301_v19, %v6303_v23  ;;  %v13629_v15 = vmul.u32 %v6313_v46, %v6310_v18  ;;  %v13632_v12 = vmul.u32 %v6312_v43, %v13620_v26  ;;  %vm7311_vm7 = vweird.f32 %v13300_v47 }
 0x595   : > { %vm7312_vm5 = vweird.f32 %v13422_v53  ;;  %v6083_v8 = vadd.f32 -0.4999988, %v6082_v3  ;;  %v6090_v44 = vadd.f32 -0.16666654, %v6089_v37  ;;  %vm6209_vm3 = vcmp.lt.s32.totalorder %v13624_v40, 0 }
 0x596   : > { %v6210_v17 = vsub.s32 0, %v13624_v40  ;;  %v7310_v50 = vmul.f32 %v13422_v53, %v7309_v20  ;;  %v6096_v54 = vand.u32 3, %v6095_v48  ;;  %v6314_v1 = vmul.u32 %v6312_v43, %v6310_v18 }
 0x597   : > { %v6318_v31 = vshll.u32 %v13629_v15, 16  ;;  %v6084_v0 = vmul.f32 %v6083_v8, %v6079_v62  ;;  %v6091_v59 = vmul.f32 %v6090_v44, %v6079_v62  ;;  %v6335_v11 = vshrl.u32 %v6304_v60, 16  ;;  %8232 = vmatmul.msk.f32.gmra.mxu1 %vm935_vm1, %v6619_v38 }
 0x598   : > { %v6211_v4 = vsel %vm6209_vm3, %v6210_v17, %v13624_v40  ;;  %v6317_v27 = vmul.u32 %v6313_v46, %v13620_v26  ;;  %v6320_v32 = vshll.u32 %v13632_v12, 16  ;;  %vm6094_vm12 = vweird.f32 %v12235_v14  ;;  %vm7313_vm3 = vmor %vm7311_vm7, %vm7312_vm5 }
 0x599   : > { %v6212_v16 = vclz %v6211_v4  ;;  %vm6322_vm2 = vc.u32 %v6314_v1, %v6318_v31  ;;  %v6085_v56 = vadd.f32 1.0, %v6084_v0  ;;  %v6092_v25 = vadd.f32 1.0, %v6091_v59 }
 0x59a   : > { %v6323_v61 = vsel %vm6322_vm2, 1, %v14620_v36  ;;  %v6324_v55 = vadd.s32 %v6318_v31, %v6314_v1  ;;  %vm6097_vm14 = vcmp.lt.s32.totalorder %v6096_v54, 2  ;;  %v6334_v13 = vand.u32 65535, %v6304_v60  ;;  %v6627_v60 = vpop.f32.mrf.mxu0 }
 0x59b   : > { %v8188_v62 = vadd.s32 4294967294, %v6212_v16  ;;  %v6093_v29 = vmul.f32 %v6092_v25, %v13582_v22  ;;  %v6102_v2 = vxor.u32 2147483648, %v6085_v56  ;;  %v6325_v20 = vadd.s32 %v6323_v61, %v6317_v27 }
 0x59c   : > { %vm6326_vm11 = vc.u32 %v6324_v55, %v6320_v32  ;;  %vm6098_vm15 = vcmp.eq.s32.totalorder %v6096_v54, 0  ;;  %v6337_v19 = vmul.u32 %v6335_v11, %v6310_v18  ;;  %vm6101_vm6 = vcmp.eq.s32.totalorder %v6096_v54, 2 }
 0x59d   : > { %vm8189_vm13 = vcmp.lt.s32.totalorder %v8188_v62, 0  ;;  %v6327_v48 = vsel %vm6326_vm11, 1, %v14620_v36  ;;  %v6099_v7 = vxor.u32 2147483648, %v6093_v29  ;;  %v6200_v57 = vadd.s32 %v13539_v63, %v13526_v35 }
 0x59e   : > { %v6215_v30 = vsel %vm8189_vm13, 0, %v8188_v62  ;;  %v6336_v43 = vmul.u32 %v6334_v13, %v6310_v18  ;;  %v6338_v46 = vmul.u32 %v6334_v13, %v13620_v26  ;;  %v6103_v38 = vsel %vm6101_vm6, %v6102_v2, %v6093_v29 }
 0x59f   : > { %v6216_v33 = vsub.s32 32, %v6215_v30  ;;  %v6220_v23 = vsub.s32 4294967266, %v6215_v30  ;;  %v6100_v22 = vsel %vm6098_vm15, %v6085_v56, %v6099_v7  ;;  %v6329_v3 = vadd.s32 %v6327_v48, %v6325_v20  ;;  %8233 = vmatmul.msk.f32.gmra.mxu1 %vm935_vm1, %v6622_v49 }
 0x5a0   : > { %v6340_v37 = vshll.u32 %v6337_v19, 16  ;;  %v6104_v35 = vsel %vm6097_vm14, %v6100_v22, %v6103_v38  ;;  %v6217_v63 = vshll.u32 %v13624_v40, %v6215_v30  ;;  %v6319_v17 = vshrl.u32 %v13629_v15, 16 }
 0x5a1   : > { %v6218_v8 = vshrl.u32 %v6200_v57, %v6216_v33  ;;  %v6221_v18 = vadd.s32 127, %v6220_v23  ;;  %v6105_v44 = vsel %vm6094_vm12, nan, %v6104_v35  ;;  %v6339_v1 = vmul.u32 %v6335_v11, %v13620_v26  ;;  %v14822_v11 = vld [vmem:[#allocation18_spill] sm:$0xff] }
 0x5a2   : > { %vm6344_vm2 = vc.u32 %v6336_v43, %v6340_v37  ;;  %8222 = vmatmul.msk.f32.gmra.mxu2 %vm935_vm1, %v6105_v44  ;;  %v6346_v54 = vadd.s32 %v6340_v37, %v6336_v43  ;;  %v13665_v0 = vsel %vm7313_vm3, %v13422_v53, %v7310_v50  ;;  %v6342_v40 = vshll.u32 %v6338_v46, 16  ;;  %v6630_v62 = vpop.f32.mrf.mxu0 }
 0x5a3   : > { %v6219_v49 = vor.u32 %v6218_v8, %v6217_v63  ;;  %v6222_v47 = vshll.u32 %v6221_v18, 23  ;;  %v6345_v31 = vsel %vm6344_vm2, 1, %v14620_v36  ;;  %v6625_v14 = vadd.f32 %v13458_v5, %v6624_v28 }
 0x5a4   : > { %v6347_v59 = vadd.s32 %v6345_v31, %v6339_v1  ;;  %v7322_v15 = vmul.f32 %v13665_v0, %v12921_v6  ;;  %v6330_v26 = vadd.s32 %v6329_v3, %v6319_v17  ;;  %v7321_v16 = vmul.f32 %v13665_v0, %v14822_v11 }
 0x5a5   : > { %v6223_v4 = vor.u32 4788187, %v6222_v47  ;;  %v6277_v27 = vshrl.u32 %v14614_v39, %v14819_v34  ;;  %v6298_v53 = vsel %vm6296_vm8, %v13573_v10, 2102212464  ;;  %vm6348_vm7 = vc.u32 %v6346_v54, %v6342_v40 }
 0x5a6   : > { %v6226_v32 = vcvt.s32.f32 %v6219_v49  ;;  %7335 = vmatpush.msrb.mxu3 %v7322_v15  ;;  %v6321_v28 = vshrl.u32 %v13632_v12, 16  ;;  %v6349_v56 = vsel %vm6348_vm7, 1, %v14620_v36  ;;  %v6341_v6 = vshrl.u32 %v6337_v19, 16 }
 0x5a7   : > { %v6224_v50 = vand.u32 2147483647, %v6223_v4  ;;  %v6351_v25 = vadd.s32 %v6349_v56, %v6347_v59  ;;  %8234 = vmatmul.msk.f32.gmra.mxu1 %vm935_vm1, %v6625_v14  ;;  %v6297_v39 = vsel %vm6293_vm4, %v6277_v27, %v13584_v51  ;;  %v6299_v34 = vsel %vm6295_vm10, %v13568_v9, %v6298_v53  ;;  %v14826_v51 = vld [vmem:[#allocation39_spill] sm:$0xff] }
 0x5a8   : > { %7336 = vmatpush.msrb.mxu3 %v7321_v16  ;;  %v13686_v10 = vadd.s32 %v6330_v26, %v6321_v28  ;;  %v6343_v55 = vshrl.u32 %v6338_v46, 16  ;;  %v6350_v13 = vadd.s32 %v6346_v54, %v6342_v40  ;;  %vm6108_vm8 = vcmp.lt.s32.totalorder %v12385_v42, 0 }
 0x5a9   : > { %v6227_v61 = vmul.f32 %v6226_v32, %v6224_v50  ;;  %v6352_v12 = vadd.s32 %v6351_v25, %v6341_v6  ;;  %v6300_v29 = vsel %vm6294_vm9, %v6297_v39, %v6299_v34  ;;  %vm13693_vm4 = vcmp.le.f32.partialorder %v6106_v24, 0.7853982 }
 0x5aa   : > { %vm6356_vm10 = vc.u32 %v13686_v10, %v6350_v13  ;;  %v6628_v20 = vadd.f32 %v13458_v5, %v6627_v60  ;;  %v6230_v48 = vsub.s32 4, %v13602_v21  ;;  %v6354_v24 = vmul.u32 %v13600_v45, %v6300_v29  ;;  %v6633_v3 = vpop.f32.mrf.mxu0 }
 0x5ab   : > { %v6228_v36 = vxor.u32 2147483648, %v6227_v61  ;;  %v6353_v2 = vadd.s32 %v6352_v12, %v6343_v55  ;;  %v6631_v63 = vadd.f32 %v13458_v5, %v6630_v62  ;;  %v6634_v15 = vadd.f32 %v13458_v5, %v6633_v3 }
 0x5ac   : > { %v6231_v43 = vsel %vm6108_vm8, %v6230_v48, %v13602_v21  ;;  %vm6249_vm11 = vweird.f32 %v12385_v42  ;;  %v6355_v6 = vadd.s32 %v6350_v13, %v13686_v10  ;;  %v7480_v10 = vld [vmem:[%s14415_s21] sm:$0xff]  ;;  %v7481_v13 = vld [vmem:[%s14415_s21 + $0x8] sm:$0xff]  ;;  %v7482_v48 = vld [vmem:[%s14415_s21 + $0x10] sm:$0xff]  ;;  %vm6263_vm13 = vcmp.lt.s32.totalorder %v14816_v58, 0 }
 0x5ad   : > { %v6229_v9 = vsel %vm6108_vm8, %v6228_v36, %v6227_v61  ;;  %v6357_v19 = vadd.s32 1, %v6353_v2  ;;  %v6233_v37 = vsel %vm13693_vm4, 0, %v6231_v43  ;;  %vm13775_vm6 = vcmp.le.f32.partialorder %v6261_v41, 0.7853982 }
 0x5ae   : > { %v6232_v52 = vsel %vm13693_vm4, %v12385_v42, %v6229_v9  ;;  %v6250_v17 = vadd.s32 3, %v6233_v37  ;;  %v14825_v42 = vld [vmem:[#allocation19_spill] sm:$0xff]  ;;  %v7319_v9 = vmul.f32 %v13665_v0, %v14826_v51  ;;  %vm6404_vm8 = vweird.f32 %v14816_v58 }
 0x5af   : > { %v6234_v7 = vmul.f32 %v6232_v52, %v6232_v52  ;;  %v6358_v57 = vsel %vm6356_vm10, %v6357_v19, %v6353_v2  ;;  %8235 = vmatmul.msk.f32.gmra.mxu1 %vm935_vm1, %v6628_v20  ;;  %v7320_v29 = vmul.f32 %v13665_v0, %v14825_v42  ;;  %v13728_v20 = vpop.f32.mrf.mxu2  ;;  %v7458_v19 = vpop.xlane.xlu2 %7457  ;;  %v7487_v42 = vld [vmem:[%s14415_s21 + $0x38] sm:$0xff] }
 0x5b0   : > { %v6359_v23 = vadd.s32 %v6358_v57, %v6354_v24  ;;  %v6251_v40 = vand.u32 3, %v6250_v17  ;;  %v14827_v24 = vld [vmem:[#allocation13_spill] sm:$0xff] }
 0x5b1   : > { %v6235_v30 = vmul.f32 -0.001358992, %v6234_v7  ;;  %v6242_v33 = vmul.f32 -0.00019511016, %v6234_v7  ;;  %7337 = vmatpush.msrb.mxu3 %v7320_v29  ;;  %v7318_v57 = vmul.f32 %v13665_v0, %v14827_v24 }
 0x5b2   : > { %v6360_v38 = vadd.s32 536870912, %v6359_v23  ;;  %v6636_v16 = vpop.f32.mrf.mxu0  ;;  %vm6253_vm5 = vcmp.eq.s32.totalorder %v6251_v40, 0  ;;  %vm6256_vm12 = vcmp.eq.s32.totalorder %v6251_v40, 2  ;;  %vm6252_vm14 = vcmp.lt.s32.totalorder %v6251_v40, 2 }
 0x5b3   : > { %v6236_v46 = vadd.f32 0.041655596, %v6235_v30  ;;  %v6243_v22 = vadd.f32 0.008332121, %v6242_v33  ;;  %v6637_v39 = vadd.f32 %v13458_v5, %v6636_v16  ;;  %v13741_v30 = vmul.f32 %v7480_v10, %v7458_v19  ;;  %7338 = vmatpush.msrb.mxu3 %v7319_v9 }
 0x5b4   : > { %v13712_v45 = vshrl.u32 %v6360_v38, 30  ;;  %v14828_v38 = vld [vmem:[#allocation12_spill] sm:$0xff] }
 0x5b5   : > { %v6237_v60 = vmul.f32 %v6236_v46, %v6234_v7  ;;  %v6244_v35 = vmul.f32 %v6243_v22, %v6234_v7  ;;  %v7317_v3 = vmul.f32 %v13665_v0, %v14828_v38  ;;  %v7496_v37 = vmul.f32 %v13741_v30, %v13741_v30  ;;  %7339 = vmatpush.msrb.mxu3 %v7318_v57 }
 0x5b6   : > { %v6362_v44 = vshll.u32 %v13712_v45, 30 }
 0x5b7   : > { %v6238_v8 = vadd.f32 -0.4999988, %v6237_v60  ;;  %v6245_v18 = vadd.f32 -0.16666654, %v6244_v35  ;;  %8236 = vmatmul.msk.f32.gmra.mxu1 %vm935_vm1, %v6631_v63  ;;  %7340 = vmatpush.msrb.mxu3 %v7317_v3  ;;  %v13768_v40 = vpop.f32.mrf.mxu2 }
 0x5b8   : > { %v6363_v49 = vsub.s32 %v6359_v23, %v6362_v44  ;;  %v7464_v23 = vpop.xlane.xlu1 %7463 }
 0x5b9   : > { %v6239_v21 = vmul.f32 %v6238_v8, %v6234_v7  ;;  %v6246_v1 = vmul.f32 %v6245_v18, %v6234_v7  ;;  %v7461_v7 = vpop.xlane.xlu0 %7460  ;;  %v13745_v22 = vmul.f32 %v7482_v48, %v7464_v23  ;;  %v14829_v8 = vld [vmem:[#allocation10_spill] sm:$0xff] }
 0x5ba   : > { %vm6364_vm9 = vcmp.lt.s32.totalorder %v6363_v49, 0  ;;  %v6365_v54 = vsub.s32 0, %v6363_v49  ;;  %v6639_v2 = vpop.f32.mrf.mxu0  ;;  %v13743_v33 = vmul.f32 %v7481_v13, %v7461_v7  ;;  %v7316_v18 = vmul.f32 %v13665_v0, %v14829_v8 }
 0x5bb   : > { %v6240_v47 = vadd.f32 1.0, %v6239_v21  ;;  %v6247_v31 = vadd.f32 1.0, %v6246_v1  ;;  %v6640_v63 = vadd.f32 %v13458_v5, %v6639_v2  ;;  %v7498_v17 = vmul.f32 %v13745_v22, %v13745_v22  ;;  %v7483_v1 = vld [vmem:[%s14415_s21 + $0x18] sm:$0xff] }
 0x5bc   : > { %v6366_v4 = vsel %vm6364_vm9, %v6365_v54, %v6363_v49  ;;  %v7497_v60 = vmul.f32 %v13743_v33, %v13743_v33  ;;  %7341 = vmatpush.msrb.mxu3 %v7316_v18 }
 0x5bd   : > { %v6248_v59 = vmul.f32 %v6247_v31, %v6232_v52  ;;  %v6257_v14 = vxor.u32 2147483648, %v6240_v47  ;;  %v6367_v26 = vclz %v6366_v4  ;;  %v14830_v31 = vld [vmem:[#allocation36_spill] sm:$0xff] }
 0x5be   : > { %v7504_v44 = vadd.f32 %v7497_v60, %v7496_v37  ;;  %v7315_v54 = vmul.f32 %v13665_v0, %v14830_v31 }
 0x5bf   : > { %v6254_v11 = vxor.u32 2147483648, %v6248_v59  ;;  %v8191_v27 = vadd.s32 4294967294, %v6367_v26  ;;  %8237 = vmatmul.msk.f32.gmra.mxu1 %vm935_vm1, %v6634_v15  ;;  %v6258_v50 = vsel %vm6256_vm12, %v6257_v14, %v6248_v59  ;;  %v7485_v59 = vld [vmem:[%s14415_s21 + $0x28] sm:$0xff]  ;;  %v6385_v15 = vsub.s32 4, %v13712_v45  ;;  %v7467_v26 = vpop.xlane.xlu2 %7466  ;;  %v6654_v51 = vpop.f32.mrf.mxu2 }
 0x5c0   : > { %v7505_v16 = vadd.f32 %v7504_v44, %v7498_v17  ;;  %v7473_v41 = vpop.xlane.xlu1 %7472  ;;  %7342 = vmatpush.msrb.mxu3 %v7315_v54 }
 0x5c1   : > { %v6255_v53 = vsel %vm6253_vm5, %v6240_v47, %v6254_v11  ;;  %vm8192_vm15 = vcmp.lt.s32.totalorder %v8191_v27, 0  ;;  %v7470_v11 = vpop.xlane.xlu0 %7469 }
 0x5c2   : > { %v6259_v32 = vsel %vm6252_vm14, %v6255_v53, %v6258_v50  ;;  %v6370_v56 = vsel %vm8192_vm15, 0, %v8191_v27  ;;  %v6642_v47 = vpop.f32.mrf.mxu0  ;;  %v13785_v27 = vmul.f32 %v7483_v1, %v7467_v26 }
 0x5c3   : > { %v6260_v28 = vsel %vm6249_vm11, nan, %v6259_v32  ;;  %v6371_v25 = vsub.s32 32, %v6370_v56  ;;  %v6375_v61 = vsub.s32 4294967266, %v6370_v56  ;;  %v6372_v34 = vshll.u32 %v6363_v49, %v6370_v56  ;;  %v7484_v49 = vld [vmem:[%s14415_s21 + $0x20] sm:$0xff] }
 0x5c4   : > { %8223 = vmatmul.msk.f32.gmra.mxu2 %vm935_vm1, %v6260_v28  ;;  %v13787_v53 = vmul.f32 %v7484_v49, %v7470_v11  ;;  %v13789_v32 = vmul.f32 %v7485_v59, %v7473_v41  ;;  %v7499_v28 = vmul.f32 %v13785_v27, %v13785_v27 }
 0x5c5   : > { %v6373_v55 = vshrl.u32 %v6355_v6, %v6371_v25  ;;  %v6376_v12 = vadd.s32 127, %v6375_v61  ;;  %v6643_v61 = vadd.f32 %v13458_v5, %v6642_v47 }
 0x5c6   : > { %v7500_v56 = vmul.f32 %v13787_v53, %v13787_v53 }
 0x5c7   : > { %v6374_v62 = vor.u32 %v6373_v55, %v6372_v34  ;;  %v6377_v36 = vshll.u32 %v6376_v12, 23  ;;  %8238 = vmatmul.msk.f32.gmra.mxu1 %vm935_vm1, %v6637_v39  ;;  %v6386_v39 = vsel %vm6263_vm13, %v6385_v15, %v13712_v45  ;;  %v7506_v34 = vadd.f32 %v7505_v16, %v7499_v28  ;;  %v7476_v48 = vpop.xlane.xlu2 %7475  ;;  %v6657_v49 = vpop.f32.mrf.mxu2 }
 0x5c8   : > { %v7501_v55 = vmul.f32 %v13789_v32, %v13789_v32  ;;  %v6388_v45 = vsel %vm13775_vm6, 0, %v6386_v39 }
 0x5c9   : > { %v6378_v52 = vor.u32 4788187, %v6377_v36  ;;  %v6381_v46 = vcvt.s32.f32 %v6374_v62  ;;  %v7486_v36 = vld [vmem:[%s14415_s21 + $0x30] sm:$0xff]  ;;  %v7507_v2 = vadd.f32 %v7506_v34, %v7500_v56  ;;  %v6655_v56 = vadd.f32 %v13458_v5, %v6654_v51 }
 0x5ca   : > { %v6645_v29 = vpop.f32.mrf.mxu0  ;;  %v13811_v7 = vmul.f32 %v7486_v36, %v7476_v48  ;;  %v6658_v36 = vadd.f32 %v13458_v5, %v6657_v49 }
 0x5cb   : > { %v6379_v43 = vand.u32 2147483647, %v6378_v52  ;;  %v6646_v13 = vadd.f32 %v13458_v5, %v6645_v29  ;;  %v7479_v52 = vpop.xlane.xlu0 %7478  ;;  %v7508_v19 = vadd.f32 %v7507_v2, %v7501_v55 }
 0x5cc   : > { %v13813_v24 = vmul.f32 %v7487_v42, %v7479_v52 }
 0x5cd   : > { %v6382_v35 = vmul.f32 %v6381_v46, %v6379_v43  ;;  %8241 = vmatmul.msk.f32.vlgmr.msra.gmra.mxu3 %vm935_vm1, %v6646_v13  ;;  %v6405_v43 = vadd.s32 3, %v6388_v45  ;;  %v7502_v46 = vmul.f32 %v13811_v7, %v13811_v7 }
 0x5ce   : > { %v7503_v38 = vmul.f32 %v13813_v24, %v13813_v24 }
 0x5cf   : > { %v6383_v21 = vxor.u32 2147483648, %v6382_v35  ;;  %8239 = vmatmul.msk.f32.gmra.mxu1 %vm935_vm1, %v6640_v63  ;;  %v7509_v60 = vadd.f32 %v7508_v19, %v7502_v46  ;;  %v6406_v8 = vand.u32 3, %v6405_v43  ;;  %v6660_v41 = vpop.f32.mrf.mxu2 }
 0x5d0   : > { %v6661_v45 = vadd.f32 %v13458_v5, %v6660_v41 }
 0x5d1   : > { %v6384_v4 = vsel %vm6263_vm13, %v6383_v21, %v6382_v35  ;;  %v7510_v18 = vadd.f32 %v7509_v60, %v7503_v38  ;;  %v6649_v21 = vadd.f32 %v13458_v5, %v13728_v20  ;;  %vm6408_vm3 = vcmp.eq.s32.totalorder %v6406_v8, 0 }
 0x5d2   : > { %v6387_v0 = vsel %vm13775_vm6, %v14816_v58, %v6384_v4  ;;  %vm6411_vm2 = vcmp.eq.s32.totalorder %v6406_v8, 2  ;;  %vm6407_vm7 = vcmp.lt.s32.totalorder %v6406_v8, 2  ;;  %v6652_v20 = vadd.f32 %v13458_v5, %v13768_v40  ;;  %v6972_v58 = vld [vmem:[%s14409_s15 + $0x30] sm:$0xff]  ;;  %v6970_v40 = vld [vmem:[%s14409_s15 + $0x20] sm:$0xff] }
 0x5d3   : > { %v6389_v50 = vmul.f32 %v6387_v0, %v6387_v0  ;;  %v7511_v1 = vrot.slane %v7510_v18, 4 }
 0x5d5   : > { %v6390_v6 = vmul.f32 -0.001358992, %v6389_v50  ;;  %v6397_v25 = vmul.f32 -0.00019511016, %v6389_v50  ;;  %8242 = vmatmul.msk.f32.gmra.mxu3 %vm935_vm1, %v6649_v21  ;;  %v7512_v31 = vadd.f32 %v7511_v1, %v7510_v18 }
 0x5d7   : > { %v6391_v12 = vadd.f32 0.041655596, %v6390_v6  ;;  %v6398_v62 = vadd.f32 0.008332121, %v6397_v25  ;;  %8240 = vmatmul.msk.f32.gmra.mxu1 %vm935_vm1, %v6643_v61  ;;  %v7513_v4 = vrot.slane %v7512_v31, 2  ;;  %v6969_v6 = vld [vmem:[%s14409_s15 + $0x18] sm:$0xff]  ;;  %v6663_v34 = vpop.f32.mrf.mxu2 }
 0x5d8   : > { %v6968_v25 = vld [vmem:[%s14409_s15 + $0x10] sm:$0xff]  ;;  %v6967_v61 = vld [vmem:[%s14409_s15 + $0x8] sm:$0xff] }
 0x5d9   : > { %v6392_v9 = vmul.f32 %v6391_v12, %v6389_v50  ;;  %v6399_v10 = vmul.f32 %v6398_v62, %v6389_v50  ;;  %v7514_v26 = vadd.f32 %v7513_v4, %v7512_v31  ;;  %v6966_v12 = vld [vmem:[%s14409_s15] sm:$0xff] }
 0x5db   : > { %v6393_v57 = vadd.f32 -0.4999988, %v6392_v9  ;;  %v6400_v23 = vadd.f32 -0.16666654, %v6399_v10  ;;  %v7515_v11 = vrot.slane %v7514_v26, 1 }
 0x5dd   : > { %v6394_v3 = vmul.f32 %v6393_v57, %v6389_v50  ;;  %v6401_v37 = vmul.f32 %v6400_v23, %v6389_v50  ;;  %8243 = vmatmul.msk.f32.gmra.mxu3 %vm935_vm1, %v6652_v20  ;;  %v7516_v16 = vadd.f32 %v7515_v11, %v7514_v26  ;;  %v6971_v50 = vld [vmem:[%s14409_s15 + $0x28] sm:$0xff]  ;;  %v6664_v57 = vadd.f32 %v13458_v5, %v6663_v34 }
 0x5df   : > { %v6395_v35 = vadd.f32 1.0, %v6394_v3  ;;  %v6402_v63 = vadd.f32 1.0, %v6401_v37  ;;  %v7517_v28 = vadd.f32 1e-08, %v7516_v16  ;;  %v6666_v51 = vpop.f32.mrf.mxu2 }
 0x5e1   : > { %v6403_v44 = vmul.f32 %v6402_v63, %v6387_v0  ;;  %v6412_v17 = vxor.u32 2147483648, %v6395_v35  ;;  %v6973_v0 = vld [vmem:[%s14409_s15 + $0x38] sm:$0xff]  ;;  %8456 = vrsqrt.f32 %v7517_v28  ;;  %vm7524_vm4 = vweird.f32 %v7517_v28 }
 0x5e2   : > { %7082 = vmatpush.msrb.mxu2 %v6973_v0 }
 0x5e3   : > { %v6409_v47 = vxor.u32 2147483648, %v6403_v44  ;;  %v6413_v59 = vsel %vm6411_vm2, %v6412_v17, %v6403_v44 }
 0x5e4   : > { %7083 = vmatpush.msrb.mxu2 %v6972_v58 }
 0x5e5   : > { %v6410_v54 = vsel %vm6408_vm3, %v6395_v35, %v6409_v47  ;;  %8244 = vmatmul.msk.f32.gmra.mxu3 %vm935_vm1, %v6655_v56 }
 0x5e6   : > { %v6414_v14 = vsel %vm6407_vm7, %v6410_v54, %v6413_v59  ;;  %7084 = vmatpush.msrb.mxu2 %v6971_v50 }
 0x5e7   : > { %v6415_v15 = vsel %vm6404_vm8, nan, %v6414_v14  ;;  %v8457_v39 = vpop.eup %8456  ;;  %v6669_v23 = vpop.f32.mrf.mxu2 }
 0x5e8   : > { %8224 = vmatmul.msk.f32.gmra.mxu2 %vm935_vm1, %v6415_v15  ;;  %v7519_v55 = vmul.f32 %v8457_v39, %v7517_v28  ;;  %vm7525_vm10 = vweird.f32 %v8457_v39 }
 0x5e9   : > { %7085 = vmatpush.msrb.mxu2 %v6970_v40  ;;  %vm7526_vm9 = vmor %vm7524_vm4, %vm7525_vm10 }
 0x5ea   : > { %v7520_v62 = vmul.f32 %v8457_v39, %v7519_v55 }
 0x5eb   : > { %7086 = vmatpush.msrb.mxu2 %v6969_v6 }
 0x5ec   : > { %v7521_v42 = vmul.f32 0.5, %v7520_v62 }
 0x5ed   : > { %7087 = vmatpush.msrb.mxu2 %v6968_v25  ;;  %8245 = vmatmul.msk.f32.gmra.mxu3 %vm935_vm1, %v6658_v36 }
 0x5ee   : > { %v7522_v29 = vsub.f32 1.5, %v7521_v42 }
 0x5ef   : > { %7088 = vmatpush.msrb.mxu2 %v6967_v61 }
 0x5f0   : > { %v7523_v2 = vmul.f32 %v8457_v39, %v7522_v29 }
 0x5f1   : > { %7089 = vmatpush.msrb.mxu2 %v6966_v12 }
 0x5f2   : > { %v7527_v9 = vsel %vm7526_vm9, %v8457_v39, %v7523_v2 }
 0x5f3   : > { %v7535_v10 = vmul.f32 %v7527_v9, %v13813_v24  ;;  %v7534_v13 = vmul.f32 %v7527_v9, %v13811_v7  ;;  %v7533_v48 = vmul.f32 %v7527_v9, %v13789_v32  ;;  %v7532_v52 = vmul.f32 %v7527_v9, %v13787_v53  ;;  %v13869_v32 = vld [vmem:[%s14408_s14] ss:$0 sm:$0xff]  ;;  %v6870_v24 = vpop.f32.mrf.mxu1 }
 0x5f4   : > { %v7531_v19 = vmul.f32 %v7527_v9, %v13785_v27  ;;  %v7530_v7 = vmul.f32 %v7527_v9, %v13745_v22  ;;  %v7529_v53 = vmul.f32 %v7527_v9, %v13743_v33  ;;  %v13873_v27 = vadd.f32 %v13869_v32, %v6870_v24  ;;  %v6672_v33 = vpop.f32.mrf.mxu2 }
 0x5f5   : > { %8246 = vmatmul.msk.f32.gmra.mxu3 %vm935_vm1, %v6661_v45  ;;  %7644 = vmatpush.msrb.mxu0 %v7535_v10  ;;  %v7528_v43 = vmul.f32 %v7527_v9, %v13741_v30  ;;  %v6667_v22 = vadd.f32 %v13458_v5, %v6666_v51  ;;  %v8464_v30 = vld [vmem:[%s14405_s11] ss:$0 sm:$0xff] }
 0x5f6   : > { %8366 = vmatpush.msra.mxu2 %v7535_v10  ;;  %v6670_v3 = vadd.f32 %v8464_v30, %v6669_v23  ;;  %v6673_v35 = vadd.f32 %v8464_v30, %v6672_v33 }
 0x5f7   : > { %7645 = vmatpush.msrb.mxu0 %v7534_v13  ;;  %8257 = vmatmul.msk.f32.vlgmr.msrb.gmra.mxu2 %vm6427_vm0, %v13873_v27 }
 0x5f8   : > { %8367 = vmatpush.msra.mxu2 %v7534_v13 }
 0x5f9   : > { %7646 = vmatpush.msrb.mxu0 %v7533_v48 }
 0x5fa   : > { %8368 = vmatpush.msra.mxu2 %v7533_v48 }
 0x5fb   : > { %7647 = vmatpush.msrb.mxu0 %v7532_v52  ;;  %v6873_v46 = vpop.f32.mrf.mxu1 }
 0x5fc   : > { %8369 = vmatpush.msra.mxu2 %v7532_v52  ;;  %v6874_v38 = vadd.f32 %v13869_v32, %v6873_v46  ;;  %v6675_v60 = vpop.f32.mrf.mxu2 }
 0x5fd   : > { %8247 = vmatmul.msk.f32.gmra.mxu3 %vm935_vm1, %v6664_v57  ;;  %7648 = vmatpush.msrb.mxu0 %v7531_v19  ;;  %v6676_v44 = vadd.f32 %v8464_v30, %v6675_v60 }
 0x5fe   : > { %8370 = vmatpush.msra.mxu2 %v7531_v19 }
 0x5ff   : > { %7649 = vmatpush.msrb.mxu0 %v7530_v7  ;;  %8258 = vmatmul.msk.f32.gmra.mxu2 %vm6427_vm0, %v6874_v38 }
 0x600   : > { %8371 = vmatpush.msra.mxu2 %v7530_v7 }
 0x601   : > { %7650 = vmatpush.msrb.mxu0 %v7529_v53 }
 0x602   : > { %8372 = vmatpush.msra.mxu2 %v7529_v53 }
 0x603   : > { %7651 = vmatpush.msrb.mxu0 %v7528_v43  ;;  %v6876_v37 = vpop.f32.mrf.mxu1 }
 0x604   : > { %8373 = vmatpush.msra.mxu2 %v7528_v43  ;;  %v6877_v5 = vadd.f32 %v13869_v32, %v6876_v37  ;;  %v6678_v8 = vpop.f32.mrf.mxu2  ;;  %v7764_v37 = vld [vmem:[%s14417_s23 + $0x78] sm:$0xff] }
 0x605   : > { %8248 = vmatmul.msk.f32.gmra.mxu3 %vm935_vm1, %v6667_v22  ;;  %v6679_v17 = vadd.f32 %v8464_v30, %v6678_v8  ;;  %7769 = vmatpush.msrb.mxu1 %v7764_v37 }
 0x607   : > { %8259 = vmatmul.msk.f32.gmra.mxu2 %vm6427_vm0, %v6877_v5 }
 0x60b   : > { %v6879_v63 = vpop.f32.mrf.mxu1 }
 0x60c   : > { %v6880_v18 = vadd.f32 %v13869_v32, %v6879_v63  ;;  %v6681_v21 = vpop.f32.mrf.mxu2 }
 0x60d   : > { %8249 = vmatmul.msk.f32.gmra.mxu3 %vm935_vm1, %v6670_v3  ;;  %v6682_v1 = vadd.f32 %v8464_v30, %v6681_v21 }
 0x60f   : > { %8260 = vmatmul.msk.f32.gmra.mxu2 %vm6427_vm0, %v6880_v18 }
 0x613   : > { %v6882_v59 = vpop.f32.mrf.mxu1 }
 0x614   : > { %v6883_v14 = vadd.f32 %v13869_v32, %v6882_v59 }
 0x615   : > { %8250 = vmatmul.msk.f32.gmra.mxu3 %vm935_vm1, %v6673_v35  ;;  %v7763_v35 = vld [vmem:[%s14417_s23 + $0x70] sm:$0xff] }
 0x616   : > { %7770 = vmatpush.msrb.mxu1 %v7763_v35 }
 0x617   : > { %8261 = vmatmul.msk.f32.gmra.mxu2 %vm6427_vm0, %v6883_v14 }
 0x61b   : > { %v6885_v4 = vpop.f32.mrf.mxu1 }
 0x61c   : > { %v6886_v15 = vadd.f32 %v13869_v32, %v6885_v4 }
 0x61d   : > { %8251 = vmatmul.msk.f32.gmra.mxu3 %vm935_vm1, %v6676_v44  ;;  %v7762_v44 = vld [vmem:[%s14417_s23 + $0x68] sm:$0xff] }
 0x61e   : > { %7771 = vmatpush.msrb.mxu1 %v7762_v44 }
 0x61f   : > { %8262 = vmatmul.msk.f32.gmra.mxu2 %vm6427_vm0, %v6886_v15 }
 0x623   : > { %v6888_v26 = vpop.f32.mrf.mxu1 }
 0x624   : > { %v6889_v20 = vadd.f32 %v13869_v32, %v6888_v26 }
 0x625   : > { %8252 = vmatmul.msk.f32.gmra.mxu3 %vm935_vm1, %v6679_v17  ;;  %v6684_v49 = vpop.f32.mrf.mxu2 }
 0x626   : > { %v6685_v47 = vadd.f32 %v8464_v30, %v6684_v49 }
 0x627   : > { %8263 = vmatmul.msk.f32.gmra.mxu2 %vm6427_vm0, %v6889_v20 }
 0x62b   : > { %v6891_v0 = vpop.f32.mrf.mxu1 }
 0x62c   : > { %v6892_v58 = vadd.f32 %v13869_v32, %v6891_v0 }
 0x62d   : > { %8253 = vmatmul.msk.f32.gmra.mxu3 %vm935_vm1, %v6682_v1  ;;  %v13993_v1 = vld [vmem:[%s14413_s19] ss:$0 sm:$0xff] }
 0x62f   : > { %8264 = vmatmul.msk.f32.gmra.mxu2 %vm6427_vm0, %v6892_v58 }
 0x633   : > { %v6894_v28 = vpop.f32.mrf.mxu1 }
 0x634   : > { %v6895_v40 = vadd.f32 %v13869_v32, %v6894_v28  ;;  %v7758_v28 = vld [vmem:[%s14417_s23 + $0x48] sm:$0xff] }
 0x635   : > { %8254 = vmatmul.msk.f32.gmra.mxu3 %vm935_vm1, %v6685_v47 }
 0x637   : > { %8265 = vmatmul.msk.f32.gmra.mxu2 %vm6427_vm0, %v6895_v40 }
 0x63b   : > { %v6897_v6 = vpop.f32.mrf.mxu1 }
 0x63c   : > { %v6898_v25 = vadd.f32 %v13869_v32, %v6897_v6 }
 0x63f   : > { %8266 = vmatmul.msk.f32.gmra.mxu2 %vm6427_vm0, %v6898_v25 }
 0x643   : > { %v6900_v39 = vpop.f32.mrf.mxu1 }
 0x644   : > { %v6901_v34 = vadd.f32 %v13869_v32, %v6900_v39 }
 0x647   : > { %v6687_v31 = vpop.f32.mrf.mxu2  ;;  %8267 = vmatmul.msk.f32.gmra.mxu2 %vm6427_vm0, %v6901_v34 }
 0x648   : > { %v6688_v54 = vadd.f32 %v8464_v30, %v6687_v31  ;;  %v7761_v31 = vld [vmem:[%s14417_s23 + $0x60] sm:$0xff] }
 0x649   : > { %7772 = vmatpush.msrb.mxu1 %v7761_v31 }
 0x64a   : > { %8255 = vmatmul.msk.f32.gmra.mxu3 %vm935_vm1, %v6688_v54 }
 0x64b   : > { %v6903_v12 = vpop.f32.mrf.mxu1 }
 0x64c   : > { %v6904_v62 = vadd.f32 %v13869_v32, %v6903_v12 }
 0x64f   : > { %8268 = vmatmul.msk.f32.gmra.mxu2 %vm6427_vm0, %v6904_v62 }
 0x650   : > { %v6918_v11 = vpop.f32.mrf.mxu3 }
 0x651   : > { %v6919_v57 = vadd.f32 %v13869_v32, %v6918_v11 }
 0x653   : > { %v6906_v36 = vpop.f32.mrf.mxu1 }
 0x654   : > { %v6907_v29 = vadd.f32 %v13869_v32, %v6906_v36 }
 0x657   : > { %8269 = vmatmul.msk.f32.gmra.mxu2 %vm6427_vm0, %v6907_v29 }
 0x658   : > { %v6921_v16 = vpop.f32.mrf.mxu3 }
 0x659   : > { %v6922_v23 = vadd.f32 %v13869_v32, %v6921_v16 }
 0x65b   : > { %v6909_v2 = vpop.f32.mrf.mxu1 }
 0x65c   : > { %v6910_v51 = vadd.f32 %v13869_v32, %v6909_v2 }
 0x65f   : > { %8270 = vmatmul.msk.f32.gmra.mxu2 %vm6427_vm0, %v6910_v51 }
 0x660   : > { %v6924_v56 = vpop.f32.mrf.mxu3 }
 0x661   : > { %v6925_v24 = vadd.f32 %v13869_v32, %v6924_v56 }
 0x663   : > { %v6912_v9 = vpop.f32.mrf.mxu1 }
 0x664   : > { %v6913_v10 = vadd.f32 %v13869_v32, %v6912_v9  ;;  %v7754_v9 = vld [vmem:[%s14417_s23 + $0x28] sm:$0xff] }
 0x667   : > { %8271 = vmatmul.msk.f32.gmra.mxu2 %vm6427_vm0, %v6913_v10 }
 0x668   : > { %v6927_v61 = vpop.f32.mrf.mxu3 }
 0x66b   : > { %v6690_v41 = vpop.f32.mrf.mxu2  ;;  %v6915_v48 = vpop.f32.mrf.mxu1 }
 0x66c   : > { %v6691_v50 = vadd.f32 %v8464_v30, %v6690_v41  ;;  %v6916_v52 = vadd.f32 %v13869_v32, %v6915_v48  ;;  %v7753_v48 = vld [vmem:[%s14417_s23 + $0x20] sm:$0xff] }
 0x66e   : > { %8256 = vmatmul.msk.f32.gmra.mxu3 %vm935_vm1, %v6691_v50 }
 0x66f   : > { %8272 = vmatmul.msk.f32.gmra.mxu2 %vm6427_vm0, %v6916_v52 }
 0x670   : > { %v6930_v55 = vpop.f32.mrf.mxu3 }
 0x671   : > { %v13942_v22 = vadd.f32 %v13869_v32, %v6930_v55 }
 0x676   : > { %8289 = vmatmul.msk.f32.vlgmr.msrb.gmra.mxu3 %vm6427_vm0, %v13873_v27  ;;  %v6928_v27 = vadd.f32 %v13869_v32, %v6927_v61  ;;  %v7757_v61 = vld [vmem:[%s14417_s23 + $0x40] sm:$0xff] }
 0x677   : > { %8273 = vmatmul.msk.f32.gmra.mxu2 %vm6427_vm0, %v6919_v57 }
 0x678   : > { %v6933_v42 = vpop.f32.mrf.mxu3 }
 0x679   : > { %v13948_v33 = vadd.f32 %v13869_v32, %v6933_v42 }
 0x67a   : > { %v13959_v3 = vpop.f32.mrf.mxu2 }
 0x67e   : > { %8290 = vmatmul.msk.f32.gmra.mxu3 %vm6427_vm0, %v6874_v38 }
 0x67f   : > { %8274 = vmatmul.msk.f32.gmra.mxu2 %vm6427_vm0, %v6922_v23 }
 0x680   : > { %v6936_v45 = vpop.f32.mrf.mxu3 }
 0x681   : > { %v13954_v38 = vadd.f32 %v13869_v32, %v6936_v45 }
 0x682   : > { %v13973_v63 = vpop.f32.mrf.mxu2 }
 0x686   : > { %8291 = vmatmul.msk.f32.gmra.mxu3 %vm6427_vm0, %v6877_v5 }
 0x687   : > { %8275 = vmatmul.msk.f32.gmra.mxu2 %vm6427_vm0, %v6925_v24 }
 0x688   : > { %v6939_v13 = vpop.f32.mrf.mxu3 }
 0x689   : > { %v13965_v5 = vadd.f32 %v13869_v32, %v6939_v13 }
 0x68a   : > { %v13987_v21 = vpop.f32.mrf.mxu2 }
 0x68e   : > { %8292 = vmatmul.msk.f32.gmra.mxu3 %vm6427_vm0, %v6880_v18 }
 0x68f   : > { %8276 = vmatmul.msk.f32.gmra.mxu2 %vm6427_vm0, %v6928_v27 }
 0x690   : > { %v6942_v19 = vpop.f32.mrf.mxu3 }
 0x691   : > { %v13976_v8 = vadd.f32 %v13869_v32, %v6942_v19 }
 0x692   : > { %v14006_v59 = vpop.f32.mrf.mxu2 }
 0x696   : > { %8293 = vmatmul.msk.f32.gmra.mxu3 %vm6427_vm0, %v6883_v14 }
 0x697   : > { %8277 = vmatmul.msk.f32.gmra.mxu2 %vm6427_vm0, %v13942_v22 }
 0x698   : > { %v6945_v7 = vpop.f32.mrf.mxu3 }
 0x699   : > { %v13985_v17 = vadd.f32 %v13869_v32, %v6945_v7 }
 0x69e   : > { %8294 = vmatmul.msk.f32.gmra.mxu3 %vm6427_vm0, %v6886_v15  ;;  %v7760_v15 = vld [vmem:[%s14417_s23 + $0x58] sm:$0xff] }
 0x69f   : > { %8278 = vmatmul.msk.f32.gmra.mxu2 %vm6427_vm0, %v13948_v33  ;;  %7773 = vmatpush.msrb.mxu1 %v7760_v15 }
 0x6a0   : > { %v6948_v53 = vpop.f32.mrf.mxu3 }
 0x6a1   : > { %v14003_v54 = vadd.f32 %v13869_v32, %v6948_v53 }
 0x6a6   : > { %8295 = vmatmul.msk.f32.gmra.mxu3 %vm6427_vm0, %v6889_v20  ;;  %v14021_v20 = vpop.f32.mrf.mxu2 }
 0x6a7   : > { %8279 = vmatmul.msk.f32.gmra.mxu2 %vm6427_vm0, %v13954_v38 }
 0x6a8   : > { %v6951_v43 = vpop.f32.mrf.mxu3 }
 0x6a9   : > { %v14016_v26 = vadd.f32 %v13869_v32, %v6951_v43  ;;  %v7750_v43 = vld [vmem:[%s14417_s23 + $0x8] sm:$0xff] }
 0x6ae   : > { %8296 = vmatmul.msk.f32.gmra.mxu3 %vm6427_vm0, %v6892_v58  ;;  %v7759_v58 = vld [vmem:[%s14417_s23 + $0x50] sm:$0xff] }
 0x6af   : > { %8280 = vmatmul.msk.f32.gmra.mxu2 %vm6427_vm0, %v13965_v5  ;;  %7774 = vmatpush.msrb.mxu1 %v7759_v58 }
 0x6b0   : > { %v6954_v46 = vpop.f32.mrf.mxu3 }
 0x6b1   : > { %v14029_v16 = vadd.f32 %v13869_v32, %v6954_v46  ;;  %7775 = vmatpush.msrb.mxu1 %v7758_v28 }
 0x6b3   : > { %7776 = vmatpush.msrb.mxu1 %v7757_v61 }
 0x6b6   : > { %8297 = vmatmul.msk.f32.gmra.mxu3 %vm6427_vm0, %v6895_v40  ;;  %v14038_v40 = vpop.f32.mrf.mxu2 }
 0x6b7   : > { %8281 = vmatmul.msk.f32.gmra.mxu2 %vm6427_vm0, %v13976_v8 }
 0x6b8   : > { %v6957_v30 = vpop.f32.mrf.mxu3 }
 0x6b9   : > { %v6958_v56 = vadd.f32 %v13869_v32, %v6957_v30 }
 0x6be   : > { %8298 = vmatmul.msk.f32.gmra.mxu3 %vm6427_vm0, %v6898_v25 }
 0x6bf   : > { %8282 = vmatmul.msk.f32.gmra.mxu2 %vm6427_vm0, %v13985_v17 }
 0x6c6   : > { %8299 = vmatmul.msk.f32.gmra.mxu3 %vm6427_vm0, %v6901_v34  ;;  %v14051_v34 = vpop.f32.mrf.mxu2 }
 0x6c7   : > { %8283 = vmatmul.msk.f32.gmra.mxu2 %vm6427_vm0, %v14003_v54 }
 0x6cd   : > { %v6960_v60 = vpop.f32.mrf.mxu3 }
 0x6ce   : > { %8300 = vmatmul.msk.f32.gmra.mxu3 %vm6427_vm0, %v6904_v62  ;;  %v6961_v39 = vadd.f32 %v13869_v32, %v6960_v60  ;;  %v7756_v62 = vld [vmem:[%s14417_s23 + $0x38] sm:$0xff]  ;;  %v14064_v42 = vpop.f32.mrf.mxu2 }
 0x6cf   : > { %8284 = vmatmul.msk.f32.gmra.mxu2 %vm6427_vm0, %v14016_v26  ;;  %7777 = vmatpush.msrb.mxu1 %v7756_v62 }
 0x6d6   : > { %8301 = vmatmul.msk.f32.gmra.mxu3 %vm6427_vm0, %v6907_v29 }
 0x6d7   : > { %8285 = vmatmul.msk.f32.gmra.mxu2 %vm6427_vm0, %v14029_v16 }
 0x6de   : > { %8302 = vmatmul.msk.f32.gmra.mxu3 %vm6427_vm0, %v6910_v51  ;;  %v7755_v51 = vld [vmem:[%s14417_s23 + $0x30] sm:$0xff] }
 0x6df   : > { %8286 = vmatmul.msk.f32.gmra.mxu2 %vm6427_vm0, %v6958_v56  ;;  %7778 = vmatpush.msrb.mxu1 %v7755_v51 }
 0x6e1   : > { %7779 = vmatpush.msrb.mxu1 %v7754_v9 }
 0x6e3   : > { %7780 = vmatpush.msrb.mxu1 %v7753_v48 }
 0x6e6   : > { %8303 = vmatmul.msk.f32.gmra.mxu3 %vm6427_vm0, %v6913_v10 }
 0x6e7   : > { %8287 = vmatmul.msk.f32.gmra.mxu2 %vm6427_vm0, %v6961_v39 }
 0x6ee   : > { %8304 = vmatmul.msk.f32.gmra.mxu3 %vm6427_vm0, %v6916_v52 }
 0x6f1   : > { %v6963_v18 = vpop.f32.mrf.mxu3 }
 0x6f2   : > { %v6964_v36 = vadd.f32 %v13869_v32, %v6963_v18 }
 0x6f4   : > { %8288 = vmatmul.msk.f32.gmra.mxu2 %vm6427_vm0, %v6964_v36 }
 0x6f6   : > { %8305 = vmatmul.msk.f32.gmra.mxu3 %vm6427_vm0, %v6919_v57  ;;  %v7752_v57 = vld [vmem:[%s14417_s23 + $0x18] sm:$0xff] }
 0x6f7   : > { %7781 = vmatpush.msrb.mxu1 %v7752_v57 }
 0x6f9   : > { %v7344_v49 = vpop.f32.mrf.mxu3 }
 0x6fa   : > { %v7345_v47 = vadd.f32 %v13993_v1, %v7344_v49 }
 0x6fc   : > { %8321 = vmatmul.msk.f32.vlgmr.msrb.gmra.mxu0 %vm6427_vm0, %v7345_v47 }
 0x6fe   : > { %8306 = vmatmul.msk.f32.gmra.mxu3 %vm6427_vm0, %v6922_v23 }
 0x701   : > { %v7347_v14 = vpop.f32.mrf.mxu3 }
 0x702   : > { %v7348_v4 = vadd.f32 %v13993_v1, %v7347_v14 }
 0x704   : > { %8322 = vmatmul.msk.f32.gmra.mxu0 %vm6427_vm0, %v7348_v4  ;;  %v14134_v4 = vpop.f32.mrf.mxu2 }
 0x706   : > { %8307 = vmatmul.msk.f32.gmra.mxu3 %vm6427_vm0, %v6925_v24  ;;  %v7751_v24 = vld [vmem:[%s14417_s23 + $0x10] sm:$0xff] }
 0x707   : > { %7782 = vmatpush.msrb.mxu1 %v7751_v24 }
 0x709   : > { %v7350_v11 = vpop.f32.mrf.mxu3  ;;  %7783 = vmatpush.msrb.mxu1 %v7750_v43 }
 0x70a   : > { %v7351_v0 = vadd.f32 %v13993_v1, %v7350_v11 }
 0x70c   : > { %8323 = vmatmul.msk.f32.gmra.mxu0 %vm6427_vm0, %v7351_v0 }
 0x70e   : > { %8308 = vmatmul.msk.f32.gmra.mxu3 %vm6427_vm0, %v6928_v27 }
 0x711   : > { %v7353_v41 = vpop.f32.mrf.mxu3 }
 0x712   : > { %v7354_v50 = vadd.f32 %v13993_v1, %v7353_v41  ;;  %v14139_v41 = vpop.f32.mrf.mxu2 }
 0x714   : > { %8324 = vmatmul.msk.f32.gmra.mxu0 %vm6427_vm0, %v7354_v50 }
 0x716   : > { %8309 = vmatmul.msk.f32.gmra.mxu3 %vm6427_vm0, %v13942_v22 }
 0x719   : > { %v7356_v6 = vpop.f32.mrf.mxu3 }
 0x71a   : > { %v7357_v25 = vadd.f32 %v13993_v1, %v7356_v6 }
 0x71c   : > { %8325 = vmatmul.msk.f32.gmra.mxu0 %vm6427_vm0, %v7357_v25 }
 0x71e   : > { %8310 = vmatmul.msk.f32.gmra.mxu3 %vm6427_vm0, %v13948_v33  ;;  %v7749_v33 = vld [vmem:[%s14417_s23] sm:$0xff] }
 0x71f   : > { %7784 = vmatpush.msrb.mxu1 %v7749_v33 }
 0x721   : > { %v7359_v55 = vpop.f32.mrf.mxu3 }
 0x722   : > { %v7360_v12 = vadd.f32 %v13993_v1, %v7359_v55 }
 0x724   : > { %8326 = vmatmul.msk.f32.gmra.mxu0 %vm6427_vm0, %v7360_v12 }
 0x726   : > { %8311 = vmatmul.msk.f32.gmra.mxu3 %vm6427_vm0, %v13954_v38 }
 0x729   : > { %v7362_v29 = vpop.f32.mrf.mxu3 }
 0x72a   : > { %v7363_v2 = vadd.f32 %v13993_v1, %v7362_v29 }
 0x72c   : > { %8327 = vmatmul.msk.f32.gmra.mxu0 %vm6427_vm0, %v7363_v2 }
 0x72e   : > { %8312 = vmatmul.msk.f32.gmra.mxu3 %vm6427_vm0, %v13965_v5 }
 0x731   : > { %v7365_v32 = vpop.f32.mrf.mxu3 }
 0x732   : > { %v7366_v45 = vadd.f32 %v13993_v1, %v7365_v32 }
 0x734   : > { %8328 = vmatmul.msk.f32.gmra.mxu0 %vm6427_vm0, %v7366_v45 }
 0x736   : > { %8313 = vmatmul.msk.f32.gmra.mxu3 %vm6427_vm0, %v13976_v8  ;;  %v14126_v8 = vld [vmem:[%s14416_s22] ss:$0 sm:$0xff] }
 0x739   : > { %v7368_v10 = vpop.f32.mrf.mxu3 }
 0x73a   : > { %v7369_v13 = vadd.f32 %v13993_v1, %v7368_v10 }
 0x73c   : > { %8329 = vmatmul.msk.f32.gmra.mxu0 %vm6427_vm0, %v7369_v13 }
 0x73e   : > { %8314 = vmatmul.msk.f32.gmra.mxu3 %vm6427_vm0, %v13985_v17 }
 0x741   : > { %v7371_v52 = vpop.f32.mrf.mxu3 }
 0x742   : > { %v7372_v19 = vadd.f32 %v13993_v1, %v7371_v52 }
 0x744   : > { %8330 = vmatmul.msk.f32.gmra.mxu0 %vm6427_vm0, %v7372_v19 }
 0x746   : > { %8315 = vmatmul.msk.f32.gmra.mxu3 %vm6427_vm0, %v14003_v54 }
 0x749   : > { %v7374_v23 = vpop.f32.mrf.mxu3 }
 0x74a   : > { %v7375_v7 = vadd.f32 %v13993_v1, %v7374_v23 }
 0x74c   : > { %8331 = vmatmul.msk.f32.gmra.mxu0 %vm6427_vm0, %v7375_v7 }
 0x74e   : > { %8316 = vmatmul.msk.f32.gmra.mxu3 %vm6427_vm0, %v14016_v26 }
 0x751   : > { %v7377_v53 = vpop.f32.mrf.mxu3 }
 0x752   : > { %v7378_v27 = vadd.f32 %v13993_v1, %v7377_v53 }
 0x754   : > { %8332 = vmatmul.msk.f32.gmra.mxu0 %vm6427_vm0, %v7378_v27 }
 0x756   : > { %8317 = vmatmul.msk.f32.gmra.mxu3 %vm6427_vm0, %v14029_v16 }
 0x759   : > { %v7380_v22 = vpop.f32.mrf.mxu3 }
 0x75a   : > { %v7381_v46 = vadd.f32 %v13993_v1, %v7380_v22 }
 0x75c   : > { %8333 = vmatmul.msk.f32.gmra.mxu0 %vm6427_vm0, %v7381_v46 }
 0x75e   : > { %8318 = vmatmul.msk.f32.gmra.mxu3 %vm6427_vm0, %v6958_v56 }
 0x761   : > { %v7383_v38 = vpop.f32.mrf.mxu3 }
 0x762   : > { %v7384_v30 = vadd.f32 %v13993_v1, %v7383_v38 }
 0x764   : > { %8334 = vmatmul.msk.f32.gmra.mxu0 %vm6427_vm0, %v7384_v30 }
 0x766   : > { %8319 = vmatmul.msk.f32.gmra.mxu3 %vm6427_vm0, %v6961_v39  ;;  %v14146_v39 = vpop.f32.mrf.mxu2 }
 0x769   : > { %v7386_v37 = vpop.f32.mrf.mxu3 }
 0x76a   : > { %v7387_v5 = vadd.f32 %v13993_v1, %v7386_v37 }
 0x76c   : > { %8335 = vmatmul.msk.f32.gmra.mxu0 %vm6427_vm0, %v7387_v5 }
 0x76e   : > { %8320 = vmatmul.msk.f32.gmra.mxu3 %vm6427_vm0, %v6964_v36  ;;  %v14152_v29 = vpop.f32.mrf.mxu2 }
 0x771   : > { %v7389_v60 = vpop.f32.mrf.mxu3 }
 0x772   : > { %v7390_v35 = vadd.f32 %v13993_v1, %v7389_v60 }
 0x774   : > { %8336 = vmatmul.msk.f32.gmra.mxu0 %vm6427_vm0, %v7390_v35 }
 0x776   : > { %v14157_v9 = vpop.f32.mrf.mxu2 }
 0x779   : > { %v7392_v18 = vpop.f32.mrf.mxu3  ;;  %v7653_v44 = vpop.f32.mrf.mxu0 }
 0x77a   : > { %v7393_v17 = vadd.f32 %v13993_v1, %v7392_v18  ;;  %v7654_v49 = vadd.f32 %v14126_v8, %v7653_v44 }
 0x77c   : > { %8337 = vmatmul.msk.f32.gmra.mxu0 %vm6427_vm0, %v7393_v17  ;;  %7785 = vmatmul.f32.vlgmr.msrb.gmra.mxu1 %v7654_v49 }
 0x77e   : > { %v14162_v23 = vpop.f32.mrf.mxu2 }
 0x781   : > { %v7395_v47 = vpop.f32.mrf.mxu3  ;;  %v7656_v31 = vpop.f32.mrf.mxu0 }
 0x782   : > { %v7396_v54 = vadd.f32 %v13993_v1, %v7395_v47  ;;  %v7657_v14 = vadd.f32 %v14126_v8, %v7656_v31 }
 0x784   : > { %8338 = vmatmul.msk.f32.gmra.mxu0 %vm6427_vm0, %v7396_v54  ;;  %7788 = vmatmul.f32.gmra.mxu1 %v7657_v14 }
 0x786   : > { %v14169_v46 = vpop.f32.mrf.mxu2 }
 0x789   : > { %v7398_v15 = vpop.f32.mrf.mxu3  ;;  %v7659_v26 = vpop.f32.mrf.mxu0 }
 0x78a   : > { %v7399_v11 = vadd.f32 %v13993_v1, %v7398_v15  ;;  %v7660_v0 = vadd.f32 %v14126_v8, %v7659_v26 }
 0x78c   : > { %8339 = vmatmul.msk.f32.gmra.mxu0 %vm6427_vm0, %v7399_v11  ;;  %7791 = vmatmul.f32.gmra.mxu1 %v7660_v0 }
 0x78e   : > { %v14175_v5 = vpop.f32.mrf.mxu2 }
 0x791   : > { %v7401_v58 = vpop.f32.mrf.mxu3  ;;  %v7662_v16 = vpop.f32.mrf.mxu0 }
 0x792   : > { %v7402_v50 = vadd.f32 %v13993_v1, %v7401_v58  ;;  %v7663_v28 = vadd.f32 %v14126_v8, %v7662_v16 }
 0x794   : > { %8340 = vmatmul.msk.f32.gmra.mxu0 %vm6427_vm0, %v7402_v50  ;;  %7794 = vmatmul.f32.gmra.mxu1 %v7663_v28 }
 0x796   : > { %v14180_v17 = vpop.f32.mrf.mxu2 }
 0x799   : > { %v7404_v56 = vpop.f32.mrf.mxu3  ;;  %v7665_v6 = vpop.f32.mrf.mxu0 }
 0x79a   : > { %v7405_v25 = vadd.f32 %v13993_v1, %v7404_v56  ;;  %v7666_v61 = vadd.f32 %v14126_v8, %v7665_v6 }
 0x79c   : > { %8341 = vmatmul.msk.f32.gmra.mxu0 %vm6427_vm0, %v7405_v25  ;;  %7797 = vmatmul.f32.gmra.mxu1 %v7666_v61 }
 0x79e   : > { %v14185_v26 = vpop.f32.mrf.mxu2 }
 0x7a1   : > { %v7407_v55 = vpop.f32.mrf.mxu3  ;;  %v7668_v12 = vpop.f32.mrf.mxu0 }
 0x7a2   : > { %v7408_v62 = vadd.f32 %v13993_v1, %v7407_v55  ;;  %v7669_v36 = vadd.f32 %v14126_v8, %v7668_v12  ;;  %v14201_v12 = vld [vmem:[%s14410_s16] ss:$0 sm:$0xff] }
 0x7a4   : > { %8342 = vmatmul.msk.f32.gmra.mxu0 %vm6427_vm0, %v7408_v62  ;;  %7800 = vmatmul.f32.gmra.mxu1 %v7669_v36  ;;  %v14208_v36 = vld [vmem:[%s14418_s24] ss:$0 sm:$0xff] }
 0x7a6   : > { %v14192_v56 = vpop.f32.mrf.mxu2 }
 0x7a9   : > { %v7410_v2 = vpop.f32.mrf.mxu3  ;;  %v7671_v51 = vpop.f32.mrf.mxu0 }
 0x7aa   : > { %v7411_v32 = vadd.f32 %v13993_v1, %v7410_v2  ;;  %v7672_v45 = vadd.f32 %v14126_v8, %v7671_v51 }
 0x7ac   : > { %8343 = vmatmul.msk.f32.gmra.mxu0 %vm6427_vm0, %v7411_v32  ;;  %7803 = vmatmul.f32.gmra.mxu1 %v7672_v45 }
 0x7ae   : > { %v14203_v62 = vpop.f32.mrf.mxu2 }
 0x7b1   : > { %v7413_v10 = vpop.f32.mrf.mxu3  ;;  %v7674_v13 = vpop.f32.mrf.mxu0 }
 0x7b2   : > { %v7414_v48 = vadd.f32 %v13993_v1, %v7413_v10  ;;  %v7675_v52 = vadd.f32 %v14126_v8, %v7674_v13 }
 0x7b4   : > { %8344 = vmatmul.msk.f32.gmra.mxu0 %vm6427_vm0, %v7414_v48  ;;  %7806 = vmatmul.f32.gmra.mxu1 %v7675_v52  ;;  %v7095_v52 = vadd.f32 %v14201_v12, %v13973_v63 }
 0x7b6   : > { %v14222_v13 = vpop.f32.mrf.mxu2 }
 0x7b9   : > { %v7416_v19 = vpop.f32.mrf.mxu3  ;;  %v7677_v57 = vpop.f32.mrf.mxu0 }
 0x7ba   : > { %v7417_v7 = vadd.f32 %v13993_v1, %v7416_v19  ;;  %v7678_v24 = vadd.f32 %v14126_v8, %v7677_v57 }
 0x7bc   : > { %8345 = vmatmul.msk.f32.gmra.mxu0 %vm6427_vm0, %v7417_v7  ;;  %7809 = vmatmul.f32.gmra.mxu1 %v7678_v24 }
 0x7c1   : > { %v7419_v53 = vpop.f32.mrf.mxu3  ;;  %v7680_v27 = vpop.f32.mrf.mxu0 }
 0x7c2   : > { %v7420_v43 = vadd.f32 %v13993_v1, %v7419_v53  ;;  %v7681_v22 = vadd.f32 %v14126_v8, %v7680_v27  ;;  %v7098_v27 = vadd.f32 %v14201_v12, %v13987_v21 }
 0x7c4   : > { %8346 = vmatmul.msk.f32.gmra.mxu0 %vm6427_vm0, %v7420_v43  ;;  %7812 = vmatmul.f32.gmra.mxu1 %v7681_v22  ;;  %v14231_v43 = vpop.f32.mrf.mxu2 }
 0x7c9   : > { %v7422_v33 = vpop.f32.mrf.mxu3  ;;  %v7683_v38 = vpop.f32.mrf.mxu0 }
 0x7ca   : > { %v7423_v30 = vadd.f32 %v13993_v1, %v7422_v33  ;;  %v7684_v37 = vadd.f32 %v14126_v8, %v7683_v38 }
 0x7cc   : > { %8347 = vmatmul.msk.f32.gmra.mxu0 %vm6427_vm0, %v7423_v30  ;;  %7815 = vmatmul.f32.gmra.mxu1 %v7684_v37  ;;  %v7101_v37 = vadd.f32 %v14201_v12, %v14006_v59  ;;  %v14240_v21 = vpop.f32.mrf.mxu2 }
 0x7d1   : > { %v7425_v60 = vpop.f32.mrf.mxu3  ;;  %v7686_v35 = vpop.f32.mrf.mxu0 }
 0x7d2   : > { %v7426_v18 = vadd.f32 %v13993_v1, %v7425_v60  ;;  %v7687_v44 = vadd.f32 %v14126_v8, %v7686_v35 }
 0x7d4   : > { %8348 = vmatmul.msk.f32.gmra.mxu0 %vm6427_vm0, %v7426_v18  ;;  %7818 = vmatmul.f32.gmra.mxu1 %v7687_v44 }
 0x7d9   : > { %v7428_v49 = vpop.f32.mrf.mxu3  ;;  %v7689_v47 = vpop.f32.mrf.mxu0 }
 0x7da   : > { %v7429_v31 = vadd.f32 %v13993_v1, %v7428_v49  ;;  %v7690_v54 = vadd.f32 %v14126_v8, %v7689_v47  ;;  %v7104_v47 = vadd.f32 %v14201_v12, %v14021_v20 }
 0x7dc   : > { %8349 = vmatmul.msk.f32.gmra.mxu0 %vm6427_vm0, %v7429_v31  ;;  %7821 = vmatmul.f32.gmra.mxu1 %v7690_v54 }
 0x7e1   : > { %v7431_v14 = vpop.f32.mrf.mxu3  ;;  %v7692_v15 = vpop.f32.mrf.mxu0 }
 0x7e2   : > { %v7432_v11 = vadd.f32 %v13993_v1, %v7431_v14  ;;  %v7693_v0 = vadd.f32 %v14126_v8, %v7692_v15  ;;  %v14247_v14 = vpop.f32.mrf.mxu2 }
 0x7e4   : > { %8350 = vmatmul.msk.f32.gmra.mxu0 %vm6427_vm0, %v7432_v11  ;;  %7824 = vmatmul.f32.gmra.mxu1 %v7693_v0  ;;  %v7107_v0 = vadd.f32 %v14201_v12, %v14038_v40 }
 0x7e9   : > { %v7434_v58 = vpop.f32.mrf.mxu3  ;;  %v7695_v16 = vpop.f32.mrf.mxu0 }
 0x7ea   : > { %v7435_v50 = vadd.f32 %v13993_v1, %v7434_v58  ;;  %v7696_v28 = vadd.f32 %v14126_v8, %v7695_v16 }
 0x7ec   : > { %8351 = vmatmul.msk.f32.gmra.mxu0 %vm6427_vm0, %v7435_v50  ;;  %7827 = vmatmul.f32.gmra.mxu1 %v7696_v28  ;;  %v14255_v50 = vpop.f32.mrf.mxu2 }
 0x7f1   : > { %v7437_v6 = vpop.f32.mrf.mxu3  ;;  %v7698_v25 = vpop.f32.mrf.mxu0 }
 0x7f2   : > { %v7438_v61 = vadd.f32 %v13993_v1, %v7437_v6  ;;  %v7699_v55 = vadd.f32 %v14126_v8, %v7698_v25  ;;  %v7092_v1 = vadd.f32 %v14201_v12, %v13959_v3  ;;  %v7110_v25 = vadd.f32 %v14201_v12, %v14051_v34 }
 0x7f4   : > { %8352 = vmatmul.msk.f32.vlgmr.msra.gmra.mxu2 %vm6427_vm0, %v7438_v61  ;;  %7830 = vmatmul.f32.gmra.mxu1 %v7699_v55 }
 0x7f9   : > { %v7701_v2 = vpop.f32.mrf.mxu0  ;;  %v7786_v51 = vpop.f32.mrf.mxu1 }
 0x7fa   : > { %v7702_v32 = vadd.f32 %v14126_v8, %v7701_v2  ;;  %v7787_v45 = vadd.f32 %v14208_v36, %v7786_v51 }
 0x7fc   : > { %v7914_v10 = vadd.f32 %v7787_v45, %v7092_v1  ;;  %7833 = vmatmul.f32.gmra.mxu1 %v7702_v32  ;;  %v7113_v1 = vadd.f32 %v14201_v12, %v14064_v42  ;;  %v14264_v32 = vpop.f32.mrf.mxu2 }
 0x7fe   : > { %7946 = vst [vmem:[%s14219_s4] sm:$0xff] %v7914_v10 }
 0x801   : > { %v7704_v48 = vpop.f32.mrf.mxu0  ;;  %v7789_v3 = vpop.f32.mrf.mxu1 }
 0x802   : > { %v7705_v19 = vadd.f32 %v14126_v8, %v7704_v48  ;;  %v7790_v57 = vadd.f32 %v14208_v36, %v7789_v3 }
 0x804   : > { %v7915_v7 = vadd.f32 %v7790_v57, %v7095_v52  ;;  %7836 = vmatmul.f32.gmra.mxu1 %v7705_v19  ;;  %v7116_v52 = vadd.f32 %v14201_v12, %v14134_v4  ;;  %v14273_v42 = vpop.f32.mrf.mxu2 }
 0x806   : > { %7947 = vst [vmem:[%s14219_s4 + $0x8] sm:$0xff] %v7915_v7 }
 0x809   : > { %v7707_v24 = vpop.f32.mrf.mxu0  ;;  %v7792_v53 = vpop.f32.mrf.mxu1 }
 0x80a   : > { %v7708_v22 = vadd.f32 %v14126_v8, %v7707_v24  ;;  %v7793_v33 = vadd.f32 %v14208_v36, %v7792_v53 }
 0x80c   : > { %v7916_v63 = vadd.f32 %v7793_v33, %v7098_v27  ;;  %7839 = vmatmul.f32.gmra.mxu1 %v7708_v22  ;;  %v7119_v27 = vadd.f32 %v14201_v12, %v14139_v41 }
 0x80e   : > { %7948 = vst [vmem:[%s14219_s4 + $0x10] sm:$0xff] %v7916_v63  ;;  %v14280_v63 = vpop.f32.mrf.mxu2 }
 0x811   : > { %v7710_v38 = vpop.f32.mrf.mxu0  ;;  %v7795_v30 = vpop.f32.mrf.mxu1 }
 0x812   : > { %v7711_v60 = vadd.f32 %v14126_v8, %v7710_v38  ;;  %v7796_v35 = vadd.f32 %v14208_v36, %v7795_v30 }
 0x814   : > { %v7917_v18 = vadd.f32 %v7796_v35, %v7101_v37  ;;  %7842 = vmatmul.f32.gmra.mxu1 %v7711_v60  ;;  %v7122_v37 = vadd.f32 %v14201_v12, %v14146_v39 }
 0x816   : > { %7949 = vst [vmem:[%s14219_s4 + $0x18] sm:$0xff] %v7917_v18  ;;  %v14288_v18 = vpop.f32.mrf.mxu2 }
 0x819   : > { %v7713_v44 = vpop.f32.mrf.mxu0  ;;  %v7798_v49 = vpop.f32.mrf.mxu1 }
 0x81a   : > { %v7714_v31 = vadd.f32 %v14126_v8, %v7713_v44  ;;  %v7799_v54 = vadd.f32 %v14208_v36, %v7798_v49 }
 0x81c   : > { %v7918_v59 = vadd.f32 %v7799_v54, %v7104_v47  ;;  %7845 = vmatmul.f32.gmra.mxu1 %v7714_v31  ;;  %v7125_v47 = vadd.f32 %v14201_v12, %v14152_v29 }
 0x81e   : > { %7950 = vst [vmem:[%s14219_s4 + $0x20] sm:$0xff] %v7918_v59 }
 0x821   : > { %v7716_v15 = vpop.f32.mrf.mxu0  ;;  %v7801_v11 = vpop.f32.mrf.mxu1 }
 0x822   : > { %v7717_v58 = vadd.f32 %v14126_v8, %v7716_v15  ;;  %v7802_v16 = vadd.f32 %v14208_v36, %v7801_v11  ;;  %v7128_v11 = vadd.f32 %v14201_v12, %v14157_v9 }
 0x824   : > { %v7919_v20 = vadd.f32 %v7802_v16, %v7107_v0  ;;  %7848 = vmatmul.f32.gmra.mxu1 %v7717_v58  ;;  %v14299_v16 = vpop.f32.mrf.mxu2 }
 0x826   : > { %7951 = vst [vmem:[%s14219_s4 + $0x28] sm:$0xff] %v7919_v20 }
 0x829   : > { %v7719_v28 = vpop.f32.mrf.mxu0  ;;  %v7804_v6 = vpop.f32.mrf.mxu1 }
 0x82a   : > { %v7720_v61 = vadd.f32 %v14126_v8, %v7719_v28  ;;  %v7805_v55 = vadd.f32 %v14208_v36, %v7804_v6  ;;  %v7131_v6 = vadd.f32 %v14201_v12, %v14162_v23 }
 0x82c   : > { %v7920_v40 = vadd.f32 %v7805_v55, %v7110_v25  ;;  %7851 = vmatmul.f32.gmra.mxu1 %v7720_v61  ;;  %v14306_v55 = vpop.f32.mrf.mxu2 }
 0x82e   : > { %7952 = vst [vmem:[%s14219_s4 + $0x30] sm:$0xff] %v7920_v40 }
 0x831   : > { %v7722_v2 = vpop.f32.mrf.mxu0  ;;  %v7807_v51 = vpop.f32.mrf.mxu1 }
 0x832   : > { %v7723_v45 = vadd.f32 %v14126_v8, %v7722_v2  ;;  %v7808_v10 = vadd.f32 %v14208_v36, %v7807_v51  ;;  %v7134_v51 = vadd.f32 %v14201_v12, %v14169_v46 }
 0x834   : > { %v7921_v34 = vadd.f32 %v7808_v10, %v7113_v1  ;;  %7854 = vmatmul.f32.gmra.mxu1 %v7723_v45  ;;  %v14314_v10 = vpop.f32.mrf.mxu2 }
 0x836   : > { %7953 = vst [vmem:[%s14219_s4 + $0x38] sm:$0xff] %v7921_v34 }
 0x839   : > { %v7725_v48 = vpop.f32.mrf.mxu0  ;;  %v7810_v3 = vpop.f32.mrf.mxu1 }
 0x83a   : > { %v7726_v19 = vadd.f32 %v14126_v8, %v7725_v48  ;;  %v7811_v57 = vadd.f32 %v14208_v36, %v7810_v3  ;;  %v7137_v48 = vadd.f32 %v14201_v12, %v14175_v5 }
 0x83c   : > { %v7922_v7 = vadd.f32 %v7811_v57, %v7116_v52  ;;  %7857 = vmatmul.f32.gmra.mxu1 %v7726_v19 }
 0x83e   : > { %7954 = vst [vmem:[%s14219_s4 + $0x40] sm:$0xff] %v7922_v7  ;;  %v7140_v7 = vadd.f32 %v14201_v12, %v14180_v17 }
 0x841   : > { %v7728_v24 = vpop.f32.mrf.mxu0  ;;  %v7813_v53 = vpop.f32.mrf.mxu1 }
 0x842   : > { %v7729_v22 = vadd.f32 %v14126_v8, %v7728_v24  ;;  %v7814_v33 = vadd.f32 %v14208_v36, %v7813_v53 }
 0x844   : > { %v7923_v4 = vadd.f32 %v7814_v33, %v7119_v27  ;;  %7860 = vmatmul.f32.gmra.mxu1 %v7729_v22  ;;  %v7143_v27 = vadd.f32 %v14201_v12, %v14185_v26 }
 0x846   : > { %7955 = vst [vmem:[%s14219_s4 + $0x48] sm:$0xff] %v7923_v4  ;;  %v7146_v4 = vadd.f32 %v14201_v12, %v14192_v56 }
 0x849   : > { %v7731_v38 = vpop.f32.mrf.mxu0  ;;  %v7816_v30 = vpop.f32.mrf.mxu1 }
 0x84a   : > { %v7732_v60 = vadd.f32 %v14126_v8, %v7731_v38  ;;  %v7817_v35 = vadd.f32 %v14208_v36, %v7816_v30 }
 0x84c   : > { %v7924_v41 = vadd.f32 %v7817_v35, %v7122_v37  ;;  %7863 = vmatmul.f32.gmra.mxu1 %v7732_v60  ;;  %v7149_v37 = vadd.f32 %v14201_v12, %v14203_v62 }
 0x84e   : > { %7956 = vst [vmem:[%s14219_s4 + $0x50] sm:$0xff] %v7924_v41  ;;  %v7152_v41 = vadd.f32 %v14201_v12, %v14222_v13 }
 0x851   : > { %v7734_v44 = vpop.f32.mrf.mxu0  ;;  %v7819_v49 = vpop.f32.mrf.mxu1 }
 0x852   : > { %v7735_v31 = vadd.f32 %v14126_v8, %v7734_v44  ;;  %v7820_v54 = vadd.f32 %v14208_v36, %v7819_v49 }
 0x854   : > { %v7925_v39 = vadd.f32 %v7820_v54, %v7125_v47  ;;  %7866 = vmatmul.f32.gmra.mxu1 %v7735_v31  ;;  %v7155_v47 = vadd.f32 %v14201_v12, %v14231_v43 }
 0x856   : > { %7957 = vst [vmem:[%s14219_s4 + $0x58] sm:$0xff] %v7925_v39  ;;  %v7158_v39 = vadd.f32 %v14201_v12, %v14240_v21 }
 0x859   : > { %v7737_v59 = vpop.f32.mrf.mxu0  ;;  %v7822_v15 = vpop.f32.mrf.mxu1 }
 0x85a   : > { %v7738_v0 = vadd.f32 %v14126_v8, %v7737_v59  ;;  %v7823_v58 = vadd.f32 %v14208_v36, %v7822_v15 }
 0x85c   : > { %v7926_v29 = vadd.f32 %v7823_v58, %v7128_v11  ;;  %7869 = vmatmul.f32.gmra.mxu1 %v7738_v0  ;;  %v7161_v11 = vadd.f32 %v14201_v12, %v14247_v14 }
 0x85e   : > { %7958 = vst [vmem:[%s14219_s4 + $0x60] sm:$0xff] %v7926_v29  ;;  %v7164_v29 = vadd.f32 %v14201_v12, %v14255_v50 }
 0x861   : > { %v7740_v20 = vpop.f32.mrf.mxu0  ;;  %v7825_v28 = vpop.f32.mrf.mxu1 }
 0x862   : > { %v7741_v25 = vadd.f32 %v14126_v8, %v7740_v20  ;;  %v7826_v61 = vadd.f32 %v14208_v36, %v7825_v28 }
 0x864   : > { %v7927_v9 = vadd.f32 %v7826_v61, %v7131_v6  ;;  %7872 = vmatmul.f32.gmra.mxu1 %v7741_v25  ;;  %v7167_v6 = vadd.f32 %v14201_v12, %v14264_v32 }
 0x866   : > { %7959 = vst [vmem:[%s14219_s4 + $0x68] sm:$0xff] %v7927_v9  ;;  %v7170_v9 = vadd.f32 %v14201_v12, %v14273_v42 }
 0x869   : > { %v7743_v40 = vpop.f32.mrf.mxu0  ;;  %v7828_v2 = vpop.f32.mrf.mxu1 }
 0x86a   : > { %v7744_v1 = vadd.f32 %v14126_v8, %v7743_v40  ;;  %v7829_v45 = vadd.f32 %v14208_v36, %v7828_v2 }
 0x86c   : > { %v7928_v23 = vadd.f32 %v7829_v45, %v7134_v51  ;;  %7875 = vmatmul.f32.gmra.mxu1 %v7744_v1  ;;  %v7173_v51 = vadd.f32 %v14201_v12, %v14280_v63 }
 0x86e   : > { %7960 = vst [vmem:[%s14219_s4 + $0x70] sm:$0xff] %v7928_v23  ;;  %v7176_v23 = vadd.f32 %v14201_v12, %v14288_v18 }
 0x871   : > { %v7831_v34 = vpop.f32.mrf.mxu1 }
 0x872   : > { %v7832_v3 = vadd.f32 %v14208_v36, %v7831_v34 }
 0x874   : > { %v7929_v52 = vadd.f32 %v7832_v3, %v7137_v48  ;;  %v7179_v3 = vadd.f32 %v14201_v12, %v14299_v16 }
 0x876   : > { %7961 = vst [vmem:[%s14219_s4 + $0x78] sm:$0xff] %v7929_v52 }
 0x877   : > { %v7746_v46 = vpop.f32.mrf.mxu2 }
 0x878   : > { %v7747_v19 = vadd.f32 %v14126_v8, %v7746_v46 }
 0x879   : > { %v7834_v57 = vpop.f32.mrf.mxu1 }
 0x87a   : > { %v7835_v24 = vadd.f32 %v14208_v36, %v7834_v57  ;;  %7878 = vmatmul.f32.gmra.mxu1 %v7747_v19  ;;  %v7182_v19 = vadd.f32 %v14201_v12, %v14306_v55 }
 0x87c   : > { %v7930_v53 = vadd.f32 %v7835_v24, %v7140_v7  ;;  %v7185_v24 = vadd.f32 %v14201_v12, %v14314_v10 }
 0x87e   : > { %7962 = vst [vmem:[%s14219_s4 + $0x80] sm:$0xff] %v7930_v53 }
 0x881   : > { %v7837_v5 = vpop.f32.mrf.mxu1 }
 0x882   : > { %v7838_v22 = vadd.f32 %v14208_v36, %v7837_v5 }
 0x884   : > { %v7931_v33 = vadd.f32 %v7838_v22, %v7143_v27 }
 0x886   : > { %7963 = vst [vmem:[%s14219_s4 + $0x88] sm:$0xff] %v7931_v33 }
 0x889   : > { %v7840_v8 = vpop.f32.mrf.mxu1 }
 0x88a   : > { %v7841_v17 = vadd.f32 %v14208_v36, %v7840_v8 }
 0x88c   : > { %v7932_v38 = vadd.f32 %v7841_v17, %v7146_v4 }
 0x88e   : > { %7964 = vst [vmem:[%s14219_s4 + $0x90] sm:$0xff] %v7932_v38 }
 0x891   : > { %v7843_v30 = vpop.f32.mrf.mxu1 }
 0x892   : > { %v7844_v26 = vadd.f32 %v14208_v36, %v7843_v30 }
 0x894   : > { %v7933_v60 = vadd.f32 %v7844_v26, %v7149_v37 }
 0x896   : > { %7965 = vst [vmem:[%s14219_s4 + $0x98] sm:$0xff] %v7933_v60 }
 0x899   : > { %v7846_v35 = vpop.f32.mrf.mxu1 }
 0x89a   : > { %v7847_v56 = vadd.f32 %v14208_v36, %v7846_v35 }
 0x89c   : > { %v7934_v44 = vadd.f32 %v7847_v56, %v7152_v41 }
 0x89e   : > { %7966 = vst [vmem:[%s14219_s4 + $0xa0] sm:$0xff] %v7934_v44 }
 0x8a1   : > { %v7849_v49 = vpop.f32.mrf.mxu1 }
 0x8a2   : > { %v7850_v62 = vadd.f32 %v14208_v36, %v7849_v49 }
 0x8a4   : > { %v7935_v31 = vadd.f32 %v7850_v62, %v7155_v47 }
 0x8a6   : > { %7967 = vst [vmem:[%s14219_s4 + $0xa8] sm:$0xff] %v7935_v31 }
 0x8a9   : > { %v7852_v54 = vpop.f32.mrf.mxu1 }
 0x8aa   : > { %v7853_v13 = vadd.f32 %v14208_v36, %v7852_v54 }
 0x8ac   : > { %v7936_v59 = vadd.f32 %v7853_v13, %v7158_v39 }
 0x8ae   : > { %7968 = vst [vmem:[%s14219_s4 + $0xb0] sm:$0xff] %v7936_v59 }
 0x8b1   : > { %v7855_v15 = vpop.f32.mrf.mxu1 }
 0x8b2   : > { %v7856_v43 = vadd.f32 %v14208_v36, %v7855_v15 }
 0x8b4   : > { %v7937_v0 = vadd.f32 %v7856_v43, %v7161_v11 }
 0x8b6   : > { %7969 = vst [vmem:[%s14219_s4 + $0xb8] sm:$0xff] %v7937_v0 }
 0x8b9   : > { %v7858_v58 = vpop.f32.mrf.mxu1 }
 0x8ba   : > { %v7859_v21 = vadd.f32 %v14208_v36, %v7858_v58 }
 0x8bc   : > { %v7938_v20 = vadd.f32 %v7859_v21, %v7164_v29 }
 0x8be   : > { %7970 = vst [vmem:[%s14219_s4 + $0xc0] sm:$0xff] %v7938_v20 }
 0x8c1   : > { %v7861_v28 = vpop.f32.mrf.mxu1 }
 0x8c2   : > { %v7862_v14 = vadd.f32 %v14208_v36, %v7861_v28 }
 0x8c4   : > { %v7939_v25 = vadd.f32 %v7862_v14, %v7167_v6 }
 0x8c6   : > { %7971 = vst [vmem:[%s14219_s4 + $0xc8] sm:$0xff] %v7939_v25 }
 0x8c9   : > { %v7864_v61 = vpop.f32.mrf.mxu1 }
 0x8ca   : > { %v7865_v50 = vadd.f32 %v14208_v36, %v7864_v61 }
 0x8cc   : > { %v7940_v40 = vadd.f32 %v7865_v50, %v7170_v9 }
 0x8ce   : > { %7972 = vst [vmem:[%s14219_s4 + $0xd0] sm:$0xff] %v7940_v40 }
 0x8d1   : > { %v7867_v2 = vpop.f32.mrf.mxu1 }
 0x8d2   : > { %v7868_v32 = vadd.f32 %v14208_v36, %v7867_v2 }
 0x8d4   : > { %v7941_v1 = vadd.f32 %v7868_v32, %v7173_v51 }
 0x8d6   : > { %7973 = vst [vmem:[%s14219_s4 + $0xd8] sm:$0xff] %v7941_v1 }
 0x8d9   : > { %v7870_v45 = vpop.f32.mrf.mxu1 }
 0x8da   : > { %v7871_v42 = vadd.f32 %v14208_v36, %v7870_v45 }
 0x8dc   : > { %v7942_v34 = vadd.f32 %v7871_v42, %v7176_v23 }
 0x8de   : > { %7974 = vst [vmem:[%s14219_s4 + $0xe0] sm:$0xff] %v7942_v34 }
 0x8e1   : > { %v7873_v48 = vpop.f32.mrf.mxu1 }
 0x8e2   : > { %v7874_v63 = vadd.f32 %v14208_v36, %v7873_v48 }
 0x8e4   : > { %v7943_v52 = vadd.f32 %v7874_v63, %v7179_v3 }
 0x8e6   : > { %7975 = vst [vmem:[%s14219_s4 + $0xe8] sm:$0xff] %v7943_v52 }
 0x8e9   : > { %v7876_v46 = vpop.f32.mrf.mxu1 }
 0x8ea   : > { %v7877_v57 = vadd.f32 %v14208_v36, %v7876_v46 }
 0x8ec   : > { %v7944_v18 = vadd.f32 %v7877_v57, %v7182_v19 }
 0x8ee   : > { %7976 = vst [vmem:[%s14219_s4 + $0xf0] sm:$0xff] %v7944_v18 }
 0x8f7   : > { %v7879_v7 = vpop.f32.mrf.mxu1 }
 0x8f8   : > { %v7880_v53 = vadd.f32 %v14208_v36, %v7879_v7 }
 0x8fa   : > { %v7945_v5 = vadd.f32 %v7880_v53, %v7185_v24 }
 0x8fc   : > { %7977 = vst [vmem:[%s14219_s4 + $0xf8] sm:$0xff] %v7945_v5 }
 0x8fd PF: > { %s14835_s29 = sld [smem:[#allocation3_spill]] }
 0x8fe   : > { %s14837_s2 = sld [smem:[#allocation4_spill]] }
 0x903   : > { %s35_s6 = sadd.s32 1, %s14835_s29   ;;  %s14836_s29 = sld [smem:[#allocation2_spill]] }
 0x904   : > { %p32_p5 = scmp.ge.s32.totalorder %s35_s6, 4  }
 0x906   :  { %34 = sbr.rel (!%p32_p5) target bundleno = 12 (0xc), region = 156 }

</bundles_post_ra>
